<compile_context>
chip_gen: v7x
topology: tpu7x:2x2x1
jax: 0.10.0
libtpu: 0.0.40
codegen_flags: <defaults>
</compile_context>

<pallas_src>
import functools

import jax
import jax.numpy as jnp
from jax import lax
from jax.experimental import pallas as pl
from jax.experimental.pallas import tpu as pltpu

N, C, H, W = 1, 128, 28, 28
WP = 32                      # padded row stride (28 data cols + 4 zero cols)
MP = H * WP                  # 896 flat pixel rows in the stride-32 layout
HALO = 32                    # one padded image row of halo above/below
ROWS = MP + 2 * HALO         # 960 rows in the kw-packed bf16 conv scratch
EPS = 1e-5
INV_COUNT = 1.0 / (N * H * W)    # 1/784 real pixels

# Wide-RHS (N=384) matmul fills the 256-wide MXU on v6e/v7x; on v5e's 128-wide
# MXU keep the three narrow (N=128) matmuls.
try:
    _KIND = jax.devices()[0].device_kind.lower()
except Exception:  # pragma: no cover - fall back to the newer-chip path
    _KIND = ""
USE_WIDE_RHS = "v5" not in _KIND


def bn_add_relu_conv3x3_kernel(wide, x_ref, r_ref, gamma_ref, beta_ref, w_ref,
                               o_ref, apack_ref, y_ref=None):
    # ---- BatchNorm2d, one-pass batch statistics (pad columns are zero, so
    #      sums over the 896 padded rows equal sums over the 784 pixels) ----
    x = x_ref[...]                                       # (MP, C) f32
    s1 = jnp.sum(x, axis=0, keepdims=True)               # (1, C)
    s2 = jnp.sum(x * x, axis=0, keepdims=True)           # (1, C)
    mean = s1 * INV_COUNT
    var = s2 * INV_COUNT - mean * mean                   # biased batch variance
    scale = gamma_ref[...] * lax.rsqrt(var + EPS)        # (1, C)
    shift = beta_ref[...] - mean * scale                 # (1, C)

    # ---- BN + residual add + ReLU (f32), then re-zero the 4 pad columns
    #      BEFORE the rolls (keeps the roll wrap rows zero where it matters) --
    a = jnp.maximum(x * scale + shift + r_ref[...], 0.0)
    col = lax.broadcasted_iota(jnp.int32, (MP, 1), 0) % WP
    a = jnp.where(col < W, a, 0.0)                       # (MP, C) f32

    # ---- kw shifts via XLU roll (no staging scratch, no misaligned loads).
    #      a_l[p] = a[p-1]; wrap row 0 reads a[MP-1] which is a zeroed pad col.
    #      a_r[p] = a[p+1]; wrap row MP-1 only feeds discarded pad output rows.
    a_l = pltpu.roll(a, shift=1, axis=0)                 # x[p-1]  (kw = 0)
    a_r = pltpu.roll(a, shift=MP - 1, axis=0)            # x[p+1]  (kw = 2)
    ab_l = a_l.astype(jnp.bfloat16)
    ab_c = a.astype(jnp.bfloat16)
    ab_r = a_r.astype(jnp.bfloat16)

    # ---- kw-packed bf16 conv operand:
    #      apack[HALO + p, kw*C + c] = x[p + (kw - 1), c], zero halo rows.
    #      All bf16 stores are sublane/lane aligned. ----
    apack_ref[0:HALO, :] = jnp.zeros((HALO, 3 * C), jnp.bfloat16)
    apack_ref[HALO + MP:ROWS, :] = jnp.zeros((HALO, 3 * C), jnp.bfloat16)
    apack_ref[HALO:HALO + MP, 0:C] = ab_l
    apack_ref[HALO:HALO + MP, C:2 * C] = ab_c
    apack_ref[HALO:HALO + MP, 2 * C:3 * C] = ab_r

    if wide:
        # ---- v6e/v7x: one wide matmul (M=960, K=384, N=384), bf16 in / f32
        #      acc, then three sublane/lane-aligned f32 slice-adds. ----
        y_ref[...] = jnp.dot(apack_ref[...], w_ref[...],
                             preferred_element_type=jnp.float32)
        o_ref[...] = (y_ref[0:MP, 0:C]
                      + y_ref[HALO:HALO + MP, C:2 * C]
                      + y_ref[2 * HALO:2 * HALO + MP, 2 * C:3 * C])
    else:
        # ---- v5e: three (896, 384) @ (384, 128) matmuls, local f32 acc ----
        acc = jnp.dot(apack_ref[0:MP, :], w_ref[:, 0:C],
                      preferred_element_type=jnp.float32)
        acc = acc + jnp.dot(apack_ref[HALO:HALO + MP, :], w_ref[:, C:2 * C],
                            preferred_element_type=jnp.float32)
        acc = acc + jnp.dot(apack_ref[2 * HALO:2 * HALO + MP, :],
                            w_ref[:, 2 * C:3 * C],
                            preferred_element_type=jnp.float32)
        o_ref[...] = acc


@jax.jit
def forward(x29, x32, gamma, beta, w_oihw):
    """x29, x32: (1, C, H, W) f32 NCHW.  w_oihw: (C, C, 3, 3).  Returns NCHW."""

    def to_flat(t):
        t = jnp.transpose(t, (0, 2, 3, 1)).astype(jnp.float32)   # NHWC
        t = jnp.pad(t, ((0, 0), (0, 0), (0, WP - W), (0, 0)))    # W: 28 -> 32
        return t.reshape(MP, C)

    x = to_flat(x29)
    r = to_flat(x32)
    # OIHW -> wide packed weight W_all[kw*Cin + ci, kh*Cout + co], bf16 for MXU
    w_wide = jnp.transpose(w_oihw, (3, 1, 2, 0)).reshape(3 * C, 3 * C)
    w_wide = w_wide.astype(jnp.bfloat16)
    g2 = gamma.reshape(1, C).astype(jnp.float32)
    b2 = beta.reshape(1, C).astype(jnp.float32)

    scratch = [pltpu.VMEM((ROWS, 3 * C), jnp.bfloat16)]
    if USE_WIDE_RHS:
        scratch.append(pltpu.VMEM((ROWS, 3 * C), jnp.float32))

    out_flat = pl.pallas_call(
        functools.partial(bn_add_relu_conv3x3_kernel, USE_WIDE_RHS),
        out_shape=jax.ShapeDtypeStruct((MP, C), jnp.float32),
        in_specs=[pl.BlockSpec(memory_space=pltpu.MemorySpace.VMEM)] * 5,
        out_specs=pl.BlockSpec(memory_space=pltpu.MemorySpace.VMEM),
        scratch_shapes=scratch,
        compiler_params=pltpu.CompilerParams(
            allow_input_fusion=[True, True, True, True, True]),
    )(x, r, g2, b2, w_wide)

    out = out_flat.reshape(N, H, WP, C)[:, :, :W, :]
    return jnp.transpose(out, (0, 3, 1, 2))


def reference(x29, x32, gamma, beta, w_oihw):
    mean = jnp.mean(x29, axis=(0, 2, 3))
    var = jnp.mean((x29 - mean[None, :, None, None]) ** 2, axis=(0, 2, 3))
    xn = (x29 - mean[None, :, None, None]) * lax.rsqrt(var + EPS)[None, :, None, None]
    xn = xn * gamma[None, :, None, None] + beta[None, :, None, None]
    a = jnp.maximum(xn + x32, 0.0)
    return lax.conv_general_dilated(
        a, w_oihw, window_strides=(1, 1), padding=((1, 1), (1, 1)),
        dimension_numbers=('NCHW', 'OIHW', 'NCHW'))


if __name__ == "__main__":
    key = jax.random.PRNGKey(0)
    k1, k2, k3, k4, k5 = jax.random.split(key, 5)

    x29 = jax.random.normal(k1, (N, C, H, W), jnp.float32)
    x32 = jax.random.normal(k2, (N, C, H, W), jnp.float32)
    gamma = jax.random.uniform(k3, (C,), jnp.float32, 0.5, 1.5)
    beta = 0.1 * jax.random.normal(k4, (C,), jnp.float32)
    w_oihw = jax.random.normal(k5, (C, C, 3, 3), jnp.float32) / jnp.sqrt(C * 9.0)

    out = jax.block_until_ready(forward(x29, x32, gamma, beta, w_oihw))
    ref = jax.block_until_ready(reference(x29, x32, gamma, beta, w_oihw))

    assert out.shape == (N, C, H, W), out.shape
    assert jnp.allclose(out, ref, rtol=3e-2, atol=3e-2), (
        float(jnp.max(jnp.abs(out - ref))))
    # TODO(synk): BatchNorm2d running_mean/running_var (momentum) updates are a
    # training side effect not returned by forward(); they are not computed.
    print("KERNEL_OK")
</pallas_src>

<mosaic_0001>
module attributes {stable_mosaic.version = 11 : i64} {
  func.func @bn_add_relu_conv3x3_kernel(%arg0: memref<896x128xf32, #tpu.memory_space<vmem>>, %arg1: memref<896x128xf32, #tpu.memory_space<vmem>>, %arg2: memref<1x128xf32, #tpu.memory_space<vmem>>, %arg3: memref<1x128xf32, #tpu.memory_space<vmem>>, %arg4: memref<384x384xbf16, #tpu.memory_space<vmem>>, %arg5: memref<896x128xf32, #tpu.memory_space<vmem>>, %arg6: memref<960x384xbf16, #tpu.memory_space<vmem>>, %arg7: memref<960x384xf32, #tpu.memory_space<vmem>>) attributes {dimension_semantics = [], scalar_prefetch = 0 : i64, scratch_operands = 2 : i64, tpu.core_type = #tpu.core_type<tc>} {
    %c0 = arith.constant 0 : index
    %c0_0 = arith.constant 0 : index
    %0 = vector.load %arg0[%c0, %c0_0] : memref<896x128xf32, #tpu.memory_space<vmem>>, vector<896x128xf32>
    %cst = arith.constant dense<0.000000e+00> : vector<128xf32>
    %1 = vector.multi_reduction <add>, %0, %cst [0] : vector<896x128xf32> to vector<128xf32>
    %2 = vector.shape_cast %1 : vector<128xf32> to vector<1x128xf32>
    %3 = arith.mulf %0, %0 : vector<896x128xf32>
    %cst_1 = arith.constant dense<0.000000e+00> : vector<128xf32>
    %4 = vector.multi_reduction <add>, %3, %cst_1 [0] : vector<896x128xf32> to vector<128xf32>
    %5 = vector.shape_cast %4 : vector<128xf32> to vector<1x128xf32>
    %cst_2 = arith.constant 0.00127551018 : f32
    %6 = vector.broadcast %cst_2 : f32 to vector<1x128xf32>
    %7 = arith.mulf %2, %6 : vector<1x128xf32>
    %cst_3 = arith.constant 0.00127551018 : f32
    %8 = vector.broadcast %cst_3 : f32 to vector<1x128xf32>
    %9 = arith.mulf %5, %8 : vector<1x128xf32>
    %10 = arith.mulf %7, %7 : vector<1x128xf32>
    %11 = arith.subf %9, %10 : vector<1x128xf32>
    %c0_4 = arith.constant 0 : index
    %c0_5 = arith.constant 0 : index
    %12 = vector.load %arg2[%c0_4, %c0_5] : memref<1x128xf32, #tpu.memory_space<vmem>>, vector<1x128xf32>
    %cst_6 = arith.constant 9.99999974E-6 : f32
    %13 = vector.broadcast %cst_6 : f32 to vector<1x128xf32>
    %14 = arith.addf %11, %13 : vector<1x128xf32>
    %15 = math.rsqrt %14 : vector<1x128xf32>
    %16 = arith.mulf %12, %15 : vector<1x128xf32>
    %c0_7 = arith.constant 0 : index
    %c0_8 = arith.constant 0 : index
    %17 = vector.load %arg3[%c0_7, %c0_8] : memref<1x128xf32, #tpu.memory_space<vmem>>, vector<1x128xf32>
    %18 = arith.mulf %7, %16 : vector<1x128xf32>
    %19 = arith.subf %17, %18 : vector<1x128xf32>
    %20 = vector.broadcast %16 : vector<1x128xf32> to vector<896x128xf32>
    %21 = arith.mulf %0, %20 : vector<896x128xf32>
    %22 = vector.broadcast %19 : vector<1x128xf32> to vector<896x128xf32>
    %23 = arith.addf %21, %22 : vector<896x128xf32>
    %c0_9 = arith.constant 0 : index
    %c0_10 = arith.constant 0 : index
    %24 = vector.load %arg1[%c0_9, %c0_10] : memref<896x128xf32, #tpu.memory_space<vmem>>, vector<896x128xf32>
    %25 = arith.addf %23, %24 : vector<896x128xf32>
    %cst_11 = arith.constant 0.000000e+00 : f32
    %26 = vector.broadcast %cst_11 : f32 to vector<896x128xf32>
    %27 = arith.maximumf %25, %26 : vector<896x128xf32>
    %28 = tpu.iota {dimensions = array<i32: 0>} : vector<896x1xi32>
    %c32_i32 = arith.constant 32 : i32
    %c0_i32 = arith.constant 0 : i32
    %29 = arith.cmpi eq, %c32_i32, %c0_i32 : i32
    %c1_i32 = arith.constant 1 : i32
    %30 = arith.select %29, %c1_i32, %c32_i32 : i32
    %31 = vector.broadcast %30 : i32 to vector<896x1xi32>
    %32 = arith.remsi %28, %31 : vector<896x1xi32>
    %c0_i32_12 = arith.constant 0 : i32
    %33 = vector.broadcast %c0_i32_12 : i32 to vector<896x1xi32>
    %34 = arith.cmpi ne, %32, %33 : vector<896x1xi32>
    %c0_i32_13 = arith.constant 0 : i32
    %35 = vector.broadcast %c0_i32_13 : i32 to vector<896x1xi32>
    %36 = arith.cmpi slt, %32, %35 : vector<896x1xi32>
    %c0_i32_14 = arith.constant 0 : i32
    %37 = arith.cmpi slt, %30, %c0_i32_14 : i32
    %38 = vector.broadcast %37 : i1 to vector<896x1xi1>
    %39 = vector.broadcast %38 : vector<896x1xi1> to vector<896x1xi1>
    %40 = arith.xori %36, %39 : vector<896x1xi1>
    %41 = arith.andi %40, %34 : vector<896x1xi1>
    %42 = vector.broadcast %30 : i32 to vector<896x1xi32>
    %43 = arith.addi %32, %42 : vector<896x1xi32>
    %44 = arith.select %41, %43, %32 : vector<896x1xi1>, vector<896x1xi32>
    %c28_i32 = arith.constant 28 : i32
    %45 = vector.broadcast %c28_i32 : i32 to vector<896x1xi32>
    %46 = arith.cmpi slt, %44, %45 : vector<896x1xi32>
    %cst_15 = arith.constant 0.000000e+00 : f32
    %47 = vector.shape_cast %46 : vector<896x1xi1> to vector<896x1xi1>
    %48 = vector.broadcast %47 : vector<896x1xi1> to vector<896x128xi1>
    %49 = vector.broadcast %cst_15 : f32 to vector<896x128xf32>
    %50 = arith.select %48, %27, %49 : vector<896x128xi1>, vector<896x128xf32>
    %c1_i32_16 = arith.constant 1 : i32
    %51 = tpu.dynamic_rotate %50 by %c1_i32_16 dim 0 : vector<896x128xf32>, i32 -> vector<896x128xf32>
    %c895_i32 = arith.constant 895 : i32
    %52 = tpu.dynamic_rotate %50 by %c895_i32 dim 0 : vector<896x128xf32>, i32 -> vector<896x128xf32>
    %53 = arith.truncf %51 : vector<896x128xf32> to vector<896x128xbf16>
    %54 = arith.truncf %50 : vector<896x128xf32> to vector<896x128xbf16>
    %55 = arith.truncf %52 : vector<896x128xf32> to vector<896x128xbf16>
    %cst_17 = arith.constant 0.000000e+00 : bf16
    %56 = vector.broadcast %cst_17 : bf16 to vector<32x384xbf16>
    %c0_18 = arith.constant 0 : index
    %c0_19 = arith.constant 0 : index
    %57 = vector.load %arg6[%c0_18, %c0_19] : memref<960x384xbf16, #tpu.memory_space<vmem>>, vector<32x384xbf16>
    tpu.vector_store %arg6[%c0_18, %c0_19], %56 {strides = array<i32>} : memref<960x384xbf16, #tpu.memory_space<vmem>>, vector<32x384xbf16>,
    %cst_20 = arith.constant 0.000000e+00 : bf16
    %58 = vector.broadcast %cst_20 : bf16 to vector<32x384xbf16>
    %c928 = arith.constant 928 : index
    %c0_21 = arith.constant 0 : index
    %59 = vector.load %arg6[%c928, %c0_21] : memref<960x384xbf16, #tpu.memory_space<vmem>>, vector<32x384xbf16>
    tpu.vector_store %arg6[%c928, %c0_21], %58 {strides = array<i32>} : memref<960x384xbf16, #tpu.memory_space<vmem>>, vector<32x384xbf16>,
    %c32 = arith.constant 32 : index
    %c0_22 = arith.constant 0 : index
    %60 = vector.load %arg6[%c32, %c0_22] : memref<960x384xbf16, #tpu.memory_space<vmem>>, vector<896x128xbf16>
    tpu.vector_store %arg6[%c32, %c0_22], %53 {strides = array<i32>} : memref<960x384xbf16, #tpu.memory_space<vmem>>, vector<896x128xbf16>,
    %c32_23 = arith.constant 32 : index
    %c128 = arith.constant 128 : index
    %61 = vector.load %arg6[%c32_23, %c128] : memref<960x384xbf16, #tpu.memory_space<vmem>>, vector<896x128xbf16>
    tpu.vector_store %arg6[%c32_23, %c128], %54 {strides = array<i32>} : memref<960x384xbf16, #tpu.memory_space<vmem>>, vector<896x128xbf16>,
    %c32_24 = arith.constant 32 : index
    %c256 = arith.constant 256 : index
    %62 = vector.load %arg6[%c32_24, %c256] : memref<960x384xbf16, #tpu.memory_space<vmem>>, vector<896x128xbf16>
    tpu.vector_store %arg6[%c32_24, %c256], %55 {strides = array<i32>} : memref<960x384xbf16, #tpu.memory_space<vmem>>, vector<896x128xbf16>,
    %c0_25 = arith.constant 0 : index
    %c0_26 = arith.constant 0 : index
    %63 = vector.load %arg6[%c0_25, %c0_26] : memref<960x384xbf16, #tpu.memory_space<vmem>>, vector<960x384xbf16>
    %c0_27 = arith.constant 0 : index
    %c0_28 = arith.constant 0 : index
    %64 = vector.load %arg4[%c0_27, %c0_28] : memref<384x384xbf16, #tpu.memory_space<vmem>>, vector<384x384xbf16>
    %cst_29 = arith.constant dense<0.000000e+00> : vector<960x384xf32>
    %65 = tpu.matmul %63, %64, %cst_29 {dimension_numbers = #tpu.dot_dimension_numbers<[1], [0], [0], [1], [0, 0, 1, 1], [], []>} : vector<960x384xbf16>, vector<384x384xbf16>, vector<960x384xf32> -> vector<960x384xf32>
    %c0_30 = arith.constant 0 : index
    %c0_31 = arith.constant 0 : index
    %66 = vector.load %arg7[%c0_30, %c0_31] : memref<960x384xf32, #tpu.memory_space<vmem>>, vector<960x384xf32>
    tpu.vector_store %arg7[%c0_30, %c0_31], %65 {strides = array<i32>} : memref<960x384xf32, #tpu.memory_space<vmem>>, vector<960x384xf32>,
    %c0_32 = arith.constant 0 : index
    %c0_33 = arith.constant 0 : index
    %67 = vector.load %arg7[%c0_32, %c0_33] : memref<960x384xf32, #tpu.memory_space<vmem>>, vector<896x128xf32>
    %c32_34 = arith.constant 32 : index
    %c128_35 = arith.constant 128 : index
    %68 = vector.load %arg7[%c32_34, %c128_35] : memref<960x384xf32, #tpu.memory_space<vmem>>, vector<896x128xf32>
    %69 = arith.addf %67, %68 : vector<896x128xf32>
    %c64 = arith.constant 64 : index
    %c256_36 = arith.constant 256 : index
    %70 = vector.load %arg7[%c64, %c256_36] : memref<960x384xf32, #tpu.memory_space<vmem>>, vector<896x128xf32>
    %71 = arith.addf %69, %70 : vector<896x128xf32>
    %c0_37 = arith.constant 0 : index
    %c0_38 = arith.constant 0 : index
    %72 = vector.load %arg5[%c0_37, %c0_38] : memref<896x128xf32, #tpu.memory_space<vmem>>, vector<896x128xf32>
    tpu.vector_store %arg5[%c0_37, %c0_38], %71 {strides = array<i32>} : memref<896x128xf32, #tpu.memory_space<vmem>>, vector<896x128xf32>,
    return
  }
}

</mosaic_0001>

<bundles_post_ra>
// kernel: forward.2
= control target key start
LH: loop header
LB: loop body
LE: loop exit
PB: predicated region body
PF: predicated region fallthrough
CT: control target
= control target key end

     0   :  { %v15569_v2 = vmov 0   ;;  %vm15656_vm6 = vmmov 1   ;;  %s15554_s0 = inlined_call_operand.vmem [shape: f32[896,128], index: 0, kind: input, shape index: {}]   ;;  %s15555_s1 = inlined_call_operand.vmem [shape: f32[896,128], index: 1, kind: input, shape index: {}]   ;;  %s15556_s2 = inlined_call_operand.vmem [shape: bf16[48,8,3,128], index: 2, kind: input, shape index: {}]   ;;  %s15557_s3 = inlined_call_operand.vmem [shape: f32[128], index: 3, kind: input, shape index: {}]   ;;  %s15558_s4 = inlined_call_operand.vmem [shape: f32[128], index: 4, kind: input, shape index: {}]   ;;  %s15559_s5 = inlined_call_operand.vmem [shape: f32[896,128], index: 5, kind: output, shape index: {}]  }
   0x1   :  { %v26_v0 = vld [vmem:[%s15556_s2] sm:$0xff]   ;;  %v10168_v1 = vld [vmem:[%s15556_s2 + $0x8] sm:$0xff]   ;;  %5613 = vmatprep.mubr.bf16.mxu0 %v15569_v2  ;;  %6676 = vmatprep.mubr.bf16.mxu1 %v15569_v2  ;;  %v10169_v3 = vld [vmem:[%s15556_s2 + $0x10] sm:$0xff]  }
   0x2   :  { %31 = vst [vmem:[#allocation6] sm:$0xff] %v26_v0   ;;  %9128 = vst [vmem:[#allocation6 + $0x8] sm:$0xff] %v10168_v1   ;;  %v10173_v4 = vld [vmem:[%s15556_s2 + $0x18] sm:$0xff]   ;;  %v10174_v5 = vld [vmem:[%s15556_s2 + $0x20] sm:$0xff]  }
   0x3   :  { %9133 = vst [vmem:[#allocation6 + $0x10] sm:$0xff] %v10169_v3   ;;  %v10175_v6 = vld [vmem:[%s15556_s2 + $0x28] sm:$0xff]   ;;  %9143 = vst [vmem:[#allocation6 + $0x20] sm:$0xff] %v10174_v5   ;;  %v10176_v7 = vld [vmem:[%s15556_s2 + $0x30] sm:$0xff]  }
   0x4   :  { %9148 = vst [vmem:[#allocation6 + $0x28] sm:$0xff] %v10175_v6   ;;  %v10177_v8 = vld [vmem:[%s15556_s2 + $0x38] sm:$0xff]   ;;  %v10178_v9 = vld [vmem:[%s15556_s2 + $0x40] sm:$0xff]   ;;  %v10179_v10 = vld [vmem:[%s15556_s2 + $0x48] sm:$0xff]  }
   0x5   :  { %9158 = vst [vmem:[#allocation6 + $0x38] sm:$0xff] %v10177_v8   ;;  %9163 = vst [vmem:[#allocation6 + $0x40] sm:$0xff] %v10178_v9   ;;  %v10180_v11 = vld [vmem:[%s15556_s2 + $0x50] sm:$0xff]   ;;  %v10181_v14 = vld [vmem:[%s15556_s2 + $0x58] sm:$0xff]  }
   0x6   :  { %9173 = vst [vmem:[#allocation6 + $0x50] sm:$0xff] %v10180_v11   ;;  %v10182_v15 = vld [vmem:[%s15556_s2 + $0x60] sm:$0xff]   ;;  %9178 = vst [vmem:[#allocation6 + $0x58] sm:$0xff] %v10181_v14   ;;  %v10183_v17 = vld [vmem:[%s15556_s2 + $0x68] sm:$0xff]  }
   0x7   :  { %v10184_v20 = vld [vmem:[%s15556_s2 + $0x70] sm:$0xff]   ;;  %9188 = vst [vmem:[#allocation6 + $0x68] sm:$0xff] %v10183_v17   ;;  %v10185_v21 = vld [vmem:[%s15556_s2 + $0x78] sm:$0xff]   ;;  %v10186_v25 = vld [vmem:[%s15556_s2 + $0x80] sm:$0xff]  }
   0x8   :  { %9193 = vst [vmem:[#allocation6 + $0x70] sm:$0xff] %v10184_v20   ;;  %v10187_v26 = vld [vmem:[%s15556_s2 + $0x88] sm:$0xff]   ;;  %9203 = vst [vmem:[#allocation6 + $0x80] sm:$0xff] %v10186_v25   ;;  %v10188_v27 = vld [vmem:[%s15556_s2 + $0x90] sm:$0xff]  }
   0x9   :  { %v10172_v13 = vld [vmem:[#allocation6] ss:$12 sps:$4 sm:$0xff]   ;;  %9208 = vst [vmem:[#allocation6 + $0x88] sm:$0xff] %v10187_v26   ;;  %v10189_v29 = vld [vmem:[%s15556_s2 + $0x98] sm:$0xff]   ;;  %v10191_v33 = vld [vmem:[%s15556_s2 + $0xa8] sm:$0xff]  }
   0xa   :  { %v10170_v12 = vld [vmem:[#allocation6 + $0x4] ss:$12 sps:$4 sm:$0xff]   ;;  %v10190_v32 = vld [vmem:[%s15556_s2 + $0xa0] sm:$0xff]   ;;  %9218 = vst [vmem:[#allocation6 + $0x98] sm:$0xff] %v10189_v29   ;;  %v10193_v37 = vld [vmem:[%s15556_s2 + $0xb8] sm:$0xff]  }
   0xb   :  { %5581 = vmatprep.subr.bf16.mxu0 %v10170_v12  ;;  %v5107_v16 = vld [vmem:[#allocation6 + $0x24] sm:$0xff]  ;;  %9223 = vst [vmem:[#allocation6 + $0xa0] sm:$0xff] %v10190_v32   ;;  %v10192_v35 = vld [vmem:[%s15556_s2 + $0xb0] sm:$0xff]   ;;  %v10194_v39 = vld [vmem:[%s15556_s2 + $0xc0] sm:$0xff]  }
   0xc   :  { %5582 = vmatpush1.bf16.msra.mxu0 %v10172_v13  ;;  %v9056_v18 = vcombine.high %v10173_v4, %v5107_v16  ;;  %v9055_v19 = vcombine.low %v10173_v4, %v5107_v16  ;;  %v5111_v22 = vld [vmem:[#allocation6 + $0x3c] sm:$0xff]  ;;  %9233 = vst [vmem:[#allocation6 + $0xb0] sm:$0xff] %v10192_v35   ;;  %9238 = vst [vmem:[#allocation6 + $0xb8] sm:$0xff] %v10193_v37   ;;  %v10195_v40 = vld [vmem:[%s15556_s2 + $0xc8] sm:$0xff]  }
   0xd   :  { %v9059_v23 = vcombine.high %v10176_v7, %v5111_v22  ;;  %v9058_v24 = vcombine.low %v10176_v7, %v5111_v22  ;;  %v5115_v28 = vld [vmem:[#allocation6 + $0x54] sm:$0xff]  ;;  %9248 = vst [vmem:[#allocation6 + $0xc8] sm:$0xff] %v10195_v40   ;;  %v10196_v43 = vld [vmem:[%s15556_s2 + $0xd0] sm:$0xff]   ;;  %v10198_v47 = vld [vmem:[%s15556_s2 + $0xe0] sm:$0xff]  }
   0xe   :  { %5583 = vmatprep.subr.bf16.mxu0 %v9056_v18  ;;  %v9062_v30 = vcombine.high %v10179_v10, %v5115_v28  ;;  %v9061_v31 = vcombine.low %v10179_v10, %v5115_v28  ;;  %v10197_v45 = vld [vmem:[%s15556_s2 + $0xd8] sm:$0xff]   ;;  %9253 = vst [vmem:[#allocation6 + $0xd0] sm:$0xff] %v10196_v43   ;;  %v10199_v49 = vld [vmem:[%s15556_s2 + $0xe8] sm:$0xff]   ;;  %9263 = vst [vmem:[#allocation6 + $0xe0] sm:$0xff] %v10198_v47  }
   0xf   :  { %v5119_v34 = vld [vmem:[#allocation6 + $0x6c] sm:$0xff]  ;;  %9268 = vst [vmem:[#allocation6 + $0xe8] sm:$0xff] %v10199_v49   ;;  %v10201_v53 = vld [vmem:[%s15556_s2 + $0xf8] sm:$0xff]   ;;  %v10202_v55 = vld [vmem:[%s15556_s2 + $0x100] sm:$0xff]  }
  0x10   :  { %5584 = vmatpush1.bf16.msra.mxu0 %v9055_v19  ;;  %v9065_v36 = vcombine.high %v10182_v15, %v5119_v34  ;;  %v9064_v38 = vcombine.low %v10182_v15, %v5119_v34  ;;  %v5123_v41 = vld [vmem:[#allocation6 + $0x84] sm:$0xff]  ;;  %v10200_v50 = vld [vmem:[%s15556_s2 + $0xf0] sm:$0xff]   ;;  %9278 = vst [vmem:[#allocation6 + $0xf8] sm:$0xff] %v10201_v53   ;;  %9283 = vst [vmem:[#allocation6 + $0x100] sm:$0xff] %v10202_v55  }
  0x11   :  { %5585 = vmatprep.subr.bf16.mxu0 %v9059_v23  ;;  %v9068_v42 = vcombine.high %v10185_v21, %v5123_v41  ;;  %v9067_v44 = vcombine.low %v10185_v21, %v5123_v41  ;;  %v10494_v56 = vld [vmem:[%s15556_s2 + $0x108] sm:$0xff]   ;;  %v10204_v57 = vld [vmem:[%s15556_s2 + $0x110] sm:$0xff]   ;;  %v10205_v61 = vld [vmem:[%s15556_s2 + $0x118] sm:$0xff]  }
  0x12   :  { %v5127_v46 = vld [vmem:[#allocation6 + $0x9c] sm:$0xff]  ;;  %9293 = vst [vmem:[#allocation6 + $0x110] sm:$0xff] %v10204_v57   ;;  %9298 = vst [vmem:[#allocation6 + $0x118] sm:$0xff] %v10205_v61   ;;  %v10207_v0 = vld [vmem:[%s15556_s2 + $0x188] sm:$0xff]  }
  0x13   :  { %v9071_v48 = vcombine.high %v10188_v27, %v5127_v46  ;;  %v9070_v51 = vcombine.low %v10188_v27, %v5127_v46  ;;  %v5131_v52 = vld [vmem:[#allocation6 + $0xb4] sm:$0xff]  ;;  %v10206_v62 = vld [vmem:[%s15556_s2 + $0x180] sm:$0xff]   ;;  %v10208_v3 = vld [vmem:[%s15556_s2 + $0x190] sm:$0xff]   ;;  %9368 = vst [vmem:[#allocation6 + $0x188] sm:$0xff] %v10207_v0  }
  0x14   :  { %5586 = vmatpush1.bf16.msra.mxu0 %v9058_v24  ;;  %v9074_v54 = vcombine.high %v10191_v33, %v5131_v52  ;;  %v9073_v58 = vcombine.low %v10191_v33, %v5131_v52  ;;  %v10209_v5 = vld [vmem:[%s15556_s2 + $0x120] sm:$0xff]   ;;  %9373 = vst [vmem:[#allocation6 + $0x190] sm:$0xff] %v10208_v3   ;;  %v10210_v7 = vld [vmem:[%s15556_s2 + $0x128] sm:$0xff]   ;;  %v10211_v8 = vld [vmem:[%s15556_s2 + $0x130] sm:$0xff]  }
  0x15   :  { %5587 = vmatprep.subr.bf16.mxu0 %v9062_v30  ;;  %v5135_v59 = vld [vmem:[#allocation6 + $0xcc] sm:$0xff]  ;;  %9308 = vst [vmem:[#allocation6 + $0x128] sm:$0xff] %v10210_v7   ;;  %v10212_v10 = vld [vmem:[%s15556_s2 + $0x198] sm:$0xff]   ;;  %9313 = vst [vmem:[#allocation6 + $0x130] sm:$0xff] %v10211_v8  }
  0x16   :  { %v9077_v60 = vcombine.high %v10194_v39, %v5135_v59  ;;  %v5139_v63 = vld [vmem:[#allocation6 + $0xe4] sm:$0xff]  ;;  %v9076_v1 = vcombine.low %v10194_v39, %v5135_v59  ;;  %v10213_v12 = vld [vmem:[%s15556_s2 + $0x1a0] sm:$0xff]   ;;  %v10215_v16 = vld [vmem:[%s15556_s2 + $0x138] sm:$0xff]  }
  0x17   :  { %v9080_v4 = vcombine.high %v10197_v45, %v5139_v63  ;;  %v5143_v6 = vld [vmem:[#allocation6 + $0xfc] sm:$0xff]  ;;  %v9079_v9 = vcombine.low %v10197_v45, %v5139_v63  ;;  %9383 = vst [vmem:[#allocation6 + $0x1a0] sm:$0xff] %v10213_v12   ;;  %v10214_v14 = vld [vmem:[%s15556_s2 + $0x1a8] sm:$0xff]   ;;  %v10218_v23 = vld [vmem:[%s15556_s2 + $0x1b0] sm:$0xff]  }
  0x18   :  { %5588 = vmatpush1.bf16.msra.mxu0 %v9061_v31  ;;  %v9083_v11 = vcombine.high %v10200_v50, %v5143_v6  ;;  %v9082_v15 = vcombine.low %v10200_v50, %v5143_v6  ;;  %9388 = vst [vmem:[#allocation6 + $0x1a8] sm:$0xff] %v10214_v14   ;;  %v10216_v19 = vld [vmem:[%s15556_s2 + $0x140] sm:$0xff]   ;;  %v10217_v22 = vld [vmem:[%s15556_s2 + $0x148] sm:$0xff]   ;;  %v10219_v26 = vld [vmem:[%s15556_s2 + $0x1b8] sm:$0xff]  }
  0x19   :  { %5589 = vmatprep.subr.bf16.mxu0 %v9065_v36  ;;  %v5147_v13 = vld [vmem:[#allocation6 + $0x114] sm:$0xff]  ;;  %9323 = vst [vmem:[#allocation6 + $0x140] sm:$0xff] %v10216_v19   ;;  %9328 = vst [vmem:[#allocation6 + $0x148] sm:$0xff] %v10217_v22   ;;  %v10220_v28 = vld [vmem:[%s15556_s2 + $0x1c0] sm:$0xff]  }
  0x1a   :  { %v9086_v17 = vcombine.high %v10494_v56, %v5147_v13  ;;  %v9085_v24 = vcombine.low %v10494_v56, %v5147_v13  ;;  %9398 = vst [vmem:[#allocation6 + $0x1b8] sm:$0xff] %v10219_v26   ;;  %v10221_v29 = vld [vmem:[%s15556_s2 + $0x150] sm:$0xff]   ;;  %9403 = vst [vmem:[#allocation6 + $0x1c0] sm:$0xff] %v10220_v28   ;;  %v10222_v30 = vld [vmem:[%s15556_s2 + $0x158] sm:$0xff]  }
  0x1b   :  { %v5167_v18 = vld [vmem:[#allocation6 + $0x18c] sm:$0xff]  ;;  %9338 = vst [vmem:[#allocation6 + $0x158] sm:$0xff] %v10222_v30   ;;  %v10223_v35 = vld [vmem:[%s15556_s2 + $0x160] sm:$0xff]   ;;  %v10224_v36 = vld [vmem:[%s15556_s2 + $0x1c8] sm:$0xff]  }
  0x1c   :  { %5590 = vmatpush1.bf16.msra.mxu0 %v9064_v38  ;;  %v10536_v20 = vcombine.high %v10206_v62, %v5167_v18  ;;  %v10538_v21 = vcombine.low %v10206_v62, %v5167_v18  ;;  %v5151_v25 = vld [vmem:[#allocation6 + $0x12c] sm:$0xff]  ;;  %9343 = vst [vmem:[#allocation6 + $0x160] sm:$0xff] %v10223_v35   ;;  %v10226_v41 = vld [vmem:[%s15556_s2 + $0x1d8] sm:$0xff]   ;;  %v10231_v49 = vld [vmem:[%s15556_s2 + $0x1e8] sm:$0xff]  }
  0x1d   :  { %5591 = vmatprep.subr.bf16.mxu0 %v9068_v42  ;;  %v9089_v27 = vcombine.high %v10209_v5, %v5151_v25  ;;  %v9088_v31 = vcombine.low %v10209_v5, %v5151_v25  ;;  %v10225_v38 = vld [vmem:[%s15556_s2 + $0x1d0] sm:$0xff]   ;;  %v10227_v42 = vld [vmem:[%s15556_s2 + $0x168] sm:$0xff]   ;;  %9418 = vst [vmem:[#allocation6 + $0x1d8] sm:$0xff] %v10226_v41   ;;  %v10229_v47 = vld [vmem:[%s15556_s2 + $0x178] sm:$0xff]  }
  0x1e   :  { %9922 = vmatprep.subr.bf16.mxu1 %v10536_v20  ;;  %9413 = vst [vmem:[#allocation6 + $0x1d0] sm:$0xff] %v10225_v38   ;;  %9358 = vst [vmem:[#allocation6 + $0x178] sm:$0xff] %v10229_v47   ;;  %v10232_v53 = vld [vmem:[%s15556_s2 + $0x1f0] sm:$0xff]   ;;  %v10234_v56 = vld [vmem:[%s15556_s2 + $0x200] sm:$0xff]  }
  0x1f   :  { %9930 = vmatpush1.bf16.msra.mxu1 %v10538_v21  ;;  %v5171_v32 = vld [vmem:[#allocation6 + $0x1a4] sm:$0xff]  ;;  %9428 = vst [vmem:[#allocation6 + $0x1e8] sm:$0xff] %v10231_v49   ;;  %9433 = vst [vmem:[#allocation6 + $0x1f0] sm:$0xff] %v10232_v53   ;;  %v10237_v62 = vld [vmem:[%s15556_s2 + $0x218] sm:$0xff]  }
  0x20   :  { %5592 = vmatpush1.bf16.msra.mxu0 %v9067_v44  ;;  %v10561_v33 = vcombine.high %v10212_v10, %v5171_v32  ;;  %v10563_v34 = vcombine.low %v10212_v10, %v5171_v32  ;;  %v5155_v37 = vld [vmem:[#allocation6 + $0x144] sm:$0xff]  ;;  %v10228_v44 = vld [vmem:[%s15556_s2 + $0x170] sm:$0xff]   ;;  %9443 = vst [vmem:[#allocation6 + $0x200] sm:$0xff] %v10234_v56   ;;  %9458 = vst [vmem:[#allocation6 + $0x218] sm:$0xff] %v10237_v62  }
  0x21   :  { %5593 = vmatprep.subr.bf16.mxu0 %v9071_v48  ;;  %v9092_v39 = vcombine.high %v10215_v16, %v5155_v37  ;;  %v9091_v40 = vcombine.low %v10215_v16, %v5155_v37  ;;  %v5175_v43 = vld [vmem:[#allocation6 + $0x1bc] sm:$0xff]  ;;  %9353 = vst [vmem:[#allocation6 + $0x170] sm:$0xff] %v10228_v44   ;;  %v10235_v59 = vld [vmem:[%s15556_s2 + $0x208] sm:$0xff]   ;;  %v10241_v8 = vld [vmem:[%s15556_s2 + $0x238] sm:$0xff]  }
  0x22   :  { %9923 = vmatprep.subr.bf16.mxu1 %v10561_v33  ;;  %v10585_v45 = vcombine.high %v10218_v23, %v5175_v43  ;;  %v10587_v46 = vcombine.low %v10218_v23, %v5175_v43  ;;  %v10230_v48 = vld [vmem:[%s15556_s2 + $0x1e0] sm:$0xff]   ;;  %9448 = vst [vmem:[#allocation6 + $0x208] sm:$0xff] %v10235_v59   ;;  %v10239_v3 = vld [vmem:[%s15556_s2 + $0x228] sm:$0xff]   ;;  %v1179_v13 = vld [vmem:[%s15554_s0 + $0x10] sm:$0xff] }
  0x23   :  { %9931 = vmatpush1.bf16.msra.mxu1 %v10563_v34  ;;  %v5159_v50 = vld [vmem:[#allocation6 + $0x15c] sm:$0xff]  ;;  %v1178_v12 = vld [vmem:[%s15554_s0 + $0x8] sm:$0xff]  ;;  %9478 = vst [vmem:[#allocation6 + $0x238] sm:$0xff] %v10241_v8   ;;  %v1180_v18 = vld [vmem:[%s15554_s0 + $0x18] sm:$0xff] }
  0x24   :  { %5594 = vmatpush1.bf16.msra.mxu0 %v9070_v51  ;;  %9924 = vmatprep.subr.bf16.mxu1 %v10585_v45  ;;  %v9095_v51 = vcombine.high %v10221_v29, %v5159_v50  ;;  %v9094_v52 = vcombine.low %v10221_v29, %v5159_v50  ;;  %v23_v10 = vld [vmem:[%s15557_s3] sm:$0x1]  ;;  %v1182_v26 = vld [vmem:[%s15554_s0 + $0x28] sm:$0xff]  ;;  %v1183_v28 = vld [vmem:[%s15554_s0 + $0x30] sm:$0xff]  ;;  %v1407_v30 = vmul.f32 %v1178_v12, %v1178_v12 }
  0x25   :  { %5595 = vmatprep.subr.bf16.mxu0 %v9074_v54  ;;  %v10233_v54 = vld [vmem:[%s15556_s2 + $0x1f8] sm:$0xff]   ;;  %25 = vst [vmem:[#allocation5] sm:$0x1] %v23_v10  ;;  %v1181_v22 = vld [vmem:[%s15554_s0 + $0x20] sm:$0xff]  ;;  %v1186_v41 = vld [vmem:[%s15554_s0 + $0x48] sm:$0xff]  ;;  %v1412_v50 = vmul.f32 %v1183_v28, %v1183_v28 }
  0x26   :  { %v5179_v55 = vld [vmem:[#allocation6 + $0x1d4] sm:$0xff]  ;;  %v5183_v5 = vld [vmem:[#allocation6 + $0x1ec] sm:$0xff]  ;;  %v1185_v38 = vld [vmem:[%s15554_s0 + $0x40] sm:$0xff]  ;;  %v1415_v62 = vmul.f32 %v1186_v41, %v1186_v41 }
  0x27   :  { %9932 = vmatpush1.bf16.msra.mxu1 %v10587_v46  ;;  %v10609_v57 = vcombine.high %v10224_v36, %v5179_v55  ;;  %v10633_v6 = vcombine.high %v10230_v48, %v5183_v5  ;;  %v10635_v7 = vcombine.low %v10230_v48, %v5183_v5  ;;  %v1184_v35 = vld [vmem:[%s15554_s0 + $0x38] sm:$0xff]  ;;  %v1187_v47 = vld [vmem:[%s15554_s0 + $0x50] sm:$0xff]  ;;  %v1411_v48 = vmul.f32 %v1182_v26, %v1182_v26  ;;  %v1189_v53 = vld [vmem:[%s15554_s0 + $0x60] sm:$0xff] }
  0x28   :  { %5596 = vmatpush1.bf16.msra.mxu0 %v9073_v58  ;;  %v10611_v58 = vcombine.low %v10224_v36, %v5179_v55  ;;  %v5163_v61 = vld [vmem:[#allocation6 + $0x174] sm:$0xff]  ;;  %v1408_v36 = vmul.f32 %v1179_v13, %v1179_v13  ;;  %v1194_v10 = vld [vmem:[%s15554_s0 + $0x88] sm:$0xff] }
  0x29   :  { %5597 = vmatprep.subr.bf16.mxu0 %v9077_v60  ;;  %v10236_v60 = vld [vmem:[%s15556_s2 + $0x210] sm:$0xff]   ;;  %9925 = vmatprep.subr.bf16.mxu1 %v10609_v57  ;;  %v9098_v63 = vcombine.high %v10227_v42, %v5163_v61  ;;  %v9097_v0 = vcombine.low %v10227_v42, %v5163_v61  ;;  %v5187_v14 = vld [vmem:[#allocation6 + $0x204] sm:$0xff]  ;;  %v1410_v42 = vmul.f32 %v1181_v22, %v1181_v22 }
  0x2a   :  { %v9116_v16 = vcombine.high %v10233_v54, %v5187_v14  ;;  %v1191_v61 = vld [vmem:[%s15554_s0 + $0x70] sm:$0xff] }
  0x2b   :  { %9933 = vmatpush1.bf16.msra.mxu1 %v10611_v58 }
  0x2c   :  { %5598 = vmatpush1.bf16.msra.mxu0 %v9076_v1  ;;  %v10238_v1 = vld [vmem:[%s15556_s2 + $0x220] sm:$0xff]   ;;  %9926 = vmatprep.subr.bf16.mxu1 %v10633_v6 }
  0x2d   :  { %5599 = vmatprep.subr.bf16.mxu0 %v9080_v4  ;;  %9463 = vst [vmem:[#allocation6 + $0x220] sm:$0xff] %v10238_v1   ;;  %v10240_v4 = vld [vmem:[%s15556_s2 + $0x230] sm:$0xff]   ;;  %v1192_v1 = vld [vmem:[%s15554_s0 + $0x78] sm:$0xff] }
  0x2e   :  { %9473 = vst [vmem:[#allocation6 + $0x230] sm:$0xff] %v10240_v4  }
  0x2f   :  { %9934 = vmatpush1.bf16.msra.mxu1 %v10635_v7 }
  0x30   :  { %5600 = vmatpush1.bf16.msra.mxu0 %v9079_v9  ;;  %v20_v9 = vld [vmem:[%s15558_s4] sm:$0x1]  ;;  %9927 = vmatprep.subr.bf16.mxu1 %v9116_v16 }
  0x31   :  { %5601 = vmatprep.subr.bf16.mxu0 %v9083_v11  ;;  %22 = vst [vmem:[#allocation4] sm:$0x1] %v20_v9  ;;  %v1177_v11 = vld [vmem:[%s15554_s0] sm:$0xff] }
  0x32   :  { %v1406_v29 = vmul.f32 %v1177_v11, %v1177_v11 }
  0x34   :  { %5602 = vmatpush1.bf16.msra.mxu0 %v9082_v15  ;;  %v1289_v15 = vadd.f32 %v1178_v12, %v1177_v11  ;;  %v1418_v11 = vmul.f32 %v1189_v53, %v1189_v53 }
  0x35   :  { %5603 = vmatprep.subr.bf16.mxu0 %v9086_v17  ;;  %v10659_v17 = vcombine.low %v10233_v54, %v5187_v14  ;;  %v1413_v54 = vmul.f32 %v1184_v35, %v1184_v35  ;;  %v1195_v14 = vld [vmem:[%s15554_s0 + $0x90] sm:$0xff] }
  0x36   :  { %v1290_v19 = vadd.f32 %v1289_v15, %v1179_v13 }
  0x37   :  { %9935 = vmatpush1.bf16.msra.mxu1 %v10659_v17 }
  0x38   :  { %5604 = vmatpush1.bf16.msra.mxu0 %v9085_v24  ;;  %v1291_v24 = vadd.f32 %v1290_v19, %v1180_v18  ;;  %v1420_v19 = vmul.f32 %v1191_v61, %v1191_v61 }
  0x39   :  { %5605 = vmatprep.subr.bf16.mxu0 %v9089_v27  ;;  %v5195_v27 = vld [vmem:[#allocation6 + $0x234] sm:$0xff] }
  0x3c   :  { %5606 = vmatpush1.bf16.msra.mxu0 %v9088_v31  ;;  %v9122_v31 = vcombine.high %v10239_v3, %v5195_v27 }
  0x3d   :  { %5607 = vmatprep.subr.bf16.mxu0 %v9092_v39  ;;  %v1409_v39 = vmul.f32 %v1180_v18, %v1180_v18  ;;  %v1196_v18 = vld [vmem:[%s15554_s0 + $0x98] sm:$0xff] }
  0x40   :  { %5608 = vmatpush1.bf16.msra.mxu0 %v9091_v40 }
  0x41   :  { %5609 = vmatprep.subr.bf16.mxu0 %v9095_v51 }
  0x44   :  { %5610 = vmatpush1.bf16.msra.mxu0 %v9094_v52 }
  0x45   :  { %5611 = vmatprep.subr.bf16.mxu0 %v9098_v63 }
  0x48   :  { %5612 = vmatpush1.bf16.msra.mxu0 %v9097_v0 }
  0x49   :  { %6214 = vmatprep.subr.bf16.mxu0 %v10536_v20  ;;  %v5191_v20 = vld [vmem:[#allocation6 + $0x21c] sm:$0xff] }
  0x4a   :  { %v10669_v23 = vcombine.high %v10236_v60, %v5191_v20  ;;  %v10673_v25 = vcombine.low %v10236_v60, %v5191_v20 }
  0x4b   :  { %5614 = vmatmul.mubr.bf16.vlgmr.msra.gmra.mrb[0].mxu0 %v15569_v2 }
  0x4c   :  { %5623 = vmatprep.mubr.bf16.mxu0 %v15569_v2  ;;  %6215 = vmatpush1.bf16.msra.mxu0 %v10538_v21  ;;  %v1292_v21 = vadd.f32 %v1291_v24, %v1181_v22  ;;  %v1421_v24 = vmul.f32 %v1192_v1, %v1192_v1 }
  0x4d   :  { %6216 = vmatprep.subr.bf16.mxu0 %v10561_v33  ;;  %9928 = vmatprep.subr.bf16.mxu1 %v10669_v23  ;;  %v9121_v33 = vcombine.low %v10239_v3, %v5195_v27  ;;  %v1416_v3 = vmul.f32 %v1187_v47, %v1187_v47  ;;  %v1199_v27 = vld [vmem:[%s15554_s0 + $0xb0] sm:$0xff] }
  0x4e   :  { %v1293_v32 = vadd.f32 %v1292_v21, %v1182_v26  ;;  %9936 = vmatpush1.bf16.msra.mxu1 %v10673_v25  ;;  %v1198_v26 = vld [vmem:[%s15554_s0 + $0xa8] sm:$0xff] }
  0x4f   :  { %9929 = vmatprep.subr.bf16.mxu1 %v9122_v31 }
  0x50   :  { %6217 = vmatpush1.bf16.msra.mxu0 %v10563_v34  ;;  %v1294_v37 = vadd.f32 %v1293_v32, %v1183_v28  ;;  %v1518_v34 = vadd.f32 %v1407_v30, %v1406_v29  ;;  %v1423_v32 = vmul.f32 %v1194_v10, %v1194_v10 }
  0x51   :  { %6218 = vmatprep.subr.bf16.mxu0 %v10585_v45 }
  0x52   :  { %v1295_v40 = vadd.f32 %v1294_v37, %v1184_v35  ;;  %9937 = vmatpush1.bf16.msra.mxu1 %v9121_v33  ;;  %v1519_v43 = vadd.f32 %v1518_v34, %v1408_v36  ;;  %v1201_v36 = vld [vmem:[%s15554_s0 + $0xc0] sm:$0xff]  ;;  %v1424_v37 = vmul.f32 %v1195_v14, %v1195_v14  ;;  %v1202_v34 = vld [vmem:[%s15554_s0 + $0xc8] sm:$0xff] }
  0x53   :  { %5624 = vmatmul.mubr.bf16.gmra.mrb[4].mxu0 %v15569_v2  ;;  %6847 = vmatprep.subr.bf16.mxu1 %v15569_v2 }
  0x54   :  { %6219 = vmatpush1.bf16.msra.mxu0 %v10587_v46  ;;  %v1296_v44 = vadd.f32 %v1295_v40, %v1185_v38  ;;  %v1520_v49 = vadd.f32 %v1519_v43, %v1409_v39  ;;  %v1188_v46 = vld [vmem:[%s15554_s0 + $0x58] sm:$0xff]  ;;  %v1425_v40 = vmul.f32 %v1196_v18, %v1196_v18  ;;  %v1203_v43 = vld [vmem:[%s15554_s0 + $0xd0] sm:$0xff] }
  0x55   :  { %6220 = vmatprep.subr.bf16.mxu0 %v10609_v57  ;;  %v1190_v57 = vld [vmem:[%s15554_s0 + $0x68] sm:$0xff] }
  0x56   :  { %v1297_v45 = vadd.f32 %v1296_v44, %v1186_v41  ;;  %v1521_v51 = vadd.f32 %v1520_v49, %v1410_v42  ;;  %v1419_v15 = vmul.f32 %v1190_v57, %v1190_v57  ;;  %v1204_v49 = vld [vmem:[%s15554_s0 + $0xd8] sm:$0xff] }
  0x58   :  { %6221 = vmatpush1.bf16.msra.mxu0 %v10611_v58  ;;  %v1298_v52 = vadd.f32 %v1297_v45, %v1187_v47  ;;  %v1522_v55 = vadd.f32 %v1521_v51, %v1411_v48  ;;  %v1414_v58 = vmul.f32 %v1185_v38, %v1185_v38  ;;  %v1427_v45 = vmul.f32 %v1198_v26, %v1198_v26  ;;  %v1205_v51 = vld [vmem:[%s15554_s0 + $0xe0] sm:$0xff] }
  0x59   :  { %6222 = vmatprep.subr.bf16.mxu0 %v10633_v6  ;;  %v1193_v6 = vld [vmem:[%s15554_s0 + $0x80] sm:$0xff] }
  0x5a   :  { %v1299_v56 = vadd.f32 %v1298_v52, %v1188_v46  ;;  %v1523_v59 = vadd.f32 %v1522_v55, %v1412_v50  ;;  %v1422_v28 = vmul.f32 %v1193_v6, %v1193_v6  ;;  %v1428_v52 = vmul.f32 %v1199_v27, %v1199_v27 }
  0x5c   :  { %6223 = vmatpush1.bf16.msra.mxu0 %v10635_v7  ;;  %v1300_v60 = vadd.f32 %v1299_v56, %v1189_v53  ;;  %v1524_v63 = vadd.f32 %v1523_v59, %v1413_v54  ;;  %v1417_v7 = vmul.f32 %v1188_v46, %v1188_v46  ;;  %v1430_v59 = vmul.f32 %v1201_v36, %v1201_v36 }
  0x5d   :  { %6224 = vmatprep.subr.bf16.mxu0 %v9116_v16 }
  0x5e   :  { %v1301_v0 = vadd.f32 %v1300_v60, %v1190_v57  ;;  %v1525_v4 = vadd.f32 %v1524_v63, %v1414_v58  ;;  %v1206_v58 = vld [vmem:[%s15554_s0 + $0xe8] sm:$0xff]  ;;  %v1431_v63 = vmul.f32 %v1202_v34, %v1202_v34 }
  0x60   :  { %6225 = vmatpush1.bf16.msra.mxu0 %v10659_v17  ;;  %v1302_v5 = vadd.f32 %v1301_v0, %v1191_v61  ;;  %v1526_v8 = vadd.f32 %v1525_v4, %v1415_v62  ;;  %v1207_v62 = vld [vmem:[%s15554_s0 + $0xf0] sm:$0xff]  ;;  %v1432_v4 = vmul.f32 %v1203_v43, %v1203_v43 }
  0x61   :  { %6226 = vmatprep.subr.bf16.mxu0 %v10669_v23  ;;  %v1197_v23 = vld [vmem:[%s15554_s0 + $0xa0] sm:$0xff] }
  0x62   :  { %v1303_v9 = vadd.f32 %v1302_v5, %v1192_v1  ;;  %v1527_v12 = vadd.f32 %v1526_v8, %v1416_v3  ;;  %v1426_v44 = vmul.f32 %v1197_v23, %v1197_v23  ;;  %v1208_v3 = vld [vmem:[%s15554_s0 + $0xf8] sm:$0xff]  ;;  %v1433_v8 = vmul.f32 %v1204_v49, %v1204_v49 }
  0x64   :  { %6227 = vmatpush1.bf16.msra.mxu0 %v10673_v25  ;;  %v1304_v13 = vadd.f32 %v1303_v9, %v1193_v6  ;;  %v1528_v16 = vadd.f32 %v1527_v12, %v1417_v7  ;;  %v1209_v7 = vld [vmem:[%s15554_s0 + $0x100] sm:$0xff]  ;;  %v1434_v12 = vmul.f32 %v1205_v51, %v1205_v51 }
  0x65   :  { %6228 = vmatprep.subr.bf16.mxu0 %v9122_v31  ;;  %v1200_v31 = vld [vmem:[%s15554_s0 + $0xb8] sm:$0xff] }
  0x66   :  { %v1305_v17 = vadd.f32 %v1304_v13, %v1194_v10  ;;  %v1529_v20 = vadd.f32 %v1528_v16, %v1418_v11  ;;  %v1429_v55 = vmul.f32 %v1200_v31, %v1200_v31  ;;  %v1210_v11 = vld [vmem:[%s15554_s0 + $0x108] sm:$0xff]  ;;  %v1435_v16 = vmul.f32 %v1206_v58, %v1206_v58 }
  0x68   :  { %6229 = vmatpush1.bf16.msra.mxu0 %v9121_v33  ;;  %v1306_v22 = vadd.f32 %v1305_v17, %v1195_v14  ;;  %v1530_v25 = vadd.f32 %v1529_v20, %v1419_v15  ;;  %v1211_v15 = vld [vmem:[%s15554_s0 + $0x110] sm:$0xff]  ;;  %v1436_v20 = vmul.f32 %v1207_v62, %v1207_v62 }
  0x6a   :  { %v1307_v21 = vadd.f32 %v1306_v22, %v1196_v18  ;;  %v1531_v29 = vadd.f32 %v1530_v25, %v1420_v19  ;;  %v1212_v19 = vld [vmem:[%s15554_s0 + $0x118] sm:$0xff]  ;;  %v1437_v25 = vmul.f32 %v1208_v3, %v1208_v3 }
  0x6c   :  { %v1308_v30 = vadd.f32 %v1307_v21, %v1197_v23  ;;  %v1532_v33 = vadd.f32 %v1531_v29, %v1421_v24  ;;  %v1213_v24 = vld [vmem:[%s15554_s0 + $0x120] sm:$0xff] }
  0x6e   :  { %v1309_v35 = vadd.f32 %v1308_v30, %v1198_v26  ;;  %v1533_v38 = vadd.f32 %v1532_v33, %v1422_v28  ;;  %v1438_v28 = vmul.f32 %v1209_v7, %v1209_v7 }
  0x70   :  { %v1310_v39 = vadd.f32 %v1309_v35, %v1199_v27  ;;  %v1534_v41 = vadd.f32 %v1533_v38, %v1423_v32  ;;  %v1214_v27 = vld [vmem:[%s15554_s0 + $0x128] sm:$0xff]  ;;  %v1439_v32 = vmul.f32 %v1210_v11, %v1210_v11 }
  0x72   :  { %v1311_v42 = vadd.f32 %v1310_v39, %v1200_v31  ;;  %v1535_v47 = vadd.f32 %v1534_v41, %v1424_v37  ;;  %v1215_v31 = vld [vmem:[%s15554_s0 + $0x130] sm:$0xff]  ;;  %v1440_v37 = vmul.f32 %v1211_v15, %v1211_v15 }
  0x74   :  { %v1312_v48 = vadd.f32 %v1311_v42, %v1201_v36  ;;  %v1536_v46 = vadd.f32 %v1535_v47, %v1425_v40  ;;  %v1216_v36 = vld [vmem:[%s15554_s0 + $0x138] sm:$0xff]  ;;  %v1441_v40 = vmul.f32 %v1212_v19, %v1212_v19 }
  0x76   :  { %v1313_v50 = vadd.f32 %v1312_v48, %v1202_v34  ;;  %v1537_v53 = vadd.f32 %v1536_v46, %v1426_v44  ;;  %v1217_v34 = vld [vmem:[%s15554_s0 + $0x140] sm:$0xff]  ;;  %v1442_v44 = vmul.f32 %v1213_v24, %v1213_v24 }
  0x78   :  { %v1314_v54 = vadd.f32 %v1313_v50, %v1203_v43  ;;  %v1538_v56 = vadd.f32 %v1537_v53, %v1427_v45  ;;  %v1218_v43 = vld [vmem:[%s15554_s0 + $0x148] sm:$0xff]  ;;  %v1443_v45 = vmul.f32 %v1214_v27, %v1214_v27 }
  0x7a   :  { %v1315_v57 = vadd.f32 %v1314_v54, %v1204_v49  ;;  %v1539_v60 = vadd.f32 %v1538_v56, %v1428_v52  ;;  %v1219_v49 = vld [vmem:[%s15554_s0 + $0x150] sm:$0xff]  ;;  %v1444_v52 = vmul.f32 %v1215_v31, %v1215_v31  ;;  %v1445_v56 = vmul.f32 %v1216_v36, %v1216_v36 }
  0x7c   :  { %v1316_v61 = vadd.f32 %v1315_v57, %v1205_v51  ;;  %v1540_v0 = vadd.f32 %v1539_v60, %v1429_v55  ;;  %v1220_v51 = vld [vmem:[%s15554_s0 + $0x158] sm:$0xff]  ;;  %v1221_v55 = vld [vmem:[%s15554_s0 + $0x160] sm:$0xff]  ;;  %v1446_v60 = vmul.f32 %v1217_v34, %v1217_v34 }
  0x7e   :  { %v1317_v1 = vadd.f32 %v1316_v61, %v1206_v58  ;;  %v1541_v5 = vadd.f32 %v1540_v0, %v1430_v59  ;;  %v1222_v59 = vld [vmem:[%s15554_s0 + $0x168] sm:$0xff]  ;;  %v1447_v0 = vmul.f32 %v1218_v43, %v1218_v43 }
  0x80   :  { %v1318_v6 = vadd.f32 %v1317_v1, %v1207_v62  ;;  %v1542_v9 = vadd.f32 %v1541_v5, %v1431_v63  ;;  %v1223_v63 = vld [vmem:[%s15554_s0 + $0x170] sm:$0xff]  ;;  %v1448_v5 = vmul.f32 %v1219_v49, %v1219_v49 }
  0x82   :  { %v1319_v10 = vadd.f32 %v1318_v6, %v1208_v3  ;;  %v1543_v13 = vadd.f32 %v1542_v9, %v1432_v4  ;;  %v1224_v4 = vld [vmem:[%s15554_s0 + $0x178] sm:$0xff]  ;;  %v1449_v9 = vmul.f32 %v1220_v51, %v1220_v51 }
  0x84   :  { %v1320_v14 = vadd.f32 %v1319_v10, %v1209_v7  ;;  %v1544_v17 = vadd.f32 %v1543_v13, %v1433_v8  ;;  %v1225_v8 = vld [vmem:[%s15554_s0 + $0x180] sm:$0xff]  ;;  %v1450_v13 = vmul.f32 %v1221_v55, %v1221_v55 }
  0x86   :  { %v1321_v18 = vadd.f32 %v1320_v14, %v1210_v11  ;;  %v1545_v22 = vadd.f32 %v1544_v17, %v1434_v12  ;;  %v1226_v12 = vld [vmem:[%s15554_s0 + $0x188] sm:$0xff]  ;;  %v1451_v17 = vmul.f32 %v1222_v59, %v1222_v59 }
  0x88   :  { %v1322_v23 = vadd.f32 %v1321_v18, %v1211_v15  ;;  %v1546_v26 = vadd.f32 %v1545_v22, %v1435_v16  ;;  %v1227_v16 = vld [vmem:[%s15554_s0 + $0x190] sm:$0xff]  ;;  %v1452_v22 = vmul.f32 %v1223_v63, %v1223_v63 }
  0x8a   :  { %v1323_v21 = vadd.f32 %v1322_v23, %v1212_v19  ;;  %v1547_v29 = vadd.f32 %v1546_v26, %v1436_v20  ;;  %v1228_v20 = vld [vmem:[%s15554_s0 + $0x198] sm:$0xff]  ;;  %v1453_v26 = vmul.f32 %v1224_v4, %v1224_v4 }
  0x8c   :  { %v1324_v30 = vadd.f32 %v1323_v21, %v1213_v24  ;;  %v1548_v33 = vadd.f32 %v1547_v29, %v1437_v25  ;;  %v1229_v25 = vld [vmem:[%s15554_s0 + $0x1a0] sm:$0xff]  ;;  %v1454_v29 = vmul.f32 %v1225_v8, %v1225_v8 }
  0x8e   :  { %v1325_v35 = vadd.f32 %v1324_v30, %v1214_v27  ;;  %v1549_v38 = vadd.f32 %v1548_v33, %v1438_v28  ;;  %v1230_v28 = vld [vmem:[%s15554_s0 + $0x1a8] sm:$0xff]  ;;  %v1455_v33 = vmul.f32 %v1226_v12, %v1226_v12 }
  0x90   :  { %v1326_v39 = vadd.f32 %v1325_v35, %v1215_v31  ;;  %v1550_v41 = vadd.f32 %v1549_v38, %v1439_v32  ;;  %v1231_v32 = vld [vmem:[%s15554_s0 + $0x1b0] sm:$0xff]  ;;  %v1456_v38 = vmul.f32 %v1227_v16, %v1227_v16 }
  0x92   :  { %v1327_v42 = vadd.f32 %v1326_v39, %v1216_v36  ;;  %v1551_v47 = vadd.f32 %v1550_v41, %v1440_v37  ;;  %v1232_v37 = vld [vmem:[%s15554_s0 + $0x1b8] sm:$0xff]  ;;  %v1457_v41 = vmul.f32 %v1228_v20, %v1228_v20 }
  0x94   :  { %v1328_v48 = vadd.f32 %v1327_v42, %v1217_v34  ;;  %v1552_v46 = vadd.f32 %v1551_v47, %v1441_v40  ;;  %v1233_v40 = vld [vmem:[%s15554_s0 + $0x1c0] sm:$0xff]  ;;  %v1458_v47 = vmul.f32 %v1229_v25, %v1229_v25 }
  0x96   :  { %v1329_v50 = vadd.f32 %v1328_v48, %v1218_v43  ;;  %v1553_v53 = vadd.f32 %v1552_v46, %v1442_v44  ;;  %v1234_v44 = vld [vmem:[%s15554_s0 + $0x1c8] sm:$0xff]  ;;  %v1459_v46 = vmul.f32 %v1230_v28, %v1230_v28 }
  0x98   :  { %v1330_v54 = vadd.f32 %v1329_v50, %v1219_v49  ;;  %v1554_v57 = vadd.f32 %v1553_v53, %v1443_v45  ;;  %v1235_v45 = vld [vmem:[%s15554_s0 + $0x1d0] sm:$0xff]  ;;  %v1460_v53 = vmul.f32 %v1231_v32, %v1231_v32 }
  0x9a   :  { %v1331_v58 = vadd.f32 %v1330_v54, %v1220_v51  ;;  %v1555_v61 = vadd.f32 %v1554_v57, %v1444_v52  ;;  %v1236_v52 = vld [vmem:[%s15554_s0 + $0x1d8] sm:$0xff]  ;;  %v1461_v57 = vmul.f32 %v1232_v37, %v1232_v37 }
  0x9c   :  { %v1332_v62 = vadd.f32 %v1331_v58, %v1221_v55  ;;  %v1556_v1 = vadd.f32 %v1555_v61, %v1445_v56  ;;  %v1237_v56 = vld [vmem:[%s15554_s0 + $0x1e0] sm:$0xff]  ;;  %v1462_v61 = vmul.f32 %v1233_v40, %v1233_v40 }
  0x9e   :  { %v1333_v3 = vadd.f32 %v1332_v62, %v1222_v59  ;;  %v1557_v6 = vadd.f32 %v1556_v1, %v1446_v60  ;;  %v1238_v60 = vld [vmem:[%s15554_s0 + $0x1e8] sm:$0xff]  ;;  %v1463_v1 = vmul.f32 %v1234_v44, %v1234_v44 }
  0xa0   :  { %v1334_v7 = vadd.f32 %v1333_v3, %v1223_v63  ;;  %v1558_v10 = vadd.f32 %v1557_v6, %v1447_v0  ;;  %v1239_v0 = vld [vmem:[%s15554_s0 + $0x1f0] sm:$0xff]  ;;  %v1464_v6 = vmul.f32 %v1235_v45, %v1235_v45 }
  0xa2   :  { %v1335_v11 = vadd.f32 %v1334_v7, %v1224_v4  ;;  %v1559_v14 = vadd.f32 %v1558_v10, %v1448_v5  ;;  %v1240_v5 = vld [vmem:[%s15554_s0 + $0x1f8] sm:$0xff]  ;;  %v1465_v10 = vmul.f32 %v1236_v52, %v1236_v52 }
  0xa4   :  { %v1336_v15 = vadd.f32 %v1335_v11, %v1225_v8  ;;  %v1560_v18 = vadd.f32 %v1559_v14, %v1449_v9  ;;  %v1241_v9 = vld [vmem:[%s15554_s0 + $0x200] sm:$0xff]  ;;  %v1466_v14 = vmul.f32 %v1237_v56, %v1237_v56 }
  0xa6   :  { %v1337_v19 = vadd.f32 %v1336_v15, %v1226_v12  ;;  %v1561_v23 = vadd.f32 %v1560_v18, %v1450_v13  ;;  %v1242_v13 = vld [vmem:[%s15554_s0 + $0x208] sm:$0xff]  ;;  %v1467_v18 = vmul.f32 %v1238_v60, %v1238_v60 }
  0xa8   :  { %v1338_v24 = vadd.f32 %v1337_v19, %v1227_v16  ;;  %v1562_v21 = vadd.f32 %v1561_v23, %v1451_v17  ;;  %v1243_v17 = vld [vmem:[%s15554_s0 + $0x210] sm:$0xff]  ;;  %v1468_v23 = vmul.f32 %v1239_v0, %v1239_v0 }
  0xaa   :  { %v1339_v27 = vadd.f32 %v1338_v24, %v1228_v20  ;;  %v1563_v30 = vadd.f32 %v1562_v21, %v1452_v22  ;;  %v1244_v22 = vld [vmem:[%s15554_s0 + $0x218] sm:$0xff]  ;;  %v1469_v21 = vmul.f32 %v1240_v5, %v1240_v5 }
  0xac   :  { %v1340_v31 = vadd.f32 %v1339_v27, %v1229_v25  ;;  %v1564_v35 = vadd.f32 %v1563_v30, %v1453_v26  ;;  %v1245_v26 = vld [vmem:[%s15554_s0 + $0x220] sm:$0xff]  ;;  %v1470_v30 = vmul.f32 %v1241_v9, %v1241_v9 }
  0xae   :  { %v1341_v36 = vadd.f32 %v1340_v31, %v1230_v28  ;;  %v1565_v39 = vadd.f32 %v1564_v35, %v1454_v29  ;;  %v1246_v29 = vld [vmem:[%s15554_s0 + $0x228] sm:$0xff]  ;;  %v1471_v35 = vmul.f32 %v1242_v13, %v1242_v13 }
  0xb0   :  { %v1342_v34 = vadd.f32 %v1341_v36, %v1231_v32  ;;  %v1566_v42 = vadd.f32 %v1565_v39, %v1455_v33  ;;  %v1247_v33 = vld [vmem:[%s15554_s0 + $0x230] sm:$0xff]  ;;  %v1472_v39 = vmul.f32 %v1243_v17, %v1243_v17 }
  0xb2   :  { %v1343_v43 = vadd.f32 %v1342_v34, %v1232_v37  ;;  %v1567_v48 = vadd.f32 %v1566_v42, %v1456_v38  ;;  %v1248_v38 = vld [vmem:[%s15554_s0 + $0x238] sm:$0xff]  ;;  %v1473_v42 = vmul.f32 %v1244_v22, %v1244_v22 }
  0xb4   :  { %v1344_v49 = vadd.f32 %v1343_v43, %v1233_v40  ;;  %v1568_v50 = vadd.f32 %v1567_v48, %v1457_v41  ;;  %v1249_v41 = vld [vmem:[%s15554_s0 + $0x240] sm:$0xff]  ;;  %v1474_v48 = vmul.f32 %v1245_v26, %v1245_v26 }
  0xb6   :  { %v1345_v51 = vadd.f32 %v1344_v49, %v1234_v44  ;;  %v1569_v54 = vadd.f32 %v1568_v50, %v1458_v47  ;;  %v1250_v47 = vld [vmem:[%s15554_s0 + $0x248] sm:$0xff]  ;;  %v1475_v50 = vmul.f32 %v1246_v29, %v1246_v29 }
  0xb8   :  { %v1346_v55 = vadd.f32 %v1345_v51, %v1235_v45  ;;  %v1570_v58 = vadd.f32 %v1569_v54, %v1459_v46  ;;  %v1251_v46 = vld [vmem:[%s15554_s0 + $0x250] sm:$0xff]  ;;  %v1476_v54 = vmul.f32 %v1247_v33, %v1247_v33 }
  0xba   :  { %v1347_v59 = vadd.f32 %v1346_v55, %v1236_v52  ;;  %v1571_v62 = vadd.f32 %v1570_v58, %v1460_v53  ;;  %v1252_v53 = vld [vmem:[%s15554_s0 + $0x258] sm:$0xff]  ;;  %v1477_v58 = vmul.f32 %v1248_v38, %v1248_v38 }
  0xbc   :  { %v1348_v63 = vadd.f32 %v1347_v59, %v1237_v56  ;;  %v1572_v3 = vadd.f32 %v1571_v62, %v1461_v57  ;;  %v1253_v57 = vld [vmem:[%s15554_s0 + $0x260] sm:$0xff]  ;;  %v1478_v62 = vmul.f32 %v1249_v41, %v1249_v41 }
  0xbe   :  { %v1349_v4 = vadd.f32 %v1348_v63, %v1238_v60  ;;  %v1573_v7 = vadd.f32 %v1572_v3, %v1462_v61  ;;  %v1254_v61 = vld [vmem:[%s15554_s0 + $0x268] sm:$0xff]  ;;  %v1479_v3 = vmul.f32 %v1250_v47, %v1250_v47 }
  0xc0   :  { %v1350_v8 = vadd.f32 %v1349_v4, %v1239_v0  ;;  %v1574_v11 = vadd.f32 %v1573_v7, %v1463_v1  ;;  %v1255_v1 = vld [vmem:[%s15554_s0 + $0x270] sm:$0xff]  ;;  %v1480_v7 = vmul.f32 %v1251_v46, %v1251_v46 }
  0xc2   :  { %v1351_v12 = vadd.f32 %v1350_v8, %v1240_v5  ;;  %v1575_v15 = vadd.f32 %v1574_v11, %v1464_v6  ;;  %v1256_v6 = vld [vmem:[%s15554_s0 + $0x278] sm:$0xff]  ;;  %v1481_v11 = vmul.f32 %v1252_v53, %v1252_v53 }
  0xc4   :  { %v1352_v16 = vadd.f32 %v1351_v12, %v1241_v9  ;;  %v1576_v19 = vadd.f32 %v1575_v15, %v1465_v10  ;;  %v1257_v10 = vld [vmem:[%s15554_s0 + $0x280] sm:$0xff]  ;;  %v1482_v15 = vmul.f32 %v1253_v57, %v1253_v57 }
  0xc6   :  { %v1353_v20 = vadd.f32 %v1352_v16, %v1242_v13  ;;  %v1577_v24 = vadd.f32 %v1576_v19, %v1466_v14  ;;  %v1258_v14 = vld [vmem:[%s15554_s0 + $0x288] sm:$0xff]  ;;  %v1483_v19 = vmul.f32 %v1254_v61, %v1254_v61 }
  0xc8   :  { %v1354_v25 = vadd.f32 %v1353_v20, %v1243_v17  ;;  %v1578_v27 = vadd.f32 %v1577_v24, %v1467_v18  ;;  %v10923_v18 = vld [vmem:[%s15554_s0 + $0x290] sm:$0xff]  ;;  %v1484_v24 = vmul.f32 %v1255_v1, %v1255_v1 }
  0xca   :  { %v1355_v28 = vadd.f32 %v1354_v25, %v1244_v22  ;;  %v1579_v31 = vadd.f32 %v1578_v27, %v1468_v23  ;;  %v10928_v23 = vld [vmem:[%s15554_s0 + $0x298] sm:$0xff]  ;;  %v1485_v27 = vmul.f32 %v1256_v6, %v1256_v6 }
  0xcc   :  { %v1356_v32 = vadd.f32 %v1355_v28, %v1245_v26  ;;  %v1580_v36 = vadd.f32 %v1579_v31, %v1469_v21  ;;  %v10934_v21 = vld [vmem:[%s15554_s0 + $0x2a0] sm:$0xff]  ;;  %v1486_v31 = vmul.f32 %v1257_v10, %v1257_v10 }
  0xce   :  { %v1357_v37 = vadd.f32 %v1356_v32, %v1246_v29  ;;  %v1581_v34 = vadd.f32 %v1580_v36, %v1470_v30  ;;  %v10940_v30 = vld [vmem:[%s15554_s0 + $0x2a8] sm:$0xff]  ;;  %v1487_v36 = vmul.f32 %v1258_v14, %v1258_v14 }
  0xd0   :  { %v1358_v40 = vadd.f32 %v1357_v37, %v1247_v33  ;;  %v1582_v43 = vadd.f32 %v1581_v34, %v1471_v35  ;;  %v10946_v35 = vld [vmem:[%s15554_s0 + $0x2b0] sm:$0xff]  ;;  %v1488_v34 = vmul.f32 %v10923_v18, %v10923_v18 }
  0xd2   :  { %v1359_v44 = vadd.f32 %v1358_v40, %v1248_v38  ;;  %v1583_v49 = vadd.f32 %v1582_v43, %v1472_v39  ;;  %v10952_v39 = vld [vmem:[%s15554_s0 + $0x2b8] sm:$0xff]  ;;  %v1489_v43 = vmul.f32 %v10928_v23, %v10928_v23 }
  0xd4   :  { %v1360_v45 = vadd.f32 %v1359_v44, %v1249_v41  ;;  %v1584_v51 = vadd.f32 %v1583_v49, %v1473_v42  ;;  %v10960_v42 = vld [vmem:[%s15554_s0 + $0x2c0] sm:$0xff]  ;;  %v1490_v49 = vmul.f32 %v10934_v21, %v10934_v21 }
  0xd6   :  { %v1361_v52 = vadd.f32 %v1360_v45, %v1250_v47  ;;  %v1585_v55 = vadd.f32 %v1584_v51, %v1474_v48  ;;  %v10968_v48 = vld [vmem:[%s15554_s0 + $0x2c8] sm:$0xff]  ;;  %v1491_v51 = vmul.f32 %v10940_v30, %v10940_v30 }
  0xd8   :  { %v1362_v56 = vadd.f32 %v1361_v52, %v1251_v46  ;;  %v1586_v59 = vadd.f32 %v1585_v55, %v1475_v50  ;;  %v10976_v50 = vld [vmem:[%s15554_s0 + $0x2d0] sm:$0xff]  ;;  %v1492_v55 = vmul.f32 %v10946_v35, %v10946_v35 }
  0xda   :  { %v1363_v60 = vadd.f32 %v1362_v56, %v1252_v53  ;;  %v1587_v63 = vadd.f32 %v1586_v59, %v1476_v54  ;;  %v10984_v54 = vld [vmem:[%s15554_s0 + $0x2d8] sm:$0xff]  ;;  %v1493_v59 = vmul.f32 %v10952_v39, %v10952_v39 }
  0xdc   :  { %v1364_v0 = vadd.f32 %v1363_v60, %v1253_v57  ;;  %v1588_v4 = vadd.f32 %v1587_v63, %v1477_v58  ;;  %v10992_v58 = vld [vmem:[%s15554_s0 + $0x2e0] sm:$0xff]  ;;  %v1494_v63 = vmul.f32 %v10960_v42, %v10960_v42 }
  0xde   :  { %v1365_v5 = vadd.f32 %v1364_v0, %v1254_v61  ;;  %v1589_v8 = vadd.f32 %v1588_v4, %v1478_v62  ;;  %v11000_v62 = vld [vmem:[%s15554_s0 + $0x2e8] sm:$0xff]  ;;  %v1495_v4 = vmul.f32 %v10968_v48, %v10968_v48 }
  0xe0   :  { %v1366_v9 = vadd.f32 %v1365_v5, %v1255_v1  ;;  %v1590_v12 = vadd.f32 %v1589_v8, %v1479_v3  ;;  %v11008_v3 = vld [vmem:[%s15554_s0 + $0x2f0] sm:$0xff]  ;;  %v1496_v8 = vmul.f32 %v10976_v50, %v10976_v50 }
  0xe2   :  { %v1367_v13 = vadd.f32 %v1366_v9, %v1256_v6  ;;  %v1591_v16 = vadd.f32 %v1590_v12, %v1480_v7  ;;  %v11016_v7 = vld [vmem:[%s15554_s0 + $0x2f8] sm:$0xff]  ;;  %v1497_v12 = vmul.f32 %v10984_v54, %v10984_v54 }
  0xe4   :  { %v1368_v17 = vadd.f32 %v1367_v13, %v1257_v10  ;;  %v1592_v20 = vadd.f32 %v1591_v16, %v1481_v11  ;;  %v11024_v11 = vld [vmem:[%s15554_s0 + $0x300] sm:$0xff]  ;;  %v1498_v16 = vmul.f32 %v10992_v58, %v10992_v58 }
  0xe6   :  { %v1369_v22 = vadd.f32 %v1368_v17, %v1258_v14  ;;  %v1593_v25 = vadd.f32 %v1592_v20, %v1482_v15  ;;  %v11032_v15 = vld [vmem:[%s15554_s0 + $0x308] sm:$0xff]  ;;  %v11040_v20 = vld [vmem:[%s15554_s0 + $0x310] sm:$0xff] }
  0xe8   :  { %v1370_v26 = vadd.f32 %v1369_v22, %v10923_v18  ;;  %v1594_v28 = vadd.f32 %v1593_v25, %v1483_v19  ;;  %v1499_v22 = vmul.f32 %v11000_v62, %v11000_v62 }
  0xea   :  { %v1371_v29 = vadd.f32 %v1370_v26, %v10928_v23  ;;  %v1595_v32 = vadd.f32 %v1594_v28, %v1484_v24  ;;  %v11048_v26 = vld [vmem:[%s15554_s0 + $0x318] sm:$0xff] }
  0xec   :  { %v1372_v33 = vadd.f32 %v1371_v29, %v10934_v21  ;;  %v1596_v37 = vadd.f32 %v1595_v32, %v1485_v27  ;;  %v1500_v27 = vmul.f32 %v11008_v3, %v11008_v3  ;;  %v1501_v32 = vmul.f32 %v11016_v7, %v11016_v7 }
  0xee   :  { %v1373_v38 = vadd.f32 %v1372_v33, %v10940_v30  ;;  %v1597_v40 = vadd.f32 %v1596_v37, %v1486_v31  ;;  %v11056_v31 = vld [vmem:[%s15554_s0 + $0x320] sm:$0xff]  ;;  %v11064_v37 = vld [vmem:[%s15554_s0 + $0x328] sm:$0xff] }
  0xf0   :  { %v1374_v41 = vadd.f32 %v1373_v38, %v10946_v35  ;;  %v1598_v44 = vadd.f32 %v1597_v40, %v1487_v36  ;;  %v1502_v38 = vmul.f32 %v11024_v11, %v11024_v11 }
  0xf2   :  { %v1375_v47 = vadd.f32 %v1374_v41, %v10952_v39  ;;  %v1599_v45 = vadd.f32 %v1598_v44, %v1488_v34  ;;  %v11072_v41 = vld [vmem:[%s15554_s0 + $0x330] sm:$0xff] }
  0xf4   :  { %v1376_v46 = vadd.f32 %v1375_v47, %v10960_v42  ;;  %v1600_v52 = vadd.f32 %v1599_v45, %v1489_v43  ;;  %v1503_v43 = vmul.f32 %v11032_v15, %v11032_v15  ;;  %v1504_v45 = vmul.f32 %v11040_v20, %v11040_v20 }
  0xf6   :  { %v1377_v53 = vadd.f32 %v1376_v46, %v10968_v48  ;;  %v1601_v56 = vadd.f32 %v1600_v52, %v1490_v49  ;;  %v1280_v49 = vld [vmem:[%s15554_s0 + $0x338] sm:$0xff]  ;;  %v1281_v52 = vld [vmem:[%s15554_s0 + $0x340] sm:$0xff] }
  0xf8   :  { %v1378_v57 = vadd.f32 %v1377_v53, %v10976_v50  ;;  %v1602_v60 = vadd.f32 %v1601_v56, %v1491_v51  ;;  %v1505_v53 = vmul.f32 %v11048_v26, %v11048_v26 }
  0xfa   :  { %v1379_v61 = vadd.f32 %v1378_v57, %v10984_v54  ;;  %v1603_v0 = vadd.f32 %v1602_v60, %v1492_v55  ;;  %v1282_v57 = vld [vmem:[%s15554_s0 + $0x348] sm:$0xff] }
  0xfc   :  { %v1380_v1 = vadd.f32 %v1379_v61, %v10992_v58  ;;  %v1604_v5 = vadd.f32 %v1603_v0, %v1493_v59  ;;  %v1506_v59 = vmul.f32 %v11056_v31, %v11056_v31  ;;  %v1507_v0 = vmul.f32 %v11064_v37, %v11064_v37 }
  0xfe   :  { %v1381_v6 = vadd.f32 %v1380_v1, %v11000_v62  ;;  %v1605_v9 = vadd.f32 %v1604_v5, %v1494_v63  ;;  %v1283_v63 = vld [vmem:[%s15554_s0 + $0x350] sm:$0xff]  ;;  %v1284_v5 = vld [vmem:[%s15554_s0 + $0x358] sm:$0xff] }
 0x100   :  { %v1382_v10 = vadd.f32 %v1381_v6, %v11008_v3  ;;  %v1606_v13 = vadd.f32 %v1605_v9, %v1495_v4  ;;  %v1508_v6 = vmul.f32 %v11072_v41, %v11072_v41 }
 0x102   :  { %v1383_v14 = vadd.f32 %v1382_v10, %v11016_v7  ;;  %v1607_v17 = vadd.f32 %v1606_v13, %v1496_v8  ;;  %v1285_v10 = vld [vmem:[%s15554_s0 + $0x360] sm:$0xff] }
 0x104   :  { %v1384_v19 = vadd.f32 %v1383_v14, %v11024_v11  ;;  %v1608_v24 = vadd.f32 %v1607_v17, %v1497_v12  ;;  %v1509_v12 = vmul.f32 %v1280_v49, %v1280_v49  ;;  %v1510_v17 = vmul.f32 %v1281_v52, %v1281_v52 }
 0x106   :  { %v1385_v25 = vadd.f32 %v1384_v19, %v11032_v15  ;;  %v1609_v28 = vadd.f32 %v1608_v24, %v1498_v16  ;;  %v1286_v16 = vld [vmem:[%s15554_s0 + $0x368] sm:$0xff]  ;;  %v1287_v24 = vld [vmem:[%s15554_s0 + $0x370] sm:$0xff] }
 0x108   :  { %v1386_v29 = vadd.f32 %v1385_v25, %v11040_v20  ;;  %v1610_v33 = vadd.f32 %v1609_v28, %v1499_v22  ;;  %v1511_v25 = vmul.f32 %v1282_v57, %v1282_v57 }
 0x10a   :  { %v1387_v36 = vadd.f32 %v1386_v29, %v11048_v26  ;;  %v1611_v34 = vadd.f32 %v1610_v33, %v1500_v27  ;;  %v11115_v29 = vld [vmem:[%s15554_s0 + $0x378] sm:$0xff] }
 0x10c   :  { %v1388_v40 = vadd.f32 %v1387_v36, %v11056_v31  ;;  %v1612_v44 = vadd.f32 %v1611_v34, %v1501_v32  ;;  %v1512_v32 = vmul.f32 %v1283_v63, %v1283_v63 }
 0x10e   :  { %v1389_v47 = vadd.f32 %v1388_v40, %v11064_v37  ;;  %v1613_v46 = vadd.f32 %v1612_v44, %v1502_v38  ;;  %v1513_v38 = vmul.f32 %v1284_v5, %v1284_v5 }
 0x110   :  { %v1390_v51 = vadd.f32 %v1389_v47, %v11072_v41  ;;  %v1614_v55 = vadd.f32 %v1613_v46, %v1503_v43  ;;  %v1514_v43 = vmul.f32 %v1285_v10, %v1285_v10 }
 0x112   :  { %v1391_v56 = vadd.f32 %v1390_v51, %v1280_v49  ;;  %v1615_v60 = vadd.f32 %v1614_v55, %v1504_v45  ;;  %v1515_v49 = vmul.f32 %v1286_v16, %v1286_v16  ;;  %v1516_v51 = vmul.f32 %v1287_v24, %v1287_v24 }
 0x113   :  { %v1517_v55 = vmul.f32 %v11115_v29, %v11115_v29 }
 0x114   :  { %v1392_v61 = vadd.f32 %v1391_v56, %v1281_v52  ;;  %v1616_v1 = vadd.f32 %v1615_v60, %v1505_v53 }
 0x116   :  { %v1393_v4 = vadd.f32 %v1392_v61, %v1282_v57  ;;  %v1617_v8 = vadd.f32 %v1616_v1, %v1506_v59 }
 0x118   :  { %v1394_v9 = vadd.f32 %v1393_v4, %v1283_v63  ;;  %v1618_v13 = vadd.f32 %v1617_v8, %v1507_v0 }
 0x11a   :  { %v1395_v14 = vadd.f32 %v1394_v9, %v1284_v5  ;;  %v1619_v19 = vadd.f32 %v1618_v13, %v1508_v6 }
 0x11c   :  { %v1396_v22 = vadd.f32 %v1395_v14, %v1285_v10  ;;  %v1620_v27 = vadd.f32 %v1619_v19, %v1509_v12 }
 0x11e   :  { %v1397_v28 = vadd.f32 %v1396_v22, %v1286_v16  ;;  %v1621_v33 = vadd.f32 %v1620_v27, %v1510_v17  ;;  %v1647_v16 = vlaneseq }
 0x120   :  { %v1398_v36 = vadd.f32 %v1397_v28, %v1287_v24  ;;  %v1622_v34 = vadd.f32 %v1621_v33, %v1511_v25  ;;  %v11120_v17 = vshrl.u32 %v1647_v16, 7  ;;  %v1639_v24 = vld [vmem:[#allocation4] sm:$0x1] }
 0x122   :  { %v1399_v40 = vadd.f32 %v1398_v36, %v11115_v29  ;;  %v1623_v44 = vadd.f32 %v1622_v34, %v1512_v32  ;;  %v2330_v19 = vadd.s32 888, %v11120_v17  ;;  %v2302_v22 = vadd.s32 664, %v11120_v17 }
 0x123   :  { %v2222_v25 = vadd.s32 24, %v11120_v17  ;;  %v1649_v27 = vsub.s32 0, %v11120_v17  ;;  %v11127_v32 = vadd.s32 696, %v11120_v17  ;;  %v11130_v36 = vadd.s32 56, %v11120_v17 }
 0x124   :  { %v1400_v47 = vrot.slane %v1399_v40, 4  ;;  %v1624_v45 = vadd.f32 %v1623_v44, %v1513_v38  ;;  %v3112_v28 = vand.u32 31, %v2330_v19  ;;  %v11133_v38 = vadd.s32 728, %v11120_v17  ;;  %v1993_v19 = vld [vmem:[%s15555_s1 + $0x378] sm:$0xff] }
 0x125   :  { %v11136_v34 = vadd.s32 88, %v11120_v17  ;;  %v2916_v44 = vand.u32 31, %v2302_v22  ;;  %vm15663_vm2 = vcmp.lt.s32.totalorder %v11120_v17, 1  ;;  %v11198_v16 = vadd.s32 120, %v11120_v17  ;;  %v1964_v22 = vld [vmem:[%s15555_s1 + $0x290] sm:$0xff] }
 0x126   :  { %v1401_v46 = vadd.f32 %v1400_v47, %v1399_v40  ;;  %v1625_v52 = vadd.f32 %v1624_v45, %v1514_v43  ;;  %v11139_v40 = vadd.s32 760, %v11120_v17  ;;  %v1643_v47 = vld [vmem:[#allocation5] sm:$0x1]  ;;  %vm11144_vm0 = vcmp.lt.s32.totalorder %v3112_v28, 28  ;;  %v10273_v28 = vld [vmem:[%s15554_s0 + $0x28] sm:$0xff] }
 0x127   :  { %vm11162_vm1 = vcmp.lt.s32.totalorder %v2916_v44, 28  ;;  %vm15653_vm4 = vcmp.lt.s32.totalorder %v11120_v17, 7 }
 0x128   :  { %v1402_v53 = vrot.slane %v1401_v46, 2  ;;  %v1626_v56 = vadd.f32 %v1625_v52, %v1515_v49  ;;  %v2356_v49 = vand.u32 31, %v2222_v25  ;;  %v15780_v52 = vmov 0  ;;  %v10272_v25 = vld [vmem:[%s15554_s0 + $0x20] sm:$0xff] }
 0x129   :  { %v15781_v52 = vsel %vm11144_vm0, 4294967295, %v15780_v52 }
 0x12a   :  { %v1403_v57 = vadd.f32 %v1402_v53, %v1401_v46  ;;  %v1627_v59 = vadd.f32 %v1626_v56, %v1516_v51  ;;  %v2944_v51 = vand.u32 31, %v11127_v32  ;;  %15782 = vst [vmem:[#allocation7_spill] sm:$0xff] %v15781_v52  ;;  %vm11177_vm3 = vcmp.lt.s32.totalorder %v2356_v49, 28 }
 0x12b   :  { %vm11325_vm7 = vmpackc.low %vm11177_vm3, %vm15656_vm6 }
 0x12c   :  { %v1404_v60 = vrot.slane %v1403_v57, 1  ;;  %v1628_v61 = vadd.f32 %v1627_v59, %v1517_v55  ;;  %vm11296_vm5 = vcmp.lt.s32.totalorder %v2944_v51, 28 }
 0x12e   :  { %v1629_v63 = vrot.slane %v1628_v61, 4  ;;  %v1405_v0 = vadd.f32 %v1404_v60, %v1403_v57  ;;  %v10268_v60 = vld [vmem:[%s15554_s0] sm:$0xff] }
 0x130   :  { %v1630_v1 = vadd.f32 %v1629_v63, %v1628_v61  ;;  %v1635_v6 = vmul.f32 0.0012755102, %v1405_v0  ;;  %v10269_v63 = vld [vmem:[%s15554_s0 + $0x8] sm:$0xff] }
 0x132   :  { %v1631_v4 = vrot.slane %v1630_v1, 2  ;;  %v1637_v10 = vmul.f32 %v1635_v6, %v1635_v6 }
 0x134   :  { %v1632_v5 = vadd.f32 %v1631_v4, %v1630_v1  ;;  %v15783_v4 = vmov 0 }
 0x135   :  { %v15784_v4 = vsel %vm11162_vm1, 4294967295, %v15783_v4 }
 0x136   :  { %v1633_v8 = vrot.slane %v1632_v5, 1  ;;  %15785 = vst [vmem:[#allocation8_spill] sm:$0xff] %v15784_v4 }
 0x138   :  { %v1634_v9 = vadd.f32 %v1633_v8, %v1632_v5 }
 0x13a   :  { %v1636_v12 = vmul.f32 0.0012755102, %v1634_v9  ;;  %v10270_v9 = vld [vmem:[%s15554_s0 + $0x10] sm:$0xff] }
 0x13c   :  { %v1638_v13 = vsub.f32 %v1636_v12, %v1637_v10 }
 0x13e   :  { %v1640_v14 = vadd.f32 1e-05, %v1638_v13 }
 0x140   :  { %10266 = vrsqrt.f32 %v1640_v14 }
 0x14a   :  { %v10267_v33 = vpop.eup %10266 }
 0x14b   :  { %v1642_v43 = vmul.f32 %v10267_v33, %v1639_v24  ;;  %v1965_v24 = vld [vmem:[%s15555_s1 + $0x298] sm:$0xff] }
 0x14d   :  { %v1644_v45 = vmul.f32 %v1642_v43, %v1635_v6  ;;  %v11141_v46 = vrot.slane %v1642_v43, %v1649_v27 }
 0x14f   :  { %v1645_v59 = vsub.f32 %v1643_v47, %v1644_v45  ;;  %v1652_v61 = vmul.f32 %v10268_v60, %v11141_v46  ;;  %v1653_v0 = vmul.f32 %v10269_v63, %v11141_v46  ;;  %v1763_v1 = vmul.f32 %v11141_v46, %v11115_v29  ;;  %v1966_v45 = vld [vmem:[%s15555_s1 + $0x2a0] sm:$0xff] }
 0x150   :  { %v1734_v5 = vmul.f32 %v11141_v46, %v10923_v18  ;;  %v1735_v6 = vmul.f32 %v11141_v46, %v10928_v23  ;;  %v1736_v8 = vmul.f32 %v11141_v46, %v10934_v21  ;;  %v1654_v29 = vmul.f32 %v10270_v9, %v11141_v46  ;;  %v1882_v18 = vld [vmem:[%s15555_s1] sm:$0xff]  ;;  %v1883_v23 = vld [vmem:[%s15555_s1 + $0x8] sm:$0xff]  ;;  %v10271_v21 = vld [vmem:[%s15554_s0 + $0x18] sm:$0xff] }
 0x151   :  { %v11181_v12 = vrot.slane %v1645_v59, %v1649_v27  ;;  %v1655_v13 = vmul.f32 %v10271_v21, %v11141_v46  ;;  %v11195_v14 = vmul.f32 %v11141_v46, %v10940_v30  ;;  %v11212_v30 = vmul.f32 %v11141_v46, %v10946_v35  ;;  %v1884_v59 = vld [vmem:[%s15555_s1 + $0x10] sm:$0xff] }
 0x152   :  { %v11218_v27 = vmul.f32 %v10272_v25, %v11141_v46  ;;  %v11224_v33 = vmul.f32 %v10273_v28, %v11141_v46  ;;  %v11228_v43 = vmul.f32 %v11141_v46, %v10952_v39  ;;  %v1885_v39 = vld [vmem:[%s15555_s1 + $0x18] sm:$0xff] }
 0x153   :  { %v1770_v35 = vadd.f32 %v11181_v12, %v1652_v61  ;;  %v1771_v44 = vadd.f32 %v11181_v12, %v1653_v0  ;;  %v1881_v47 = vadd.f32 %v11181_v12, %v1763_v1  ;;  %v1852_v49 = vadd.f32 %v11181_v12, %v1734_v5 }
 0x154   :  { %v1853_v60 = vadd.f32 %v11181_v12, %v1735_v6  ;;  %v1854_v61 = vadd.f32 %v11181_v12, %v1736_v8  ;;  %v1772_v63 = vadd.f32 %v11181_v12, %v1654_v29  ;;  %v1773_v0 = vadd.f32 %v11181_v12, %v1655_v13 }
 0x155   :  { %v1994_v1 = vadd.f32 %v1882_v18, %v1770_v35  ;;  %v1995_v5 = vadd.f32 %v1883_v23, %v1771_v44  ;;  %v11247_v9 = vadd.f32 %v1993_v19, %v1881_v47  ;;  %v2076_v21 = vadd.f32 %v1964_v22, %v1852_v49 }
 0x156   :  { %v11249_v25 = vadd.f32 %v1965_v24, %v1853_v60  ;;  %v2078_v28 = vadd.f32 %v1966_v45, %v1854_v61  ;;  %v1996_v57 = vadd.f32 %v1884_v59, %v1772_v63  ;;  %v1997_v56 = vadd.f32 %v1885_v39, %v1773_v0 }
 0x157   :  { %15788 = vst [vmem:[#allocation9_spill] sm:$0xff] %v11247_v9  ;;  %v11251_v55 = vmax.f32 %v1994_v1, 0.0  ;;  %v11253_v53 = vmax.f32 %v1995_v5, 0.0  ;;  %v15562_v6 = vmax.f32 %v11247_v9, 0.0  ;;  %v11256_v8 = vmax.f32 %v2076_v21, 0.0 }
 0x158   :  { %15789 = vst [vmem:[#allocation10_spill] sm:$0xff] %v11249_v25  ;;  %v15563_v29 = vmax.f32 %v11249_v25, 0.0  ;;  %v11259_v18 = vmax.f32 %v2078_v28, 0.0  ;;  %v11261_v23 = vmax.f32 %v1996_v57, 0.0  ;;  %v2109_v13 = vmax.f32 %v1997_v56, 0.0 }
 0x159   :  { %15790 = vst [vmem:[#allocation11_spill] sm:$0xff] %v11251_v55  ;;  %15791 = vst [vmem:[#allocation12_spill] sm:$0xff] %v11253_v53  ;;  %v11265_v19 = vpack.c.bf16 %v11253_v53, %v11251_v55  ;;  %v11271_v22 = vsel %vm11144_vm0, %v15562_v6, 0.0  ;;  %v4123_v24 = vrot.slane %v11251_v55, 7  ;;  %v4124_v35 = vrot.slane %v11253_v53, 7 }
 0x15a   :  { %15792 = vst [vmem:[#allocation13_spill] sm:$0xff] %v11256_v8  ;;  %15793 = vst [vmem:[#allocation14_spill] sm:$0xff] %v11259_v18  ;;  %v15561_v44 = vrot.slane %v11271_v22, 7  ;;  %v11280_v56 = vsel %vm11162_vm1, %v15563_v29, 0.0  ;;  %v15560_v57 = vrot.slane %v11256_v8, 1  ;;  %v4432_v47 = vrot.slane %v11259_v18, 1 }
 0x15b   :  { %15794 = vst [vmem:[#allocation15_spill] sm:$0xff] %v11261_v23  ;;  %15795 = vst [vmem:[#allocation16_spill] sm:$0xff] %v11271_v22  ;;  %5633 = vmatprep.mubr.bf16.mxu0 %v11265_v19  ;;  %v4346_v49 = vsel %vm15663_vm2, %v4123_v24, %v4124_v35  ;;  %v4431_v45 = vrot.slane %v11280_v56, 1  ;;  %v11290_v59 = vsel %vm11177_vm3, %v2109_v13, 0.0  ;;  %v1740_v39 = vmul.f32 %v11141_v46, %v10960_v42  ;;  %v1967_v42 = vld [vmem:[%s15555_s1 + $0x2a8] sm:$0xff] }
 0x15c   :  { %15796 = vst [vmem:[#allocation17_spill] sm:$0xff] %v11280_v56  ;;  %15797 = vst [vmem:[#allocation18_spill] sm:$0xff] %v11290_v59  ;;  %v15798_v60 = vmov 0  ;;  %v4347_v61 = vsel %vm15663_vm2, %v15561_v44, %v4123_v24  ;;  %v15564_v63 = vrot.slane %v11290_v59, 7  ;;  %v11306_v0 = vpack.c.bf16 %v2109_v13, %v11261_v23  ;;  %v10242_v21 = vld [vmem:[#allocation6 + $0x8] ss:$12 sps:$4 sm:$0xff]  }
 0x15d   :  { %v15799_v60 = vsel %vm11296_vm5, 4294967295, %v15798_v60  ;;  %v4125_v1 = vrot.slane %v11261_v23, 7  ;;  %v11312_v32 = vpack.c.bf16 %v4346_v49, %v4347_v61  ;;  %v4488_v51 = vsel %vm15653_vm4, %v4431_v45, %v4432_v47  ;;  %v1968_v24 = vld [vmem:[%s15555_s1 + $0x2b0] sm:$0xff] }
 0x15e   :  { %15800 = vst [vmem:[#allocation19_spill] sm:$0xff] %v15799_v60  ;;  %v4489_v5 = vsel %vm15653_vm4, %v15560_v57, %v4431_v45  ;;  %v1855_v13 = vadd.f32 %v11181_v12, %v11195_v14  ;;  %v1856_v61 = vadd.f32 %v11181_v12, %v11212_v30  ;;  %v1886_v14 = vld [vmem:[%s15555_s1 + $0x20] sm:$0xff]  ;;  %v1774_v44 = vadd.f32 %v11181_v12, %v11218_v27  ;;  %v1969_v30 = vld [vmem:[%s15555_s1 + $0x2b8] sm:$0xff] }
 0x15f   :  { %v11334_v49 = vpack.c.bf16 %v4488_v51, %v4489_v5  ;;  %v4344_v45 = vsel %vm15663_vm2, %v4125_v1, %v15564_v63  ;;  %v4345_v10 = vsel %vm15663_vm2, %v4124_v35, %v4125_v1  ;;  %v1887_v51 = vld [vmem:[%s15555_s1 + $0x28] sm:$0xff]  ;;  %5634 = vmatmul.mubr.bf16.gmra.mrb[8].mxu0 %v11312_v32  ;;  %v1775_v35 = vadd.f32 %v11181_v12, %v11224_v33  ;;  %v1970_v1 = vld [vmem:[%s15555_s1 + $0x2c0] sm:$0xff]  ;;  %v10274_v63 = vld [vmem:[%s15554_s0 + $0x30] sm:$0xff] }
 0x160   :  { %v11351_v5 = vpack.c.bf16 %v4344_v45, %v4345_v10  ;;  %v2079_v57 = vadd.f32 %v1967_v42, %v1855_v13  ;;  %9552 = vmatprep.mubr.msk.bf16.mxu0 %vm11325_vm7, %v11306_v0  ;;  %v2080_v42 = vadd.f32 %v1968_v24, %v1856_v61  ;;  %v1857_v27 = vadd.f32 %v11181_v12, %v11228_v43  ;;  %v10243_v10 = vld [vmem:[#allocation6 + $0x20] ss:$12 sps:$4 sm:$0xff]   ;;  %v10275_v61 = vld [vmem:[%s15554_s0 + $0x38] sm:$0xff] }
 0x161   :  { %15803 = vst [vmem:[#allocation20_spill] sm:$0xff] %v11334_v49  ;;  %6677 = vmatmul.mubr.bf16.vlgmr.msra.gmra.mrb[0].mxu1 %v11334_v49  ;;  %v1858_v33 = vadd.f32 %v11181_v12, %v1740_v39  ;;  %v1998_v6 = vadd.f32 %v1886_v14, %v1774_v44  ;;  %v1999_v29 = vadd.f32 %v1887_v51, %v1775_v35  ;;  %v15805_v43 = vand.u32 31, %v11130_v36  ;;  %v1973_v39 = vld [vmem:[%s15555_s1 + $0x2d8] sm:$0xff] }
 0x162   :  { %6848 = vmatpush1.bf16.msra.mxu1 %v10242_v21  ;;  %6686 = vmatprep.mubr.bf16.mxu1 %v15569_v2  ;;  %v11372_v45 = vmax.f32 %v2079_v57, 0.0  ;;  %v1658_v24 = vmul.f32 %v10274_v63, %v11141_v46  ;;  %v11384_v21 = vmax.f32 %v2080_v42, 0.0  ;;  %v11387_v57 = vadd.f32 %v1969_v30, %v1857_v27  ;;  %v1888_v30 = vld [vmem:[%s15555_s1 + $0x30] sm:$0xff] }
 0x163   :  { %vm11380_vm8 = vcmp.lt.s32.totalorder %v15805_v43, 28  ;;  %6849 = vmatprep.subr.bf16.mxu1 %v15569_v2  ;;  %v2082_v44 = vadd.f32 %v1970_v1, %v1858_v33  ;;  %v1659_v14 = vmul.f32 %v10275_v61, %v11141_v46  ;;  %v11394_v36 = vmax.f32 %v1998_v6, 0.0 }
 0x164   :  { %15804 = vst [vmem:[#allocation21_spill] sm:$0xff] %v11372_v45  ;;  %15808 = vst [vmem:[#allocation22_spill] sm:$0xff] %v11384_v21  ;;  %v4433_v63 = vrot.slane %v11372_v45, 1  ;;  %v11396_v51 = vmax.f32 %v1999_v29, 0.0  ;;  %v1776_v35 = vadd.f32 %v11181_v12, %v1658_v24  ;;  %v4434_v1 = vrot.slane %v11384_v21, 1  ;;  %v10299_v45 = vld [vmem:[%s15554_s0 + $0x360] sm:$0xff] }
 0x165   :  { %15809 = vst [vmem:[#allocation23_spill] sm:$0xff] %v11387_v57  ;;  %15810 = vst [vmem:[#allocation24_spill] sm:$0xff] %v11394_v36  ;;  %v15568_v42 = vmax.f32 %v11387_v57, 0.0  ;;  %v11404_v27 = vmax.f32 %v2082_v44, 0.0  ;;  %v1777_v33 = vadd.f32 %v11181_v12, %v1659_v14  ;;  %v4127_v24 = vrot.slane %v11394_v36, 7  ;;  %v1889_v44 = vld [vmem:[%s15555_s1 + $0x38] sm:$0xff] }
 0x166   :  { %15811 = vst [vmem:[#allocation25_spill] sm:$0xff] %v11396_v51  ;;  %v4487_v6 = vsel %vm15653_vm4, %v4432_v47, %v4433_v63  ;;  %6850 = vmatpush1.bf16.msra.mxu1 %v10243_v10  ;;  %v11413_v29 = vpack.c.bf16 %v11396_v51, %v11394_v36  ;;  %v4128_v43 = vrot.slane %v11396_v51, 7  ;;  %v4486_v61 = vsel %vm15653_vm4, %v4433_v63, %v4434_v1  ;;  %v10244_v14 = vld [vmem:[#allocation6 + $0x38] ss:$12 sps:$4 sm:$0xff]   ;;  %vm11507_vm10 = vmpackc.low %vm11380_vm8, %vm15656_vm6  ;;  %v10257_v57 = vld [vmem:[#allocation6 + $0x170] ss:$12 sps:$4 sm:$0xff]  }
 0x167   :  { %15812 = vst [vmem:[#allocation26_spill] sm:$0xff] %v11404_v27  ;;  %v11426_v47 = vsel %vm11296_vm5, %v15568_v42, 0.0  ;;  %6851 = vmatprep.subr.bf16.mxu1 %v15569_v2  ;;  %v2000_v13 = vadd.f32 %v1888_v30, %v1776_v35  ;;  %5644 = vmatmul.mubr.bf16.gmra.mrb[12].mxu0 %v11351_v5  ;;  %v11431_v49 = vpack.c.bf16 %v4486_v61, %v4487_v6  ;;  %v15815_v63 = vrot.slane %v11290_v59, 7  ;;  %v10245_v59 = vld [vmem:[#allocation6 + $0x50] ss:$12 sps:$4 sm:$0xff]  }
 0x168   :  { %15813 = vst [vmem:[#allocation27_spill] sm:$0xff] %v11426_v47  ;;  %v4342_v51 = vsel %vm15663_vm2, %v4127_v24, %v4128_v43  ;;  %v4435_v42 = vrot.slane %v11426_v47, 1  ;;  %5653 = vmatprep.mubr.bf16.mxu0 %v11413_v29  ;;  %v2001_v10 = vadd.f32 %v1889_v44, %v1777_v33  ;;  %v1741_v35 = vmul.f32 %v11141_v46, %v10968_v48  ;;  %v10276_v48 = vld [vmem:[%s15554_s0 + $0x40] sm:$0xff] }
 0x169   :  { %15814 = vst [vmem:[#allocation28_spill] sm:$0xff] %v11431_v49  ;;  %v4343_v36 = vsel %vm15663_vm2, %v15815_v63, %v4127_v24  ;;  %v11441_v2 = vmax.f32 %v2000_v13, 0.0  ;;  %v11446_v30 = vadd.s32 792, %v11120_v17  ;;  %6687 = vmatmul.mubr.bf16.gmra.mrb[4].mxu1 %v11431_v49  ;;  %v15817_v61 = vrot.slane %v11404_v27, 1  ;;  %v1971_v13 = vld [vmem:[%s15555_s1 + $0x2c8] sm:$0xff]  ;;  %v1972_v49 = vld [vmem:[%s15555_s1 + $0x2d0] sm:$0xff] }
 0x16a   :  { %v11449_v6 = vpack.c.bf16 %v4342_v51, %v4343_v36  ;;  %v1742_v33 = vmul.f32 %v11141_v46, %v10976_v50  ;;  %v1660_v44 = vmul.f32 %v10276_v48, %v11141_v46  ;;  %v15818_v36 = vmov 0   ;;  %6852 = vmatpush1.bf16.msra.mxu1 %v10244_v14 }
 0x16b   :  { %15816 = vst [vmem:[#allocation29_spill] sm:$0xff] %v11441_v2  ;;  %v4484_v24 = vsel %vm15653_vm4, %v4435_v42, %v15817_v61  ;;  %6696 = vmatprep.mubr.bf16.mxu1 %v15818_v36  ;;  %v4485_v51 = vsel %vm15653_vm4, %v4434_v1, %v4435_v42  ;;  %v2113_v63 = vmax.f32 %v2001_v10, 0.0  ;;  %v4129_v61 = vrot.slane %v11441_v2, 7  ;;  %6853 = vmatprep.subr.bf16.mxu1 %v15818_v36  ;;  %v10277_v1 = vld [vmem:[%s15554_s0 + $0x48] sm:$0xff] }
 0x16c   :  { %v1859_v50 = vadd.f32 %v11181_v12, %v1741_v35  ;;  %v15819_v23 = vand.u32 31, %v11133_v38  ;;  %v15820_v48 = vmov 0  ;;  %v1860_v53 = vadd.f32 %v11181_v12, %v1742_v33  ;;  %v1890_v38 = vld [vmem:[%s15555_s1 + $0x40] sm:$0xff] }
 0x16d   :  { %v1661_v42 = vmul.f32 %v10277_v1, %v11141_v46  ;;  %v1778_v10 = vadd.f32 %v11181_v12, %v1660_v44  ;;  %v11492_v14 = vsel %vm11380_vm8, %v2113_v63, 0.0  ;;  %v11495_v35 = vpack.c.bf16 %v2113_v63, %v11441_v2  ;;  %v1891_v1 = vld [vmem:[%s15555_s1 + $0x48] sm:$0xff] }
 0x16e   :  { %vm11474_vm9 = vcmp.lt.s32.totalorder %v15819_v23, 28  ;;  %v1743_v23 = vmul.f32 %v11141_v46, %v10984_v54  ;;  %15823 = vst [vmem:[#allocation31_spill] sm:$0xff] %v11492_v14  ;;  %v2083_v33 = vadd.f32 %v1971_v13, %v1859_v50  ;;  %v11501_v52 = vpack.c.bf16 %v4484_v24, %v4485_v51  ;;  %6854 = vmatpush1.bf16.msra.mxu1 %v10245_v59  ;;  %v10246_v44 = vld [vmem:[#allocation6 + $0x68] ss:$12 sps:$4 sm:$0xff]   ;;  %v1974_v59 = vld [vmem:[%s15555_s1 + $0x2e0] sm:$0xff] }
 0x16f   :  { %v15821_v48 = vsel %vm11474_vm9, 4294967295, %v15820_v48  ;;  %v4130_v9 = vrot.slane %v11492_v14, 7  ;;  %v2084_v63 = vadd.f32 %v1972_v49, %v1860_v53  ;;  %v1779_v13 = vadd.f32 %v11181_v12, %v1661_v42  ;;  %5654 = vmatmul.mubr.bf16.gmra.mrb[16].mxu0 %v11449_v6  ;;  %6855 = vmatprep.subr.bf16.mxu1 %v15818_v36 }
 0x170   :  { %15822 = vst [vmem:[#allocation30_spill] sm:$0xff] %v15821_v48  ;;  %15824 = vst [vmem:[#allocation32_spill] sm:$0xff] %v11501_v52  ;;  %v11512_v50 = vmax.f32 %v2083_v33, 0.0  ;;  %v2002_v2 = vadd.f32 %v1890_v38, %v1778_v10  ;;  %v1744_v24 = vmul.f32 %v11141_v46, %v10992_v58  ;;  %v1861_v51 = vadd.f32 %v11181_v12, %v1743_v23  ;;  %v10278_v58 = vld [vmem:[%s15554_s0 + $0x50] sm:$0xff] }
 0x171   :  { %v4341_v53 = vsel %vm15663_vm2, %v4128_v43, %v4129_v61  ;;  %v11523_v49 = vmax.f32 %v2084_v63, 0.0  ;;  %v2003_v42 = vadd.f32 %v1891_v1, %v1779_v13  ;;  %v1662_v10 = vmul.f32 %v10278_v58, %v11141_v46  ;;  %9555 = vmatprep.mubr.msk.bf16.mxu0 %vm11507_vm10, %v11495_v35  ;;  %6697 = vmatmul.mubr.bf16.gmra.mrb[8].mxu1 %v11501_v52 }
 0x172   :  { %15827 = vst [vmem:[#allocation33_spill] sm:$0xff] %v11512_v50  ;;  %v15829_v38 = vand.u32 31, %v11136_v34  ;;  %v4340_v43 = vsel %vm15663_vm2, %v4129_v61, %v4130_v9  ;;  %v4437_v33 = vrot.slane %v11512_v50, 1  ;;  %v11545_v1 = vmax.f32 %v2002_v2, 0.0  ;;  %6706 = vmatprep.mubr.bf16.mxu1 %v15818_v36  ;;  %6856 = vmatpush1.bf16.msra.mxu1 %v10246_v44  ;;  %v1893_v44 = vld [vmem:[%s15555_s1 + $0x58] sm:$0xff] }
 0x173   :  { %15828 = vst [vmem:[#allocation34_spill] sm:$0xff] %v11523_v49  ;;  %v1862_v63 = vadd.f32 %v11181_v12, %v1744_v24  ;;  %v4438_v34 = vrot.slane %v11523_v49, 1  ;;  %v11550_v13 = vmax.f32 %v2003_v42, 0.0  ;;  %v11552_v58 = vadd.f32 %v1973_v39, %v1861_v51  ;;  %v1892_v39 = vld [vmem:[%s15555_s1 + $0x50] sm:$0xff]  ;;  %6857 = vmatprep.subr.bf16.mxu1 %v15818_v36 }
 0x174   :  { %vm11535_vm11 = vcmp.lt.s32.totalorder %v15829_v38, 28  ;;  %15832 = vst [vmem:[#allocation35_spill] sm:$0xff] %v11545_v1  ;;  %v10279_v38 = vld [vmem:[%s15554_s0 + $0x58] sm:$0xff]  ;;  %v15835_v2 = vrot.slane %v11404_v27, 1  ;;  %v4131_v52 = vrot.slane %v11545_v1, 7  ;;  %v1780_v51 = vadd.f32 %v11181_v12, %v1662_v10 }
 0x175   :  { %15833 = vst [vmem:[#allocation36_spill] sm:$0xff] %v11550_v13  ;;  %15834 = vst [vmem:[#allocation37_spill] sm:$0xff] %v11552_v58  ;;  %v1663_v61 = vmul.f32 %v10279_v38, %v11141_v46  ;;  %v2086_v14 = vadd.f32 %v1974_v59, %v1862_v63  ;;  %v10247_v42 = vld [vmem:[#allocation6 + $0x80] ss:$12 sps:$4 sm:$0xff]   ;;  %v11568_v49 = vpack.c.bf16 %v4340_v43, %v4341_v53  ;;  %v4132_v50 = vrot.slane %v11550_v13, 7 }
 0x176   :  { %v4483_v24 = vsel %vm15653_vm4, %v15835_v2, %v4437_v33  ;;  %v4482_v38 = vsel %vm15653_vm4, %v4437_v33, %v4438_v34  ;;  %v15588_v2 = vmax.f32 %v11552_v58, 0.0  ;;  %v11582_v10 = vpack.c.bf16 %v11550_v13, %v11545_v1  ;;  %6858 = vmatpush1.bf16.msra.mxu1 %v10247_v42  ;;  %v10248_v1 = vld [vmem:[#allocation6 + $0x98] ss:$12 sps:$4 sm:$0xff]   ;;  %vm11669_vm13 = vmpackc.low %vm11535_vm11, %vm15656_vm6 }
 0x177   :  { %v11578_v59 = vpack.c.bf16 %v4482_v38, %v4483_v24  ;;  %v11584_v53 = vmax.f32 %v2086_v14, 0.0  ;;  %v1781_v43 = vadd.f32 %v11181_v12, %v1663_v61  ;;  %v4339_v33 = vsel %vm15663_vm2, %v4130_v9, %v4131_v52  ;;  %v1975_v9 = vld [vmem:[%s15555_s1 + $0x2e8] sm:$0xff]  ;;  %5664 = vmatmul.mubr.bf16.gmra.mrb[20].mxu0 %v11568_v49  ;;  %6859 = vmatprep.subr.bf16.mxu1 %v15818_v36 }
 0x178   :  { %v11593_v63 = vsel %vm11474_vm9, %v15588_v2, 0.0  ;;  %v2004_v27 = vadd.f32 %v1892_v39, %v1780_v51  ;;  %v1745_v24 = vmul.f32 %v11141_v46, %v11000_v62  ;;  %v4338_v38 = vsel %vm15663_vm2, %v4131_v52, %v4132_v50  ;;  %v10280_v39 = vld [vmem:[%s15554_s0 + $0x60] sm:$0xff]  ;;  %5673 = vmatprep.mubr.bf16.mxu0 %v11582_v10 }
 0x179   :  { %15836 = vst [vmem:[#allocation38_spill] sm:$0xff] %v11578_v59  ;;  %15837 = vst [vmem:[#allocation39_spill] sm:$0xff] %v11584_v53  ;;  %v4439_v14 = vrot.slane %v11593_v63, 1  ;;  %v15589_v61 = vrot.slane %v11584_v53, 1  ;;  %v2005_v13 = vadd.f32 %v1893_v44, %v1781_v43  ;;  %v1746_v62 = vmul.f32 %v11141_v46, %v11008_v3  ;;  %v1976_v43 = vld [vmem:[%s15555_s1 + $0x2f0] sm:$0xff]  ;;  %6707 = vmatmul.mubr.bf16.gmra.mrb[12].mxu1 %v11578_v59 }
 0x17a   :  { %15838 = vst [vmem:[#allocation40_spill] sm:$0xff] %v11593_v63  ;;  %v11605_v51 = vmax.f32 %v2004_v27, 0.0  ;;  %v1863_v52 = vadd.f32 %v11181_v12, %v1745_v24  ;;  %v1664_v44 = vmul.f32 %v10280_v39, %v11141_v46  ;;  %v10281_v24 = vld [vmem:[%s15554_s0 + $0x68] sm:$0xff]  ;;  %v11630_v2 = vpack.c.bf16 %v4338_v38, %v4339_v33  ;;  %6716 = vmatprep.mubr.bf16.mxu1 %v15818_v36  ;;  %v10249_v59 = vld [vmem:[#allocation6 + $0xb0] ss:$12 sps:$4 sm:$0xff]  }
 0x17b   :  { %v4480_v27 = vsel %vm15653_vm4, %v4439_v14, %v15589_v61  ;;  %v4481_v3 = vsel %vm15653_vm4, %v4438_v34, %v4439_v14  ;;  %v2117_v42 = vmax.f32 %v2005_v13, 0.0  ;;  %v1665_v39 = vmul.f32 %v10281_v24, %v11141_v46  ;;  %v1894_v13 = vld [vmem:[%s15555_s1 + $0x60] sm:$0xff]  ;;  %v1895_v14 = vld [vmem:[%s15555_s1 + $0x68] sm:$0xff]  ;;  %6860 = vmatpush1.bf16.msra.mxu1 %v10248_v1 }
 0x17c   :  { %15839 = vst [vmem:[#allocation41_spill] sm:$0xff] %v11605_v51  ;;  %v4133_v61 = vrot.slane %v11605_v51, 7  ;;  %v1864_v48 = vadd.f32 %v11181_v12, %v1746_v62  ;;  %v2087_v34 = vadd.f32 %v1975_v9, %v1863_v52  ;;  %v11641_v24 = vpack.c.bf16 %v4480_v27, %v4481_v3  ;;  %6861 = vmatprep.subr.bf16.mxu1 %v15818_v36 }
 0x17d   :  { %v11645_v33 = vsel %vm11535_vm11, %v2117_v42, 0.0  ;;  %v1782_v38 = vadd.f32 %v11181_v12, %v1664_v44  ;;  %v1783_v9 = vadd.f32 %v11181_v12, %v1665_v39  ;;  %v15842_v62 = vand.u32 31, %v11139_v40 }
 0x17e   :  { %15840 = vst [vmem:[#allocation42_spill] sm:$0xff] %v11641_v24  ;;  %15841 = vst [vmem:[#allocation43_spill] sm:$0xff] %v11645_v33  ;;  %v15843_v52 = vmov 0  ;;  %v4134_v63 = vrot.slane %v11645_v33, 7  ;;  %v11657_v27 = vpack.c.bf16 %v2117_v42, %v11605_v51  ;;  %v4337_v3 = vsel %vm15663_vm2, %v4132_v50, %v4133_v61  ;;  %v1897_v33 = vld [vmem:[%s15555_s1 + $0x78] sm:$0xff] }
 0x17f   :  { %vm11651_vm12 = vcmp.lt.s32.totalorder %v15842_v62, 28  ;;  %v2088_v58 = vadd.f32 %v1976_v43, %v1864_v48  ;;  %v11662_v44 = vmax.f32 %v2087_v34, 0.0  ;;  %v2006_v40 = vadd.f32 %v1894_v13, %v1782_v38  ;;  %v10282_v43 = vld [vmem:[%s15554_s0 + $0x70] sm:$0xff]  ;;  %6862 = vmatpush1.bf16.msra.mxu1 %v10249_v59  ;;  %5674 = vmatmul.mubr.bf16.gmra.mrb[24].mxu0 %v11630_v2  ;;  %v10250_v59 = vld [vmem:[#allocation6 + $0xc8] ss:$12 sps:$4 sm:$0xff]  }
 0x180   :  { %v15844_v52 = vsel %vm11651_vm12, 4294967295, %v15843_v52  ;;  %v2007_v39 = vadd.f32 %v1895_v14, %v1783_v9  ;;  %v1747_v62 = vmul.f32 %v11141_v46, %v11016_v7  ;;  %v4336_v50 = vsel %vm15663_vm2, %v4133_v61, %v4134_v63  ;;  %v1978_v14 = vld [vmem:[%s15555_s1 + $0x300] sm:$0xff]  ;;  %6863 = vmatprep.subr.bf16.mxu1 %v15818_v36  ;;  %9558 = vmatprep.mubr.msk.bf16.mxu0 %vm11669_vm13, %v11657_v27 }
 0x181   :  { %15845 = vst [vmem:[#allocation44_spill] sm:$0xff] %v15844_v52  ;;  %15846 = vst [vmem:[#allocation45_spill] sm:$0xff] %v11662_v44  ;;  %v11675_v48 = vmax.f32 %v2088_v58, 0.0  ;;  %v1748_v42 = vmul.f32 %v11141_v46, %v11024_v11  ;;  %v1666_v7 = vmul.f32 %v10282_v43, %v11141_v46  ;;  %v15850_v23 = vand.u32 31, %v11198_v16  ;;  %v1977_v11 = vld [vmem:[%s15555_s1 + $0x2f8] sm:$0xff]  ;;  %6717 = vmatmul.mubr.bf16.gmra.mrb[16].mxu1 %v11641_v24 }
 0x182   :  { %v4441_v13 = vrot.slane %v11662_v44, 1  ;;  %v11690_v61 = vmax.f32 %v2006_v40, 0.0  ;;  %v11692_v58 = vmax.f32 %v2007_v39, 0.0  ;;  %v11701_v16 = vadd.s32 152, %v11120_v17  ;;  %v10283_v39 = vld [vmem:[%s15554_s0 + $0x78] sm:$0xff]  ;;  %6726 = vmatprep.mubr.bf16.mxu1 %v15818_v36 }
 0x183   :  { %15849 = vst [vmem:[#allocation46_spill] sm:$0xff] %v11675_v48  ;;  %vm11685_vm14 = vcmp.lt.s32.totalorder %v15850_v23, 28  ;;  %v1865_v9 = vadd.f32 %v11181_v12, %v1747_v62  ;;  %v1866_v40 = vadd.f32 %v11181_v12, %v1748_v42  ;;  %v1667_v43 = vmul.f32 %v10283_v39, %v11141_v46  ;;  %v1896_v39 = vld [vmem:[%s15555_s1 + $0x70] sm:$0xff]  ;;  %6864 = vmatpush1.bf16.msra.mxu1 %v10250_v59 }
 0x184   :  { %15853 = vst [vmem:[#allocation47_spill] sm:$0xff] %v11690_v61  ;;  %15854 = vst [vmem:[#allocation48_spill] sm:$0xff] %v11692_v58  ;;  %v11715_v23 = vpack.c.bf16 %v4336_v50, %v4337_v3  ;;  %v15855_v38 = vrot.slane %v11584_v53, 1  ;;  %v4135_v42 = vrot.slane %v11690_v61, 7  ;;  %v15856_v51 = vrot.slane %v11675_v48, 1  ;;  %6865 = vmatprep.subr.bf16.mxu1 %v15818_v36 }
 0x185   :  { %v11731_v50 = vadd.f32 %v1977_v11, %v1865_v9  ;;  %v2090_v44 = vadd.f32 %v1978_v14, %v1866_v40  ;;  %v11742_v24 = vpack.c.bf16 %v11692_v58, %v11690_v61  ;;  %v15859_v60 = vrot.slane %v11692_v58, 7  ;;  %v10251_v40 = vld [vmem:[#allocation6 + $0xe0] ss:$12 sps:$4 sm:$0xff]   ;;  %vm11851_vm3 = vmpackc.low %vm11685_vm14, %vm15656_vm6 }
 0x186   :  { %v4479_v62 = vsel %vm15653_vm4, %v15855_v38, %v4441_v13  ;;  %v4478_v3 = vsel %vm15653_vm4, %v4441_v13, %v15856_v51  ;;  %v1784_v38 = vadd.f32 %v11181_v12, %v1666_v7  ;;  %v1785_v13 = vadd.f32 %v11181_v12, %v1667_v43 }
 0x187   :  { %15857 = vst [vmem:[#allocation49_spill] sm:$0xff] %v11731_v50  ;;  %v11738_v53 = vpack.c.bf16 %v4478_v3, %v4479_v62  ;;  %v4334_v51 = vsel %vm15663_vm2, %v4135_v42, %v15859_v60  ;;  %v4335_v7 = vsel %vm15663_vm2, %v4134_v63, %v4135_v42  ;;  %v15603_v11 = vmax.f32 %v11731_v50, 0.0  ;;  %v10284_v60 = vld [vmem:[%s15554_s0 + $0x80] sm:$0xff]  ;;  %5684 = vmatmul.mubr.bf16.gmra.mrb[28].mxu0 %v11715_v23 }
 0x188   :  { %v11752_v14 = vmax.f32 %v2090_v44, 0.0  ;;  %v2008_v9 = vadd.f32 %v1896_v39, %v1784_v38  ;;  %v2009_v62 = vadd.f32 %v1897_v33, %v1785_v13  ;;  %v1749_v3 = vmul.f32 %v11141_v46, %v11032_v15  ;;  %v1979_v13 = vld [vmem:[%s15555_s1 + $0x308] sm:$0xff]  ;;  %6866 = vmatpush1.bf16.msra.mxu1 %v10251_v40  ;;  %5693 = vmatprep.mubr.bf16.mxu0 %v11742_v24 }
 0x189   :  { %15858 = vst [vmem:[#allocation50_spill] sm:$0xff] %v11738_v53  ;;  %v1750_v61 = vmul.f32 %v11141_v46, %v11040_v20  ;;  %v1668_v63 = vmul.f32 %v10284_v60, %v11141_v46  ;;  %v11767_v44 = vsel %vm11651_vm12, %v15603_v11, 0.0  ;;  %v10285_v20 = vld [vmem:[%s15554_s0 + $0x88] sm:$0xff]  ;;  %v11797_v33 = vpack.c.bf16 %v4334_v51, %v4335_v7  ;;  %6867 = vmatprep.subr.bf16.mxu1 %v15818_v36 }
 0x18a   :  { %15860 = vst [vmem:[#allocation51_spill] sm:$0xff] %v11752_v14  ;;  %15861 = vst [vmem:[#allocation52_spill] sm:$0xff] %v11767_v44  ;;  %v11770_v15 = vmax.f32 %v2008_v9, 0.0  ;;  %v1669_v43 = vmul.f32 %v10285_v20, %v11141_v46  ;;  %v4443_v59 = vrot.slane %v11767_v44, 1  ;;  %v2121_v42 = vmax.f32 %v2009_v62, 0.0  ;;  %v1980_v9 = vld [vmem:[%s15555_s1 + $0x310] sm:$0xff]  ;;  %6727 = vmatmul.mubr.bf16.gmra.mrb[20].mxu1 %v11738_v53 }
 0x18b   :  { %v1867_v39 = vadd.f32 %v11181_v12, %v1749_v3  ;;  %v1868_v38 = vadd.f32 %v11181_v12, %v1750_v61  ;;  %v1786_v60 = vadd.f32 %v11181_v12, %v1668_v63  ;;  %v1898_v62 = vld [vmem:[%s15555_s1 + $0x80] sm:$0xff]  ;;  %v1899_v61 = vld [vmem:[%s15555_s1 + $0x88] sm:$0xff]  ;;  %v1751_v3 = vmul.f32 %v11141_v46, %v11048_v26  ;;  %6736 = vmatprep.mubr.bf16.mxu1 %v15818_v36 }
 0x18c   :  { %15862 = vst [vmem:[#allocation53_spill] sm:$0xff] %v11770_v15  ;;  %v1787_v20 = vadd.f32 %v11181_v12, %v1669_v43  ;;  %v10252_v11 = vld [vmem:[#allocation6 + $0xf8] ss:$12 sps:$4 sm:$0xff]   ;;  %v11801_v63 = vsel %vm11685_vm14, %v2121_v42, 0.0  ;;  %v15864_v43 = vand.u32 31, %v11446_v30  ;;  %v15865_v52 = vmov 0 }
 0x18d   :  { %15863 = vst [vmem:[#allocation54_spill] sm:$0xff] %v11801_v63  ;;  %v2468_v44 = vand.u32 31, %v11701_v16  ;;  %v15868_v26 = vrot.slane %v11752_v14, 1  ;;  %v15869_v7 = vrot.slane %v11675_v48, 1  ;;  %v11821_v40 = vpack.c.bf16 %v2121_v42, %v11770_v15  ;;  %6868 = vmatpush1.bf16.msra.mxu1 %v10252_v11 }
 0x18e   :  { %vm11805_vm15 = vcmp.lt.s32.totalorder %v15864_v43, 28  ;;  %v4137_v43 = vrot.slane %v11770_v15, 7  ;;  %v2091_v16 = vadd.f32 %v1979_v13, %v1867_v39  ;;  %v2092_v50 = vadd.f32 %v1980_v9, %v1868_v38  ;;  %v10253_v38 = vld [vmem:[#allocation6 + $0x110] ss:$12 sps:$4 sm:$0xff]   ;;  %6869 = vmatprep.subr.bf16.mxu1 %v15818_v36 }
 0x18f   :  { %v15866_v52 = vsel %vm11805_vm15, 4294967295, %v15865_v52  ;;  %v4476_v51 = vsel %vm15653_vm4, %v4443_v59, %v15868_v26  ;;  %v4477_v30 = vsel %vm15653_vm4, %v15869_v7, %v4443_v59  ;;  %v2010_v53 = vadd.f32 %v1898_v62, %v1786_v60  ;;  %v1981_v26 = vld [vmem:[%s15555_s1 + $0x318] sm:$0xff]  ;;  %v10286_v7 = vld [vmem:[%s15554_s0 + $0x90] sm:$0xff]  ;;  %5694 = vmatmul.mubr.bf16.gmra.mrb[32].mxu0 %v11797_v33 }
 0x190   :  { %15867 = vst [vmem:[#allocation55_spill] sm:$0xff] %v15866_v52  ;;  %v2011_v47 = vadd.f32 %v1899_v61, %v1787_v20  ;;  %v4138_v48 = vrot.slane %v11801_v63, 7  ;;  %v1752_v59 = vmul.f32 %v11141_v46, %v11056_v31  ;;  %v1869_v42 = vadd.f32 %v11181_v12, %v1751_v3  ;;  %v1982_v31 = vld [vmem:[%s15555_s1 + $0x320] sm:$0xff]  ;;  %9561 = vmatprep.mubr.msk.bf16.mxu0 %vm11851_vm3, %v11821_v40 }
 0x191   :  { %v1670_v39 = vmul.f32 %v10286_v7, %v11141_v46  ;;  %v11836_v13 = vpack.c.bf16 %v4476_v51, %v4477_v30  ;;  %v11838_v9 = vmax.f32 %v2091_v16, 0.0  ;;  %v11840_v60 = vmax.f32 %v2092_v50, 0.0  ;;  %6870 = vmatpush1.bf16.msra.mxu1 %v10253_v38 }
 0x192   :  { %v11842_v20 = vmax.f32 %v2010_v53, 0.0  ;;  %v11855_v62 = vmax.f32 %v2011_v47, 0.0  ;;  %v1870_v50 = vadd.f32 %v11181_v12, %v1752_v59  ;;  %v11858_v61 = vadd.f32 %v1981_v26, %v1869_v42  ;;  %v10287_v53 = vld [vmem:[%s15554_s0 + $0x98] sm:$0xff]  ;;  %6871 = vmatprep.subr.bf16.mxu1 %v15818_v36 }
 0x193   :  { %15870 = vst [vmem:[#allocation56_spill] sm:$0xff] %v11836_v13  ;;  %15871 = vst [vmem:[#allocation57_spill] sm:$0xff] %v11838_v9  ;;  %v1671_v3 = vmul.f32 %v10287_v53, %v11141_v46  ;;  %v15878_v51 = vrot.slane %v11692_v58, 7  ;;  %v4445_v30 = vrot.slane %v11838_v9, 1  ;;  %v4446_v47 = vrot.slane %v11840_v60, 1  ;;  %v1900_v53 = vld [vmem:[%s15555_s1 + $0x90] sm:$0xff]  ;;  %6737 = vmatmul.mubr.bf16.gmra.mrb[24].mxu1 %v11836_v13 }
 0x194   :  { %15872 = vst [vmem:[#allocation58_spill] sm:$0xff] %v11840_v60  ;;  %15873 = vst [vmem:[#allocation59_spill] sm:$0xff] %v11842_v20  ;;  %v1788_v16 = vadd.f32 %v11181_v12, %v1670_v39  ;;  %v4332_v26 = vsel %vm15663_vm2, %v4137_v43, %v4138_v48  ;;  %v4139_v59 = vrot.slane %v11842_v20, 7  ;;  %v2094_v42 = vadd.f32 %v1982_v31, %v1870_v50  ;;  %v10254_v39 = vld [vmem:[#allocation6 + $0x128] ss:$12 sps:$4 sm:$0xff]  }
 0x195   :  { %15876 = vst [vmem:[#allocation60_spill] sm:$0xff] %v11855_v62  ;;  %15877 = vst [vmem:[#allocation61_spill] sm:$0xff] %v11858_v61  ;;  %v4333_v34 = vsel %vm15663_vm2, %v15878_v51, %v4137_v43  ;;  %v1901_v51 = vld [vmem:[%s15555_s1 + $0x98] sm:$0xff]  ;;  %v1789_v31 = vadd.f32 %v11181_v12, %v1671_v3  ;;  %vm11887_vm8 = vcmp.lt.s32.totalorder %v2468_v44, 28  ;;  %v11892_v7 = vadd.s32 824, %v11120_v17  ;;  %6746 = vmatprep.mubr.bf16.mxu1 %v15818_v36 }
 0x196   :  { %v4474_v38 = vsel %vm15653_vm4, %v4445_v30, %v4446_v47  ;;  %v15881_v63 = vrot.slane %v11752_v14, 1  ;;  %v11901_v43 = vmax.f32 %v2094_v42, 0.0  ;;  %v15883_v44 = vmax.f32 %v11858_v61, 0.0  ;;  %6872 = vmatpush1.bf16.msra.mxu1 %v10254_v39  ;;  %vm12019_vm11 = vmpackc.low %vm11887_vm8, %vm15656_vm6 }
 0x197   :  { %v11911_v13 = vpack.c.bf16 %v4332_v26, %v4333_v34  ;;  %v11915_v58 = vpack.c.bf16 %v11855_v62, %v11842_v20  ;;  %v2012_v60 = vadd.f32 %v1900_v53, %v1788_v16  ;;  %v1753_v42 = vmul.f32 %v11141_v46, %v11064_v37  ;;  %v10288_v34 = vld [vmem:[%s15554_s0 + $0xa0] sm:$0xff]  ;;  %v1983_v37 = vld [vmem:[%s15555_s1 + $0x328] sm:$0xff]  ;;  %6873 = vmatprep.subr.bf16.mxu1 %v15818_v36 }
 0x198   :  { %v4475_v15 = vsel %vm15653_vm4, %v15881_v63, %v4445_v30  ;;  %15882 = vst [vmem:[#allocation62_spill] sm:$0xff] %v11901_v43  ;;  %v11907_v3 = vsel %vm11805_vm15, %v15883_v44, 0.0  ;;  %v2013_v63 = vadd.f32 %v1901_v51, %v1789_v31  ;;  %v4331_v30 = vsel %vm15663_vm2, %v4138_v48, %v4139_v59  ;;  %v10255_v20 = vld [vmem:[#allocation6 + $0x140] ss:$12 sps:$4 sm:$0xff]   ;;  %v10289_v48 = vld [vmem:[%s15554_s0 + $0xa8] sm:$0xff] }
 0x199   :  { %15884 = vst [vmem:[#allocation63_spill] sm:$0xff] %v11907_v3  ;;  %v1754_v44 = vmul.f32 %v11141_v46, %v11072_v41  ;;  %v1672_v26 = vmul.f32 %v10288_v34, %v11141_v46  ;;  %v11927_v52 = vpack.c.bf16 %v4474_v38, %v4475_v15  ;;  %v4447_v16 = vrot.slane %v11907_v3, 1  ;;  %v1984_v41 = vld [vmem:[%s15555_s1 + $0x330] sm:$0xff]  ;;  %5704 = vmatmul.mubr.bf16.gmra.mrb[36].mxu0 %v11911_v13 }
 0x19a   :  { %v2125_v53 = vmax.f32 %v2013_v63, 0.0  ;;  %v1673_v51 = vmul.f32 %v10289_v48, %v11141_v46  ;;  %v15886_v15 = vrot.slane %v11855_v62, 7  ;;  %v15623_v31 = vrot.slane %v11901_v43, 1  ;;  %6874 = vmatpush1.bf16.msra.mxu1 %v10255_v20  ;;  %5713 = vmatprep.mubr.bf16.mxu0 %v11915_v58 }
 0x19b   :  { %15885 = vst [vmem:[#allocation64_spill] sm:$0xff] %v11927_v52  ;;  %v1871_v38 = vadd.f32 %v11181_v12, %v1753_v42  ;;  %v1872_v63 = vadd.f32 %v11181_v12, %v1754_v44  ;;  %v11948_v34 = vmax.f32 %v2012_v60, 0.0  ;;  %v1790_v3 = vadd.f32 %v11181_v12, %v1672_v26  ;;  %v10256_v44 = vld [vmem:[#allocation6 + $0x158] ss:$12 sps:$4 sm:$0xff]   ;;  %6747 = vmatmul.mubr.bf16.gmra.mrb[28].mxu1 %v11927_v52 }
 0x19c   :  { %v4330_v39 = vsel %vm15663_vm2, %v4139_v59, %v15886_v15  ;;  %v11954_v48 = vsel %vm11887_vm8, %v2125_v53, 0.0  ;;  %v1902_v59 = vld [vmem:[%s15555_s1 + $0xa0] sm:$0xff]  ;;  %v3056_v42 = vand.u32 31, %v11892_v7  ;;  %v4473_v26 = vsel %vm15653_vm4, %v4446_v47, %v4447_v16  ;;  %6875 = vmatprep.subr.bf16.mxu1 %v15818_v36  ;;  %6756 = vmatprep.mubr.bf16.mxu1 %v15818_v36 }
 0x19d   :  { %15887 = vst [vmem:[#allocation65_spill] sm:$0xff] %v11948_v34  ;;  %15888 = vst [vmem:[#allocation66_spill] sm:$0xff] %v11954_v48  ;;  %v2095_v61 = vadd.f32 %v1983_v37, %v1871_v38  ;;  %v2096_v9 = vadd.f32 %v1984_v41, %v1872_v63  ;;  %v11961_v60 = vpack.c.bf16 %v4330_v39, %v4331_v30  ;;  %v1903_v37 = vld [vmem:[%s15555_s1 + $0xa8] sm:$0xff]  ;;  %v10290_v41 = vld [vmem:[%s15554_s0 + $0x338] sm:$0xff]  ;;  %v2298_v1 = vadd.s32 632, %v11120_v17 }
 0x19e   :  { %v1791_v15 = vadd.f32 %v11181_v12, %v1673_v51  ;;  %v1755_v20 = vmul.f32 %v10290_v41, %v11141_v46  ;;  %v4472_v7 = vsel %vm15653_vm4, %v4447_v16, %v15623_v31  ;;  %v10291_v51 = vld [vmem:[%s15554_s0 + $0x340] sm:$0xff]  ;;  %v1985_v38 = vld [vmem:[%s15555_s1 + $0x338] sm:$0xff]  ;;  %6876 = vmatpush1.bf16.msra.mxu1 %v10256_v44  ;;  %v12001_v16 = vpack.c.bf16 %v2125_v53, %v11948_v34 }
 0x19f   :  { %v11978_v47 = vmax.f32 %v2095_v61, 0.0  ;;  %v11980_v30 = vmax.f32 %v2096_v9, 0.0  ;;  %v1756_v39 = vmul.f32 %v10291_v51, %v11141_v46  ;;  %v4141_v61 = vrot.slane %v11948_v34, 7  ;;  %v1986_v41 = vld [vmem:[%s15555_s1 + $0x340] sm:$0xff]  ;;  %6877 = vmatprep.subr.bf16.mxu1 %v15818_v36 }
 0x1a0   :  { %v2014_v9 = vadd.f32 %v1902_v59, %v1790_v3  ;;  %v1873_v63 = vadd.f32 %v11181_v12, %v1755_v20  ;;  %v2015_v52 = vadd.f32 %v1903_v37, %v1791_v15  ;;  %v10292_v3 = vld [vmem:[%s15554_s0 + $0xb0] sm:$0xff]  ;;  %v10293_v20 = vld [vmem:[%s15554_s0 + $0xb8] sm:$0xff]  ;;  %v12014_v44 = vpack.c.bf16 %v4472_v7, %v4473_v26 }
 0x1a1   :  { %15889 = vst [vmem:[#allocation67_spill] sm:$0xff] %v11978_v47  ;;  %15890 = vst [vmem:[#allocation68_spill] sm:$0xff] %v11980_v30  ;;  %v4449_v51 = vrot.slane %v11978_v47, 1  ;;  %v15631_v31 = vrot.slane %v11980_v30, 1  ;;  %v1874_v14 = vadd.f32 %v11181_v12, %v1756_v39  ;;  %v1674_v59 = vmul.f32 %v10292_v3, %v11141_v46  ;;  %5714 = vmatmul.mubr.bf16.gmra.mrb[40].mxu0 %v11961_v60 }
 0x1a2   :  { %v12003_v21 = vadd.f32 %v1985_v38, %v1873_v63  ;;  %v1675_v15 = vmul.f32 %v10293_v20, %v11141_v46  ;;  %15892 = vst [vmem:[#allocation70_spill] sm:$0xff] %v12014_v44  ;;  %v2242_v39 = vadd.s32 184, %v11120_v17  ;;  %v12024_v38 = vld [vmem:[#allocation6 + $0x188] ss:$12 sps:$4 sm:$0xff]   ;;  %v15895_v63 = vrot.slane %v11954_v48, 7  ;;  %6878 = vmatpush1.bf16.msra.mxu1 %v10257_v57  ;;  %9564 = vmatprep.mubr.msk.bf16.mxu0 %vm12019_vm11, %v12001_v16  ;;  %v10295_v57 = vld [vmem:[%s15554_s0 + $0x350] sm:$0xff] }
 0x1a3   :  { %v2098_v37 = vadd.f32 %v1986_v41, %v1874_v14  ;;  %v15896_v26 = vrot.slane %v11855_v62, 7  ;;  %v12034_v50 = vmax.f32 %v2014_v9, 0.0  ;;  %vm12036_vm14 = vcmp.lt.s32.totalorder %v3056_v42, 28  ;;  %v1905_v14 = vld [vmem:[%s15555_s1 + $0xb8] sm:$0xff]  ;;  %6757 = vmatmul.mubr.bf16.gmra.mrb[32].mxu1 %v12014_v44  ;;  %9786 = vmatprep.subr.bf16.mxu1 %v12024_v38 }
 0x1a4   :  { %15891 = vst [vmem:[#allocation69_spill] sm:$0xff] %v12003_v21  ;;  %v4328_v3 = vsel %vm15663_vm2, %v4141_v61, %v15895_v63  ;;  %v15898_v20 = vmov 0  ;;  %v4470_v41 = vsel %vm15653_vm4, %v4449_v51, %v15631_v31  ;;  %v12048_v63 = vmax.f32 %v2015_v52, 0.0  ;;  %v10294_v52 = vld [vmem:[%s15554_s0 + $0x348] sm:$0xff]  ;;  %6766 = vmatprep.mubr.bf16.mxu1 %v15818_v36 }
 0x1a5   :  { %v4329_v7 = vsel %vm15663_vm2, %v15896_v26, %v4141_v61  ;;  %15897 = vst [vmem:[#allocation71_spill] sm:$0xff] %v12034_v50  ;;  %v15899_v20 = vsel %vm12036_vm14, 4294967295, %v15898_v20  ;;  %v1793_v42 = vadd.f32 %v11181_v12, %v1675_v15  ;;  %v15902_v9 = vrot.slane %v11901_v43, 1 }
 0x1a6   :  { %15900 = vst [vmem:[#allocation72_spill] sm:$0xff] %v15899_v20  ;;  %15901 = vst [vmem:[#allocation73_spill] sm:$0xff] %v12048_v63  ;;  %v1792_v34 = vadd.f32 %v11181_v12, %v1674_v59  ;;  %v1757_v31 = vmul.f32 %v10294_v52, %v11141_v46  ;;  %v1758_v15 = vmul.f32 %v10295_v57, %v11141_v46  ;;  %v12069_v61 = vmax.f32 %v2098_v37, 0.0 }
 0x1a7   :  { %v4471_v26 = vsel %vm15653_vm4, %v15902_v9, %v4449_v51  ;;  %v1904_v51 = vld [vmem:[%s15555_s1 + $0xb0] sm:$0xff]  ;;  %v2017_v59 = vadd.f32 %v1905_v14, %v1793_v42  ;;  %v2496_v9 = vand.u32 31, %v2242_v39  ;;  %v12075_v62 = vadd.s32 856, %v11120_v17  ;;  %v1987_v39 = vld [vmem:[%s15555_s1 + $0x348] sm:$0xff] }
 0x1a8   :  { %15903 = vst [vmem:[#allocation74_spill] sm:$0xff] %v12069_v61  ;;  %v12079_v52 = vpack.c.bf16 %v4328_v3, %v4329_v7  ;;  %v15904_v57 = vmax.f32 %v12003_v21, 0.0  ;;  %v1875_v44 = vadd.f32 %v11181_v12, %v1757_v31  ;;  %v1876_v14 = vadd.f32 %v11181_v12, %v1758_v15  ;;  %v10296_v31 = vld [vmem:[%s15554_s0 + $0xc0] sm:$0xff] }
 0x1a9   :  { %v12092_v42 = vpack.c.bf16 %v4470_v41, %v4471_v26  ;;  %v12096_v3 = vpack.c.bf16 %v12048_v63, %v12034_v50  ;;  %v4143_v7 = vrot.slane %v12034_v50, 7  ;;  %v1676_v15 = vmul.f32 %v10296_v31, %v11141_v46  ;;  %v10297_v26 = vld [vmem:[%s15554_s0 + $0xc8] sm:$0xff]  ;;  %v10298_v50 = vld [vmem:[%s15554_s0 + $0x358] sm:$0xff] }
 0x1aa   :  { %v12085_v37 = vsel %vm12036_vm14, %v15904_v57, 0.0  ;;  %v1988_v57 = vld [vmem:[%s15555_s1 + $0x350] sm:$0xff]  ;;  %v2016_v41 = vadd.f32 %v1904_v51, %v1792_v34  ;;  %v1677_v21 = vmul.f32 %v10297_v26, %v11141_v46  ;;  %v1759_v47 = vmul.f32 %v10298_v50, %v11141_v46  ;;  %5724 = vmatmul.mubr.bf16.gmra.mrb[44].mxu0 %v12079_v52  ;;  %v10302_v34 = vld [vmem:[%s15554_s0 + $0x368] sm:$0xff] }
 0x1ab   :  { %15905 = vst [vmem:[#allocation75_spill] sm:$0xff] %v12085_v37  ;;  %15906 = vst [vmem:[#allocation76_spill] sm:$0xff] %v12092_v42  ;;  %v4451_v43 = vrot.slane %v12085_v37, 1  ;;  %v2129_v31 = vmax.f32 %v2017_v59, 0.0  ;;  %v2099_v18 = vadd.f32 %v1987_v39, %v1875_v44  ;;  %vm12117_vm8 = vcmp.lt.s32.totalorder %v2496_v9, 28  ;;  %5733 = vmatprep.mubr.bf16.mxu0 %v12096_v3  ;;  %6767 = vmatmul.mubr.bf16.gmra.mrb[36].mxu1 %v12092_v42 }
 0x1ac   :  { %v2100_v51 = vadd.f32 %v1988_v57, %v1876_v14  ;;  %v15909_v26 = vrot.slane %v11954_v48, 7  ;;  %v1794_v50 = vadd.f32 %v11181_v12, %v1676_v15  ;;  %v1760_v44 = vmul.f32 %v10299_v45, %v11141_v46  ;;  %v1906_v57 = vld [vmem:[%s15555_s1 + $0xc0] sm:$0xff]  ;;  %v1989_v45 = vld [vmem:[%s15555_s1 + $0x358] sm:$0xff]  ;;  %6776 = vmatprep.mubr.bf16.mxu1 %v15818_v36 }
 0x1ad   :  { %v15910_v59 = vrot.slane %v12048_v63, 7  ;;  %v12136_v14 = vmax.f32 %v2016_v41, 0.0  ;;  %v1795_v39 = vadd.f32 %v11181_v12, %v1677_v21  ;;  %v1877_v15 = vadd.f32 %v11181_v12, %v1759_v47  ;;  %v1907_v47 = vld [vmem:[%s15555_s1 + $0xc8] sm:$0xff] }
 0x1ae   :  { %v4327_v20 = vsel %vm15663_vm2, %v15909_v26, %v4143_v7  ;;  %v15912_v26 = vrot.slane %v12069_v61, 1  ;;  %v12153_v21 = vsel %vm12117_vm8, %v2129_v31, 0.0  ;;  %v12155_v41 = vmax.f32 %v2099_v18, 0.0  ;;  %v10300_v18 = vld [vmem:[%s15554_s0 + $0xd8] sm:$0xff] }
 0x1af   :  { %v4326_v9 = vsel %vm15663_vm2, %v4143_v7, %v15910_v59  ;;  %15911 = vst [vmem:[#allocation77_spill] sm:$0xff] %v12136_v14  ;;  %15913 = vst [vmem:[#allocation78_spill] sm:$0xff] %v12153_v21  ;;  %v3084_v59 = vand.u32 31, %v12075_v62  ;;  %v15915_v42 = vrot.slane %v11980_v30, 1  ;;  %v1878_v37 = vadd.f32 %v11181_v12, %v1760_v44  ;;  %v1990_v30 = vld [vmem:[%s15555_s1 + $0x360] sm:$0xff] }
 0x1b0   :  { %v4468_v7 = vsel %vm15653_vm4, %v4451_v43, %v15912_v26  ;;  %15914 = vst [vmem:[#allocation79_spill] sm:$0xff] %v12155_v41  ;;  %v12166_v26 = vmax.f32 %v2100_v51, 0.0  ;;  %v1679_v4 = vmul.f32 %v10300_v18, %v11141_v46  ;;  %v12173_v56 = vpack.c.bf16 %v4326_v9, %v4327_v20 }
 0x1b1   :  { %v4469_v48 = vsel %vm15653_vm4, %v15915_v42, %v4451_v43  ;;  %v2018_v62 = vadd.f32 %v1906_v57, %v1794_v50  ;;  %v12178_v25 = vadd.f32 %v1989_v45, %v1877_v15  ;;  %v10301_v43 = vld [vmem:[%s15554_s0 + $0xd0] sm:$0xff]  ;;  %v4146_v51 = vrot.slane %v12153_v21, 7  ;;  %vm12194_vm4 = vmpackc.low %vm12117_vm8, %vm15656_vm6 }
 0x1b2   :  { %15916 = vst [vmem:[#allocation80_spill] sm:$0xff] %v12166_v26  ;;  %v1678_v42 = vmul.f32 %v10301_v43, %v11141_v46  ;;  %v12186_v44 = vpack.c.bf16 %v2129_v31, %v12136_v14  ;;  %v4145_v20 = vrot.slane %v12136_v14, 7  ;;  %v2019_v50 = vadd.f32 %v1907_v47, %v1795_v39  ;;  %5734 = vmatmul.mubr.bf16.gmra.mrb[48].mxu0 %v12173_v56 }
 0x1b3   :  { %15917 = vst [vmem:[#allocation81_spill] sm:$0xff] %v12178_v25  ;;  %v12189_v9 = vpack.c.bf16 %v4468_v7, %v4469_v48  ;;  %v4453_v15 = vrot.slane %v12155_v41, 1  ;;  %v1797_v45 = vadd.f32 %v11181_v12, %v1679_v4  ;;  %v2246_v18 = vadd.s32 216, %v11120_v17  ;;  %v1909_v48 = vld [vmem:[%s15555_s1 + $0xd8] sm:$0xff] }
 0x1b4   :  { %v4454_v31 = vrot.slane %v12166_v26, 1  ;;  %v2102_v43 = vadd.f32 %v1990_v30, %v1878_v37  ;;  %v1761_v39 = vmul.f32 %v10302_v34, %v11141_v46  ;;  %v12210_v7 = vmax.f32 %v2018_v62, 0.0  ;;  %v10303_v30 = vld [vmem:[%s15554_s0 + $0x370] sm:$0xff]  ;;  %9567 = vmatprep.mubr.msk.bf16.mxu0 %vm12194_vm4, %v12186_v44 }
 0x1b5   :  { %15918 = vst [vmem:[#allocation82_spill] sm:$0xff] %v12189_v9  ;;  %v1796_v47 = vadd.f32 %v11181_v12, %v1678_v42  ;;  %v1762_v37 = vmul.f32 %v10303_v30, %v11141_v46  ;;  %v4324_v34 = vsel %vm15663_vm2, %v4145_v20, %v4146_v51  ;;  %v15922_v62 = vrot.slane %v12048_v63, 7  ;;  %v1908_v30 = vld [vmem:[%s15555_s1 + $0xd0] sm:$0xff]  ;;  %6777 = vmatmul.mubr.bf16.gmra.mrb[40].mxu1 %v12189_v9 }
 0x1b6   :  { %15921 = vst [vmem:[#allocation83_spill] sm:$0xff] %v12210_v7  ;;  %v12227_v21 = vmax.f32 %v2019_v50, 0.0  ;;  %vm12229_vm8 = vcmp.lt.s32.totalorder %v3084_v59, 28  ;;  %v15924_v42 = vmov 0  ;;  %v15927_v14 = vrot.slane %v12069_v61, 1  ;;  %6786 = vmatprep.mubr.bf16.mxu1 %v15818_v36 }
 0x1b7   :  { %v4325_v4 = vsel %vm15663_vm2, %v15922_v62, %v4145_v20  ;;  %v15925_v42 = vsel %vm12229_vm8, 4294967295, %v15924_v42  ;;  %vm15928_vm6 = vcmp.lt.s32.totalorder %v11120_v17, 7  ;;  %v2021_v26 = vadd.f32 %v1909_v48, %v1797_v45 }
 0x1b8   :  { %15923 = vst [vmem:[#allocation84_spill] sm:$0xff] %v12227_v21  ;;  %15926 = vst [vmem:[#allocation85_spill] sm:$0xff] %v15925_v42  ;;  %v4467_v63 = vsel %vm15928_vm6, %v15927_v14, %v4453_v15  ;;  %v2524_v41 = vand.u32 31, %v2246_v18  ;;  %v12244_v20 = vmax.f32 %v2102_v43, 0.0  ;;  %v1879_v50 = vadd.f32 %v11181_v12, %v1761_v39  ;;  %v1992_v18 = vld [vmem:[%s15555_s1 + $0x370] sm:$0xff] }
 0x1b9   :  { %vm15929_vm2 = vmmov %vm15928_vm6  ;;  %v1880_v62 = vadd.f32 %v11181_v12, %v1762_v37  ;;  %v12248_v8 = vpack.c.bf16 %v4324_v34, %v4325_v4  ;;  %v4147_v9 = vrot.slane %v12210_v7, 7  ;;  %v15931_v61 = vmax.f32 %v12178_v25, 0.0  ;;  %v10305_v4 = vld [vmem:[%s15554_s0 + $0xe8] sm:$0xff] }
 0x1ba   :  { %v4466_v59 = vsel %vm15929_vm2, %v4453_v15, %v4454_v31  ;;  %15930 = vst [vmem:[#allocation86_spill] sm:$0xff] %v12244_v20  ;;  %v2020_v45 = vadd.f32 %v1908_v30, %v1796_v47  ;;  %v1991_v15 = vld [vmem:[%s15555_s1 + $0x368] sm:$0xff]  ;;  %v12265_v43 = vpack.c.bf16 %v12227_v21, %v12210_v7  ;;  %v4148_v48 = vrot.slane %v12227_v21, 7 }
 0x1bb   :  { %v12255_v14 = vsel %vm12229_vm8, %v15931_v61, 0.0  ;;  %v10304_v61 = vld [vmem:[%s15554_s0 + $0xe0] sm:$0xff]  ;;  %v1681_v47 = vmul.f32 %v10305_v4, %v11141_v46  ;;  %v12276_v37 = vpack.c.bf16 %v4466_v59, %v4467_v63  ;;  %v2133_v34 = vmax.f32 %v2021_v26, 0.0  ;;  %5744 = vmatmul.mubr.bf16.gmra.mrb[52].mxu0 %v12248_v8 }
 0x1bc   :  { %15932 = vst [vmem:[#allocation87_spill] sm:$0xff] %v12255_v14  ;;  %15933 = vst [vmem:[#allocation88_spill] sm:$0xff] %v12265_v43  ;;  %v1680_v39 = vmul.f32 %v10304_v61, %v11141_v46  ;;  %vm12278_vm2 = vcmp.lt.s32.totalorder %v2524_v41, 28  ;;  %v4455_v21 = vrot.slane %v12255_v14, 1  ;;  %v4456_v7 = vrot.slane %v12244_v20, 1  ;;  %5753 = vmatprep.mubr.bf16.mxu0 %v12265_v43 }
 0x1bd   :  { %15934 = vst [vmem:[#allocation89_spill] sm:$0xff] %v12276_v37  ;;  %v2103_v42 = vadd.f32 %v1991_v15, %v1879_v50  ;;  %v2104_v25 = vadd.f32 %v1992_v18, %v1880_v62  ;;  %v12285_v61 = vmax.f32 %v2020_v45, 0.0  ;;  %vm15938_vm6 = vcmp.lt.s32.totalorder %v11120_v17, 1  ;;  %6787 = vmatmul.mubr.bf16.gmra.mrb[44].mxu1 %v12276_v37  ;;  %v1910_v62 = vld [vmem:[%s15555_s1 + $0xe0] sm:$0xff]  ;;  %v1911_v45 = vld [vmem:[%s15555_s1 + $0xe8] sm:$0xff] }
 0x1be   :  { %v4322_v63 = vsel %vm15938_vm6, %v4147_v9, %v4148_v48  ;;  %vm15939_vm0 = vmmov %vm15938_vm6  ;;  %v1798_v26 = vadd.f32 %v11181_v12, %v1680_v39  ;;  %v1799_v59 = vadd.f32 %v11181_v12, %v1681_v47  ;;  %v12297_v50 = vsel %vm12278_vm2, %v2133_v34, 0.0  ;;  %6796 = vmatprep.mubr.bf16.mxu1 %v15818_v36 }
 0x1bf   :  { %15937 = vst [vmem:[#allocation90_spill] sm:$0xff] %v12285_v61  ;;  %v4323_v41 = vsel %vm15939_vm0, %v4146_v51, %v4147_v9  ;;  %15940 = vst [vmem:[#allocation91_spill] sm:$0xff] %v12297_v50  ;;  %v10306_v51 = vld [vmem:[%s15554_s0 + $0xf8] sm:$0xff]  ;;  %vm15941_vm0 = vcmp.lt.s32.totalorder %v11120_v17, 7  ;;  %v12314_v39 = vmax.f32 %v2103_v42, 0.0  ;;  %v12316_v4 = vmax.f32 %v2104_v25, 0.0 }
 0x1c0   :  { %v1683_v9 = vmul.f32 %v10306_v51, %v11141_v46  ;;  %v4464_v15 = vsel %vm15941_vm0, %v4455_v21, %v4456_v7  ;;  %vm15942_vm6 = vmmov %vm15941_vm0  ;;  %v12318_v47 = vpack.c.bf16 %v4322_v63, %v4323_v41  ;;  %v4149_v37 = vrot.slane %v12285_v61, 7  ;;  %v10307_v51 = vld [vmem:[%s15554_s0 + $0xf0] sm:$0xff] }
 0x1c1   :  { %v4465_v18 = vsel %vm15942_vm6, %v4454_v31, %v4455_v21  ;;  %15943 = vst [vmem:[#allocation92_spill] sm:$0xff] %v12314_v39  ;;  %15944 = vst [vmem:[#allocation93_spill] sm:$0xff] %v12316_v4  ;;  %v1682_v20 = vmul.f32 %v10307_v51, %v11141_v46  ;;  %v4150_v14 = vrot.slane %v12297_v50, 7  ;;  %v12327_v43 = vpack.c.bf16 %v2133_v34, %v12285_v61  ;;  %v1913_v34 = vld [vmem:[%s15555_s1 + $0xf8] sm:$0xff] }
 0x1c2   :  { %v2022_v21 = vadd.f32 %v1910_v62, %v1798_v26  ;;  %v2023_v31 = vadd.f32 %v1911_v45, %v1799_v59  ;;  %v12329_v42 = vpack.c.bf16 %v4464_v15, %v4465_v18  ;;  %vm15946_vm0 = vmmov 1   ;;  %v1912_v15 = vld [vmem:[%s15555_s1 + $0xf0] sm:$0xff] }
 0x1c3   :  { %vm12334_vm6 = vmpackc.low %vm12278_vm2, %vm15946_vm0  ;;  %v1801_v63 = vadd.f32 %v11181_v12, %v1683_v9  ;;  %v4457_v41 = vrot.slane %v12314_v39, 1  ;;  %v4458_v51 = vrot.slane %v12316_v4, 1  ;;  %v2250_v26 = vadd.s32 248, %v11120_v17  ;;  %5754 = vmatmul.mubr.bf16.gmra.mrb[56].mxu0 %v12318_v47 }
 0x1c4   :  { %15945 = vst [vmem:[#allocation94_spill] sm:$0xff] %v12329_v42  ;;  %v1800_v30 = vadd.f32 %v11181_v12, %v1682_v20  ;;  %9570 = vmatprep.mubr.msk.bf16.mxu0 %vm12334_vm6, %v12327_v43  ;;  %vm15949_vm2 = vcmp.lt.s32.totalorder %v11120_v17, 1  ;;  %v12354_v45 = vmax.f32 %v2022_v21, 0.0  ;;  %v12356_v9 = vmax.f32 %v2023_v31, 0.0  ;;  %v10308_v31 = vld [vmem:[%s15554_s0 + $0x100] sm:$0xff] }
 0x1c5   :  { %v4320_v59 = vsel %vm15949_vm2, %v4149_v37, %v4150_v14  ;;  %vm15950_vm8 = vmmov %vm15949_vm2  ;;  %6797 = vmatmul.mubr.bf16.gmra.mrb[48].mxu1 %v12329_v42  ;;  %v2025_v20 = vadd.f32 %v1913_v34, %v1801_v63  ;;  %vm15953_vm14 = vcmp.lt.s32.totalorder %v11120_v17, 7  ;;  %v1684_v61 = vmul.f32 %v10308_v31, %v11141_v46 }
 0x1c6   :  { %v4321_v62 = vsel %vm15950_vm8, %v4148_v48, %v4149_v37  ;;  %15951 = vst [vmem:[#allocation95_spill] sm:$0xff] %v12354_v45  ;;  %15952 = vst [vmem:[#allocation96_spill] sm:$0xff] %v12356_v9  ;;  %6806 = vmatprep.mubr.bf16.mxu1 %v15818_v36  ;;  %v4462_v18 = vsel %vm15953_vm14, %v4457_v41, %v4458_v51  ;;  %v2552_v48 = vand.u32 31, %v2250_v26  ;;  %v4151_v34 = vrot.slane %v12354_v45, 7 }
 0x1c7   :  { %vm15954_vm2 = vmmov %vm15953_vm14  ;;  %v12367_v37 = vpack.c.bf16 %v4320_v59, %v4321_v62  ;;  %v2024_v21 = vadd.f32 %v1912_v15, %v1800_v30  ;;  %v12375_v63 = vpack.c.bf16 %v12356_v9, %v12354_v45  ;;  %v4152_v42 = vrot.slane %v12356_v9, 7  ;;  %v1915_v59 = vld [vmem:[%s15555_s1 + $0x108] sm:$0xff] }
 0x1c8   :  { %v4463_v50 = vsel %vm15954_vm2, %v4456_v7, %v4457_v41  ;;  %v10309_v7 = vld [vmem:[%s15554_s0 + $0x108] sm:$0xff]  ;;  %v2137_v30 = vmax.f32 %v2025_v20, 0.0  ;;  %v4459_v62 = vrot.slane %v11271_v22, 1  ;;  %vm12387_vm14 = vcmp.lt.s32.totalorder %v2552_v48, 28  ;;  %vm15960_vm2 = vmmov %vm15950_vm8  ;;  %v10311_v22 = vld [vmem:[%s15554_s0 + $0x110] sm:$0xff] }
 0x1c9   :  { %15955 = vst [vmem:[#allocation97_spill] sm:$0xff] %v12375_v63  ;;  %v1685_v41 = vmul.f32 %v10309_v7, %v11141_v46  ;;  %v12383_v26 = vpack.c.bf16 %v4462_v18, %v4463_v50  ;;  %v12392_v31 = vmax.f32 %v2024_v21, 0.0  ;;  %v4318_v7 = vsel %vm15950_vm8, %v4151_v34, %v4152_v42  ;;  %v1914_v21 = vld [vmem:[%s15555_s1 + $0x100] sm:$0xff] }
 0x1ca   :  { %v4319_v50 = vsel %vm15960_vm2, %v4150_v14, %v4151_v34  ;;  %v1802_v20 = vadd.f32 %v11181_v12, %v1684_v61  ;;  %v12404_v48 = vsel %vm12387_vm14, %v2137_v30, 0.0  ;;  %v10310_v14 = vld [vmem:[%s15554_s0 + $0x118] sm:$0xff]  ;;  %vm15962_vm8 = vcmp.lt.s32.totalorder %v11120_v17, 7 }
 0x1cb   :  { %15956 = vst [vmem:[#allocation98_spill] sm:$0xff] %v12383_v26  ;;  %5764 = vmatmul.mubr.bf16.gmra.mrb[60].mxu0 %v12367_v37  ;;  %15959 = vst [vmem:[#allocation99_spill] sm:$0xff] %v12392_v31  ;;  %v1803_v18 = vadd.f32 %v11181_v12, %v1685_v41  ;;  %v1687_v61 = vmul.f32 %v10310_v14, %v11141_v46  ;;  %v4461_v34 = vsel %vm15962_vm8, %v4458_v51, %v4459_v62 }
 0x1cc   :  { %5773 = vmatprep.mubr.bf16.mxu0 %v12375_v63  ;;  %15961 = vst [vmem:[#allocation100_spill] sm:$0xff] %v12404_v48  ;;  %v15963_v41 = vrot.slane %v11251_v55, 1  ;;  %vm15964_vm2 = vmmov %vm15962_vm8  ;;  %v12423_v9 = vpack.c.bf16 %v4318_v7, %v4319_v50  ;;  %v4153_v45 = vrot.slane %v12392_v31, 7  ;;  %v1686_v14 = vmul.f32 %v10311_v22, %v11141_v46  ;;  %v1917_v22 = vld [vmem:[%s15555_s1 + $0x118] sm:$0xff] }
 0x1cd   :  { %6807 = vmatmul.mubr.bf16.gmra.mrb[52].mxu1 %v12383_v26  ;;  %v4154_v4 = vrot.slane %v12404_v48, 7  ;;  %v12432_v39 = vpack.c.bf16 %v2137_v30, %v12392_v31  ;;  %v2026_v51 = vadd.f32 %v1914_v21, %v1802_v20  ;;  %v2027_v55 = vadd.f32 %v1915_v59, %v1803_v18  ;;  %vm12439_vm8 = vmpackc.low %vm12387_vm14, %vm15946_vm0  ;;  %v1916_v18 = vld [vmem:[%s15555_s1 + $0x110] sm:$0xff] }
 0x1ce   :  { %6816 = vmatprep.mubr.bf16.mxu1 %v15818_v36  ;;  %v4572_v26 = vsel %vm15964_vm2, %v4459_v62, %v15963_v41  ;;  %v1805_v7 = vadd.f32 %v11181_v12, %v1687_v61  ;;  %v2254_v30 = vadd.s32 280, %v11120_v17  ;;  %vm15968_vm2 = vcmp.lt.s32.totalorder %v11120_v17, 1  ;;  %v10315_v31 = vld [vmem:[%s15554_s0 + $0x130] sm:$0xff] }
 0x1cf   :  { %v12434_v63 = vpack.c.bf16 %v4572_v26, %v4461_v34  ;;  %v4317_v26 = vsel %vm15968_vm2, %v4152_v42, %v4153_v45  ;;  %vm15969_vm14 = vmmov %vm15968_vm2  ;;  %v12456_v15 = vmax.f32 %v2026_v51, 0.0  ;;  %v12458_v50 = vmax.f32 %v2027_v55, 0.0  ;;  %v10313_v34 = vld [vmem:[%s15554_s0 + $0x128] sm:$0xff] }
 0x1d0   :  { %v4316_v59 = vsel %vm15969_vm14, %v4153_v45, %v4154_v4  ;;  %v1804_v20 = vadd.f32 %v11181_v12, %v1686_v14  ;;  %v2029_v42 = vadd.f32 %v1917_v22, %v1805_v7  ;;  %v2580_v21 = vand.u32 31, %v2254_v30  ;;  %v10312_v45 = vld [vmem:[%s15554_s0 + $0x120] sm:$0xff]  ;;  %vm15975_vm15 = vmmov %vm15969_vm14 }
 0x1d1   :  { %15965 = vst [vmem:[#allocation101_spill] sm:$0xff] %v12434_v63  ;;  %15970 = vst [vmem:[#allocation102_spill] sm:$0xff] %v12456_v15  ;;  %v12466_v61 = vpack.c.bf16 %v4316_v59, %v4317_v26  ;;  %v1688_v55 = vmul.f32 %v10312_v45, %v11141_v46  ;;  %v1689_v41 = vmul.f32 %v10313_v34, %v11141_v46  ;;  %v4155_v51 = vrot.slane %v12456_v15, 7 }
 0x1d2   :  { %15971 = vst [vmem:[#allocation103_spill] sm:$0xff] %v12458_v50  ;;  %v12478_v14 = vpack.c.bf16 %v12458_v50, %v12456_v15  ;;  %v4156_v7 = vrot.slane %v12458_v50, 7  ;;  %v2028_v22 = vadd.f32 %v1916_v18, %v1804_v20  ;;  %v2141_v30 = vmax.f32 %v2029_v42, 0.0  ;;  %v1918_v18 = vld [vmem:[%s15555_s1 + $0x120] sm:$0xff]  ;;  %v1919_v42 = vld [vmem:[%s15555_s1 + $0x128] sm:$0xff] }
 0x1d3   :  { %5774 = vmatmul.mubr.bf16.gmra.mrb[64].mxu0 %v12423_v9  ;;  %vm12482_vm2 = vcmp.lt.s32.totalorder %v2580_v21, 28  ;;  %v1806_v59 = vadd.f32 %v11181_v12, %v1688_v55  ;;  %v1807_v45 = vadd.f32 %v11181_v12, %v1689_v41 }
 0x1d4   :  { %9573 = vmatprep.mubr.msk.bf16.mxu0 %vm12439_vm8, %v12432_v39  ;;  %15972 = vst [vmem:[#allocation104_spill] sm:$0xff] %v12478_v14  ;;  %v4314_v34 = vsel %vm15969_vm14, %v4155_v51, %v4156_v7  ;;  %v12494_v20 = vmax.f32 %v2028_v22, 0.0  ;;  %v12505_v21 = vsel %vm12482_vm2, %v2141_v30, 0.0 }
 0x1d5   :  { %6817 = vmatmul.mubr.bf16.gmra.mrb[56].mxu1 %v12434_v63  ;;  %v4315_v63 = vsel %vm15975_vm15, %v4154_v4, %v4155_v51  ;;  %15977 = vst [vmem:[#allocation106_spill] sm:$0xff] %v12505_v21  ;;  %v10314_v4 = vld [vmem:[%s15554_s0 + $0x138] sm:$0xff]  ;;  %v2030_v51 = vadd.f32 %v1918_v18, %v1806_v59  ;;  %v2031_v22 = vadd.f32 %v1919_v42, %v1807_v45  ;;  %v4158_v50 = vrot.slane %v12505_v21, 7  ;;  %vm12526_vm15 = vmpackc.low %vm12482_vm2, %vm15946_vm0 }
 0x1d6   :  { %6826 = vmatprep.mubr.bf16.mxu1 %v15818_v36  ;;  %15976 = vst [vmem:[#allocation105_spill] sm:$0xff] %v12494_v20  ;;  %v1691_v55 = vmul.f32 %v10314_v4, %v11141_v46  ;;  %v12512_v41 = vpack.c.bf16 %v4314_v34, %v4315_v63  ;;  %v12516_v15 = vpack.c.bf16 %v2141_v30, %v12494_v20  ;;  %v4157_v48 = vrot.slane %v12494_v20, 7  ;;  %v1921_v30 = vld [vmem:[%s15555_s1 + $0x138] sm:$0xff]  ;;  %vm15984_vm2 = vmmov %vm15969_vm14  ;;  %v1920_v4 = vld [vmem:[%s15555_s1 + $0x130] sm:$0xff] }
 0x1d7   :  { %v15980_v63 = vmov 0  ;;  %v2258_v45 = vadd.s32 312, %v11120_v17  ;;  %v12536_v34 = vmax.f32 %v2030_v51, 0.0  ;;  %vm15985_vm14 = vmmov %vm15984_vm2  ;;  %v12545_v18 = vmax.f32 %v2031_v22, 0.0 }
 0x1d8   :  { %15978 = vst [vmem:[#allocation107_spill] sm:$0xff] %v12512_v41  ;;  %15979 = vst [vmem:[#allocation108_spill] sm:$0xff] %v12516_v15  ;;  %v15981_v63 = vsel %vm12526_vm15, 4294967295, %v15980_v63  ;;  %v1809_v59 = vadd.f32 %v11181_v12, %v1691_v55  ;;  %v4313_v26 = vsel %vm15985_vm14, %v4156_v7, %v4157_v48 }
 0x1d9   :  { %15982 = vst [vmem:[#allocation109_spill] sm:$0xff] %v15981_v63  ;;  %15983 = vst [vmem:[#allocation110_spill] sm:$0xff] %v12536_v34  ;;  %v2608_v51 = vand.u32 31, %v2258_v45  ;;  %v12557_v20 = vpack.c.bf16 %v12545_v18, %v12536_v34  ;;  %v4159_v7 = vrot.slane %v12536_v34, 7  ;;  %v4160_v22 = vrot.slane %v12545_v18, 7  ;;  %v10319_v34 = vld [vmem:[%s15554_s0 + $0x150] sm:$0xff] }
 0x1da   :  { %15986 = vst [vmem:[#allocation111_spill] sm:$0xff] %v12545_v18  ;;  %v2033_v55 = vadd.f32 %v1921_v30, %v1809_v59  ;;  %v10317_v30 = vld [vmem:[%s15554_s0 + $0x148] sm:$0xff]  ;;  %v10259_v63 = vld [vmem:[#allocation6 + $0x1a0] ss:$12 sps:$4 sm:$0xff]   ;;  %vm15991_vm12 = vmmov %vm15985_vm14 }
 0x1db   :  { %5784 = vmatmul.mubr.bf16.gmra.mrb[68].mxu0 %v12466_v61  ;;  %15988 = vst [vmem:[#allocation113_spill] sm:$0xff] %v12557_v20  ;;  %v1693_v45 = vmul.f32 %v10317_v30, %v11141_v46  ;;  %v1923_v30 = vld [vmem:[%s15555_s1 + $0x148] sm:$0xff] }
 0x1dc   :  { %5793 = vmatprep.mubr.bf16.mxu0 %v12478_v14  ;;  %v1690_v14 = vmul.f32 %v10315_v31, %v11141_v46  ;;  %v4312_v31 = vsel %vm15984_vm2, %v4157_v48, %v4158_v50  ;;  %v10316_v48 = vld [vmem:[%s15554_s0 + $0x140] sm:$0xff]  ;;  %vm12569_vm2 = vcmp.lt.s32.totalorder %v2608_v51, 28 }
 0x1dd   :  { %6827 = vmatmul.mubr.bf16.gmra.mrb[60].mxu1 %v15818_v36  ;;  %v12553_v21 = vpack.c.bf16 %v4312_v31, %v4313_v26  ;;  %v2145_v31 = vmax.f32 %v2033_v55, 0.0  ;;  %v1811_v55 = vadd.f32 %v11181_v12, %v1693_v45  ;;  %v1922_v51 = vld [vmem:[%s15555_s1 + $0x140] sm:$0xff] }
 0x1de   :  { %6836 = vmatprep.mubr.bf16.mxu1 %v15818_v36  ;;  %v1808_v42 = vadd.f32 %v11181_v12, %v1690_v14  ;;  %v1692_v14 = vmul.f32 %v10316_v48, %v11141_v46 }
 0x1df   :  { %15987 = vst [vmem:[#allocation112_spill] sm:$0xff] %v12553_v21 }
 0x1e0   :  { %v2032_v59 = vadd.f32 %v1920_v4, %v1808_v42  ;;  %v1810_v48 = vadd.f32 %v11181_v12, %v1692_v14  ;;  %v4310_v42 = vsel %vm15985_vm14, %v4159_v7, %v4160_v22  ;;  %v4311_v4 = vsel %vm15991_vm12, %v4158_v50, %v4159_v7  ;;  %v10318_v50 = vld [vmem:[%s15554_s0 + $0x158] sm:$0xff]  ;;  %vm12614_vm12 = vmpackc.low %vm12569_vm2, %vm15946_vm0 }
 0x1e1   :  { %v12589_v14 = vsel %vm12569_vm2, %v2145_v31, 0.0  ;;  %v1695_v7 = vmul.f32 %v10318_v50, %v11141_v46  ;;  %v2035_v50 = vadd.f32 %v1923_v30, %v1811_v55  ;;  %vm15997_vm2 = vmmov %vm15985_vm14 }
 0x1e2   :  { %v12580_v18 = vmax.f32 %v2032_v59, 0.0  ;;  %15993 = vst [vmem:[#allocation115_spill] sm:$0xff] %v12589_v14  ;;  %v12600_v59 = vpack.c.bf16 %v4310_v42, %v4311_v4  ;;  %v2034_v45 = vadd.f32 %v1922_v51, %v1810_v48  ;;  %v2262_v4 = vadd.s32 344, %v11120_v17  ;;  %vm15998_vm14 = vmmov %vm15997_vm2 }
 0x1e3   :  { %5794 = vmatmul.mubr.bf16.gmra.mrb[72].mxu0 %v12512_v41  ;;  %v1813_v42 = vadd.f32 %v11181_v12, %v1695_v7  ;;  %v12634_v30 = vmax.f32 %v2035_v50, 0.0  ;;  %v10320_v50 = vld [vmem:[%s15554_s0 + $0x160] sm:$0xff]  ;;  %vm16003_vm9 = vmmov %vm15998_vm14 }
 0x1e4   :  { %9576 = vmatprep.mubr.msk.bf16.mxu0 %vm12526_vm15, %v12516_v15  ;;  %15992 = vst [vmem:[#allocation114_spill] sm:$0xff] %v12580_v18  ;;  %v4162_v15 = vrot.slane %v12589_v14, 7  ;;  %v12608_v41 = vpack.c.bf16 %v2145_v31, %v12580_v18  ;;  %v12624_v31 = vmax.f32 %v2034_v45, 0.0  ;;  %v2636_v7 = vand.u32 31, %v2262_v4 }
 0x1e5   :  { %6837 = vmatmul.mubr.bf16.gmra.mrb[64].mxu1 %v15818_v36  ;;  %15999 = vst [vmem:[#allocation117_spill] sm:$0xff] %v12634_v30 }
 0x1e6   :  { %6879 = vmatprep.mubr.bf16.mxu1 %v15818_v36  ;;  %15996 = vst [vmem:[#allocation116_spill] sm:$0xff] %v12624_v31  ;;  %v4163_v14 = vrot.slane %v12624_v31, 7 }
 0x1eb   :  { %5804 = vmatmul.mubr.bf16.gmra.mrb[76].mxu0 %v12553_v21  ;;  %v10260_v21 = vld [vmem:[#allocation6 + $0x1b8] ss:$12 sps:$4 sm:$0xff]  }
 0x1ec   :  { %5813 = vmatprep.mubr.bf16.mxu0 %v12557_v20  ;;  %v1694_v20 = vmul.f32 %v10319_v34, %v11141_v46  ;;  %v1925_v34 = vld [vmem:[%s15555_s1 + $0x158] sm:$0xff] }
 0x1ed   :  { %6880 = vmatmul.mubr.bf16.vlgmr.msra.gmra.mrb[68].mxu1 %v15818_v36 }
 0x1ee   :  { %9787 = vmatpush3.bf16.msra.mxu1 %v12024_v38  ;;  %6887 = vmatprep.mubr.bf16.mxu1 %v15818_v36  ;;  %v4161_v38 = vrot.slane %v12580_v18, 7  ;;  %v1812_v55 = vadd.f32 %v11181_v12, %v1694_v20  ;;  %v2037_v20 = vadd.f32 %v1925_v34, %v1813_v42  ;;  %v1696_v42 = vmul.f32 %v10320_v50, %v11141_v46  ;;  %v1927_v50 = vld [vmem:[%s15555_s1 + $0x168] sm:$0xff] }
 0x1ef   :  { %9788 = vmatprep.subr.bf16.mxu1 %v10259_v63 }
 0x1f0   :  { %v4308_v26 = vsel %vm15997_vm2, %v4161_v38, %v4162_v15  ;;  %v4309_v51 = vsel %vm15998_vm14, %v4160_v22, %v4161_v38  ;;  %v12646_v22 = vpack.c.bf16 %v12634_v30, %v12624_v31  ;;  %v4164_v38 = vrot.slane %v12634_v30, 7 }
 0x1f1   :  { %v12641_v45 = vpack.c.bf16 %v4308_v26, %v4309_v51  ;;  %v2149_v34 = vmax.f32 %v2037_v20, 0.0  ;;  %vm12657_vm2 = vcmp.lt.s32.totalorder %v2636_v7, 28  ;;  %v4307_v51 = vsel %vm16003_vm9, %v4162_v15, %v4163_v14  ;;  %v10322_v15 = vld [vmem:[%s15554_s0 + $0x178] sm:$0xff] }
 0x1f2   :  { %9789 = vmatpush3.bf16.msra.mxu1 %v10259_v63  ;;  %v1924_v63 = vld [vmem:[%s15555_s1 + $0x150] sm:$0xff]  ;;  %v4306_v26 = vsel %vm15998_vm14, %v4163_v14, %v4164_v38  ;;  %v1699_v14 = vmul.f32 %v10322_v15, %v11141_v46 }
 0x1f3   :  { %5814 = vmatmul.mubr.bf16.gmra.mrb[80].mxu0 %v12600_v59  ;;  %9790 = vmatprep.subr.bf16.mxu1 %v10260_v21  ;;  %v2036_v18 = vadd.f32 %v1924_v63, %v1812_v55  ;;  %v1814_v63 = vadd.f32 %v11181_v12, %v1696_v42  ;;  %v12674_v7 = vsel %vm12657_vm2, %v2149_v34, 0.0 }
 0x1f4   :  { %9579 = vmatprep.mubr.msk.bf16.mxu0 %vm12614_vm12, %v12608_v41  ;;  %16004 = vst [vmem:[#allocation119_spill] sm:$0xff] %v12674_v7  ;;  %v4166_v30 = vrot.slane %v12674_v7, 7  ;;  %v1817_v28 = vadd.f32 %v11181_v12, %v1699_v14 }
 0x1f5   :  { %6888 = vmatmul.mubr.bf16.gmra.mrb[72].mxu1 %v15818_v36  ;;  %v12662_v55 = vmax.f32 %v2036_v18, 0.0  ;;  %v1926_v18 = vld [vmem:[%s15555_s1 + $0x160] sm:$0xff] }
 0x1f6   :  { %6895 = vmatprep.mubr.bf16.mxu1 %v11265_v19  ;;  %9791 = vmatpush3.bf16.msra.mxu1 %v10260_v21  ;;  %v10321_v19 = vld [vmem:[%s15554_s0 + $0x168] sm:$0xff]  ;;  %v2038_v15 = vadd.f32 %v1926_v18, %v1814_v63 }
 0x1f7   :  { %v1697_v21 = vmul.f32 %v10321_v19, %v11141_v46  ;;  %16002 = vst [vmem:[#allocation118_spill] sm:$0xff] %v12662_v55  ;;  %v4165_v42 = vrot.slane %v12662_v55, 7  ;;  %v10323_v19 = vld [vmem:[%s15554_s0 + $0x170] sm:$0xff]  ;;  %v12698_v31 = vpack.c.bf16 %v2149_v34, %v12662_v55 }
 0x1f9   :  { %v1815_v20 = vadd.f32 %v11181_v12, %v1697_v21  ;;  %v1698_v21 = vmul.f32 %v10323_v19, %v11141_v46  ;;  %v4305_v34 = vsel %vm16003_vm9, %v4164_v38, %v4165_v42  ;;  %v10324_v38 = vld [vmem:[%s15554_s0 + $0x180] sm:$0xff] }
 0x1fa   :  { %v1700_v14 = vmul.f32 %v10324_v38, %v11141_v46 }
 0x1fb   :  { %5824 = vmatmul.mubr.bf16.gmra.mrb[84].mxu0 %v12641_v45  ;;  %v2039_v36 = vadd.f32 %v1927_v50, %v1815_v20  ;;  %v1816_v63 = vadd.f32 %v11181_v12, %v1698_v21  ;;  %v12721_v20 = vmax.f32 %v2038_v15, 0.0  ;;  %v1928_v50 = vld [vmem:[%s15555_s1 + $0x170] sm:$0xff] }
 0x1fc   :  { %5833 = vmatprep.mubr.bf16.mxu0 %v12646_v22 }
 0x1fd   :  { %6896 = vmatmul.mubr.bf16.gmra.mrb[76].mxu1 %v11312_v32  ;;  %v12689_v32 = vpack.c.bf16 %v4306_v26, %v4307_v51  ;;  %v1929_v26 = vld [vmem:[%s15555_s1 + $0x178] sm:$0xff]  ;;  %v2266_v51 = vadd.s32 376, %v11120_v17  ;;  %16008 = vst [vmem:[#allocation120_spill] sm:$0xff] %v12721_v20  ;;  %v12723_v18 = vmax.f32 %v2039_v36, 0.0  ;;  %v10325_v36 = vld [vmem:[%s15554_s0 + $0x188] sm:$0xff]  ;;  %v2040_v7 = vadd.f32 %v1928_v50, %v1816_v63 }
 0x1fe   :  { %9636 = vmatprep.mubr.msk.bf16.mxu1 %vm11325_vm7, %v11306_v0  ;;  %vm12703_vm7 = vmpackc.low %vm12657_vm2, %vm15946_vm0  ;;  %v2041_v19 = vadd.f32 %v1929_v26, %v1817_v28  ;;  %v1701_v21 = vmul.f32 %v10325_v36, %v11141_v46  ;;  %v4167_v38 = vrot.slane %v12721_v20, 7  ;;  %v1930_v26 = vld [vmem:[%s15555_s1 + $0x180] sm:$0xff]  ;;  %v1931_v63 = vld [vmem:[%s15555_s1 + $0x188] sm:$0xff] }
 0x1ff   :  { %vm16007_vm2 = vmmov %vm16003_vm9  ;;  %16009 = vst [vmem:[#allocation121_spill] sm:$0xff] %v12723_v18  ;;  %v12742_v55 = vpack.c.bf16 %v12723_v18, %v12721_v20  ;;  %v10326_v36 = vld [vmem:[%s15554_s0 + $0x198] sm:$0xff] }
 0x200   :  { %v4304_v4 = vsel %vm16007_vm2, %v4165_v42, %v4166_v30  ;;  %v2664_v42 = vand.u32 31, %v2266_v51  ;;  %v2153_v28 = vmax.f32 %v2041_v19, 0.0  ;;  %vm16014_vm9 = vmmov %vm16007_vm2  ;;  %v4303_v50 = vsel %vm16007_vm2, %v4166_v30, %v4167_v38  ;;  %v1932_v51 = vld [vmem:[%s15555_s1 + $0x190] sm:$0xff] }
 0x201   :  { %v12738_v15 = vpack.c.bf16 %v4304_v4, %v4305_v34  ;;  %16011 = vst [vmem:[#allocation123_spill] sm:$0xff] %v12742_v55  ;;  %v1819_v34 = vadd.f32 %v11181_v12, %v1701_v21  ;;  %v1703_v21 = vmul.f32 %v10326_v36, %v11141_v46 }
 0x202   :  { %vm12750_vm14 = vcmp.lt.s32.totalorder %v2664_v42, 28 }
 0x203   :  { %5834 = vmatmul.mubr.bf16.gmra.mrb[88].mxu0 %v12689_v32  ;;  %16010 = vst [vmem:[#allocation122_spill] sm:$0xff] %v12738_v15  ;;  %v12769_v42 = vsel %vm12750_vm14, %v2153_v28, 0.0  ;;  %v2043_v30 = vadd.f32 %v1931_v63, %v1819_v34  ;;  %v1821_v54 = vadd.f32 %v11181_v12, %v1703_v21 }
 0x204   :  { %9582 = vmatprep.mubr.msk.bf16.mxu0 %vm12703_vm7, %v12698_v31  ;;  %16016 = vst [vmem:[#allocation125_spill] sm:$0xff] %v12769_v42 }
 0x205   :  { %6904 = vmatmul.mubr.bf16.gmra.mrb[80].mxu1 %v11351_v5  ;;  %v4168_v5 = vrot.slane %v12723_v18, 7  ;;  %v12799_v34 = vmax.f32 %v2043_v30, 0.0  ;;  %v10328_v30 = vld [vmem:[%s15554_s0 + $0x258] sm:$0xff] }
 0x206   :  { %6911 = vmatprep.mubr.bf16.mxu1 %v11413_v29  ;;  %v1818_v29 = vadd.f32 %v11181_v12, %v1700_v14  ;;  %v12764_v14 = vmax.f32 %v2040_v7, 0.0  ;;  %v10327_v7 = vld [vmem:[%s15554_s0 + $0x190] sm:$0xff] }
 0x207   :  { %v4302_v4 = vsel %vm16014_vm9, %v4167_v38, %v4168_v5  ;;  %16023 = vst [vmem:[#allocation130_spill] sm:$0xff] %v12799_v34  ;;  %vm16025_vm9 = vmmov %vm16007_vm2 }
 0x208   :  { %16015 = vst [vmem:[#allocation124_spill] sm:$0xff] %v12764_v14  ;;  %v2042_v19 = vadd.f32 %v1930_v26, %v1818_v29  ;;  %v12782_v38 = vpack.c.bf16 %v4302_v4, %v4303_v50  ;;  %v4170_v29 = vrot.slane %v12769_v42, 7  ;;  %v12786_v26 = vpack.c.bf16 %v2153_v28, %v12764_v14  ;;  %v1933_v28 = vld [vmem:[%s15555_s1 + $0x198] sm:$0xff]  ;;  %v10329_v42 = vld [vmem:[%s15554_s0 + $0x1a0] sm:$0xff] }
 0x209   :  { %v4169_v36 = vrot.slane %v12764_v14, 7  ;;  %v2270_v4 = vadd.s32 408, %v11120_v17  ;;  %v1704_v14 = vmul.f32 %v10329_v42, %v11141_v46 }
 0x20a   :  { %16017 = vst [vmem:[#allocation126_spill] sm:$0xff] %v12782_v38  ;;  %16018 = vst [vmem:[#allocation127_spill] sm:$0xff] %v12786_v26  ;;  %v12789_v18 = vmax.f32 %v2042_v19, 0.0 }
 0x20b   :  { %5844 = vmatmul.mubr.bf16.gmra.mrb[92].mxu0 %v12738_v15  ;;  %v4301_v19 = vsel %vm16025_vm9, %v4168_v5, %v4169_v36  ;;  %v15727_v5 = vrot.slane %v12799_v34, 7  ;;  %v2692_v20 = vand.u32 31, %v2270_v4 }
 0x20c   :  { %5853 = vmatprep.mubr.bf16.mxu0 %v12742_v55  ;;  %16019 = vst [vmem:[#allocation128_spill] sm:$0xff] %v12789_v18  ;;  %v4171_v21 = vrot.slane %v12789_v18, 7 }
 0x20d   :  { %6912 = vmatmul.mubr.bf16.gmra.mrb[84].mxu1 %v11449_v6  ;;  %v1702_v6 = vmul.f32 %v10327_v7, %v11141_v46  ;;  %v1727_v7 = vmul.f32 %v10328_v30, %v11141_v46  ;;  %vm12859_vm9 = vcmp.lt.s32.totalorder %v2692_v20, 28  ;;  %v1958_v20 = vld [vmem:[%s15555_s1 + $0x260] sm:$0xff] }
 0x20e   :  { %9639 = vmatprep.mubr.msk.bf16.mxu1 %vm11507_vm10, %v11495_v35  ;;  %vm12794_vm10 = vmpackc.low %vm12750_vm14, %vm15946_vm0  ;;  %v16020_v35 = vmov 0 }
 0x20f   :  { %v16021_v35 = vsel %vm12794_vm10, 4294967295, %v16020_v35  ;;  %v1820_v63 = vadd.f32 %v11181_v12, %v1702_v6  ;;  %vm16024_vm14 = vmmov %vm16007_vm2  ;;  %v2045_v6 = vadd.f32 %v1933_v28, %v1821_v54  ;;  %v1845_v42 = vadd.f32 %v11181_v12, %v1727_v7 }
 0x210   :  { %16022 = vst [vmem:[#allocation129_spill] sm:$0xff] %v16021_v35  ;;  %v4300_v50 = vsel %vm16024_vm14, %v4169_v36, %v4170_v29  ;;  %v10330_v35 = vld [vmem:[%s15554_s0 + $0x1a8] sm:$0xff]  ;;  %v4299_v28 = vsel %vm16007_vm2, %v4170_v29, %v4171_v21  ;;  %vm16028_vm14 = vmmov %vm16007_vm2  ;;  %v1962_v29 = vld [vmem:[%s15555_s1 + $0x280] sm:$0xff] }
 0x211   :  { %v2044_v36 = vadd.f32 %v1932_v51, %v1820_v63  ;;  %v1705_v30 = vmul.f32 %v10330_v35, %v11141_v46  ;;  %v12836_v54 = vpack.c.bf16 %v4300_v50, %v4301_v19  ;;  %v12842_v63 = vpack.c.bf16 %v12799_v34, %v12789_v18  ;;  %v10331_v35 = vld [vmem:[%s15554_s0 + $0x260] sm:$0xff] }
 0x212   :  { %v1728_v4 = vmul.f32 %v10331_v35, %v11141_v46  ;;  %v2157_v51 = vmax.f32 %v2045_v6, 0.0  ;;  %v1822_v50 = vadd.f32 %v11181_v12, %v1704_v14  ;;  %v4298_v18 = vsel %vm16028_vm14, %v4171_v21, %v15727_v5  ;;  %v1934_v14 = vld [vmem:[%s15555_s1 + $0x1a0] sm:$0xff]  ;;  %v1935_v6 = vld [vmem:[%s15555_s1 + $0x1a8] sm:$0xff] }
 0x213   :  { %5854 = vmatmul.mubr.bf16.gmra.mrb[96].mxu0 %v12782_v38  ;;  %16026 = vst [vmem:[#allocation131_spill] sm:$0xff] %v12836_v54  ;;  %16027 = vst [vmem:[#allocation132_spill] sm:$0xff] %v12842_v63  ;;  %v1823_v38 = vadd.f32 %v11181_v12, %v1705_v30 }
 0x214   :  { %9585 = vmatprep.mubr.msk.bf16.mxu0 %vm12794_vm10, %v12786_v26  ;;  %v12857_v26 = vmax.f32 %v2044_v36, 0.0  ;;  %v1846_v36 = vadd.f32 %v11181_v12, %v1728_v4  ;;  %v10333_v4 = vld [vmem:[%s15554_s0 + $0x1b8] sm:$0xff]  ;;  %vm16060_vm10 = vcmp.lt.s32.totalorder %v11120_v17, 7 }
 0x215   :  { %6920 = vmatmul.mubr.bf16.gmra.mrb[88].mxu1 %v11568_v49  ;;  %v1957_v49 = vld [vmem:[%s15555_s1 + $0x258] sm:$0xff] }
 0x216   :  { %6927 = vmatprep.mubr.bf16.mxu1 %v11582_v10  ;;  %v2294_v10 = vadd.s32 600, %v11120_v17  ;;  %v12851_v19 = vadd.f32 %v1957_v49, %v1845_v42  ;;  %16029 = vst [vmem:[#allocation133_spill] sm:$0xff] %v12857_v26  ;;  %v12882_v49 = vpack.c.bf16 %v4298_v18, %v4299_v28  ;;  %v12886_v42 = vsel %vm12859_vm9, %v2157_v51, 0.0 }
 0x217   :  { %16035 = vst [vmem:[#allocation135_spill] sm:$0xff] %v12886_v42  ;;  %v2046_v18 = vadd.f32 %v1934_v14, %v1822_v50  ;;  %v2047_v28 = vadd.f32 %v1935_v6, %v1823_v38  ;;  %v2070_v5 = vadd.f32 %v1958_v20, %v1846_v36  ;;  %v12901_v21 = vpack.c.bf16 %v2157_v51, %v12857_v26  ;;  %v1961_v14 = vld [vmem:[%s15555_s1 + $0x278] sm:$0xff]  ;;  %v10261_v6 = vld [vmem:[#allocation6 + $0x1d0] ss:$12 sps:$4 sm:$0xff]  }
 0x218   :  { %v2860_v7 = vand.u32 31, %v2294_v10  ;;  %16034 = vst [vmem:[#allocation134_spill] sm:$0xff] %v12882_v49  ;;  %v10332_v10 = vld [vmem:[%s15554_s0 + $0x1b0] sm:$0xff]  ;;  %v4174_v38 = vrot.slane %v12886_v42, 7  ;;  %v10335_v36 = vld [vmem:[%s15554_s0 + $0x280] sm:$0xff]  ;;  %v2888_v50 = vand.u32 31, %v2298_v1  ;;  %9792 = vmatprep.subr.bf16.mxu1 %v10261_v6 }
 0x219   :  { %v1706_v35 = vmul.f32 %v10332_v10, %v11141_v46  ;;  %16036 = vst [vmem:[#allocation136_spill] sm:$0xff] %v12901_v21  ;;  %v16037_v10 = vmax.f32 %v12851_v19, 0.0  ;;  %v12916_v51 = vmax.f32 %v2070_v5, 0.0  ;;  %v1732_v20 = vmul.f32 %v10335_v36, %v11141_v46  ;;  %v1937_v36 = vld [vmem:[%s15555_s1 + $0x1b8] sm:$0xff]  ;;  %9793 = vmatpush3.bf16.msra.mxu1 %v10261_v6 }
 0x21a   :  { %vm12877_vm2 = vcmp.lt.s32.totalorder %v2860_v7, 28  ;;  %v1707_v7 = vmul.f32 %v10333_v4, %v11141_v46  ;;  %v10334_v4 = vld [vmem:[%s15554_s0 + $0x278] sm:$0xff]  ;;  %v12934_v42 = vmax.f32 %v2046_v18, 0.0  ;;  %v12947_v18 = vmax.f32 %v2047_v28, 0.0 }
 0x21b   :  { %5864 = vmatmul.mubr.bf16.gmra.mrb[100].mxu0 %v12836_v54  ;;  %16039 = vst [vmem:[#allocation138_spill] sm:$0xff] %v12916_v51  ;;  %v2274_v54 = vadd.s32 440, %v11120_v17  ;;  %v16047_v28 = vrot.slane %v12916_v51, 1  ;;  %vm12970_vm5 = vcmp.lt.s32.totalorder %v2888_v50, 28 }
 0x21c   :  { %5873 = vmatprep.mubr.bf16.mxu0 %v12842_v63  ;;  %v12907_v63 = vsel %vm12877_vm2, %v16037_v10, 0.0  ;;  %v16040_v10 = vmov 0  ;;  %v1825_v5 = vadd.f32 %v11181_v12, %v1707_v7  ;;  %16043 = vst [vmem:[#allocation140_spill] sm:$0xff] %v12934_v42  ;;  %v16044_v7 = vrot.slane %v12799_v34, 7  ;;  %16045 = vst [vmem:[#allocation141_spill] sm:$0xff] %v12947_v18 }
 0x21d   :  { %6928 = vmatmul.mubr.bf16.gmra.mrb[92].mxu1 %v11630_v2  ;;  %v4173_v2 = vrot.slane %v12857_v26, 7  ;;  %16038 = vst [vmem:[#allocation137_spill] sm:$0xff] %v12907_v63  ;;  %v1824_v26 = vadd.f32 %v11181_v12, %v1706_v35  ;;  %v1936_v35 = vld [vmem:[%s15555_s1 + $0x1b0] sm:$0xff]  ;;  %v16048_v34 = vrot.slane %v12907_v63, 1  ;;  %v2720_v55 = vand.u32 31, %v2274_v54  ;;  %v10337_v54 = vld [vmem:[%s15554_s0 + $0x1c8] sm:$0xff] }
 0x21e   :  { %9642 = vmatprep.mubr.msk.bf16.mxu1 %vm11669_vm13, %v11657_v27  ;;  %v1731_v27 = vmul.f32 %v10334_v4, %v11141_v46  ;;  %vm12928_vm13 = vmpackc.low %vm12859_vm9, %vm15946_vm0  ;;  %v12983_v50 = vpack.c.bf16 %v12947_v18, %v12934_v42 }
 0x21f   :  { %v16041_v10 = vsel %vm12928_vm13, 4294967295, %v16040_v10  ;;  %vm16046_vm9 = vmmov %vm16028_vm14 }
 0x220   :  { %16042 = vst [vmem:[#allocation139_spill] sm:$0xff] %v16041_v10  ;;  %v1849_v4 = vadd.f32 %v11181_v12, %v1731_v27  ;;  %v4297_v27 = vsel %vm16028_vm14, %v16044_v7, %v4173_v2  ;;  %v4296_v7 = vsel %vm16046_vm9, %v4173_v2, %v4174_v38  ;;  %vm16049_vm14 = vcmp.lt.s32.totalorder %v11120_v17, 7 }
 0x221   :  { %v2049_v10 = vadd.f32 %v1937_v36, %v1825_v5  ;;  %v4175_v2 = vrot.slane %v12934_v42, 7  ;;  %v1709_v5 = vmul.f32 %v10337_v54, %v11141_v46  ;;  %vm13003_vm9 = vcmp.lt.s32.totalorder %v2720_v55, 28 }
 0x222   :  { %v12952_v1 = vadd.f32 %v1961_v14, %v1849_v4  ;;  %v12968_v14 = vsel %vm16049_vm14, %v16048_v34, %v16047_v28  ;;  %v1850_v4 = vadd.f32 %v11181_v12, %v1732_v20  ;;  %v12979_v34 = vpack.c.bf16 %v4296_v7, %v4297_v27 }
 0x223   :  { %5874 = vmatmul.mubr.bf16.gmra.mrb[104].mxu0 %v12882_v49  ;;  %16050 = vst [vmem:[#allocation142_spill] sm:$0xff] %v12968_v14  ;;  %v2048_v49 = vadd.f32 %v1936_v35, %v1824_v26  ;;  %v4176_v20 = vrot.slane %v12947_v18, 7  ;;  %v2161_v27 = vmax.f32 %v2049_v10, 0.0  ;;  %vm16057_vm14 = vcmp.lt.s32.totalorder %v11120_v17, 1 }
 0x224   :  { %9588 = vmatprep.mubr.msk.bf16.mxu0 %vm12928_vm13, %v12901_v21  ;;  %v15743_v21 = vmax.f32 %v12952_v1, 0.0  ;;  %v2074_v15 = vadd.f32 %v1962_v29, %v1850_v4  ;;  %v4295_v28 = vsel %vm16057_vm14, %v4174_v38, %v4175_v2  ;;  %vm16059_vm13 = vmmov %vm16057_vm14  ;;  %v1827_v55 = vadd.f32 %v11181_v12, %v1709_v5  ;;  %v1938_v38 = vld [vmem:[%s15555_s1 + $0x1c0] sm:$0xff] }
 0x225   :  { %6936 = vmatmul.mubr.bf16.gmra.mrb[96].mxu1 %v11715_v23  ;;  %v13011_v4 = vmax.f32 %v2048_v49, 0.0  ;;  %v13029_v49 = vsel %vm13003_vm9, %v2161_v27, 0.0 }
 0x226   :  { %6943 = vmatprep.mubr.bf16.mxu1 %v11742_v24  ;;  %v12990_v23 = vsel %vm12970_vm5, %v15743_v21, 0.0  ;;  %v10336_v24 = vld [vmem:[%s15554_s0 + $0x1c0] sm:$0xff]  ;;  %v13001_v29 = vmax.f32 %v2074_v15, 0.0  ;;  %v4294_v15 = vsel %vm16059_vm13, %v4175_v2, %v4176_v20  ;;  %16062 = vst [vmem:[#allocation147_spill] sm:$0xff] %v13029_v49  ;;  %v1939_v2 = vld [vmem:[%s15555_s1 + $0x1c8] sm:$0xff]  ;;  %v4178_v21 = vrot.slane %v13029_v49, 7 }
 0x227   :  { %16053 = vst [vmem:[#allocation143_spill] sm:$0xff] %v12990_v23  ;;  %v1708_v26 = vmul.f32 %v10336_v24, %v11141_v46  ;;  %v15742_v36 = vrot.slane %v12990_v23, 1  ;;  %16058 = vst [vmem:[#allocation145_spill] sm:$0xff] %v13011_v4  ;;  %v4177_v5 = vrot.slane %v13011_v4, 7  ;;  %v13053_v18 = vpack.c.bf16 %v2161_v27, %v13011_v4 }
 0x228   :  { %16054 = vst [vmem:[#allocation144_spill] sm:$0xff] %v13001_v29  ;;  %v15741_v7 = vrot.slane %v13001_v29, 1  ;;  %v2051_v42 = vadd.f32 %v1939_v2, %v1827_v55 }
 0x229   :  { %v1826_v10 = vadd.f32 %v11181_v12, %v1708_v26  ;;  %v10338_v26 = vld [vmem:[%s15554_s0 + $0x1d8] sm:$0xff] }
 0x22a   :  { %v13024_v24 = vsel %vm16060_vm10, %v15742_v36, %v15741_v7  ;;  %v1711_v54 = vmul.f32 %v10338_v26, %v11141_v46  ;;  %v10339_v7 = vld [vmem:[%s15554_s0 + $0x1d0] sm:$0xff]  ;;  %vm16065_vm10 = vmmov %vm16059_vm13  ;;  %v13078_v55 = vmax.f32 %v2051_v42, 0.0  ;;  %v10340_v42 = vld [vmem:[%s15554_s0 + $0x1e0] sm:$0xff] }
 0x22b   :  { %5884 = vmatmul.mubr.bf16.gmra.mrb[108].mxu0 %v12979_v34  ;;  %16061 = vst [vmem:[#allocation146_spill] sm:$0xff] %v13024_v24  ;;  %v1710_v36 = vmul.f32 %v10339_v7, %v11141_v46  ;;  %v2050_v26 = vadd.f32 %v1938_v38, %v1826_v10  ;;  %v1941_v7 = vld [vmem:[%s15555_s1 + $0x1d8] sm:$0xff]  ;;  %v4292_v35 = vsel %vm16065_vm10, %v4177_v5, %v4178_v21  ;;  %vm16066_vm13 = vmmov %vm16065_vm10  ;;  %v1940_v38 = vld [vmem:[%s15555_s1 + $0x1d0] sm:$0xff] }
 0x22c   :  { %5893 = vmatprep.mubr.bf16.mxu0 %v12983_v50  ;;  %v1829_v11 = vadd.f32 %v11181_v12, %v1711_v54  ;;  %16068 = vst [vmem:[#allocation149_spill] sm:$0xff] %v13078_v55  ;;  %vm16076_vm14 = vmmov %vm16065_vm10 }
 0x22d   :  { %6944 = vmatmul.mubr.bf16.gmra.mrb[100].mxu1 %v11797_v33  ;;  %v13044_v33 = vpack.c.bf16 %v4294_v15, %v4295_v28  ;;  %v2278_v28 = vadd.s32 472, %v11120_v17  ;;  %v1828_v27 = vadd.f32 %v11181_v12, %v1710_v36  ;;  %v4293_v15 = vsel %vm16066_vm13, %v4176_v20, %v4177_v5  ;;  %vm16085_vm13 = vmmov %vm16065_vm10 }
 0x22e   :  { %9645 = vmatprep.mubr.msk.bf16.mxu1 %vm11851_vm3, %v11821_v40  ;;  %vm13058_vm3 = vmpackc.low %vm13003_vm9, %vm15946_vm0  ;;  %v13076_v10 = vmax.f32 %v2050_v26, 0.0  ;;  %v2053_v36 = vadd.f32 %v1941_v7, %v1829_v11  ;;  %v13087_v49 = vpack.c.bf16 %v4292_v35, %v4293_v15  ;;  %v1712_v20 = vmul.f32 %v10340_v42, %v11141_v46  ;;  %v10341_v11 = vld [vmem:[%s15554_s0 + $0x1e8] sm:$0xff] }
 0x22f   :  { %v2748_v2 = vand.u32 31, %v2278_v28  ;;  %v2052_v4 = vadd.f32 %v1940_v38, %v1828_v27  ;;  %v4180_v26 = vrot.slane %v13078_v55, 7  ;;  %v1713_v7 = vmul.f32 %v10341_v11, %v11141_v46 }
 0x230   :  { %16067 = vst [vmem:[#allocation148_spill] sm:$0xff] %v13076_v10  ;;  %v2165_v27 = vmax.f32 %v2053_v36, 0.0  ;;  %v1830_v42 = vadd.f32 %v11181_v12, %v1712_v20  ;;  %v1943_v20 = vld [vmem:[%s15555_s1 + $0x1e8] sm:$0xff] }
 0x231   :  { %vm13109_vm9 = vcmp.lt.s32.totalorder %v2748_v2, 28  ;;  %v13114_v38 = vmax.f32 %v2052_v4, 0.0  ;;  %v1942_v2 = vld [vmem:[%s15555_s1 + $0x1e0] sm:$0xff] }
 0x232   :  { %v13129_v4 = vsel %vm13109_vm9, %v2165_v27, 0.0 }
 0x233   :  { %5894 = vmatmul.mubr.bf16.gmra.mrb[112].mxu0 %v13044_v33  ;;  %16075 = vst [vmem:[#allocation154_spill] sm:$0xff] %v13114_v38  ;;  %16077 = vst [vmem:[#allocation155_spill] sm:$0xff] %v13129_v4  ;;  %v4182_v14 = vrot.slane %v13129_v4, 7 }
 0x234   :  { %9591 = vmatprep.mubr.msk.bf16.mxu0 %vm13058_vm3, %v13053_v18  ;;  %v13085_v54 = vpop.f32.mrb[0].mxu1 }
 0x235   :  { %6952 = vmatmul.mubr.bf16.gmra.mrb[104].mxu1 %v11911_v13  ;;  %16069 = vst [vmem:[#allocation150_spill] sm:$0xff] %v13085_v54  ;;  %v13093_v5 = vpop.f32.mrb[1].mxu1  ;;  %v13097_v13 = vpack.c.bf16 %v13078_v55, %v13076_v10  ;;  %v1831_v55 = vadd.f32 %v11181_v12, %v1713_v7  ;;  %v16238_v54 = vld [vmem:[#allocation40_spill] sm:$0xff] }
 0x236   :  { %6959 = vmatprep.mubr.bf16.mxu1 %v11915_v58  ;;  %16070 = vst [vmem:[#allocation151_spill] sm:$0xff] %v13093_v5  ;;  %v4179_v58 = vrot.slane %v13076_v10, 7  ;;  %v13105_v28 = vpop.f32.mrb[2].mxu1  ;;  %v2054_v10 = vadd.f32 %v1942_v2, %v1830_v42 }
 0x237   :  { %16071 = vst [vmem:[#allocation152_spill] sm:$0xff] %v13105_v28  ;;  %v13107_v35 = vpop.f32.mrb[3].mxu1  ;;  %v2055_v28 = vadd.f32 %v1943_v20, %v1831_v55  ;;  %v1945_v55 = vld [vmem:[%s15555_s1 + $0x1f8] sm:$0xff] }
 0x238   :  { %16072 = vst [vmem:[#allocation153_spill] sm:$0xff] %v13107_v35  ;;  %v4290_v11 = vsel %vm16076_vm14, %v4179_v58, %v4180_v26  ;;  %v4291_v36 = vsel %vm16065_vm10, %v4178_v21, %v4179_v58  ;;  %v10342_v21 = vld [vmem:[%s15554_s0 + $0x1f8] sm:$0xff]  ;;  %v13148_v35 = vpack.c.bf16 %v2165_v27, %v13114_v38  ;;  %v13173_v20 = vmax.f32 %v2054_v10, 0.0  ;;  %v1944_v10 = vld [vmem:[%s15555_s1 + $0x1f0] sm:$0xff] }
 0x239   :  { %v1715_v58 = vmul.f32 %v10342_v21, %v11141_v46  ;;  %v13141_v7 = vpack.c.bf16 %v4290_v11, %v4291_v36  ;;  %v10343_v21 = vld [vmem:[%s15554_s0 + $0x1f0] sm:$0xff]  ;;  %v2282_v36 = vadd.s32 504, %v11120_v17 }
 0x23a   :  { %v1714_v53 = vmul.f32 %v10343_v21, %v11141_v46  ;;  %16084 = vst [vmem:[#allocation160_spill] sm:$0xff] %v13173_v20  ;;  %v13182_v21 = vmax.f32 %v2055_v28, 0.0 }
 0x23b   :  { %5904 = vmatmul.mubr.bf16.gmra.mrb[116].mxu0 %v13087_v49  ;;  %v1833_v11 = vadd.f32 %v11181_v12, %v1715_v58 }
 0x23c   :  { %5913 = vmatprep.mubr.bf16.mxu0 %v13097_v13  ;;  %v13144_v24 = vpop.f32.mrb[4].mxu1  ;;  %16087 = vst [vmem:[#allocation161_spill] sm:$0xff] %v13182_v21  ;;  %v1832_v4 = vadd.f32 %v11181_v12, %v1714_v53  ;;  %v4184_v53 = vrot.slane %v13182_v21, 7 }
 0x23d   :  { %6960 = vmatmul.mubr.bf16.gmra.mrb[108].mxu1 %v11961_v60  ;;  %v4181_v60 = vrot.slane %v13114_v38, 7  ;;  %16078 = vst [vmem:[#allocation156_spill] sm:$0xff] %v13144_v24  ;;  %v2057_v38 = vadd.f32 %v1945_v55, %v1833_v11  ;;  %v10345_v11 = vld [vmem:[%s15554_s0 + $0x208] sm:$0xff] }
 0x23e   :  { %9648 = vmatprep.mubr.msk.bf16.mxu1 %vm12019_vm11, %v12001_v16  ;;  %v13154_v16 = vpop.f32.mrb[5].mxu1  ;;  %vm13159_vm11 = vmpackc.low %vm13109_vm9, %vm15946_vm0  ;;  %v1717_v55 = vmul.f32 %v10345_v11, %v11141_v46 }
 0x23f   :  { %16079 = vst [vmem:[#allocation157_spill] sm:$0xff] %v13154_v16  ;;  %v13164_v27 = vpop.f32.mrb[6].mxu1  ;;  %v4288_v15 = vsel %vm16085_vm13, %v4181_v60, %v4182_v14  ;;  %vm16086_vm9 = vmmov %vm16065_vm10  ;;  %v4183_v16 = vrot.slane %v13173_v20, 7 }
 0x240   :  { %16082 = vst [vmem:[#allocation158_spill] sm:$0xff] %v13164_v27  ;;  %v13170_v2 = vpop.f32.mrb[7].mxu1  ;;  %v4289_v58 = vsel %vm16086_vm9, %v4180_v26, %v4181_v60  ;;  %v10344_v26 = vld [vmem:[%s15554_s0 + $0x200] sm:$0xff]  ;;  %vm16094_vm10 = vmmov %vm16086_vm9 }
 0x241   :  { %16083 = vst [vmem:[#allocation159_spill] sm:$0xff] %v13170_v2  ;;  %v2776_v2 = vand.u32 31, %v2282_v36  ;;  %v13190_v27 = vpack.c.bf16 %v4288_v15, %v4289_v58  ;;  %v1716_v28 = vmul.f32 %v10344_v26, %v11141_v46  ;;  %v2169_v15 = vmax.f32 %v2057_v38, 0.0  ;;  %vm16095_vm13 = vmmov %vm16086_vm9 }
 0x242   :  { %v4287_v38 = vsel %vm16095_vm13, %v4182_v14, %v4183_v16  ;;  %v10346_v14 = vld [vmem:[%s15554_s0 + $0x218] sm:$0xff]  ;;  %vm16114_vm13 = vmmov %vm16086_vm9 }
 0x243   :  { %5914 = vmatmul.mubr.bf16.gmra.mrb[120].mxu0 %v13141_v7  ;;  %vm13212_vm14 = vcmp.lt.s32.totalorder %v2776_v2, 28  ;;  %v1835_v2 = vadd.f32 %v11181_v12, %v1717_v55  ;;  %v10347_v55 = vld [vmem:[%s15554_s0 + $0x210] sm:$0xff] }
 0x244   :  { %9594 = vmatprep.mubr.msk.bf16.mxu0 %vm13159_vm11, %v13148_v35  ;;  %v13197_v60 = vpop.f32.mrb[8].mxu1 }
 0x245   :  { %6968 = vmatmul.mubr.bf16.gmra.mrb[112].mxu1 %v12079_v52  ;;  %16088 = vst [vmem:[#allocation162_spill] sm:$0xff] %v13197_v60  ;;  %v13201_v52 = vpack.c.bf16 %v13182_v21, %v13173_v20  ;;  %v13208_v36 = vpop.f32.mrb[9].mxu1  ;;  %v1946_v21 = vld [vmem:[%s15555_s1 + $0x200] sm:$0xff] }
 0x246   :  { %6975 = vmatprep.mubr.bf16.mxu1 %v12096_v3  ;;  %v2056_v3 = vadd.f32 %v1944_v10, %v1832_v4  ;;  %16089 = vst [vmem:[#allocation163_spill] sm:$0xff] %v13208_v36  ;;  %v13210_v58 = vpop.f32.mrb[10].mxu1  ;;  %v1834_v4 = vadd.f32 %v11181_v12, %v1716_v28  ;;  %v4286_v10 = vsel %vm16094_vm10, %v4183_v16, %v4184_v53  ;;  %v13234_v28 = vsel %vm13212_vm14, %v2169_v15, 0.0 }
 0x247   :  { %16090 = vst [vmem:[#allocation164_spill] sm:$0xff] %v13210_v58  ;;  %v13216_v20 = vpop.f32.mrb[11].mxu1  ;;  %16097 = vst [vmem:[#allocation167_spill] sm:$0xff] %v13234_v28  ;;  %v1719_v16 = vmul.f32 %v10346_v14, %v11141_v46  ;;  %v1718_v58 = vmul.f32 %v10347_v55, %v11141_v46  ;;  %v4186_v60 = vrot.slane %v13234_v28, 7 }
 0x248   :  { %16093 = vst [vmem:[#allocation165_spill] sm:$0xff] %v13216_v20  ;;  %v13225_v11 = vmax.f32 %v2056_v3, 0.0  ;;  %v1947_v20 = vld [vmem:[%s15555_s1 + $0x208] sm:$0xff]  ;;  %v13246_v3 = vpack.c.bf16 %v4286_v10, %v4287_v38  ;;  %v2286_v38 = vadd.s32 536, %v11120_v17 }
 0x249   :  { %v2059_v57 = vadd.f32 %v1947_v20, %v1835_v2  ;;  %v1836_v28 = vadd.f32 %v11181_v12, %v1718_v58 }
 0x24a   :  { %16096 = vst [vmem:[#allocation166_spill] sm:$0xff] %v13225_v11  ;;  %v13256_v24 = vpack.c.bf16 %v2169_v15, %v13225_v11  ;;  %v4185_v14 = vrot.slane %v13225_v11, 7  ;;  %v1949_v15 = vld [vmem:[%s15555_s1 + $0x218] sm:$0xff] }
 0x24b   :  { %5924 = vmatmul.mubr.bf16.gmra.mrb[124].mxu0 %v13190_v27  ;;  %v13287_v55 = vmax.f32 %v2059_v57, 0.0 }
 0x24c   :  { %5933 = vmatprep.mubr.bf16.mxu0 %v13201_v52  ;;  %v13252_v36 = vpop.f32.mrb[12].mxu1  ;;  %v4284_v26 = vsel %vm16086_vm9, %v4185_v14, %v4186_v60 }
 0x24d   :  { %6976 = vmatmul.mubr.bf16.gmra.mrb[116].mxu1 %v12173_v56  ;;  %v2058_v56 = vadd.f32 %v1946_v21, %v1834_v4  ;;  %16098 = vst [vmem:[#allocation168_spill] sm:$0xff] %v13252_v36  ;;  %v1837_v4 = vadd.f32 %v11181_v12, %v1719_v16  ;;  %16106 = vst [vmem:[#allocation173_spill] sm:$0xff] %v13287_v55  ;;  %v4188_v57 = vrot.slane %v13287_v55, 7 }
 0x24e   :  { %9651 = vmatprep.mubr.msk.bf16.mxu1 %vm12194_vm4, %v12186_v44  ;;  %v13259_v44 = vpop.f32.mrb[13].mxu1  ;;  %vm13264_vm4 = vmpackc.low %vm13212_vm14, %vm15946_vm0 }
 0x24f   :  { %16099 = vst [vmem:[#allocation169_spill] sm:$0xff] %v13259_v44  ;;  %v13269_v10 = vpop.f32.mrb[14].mxu1  ;;  %v13278_v2 = vmax.f32 %v2058_v56, 0.0  ;;  %vm16105_vm14 = vmmov %vm16086_vm9  ;;  %v1948_v56 = vld [vmem:[%s15555_s1 + $0x210] sm:$0xff]  ;;  %v2061_v11 = vadd.f32 %v1949_v15, %v1837_v4  ;;  %v10349_v15 = vld [vmem:[%s15554_s0 + $0x228] sm:$0xff] }
 0x250   :  { %16102 = vst [vmem:[#allocation170_spill] sm:$0xff] %v13269_v10  ;;  %v13275_v20 = vpop.f32.mrb[15].mxu1  ;;  %v4285_v16 = vsel %vm16105_vm14, %v4184_v53, %v4185_v14  ;;  %v2804_v10 = vand.u32 31, %v2286_v38  ;;  %v10348_v53 = vld [vmem:[%s15554_s0 + $0x220] sm:$0xff]  ;;  %v2060_v4 = vadd.f32 %v1948_v56, %v1836_v28  ;;  %v1721_v38 = vmul.f32 %v10349_v15, %v11141_v46  ;;  %v10262_v56 = vld [vmem:[#allocation6 + $0x1e8] ss:$12 sps:$4 sm:$0xff]   ;;  %vm16123_vm14 = vmmov %vm16086_vm9 }
 0x251   :  { %16103 = vst [vmem:[#allocation171_spill] sm:$0xff] %v13275_v20  ;;  %16104 = vst [vmem:[#allocation172_spill] sm:$0xff] %v13278_v2  ;;  %v16107_v20 = vld [vmem:[#allocation88_spill] sm:$0xff]  ;;  %v13295_v44 = vpack.c.bf16 %v4284_v26, %v4285_v16  ;;  %v4187_v36 = vrot.slane %v13278_v2, 7  ;;  %v1720_v58 = vmul.f32 %v10348_v53, %v11141_v46  ;;  %v2173_v26 = vmax.f32 %v2061_v11, 0.0  ;;  %9794 = vmatprep.subr.bf16.mxu1 %v10262_v56 }
 0x252   :  { %vm13317_vm10 = vcmp.lt.s32.totalorder %v2804_v10, 28  ;;  %v13329_v11 = vmax.f32 %v2060_v4, 0.0  ;;  %9795 = vmatpush3.bf16.msra.mxu1 %v10262_v56 }
 0x253   :  { %5934 = vmatmul.mubr.bf16.gmra.mrb[128].mxu0 %v13246_v3  ;;  %v4283_v28 = vsel %vm16114_vm13, %v4186_v60, %v4187_v36  ;;  %v4282_v15 = vsel %vm16086_vm9, %v4187_v36, %v4188_v57  ;;  %v1838_v10 = vadd.f32 %v11181_v12, %v1720_v58  ;;  %v1950_v60 = vld [vmem:[%s15555_s1 + $0x220] sm:$0xff]  ;;  %v1951_v36 = vld [vmem:[%s15555_s1 + $0x228] sm:$0xff]  ;;  %v10350_v58 = vld [vmem:[%s15554_s0 + $0x238] sm:$0xff] }
 0x254   :  { %9597 = vmatprep.mubr.msk.bf16.mxu0 %vm13264_vm4, %v13256_v24  ;;  %v13302_v14 = vpop.f32.mrb[16].mxu1  ;;  %16115 = vst [vmem:[#allocation177_spill] sm:$0xff] %v13329_v11  ;;  %v1723_v4 = vmul.f32 %v10350_v58, %v11141_v46  ;;  %v4189_v5 = vrot.slane %v13329_v11, 7 }
 0x255   :  { %6984 = vmatmul.mubr.bf16.gmra.mrb[120].mxu1 %v12248_v8  ;;  %16108 = vst [vmem:[#allocation88_spill] sm:$0xff] %v13302_v14  ;;  %v13306_v8 = vpack.c.bf16 %v13287_v55, %v13278_v2  ;;  %v1839_v55 = vadd.f32 %v11181_v12, %v1721_v38  ;;  %v13354_v38 = vpack.c.bf16 %v2173_v26, %v13329_v11  ;;  %v1952_v11 = vld [vmem:[%s15555_s1 + $0x230] sm:$0xff] }
 0x256   :  { %6991 = vmatprep.mubr.bf16.mxu1 %v16107_v20  ;;  %v13313_v20 = vpop.f32.mrb[17].mxu1  ;;  %v2062_v25 = vadd.f32 %v1950_v60, %v1838_v10  ;;  %v2290_v10 = vadd.s32 568, %v11120_v17 }
 0x257   :  { %16109 = vst [vmem:[#allocation174_spill] sm:$0xff] %v13313_v20  ;;  %v13315_v16 = vpop.f32.mrb[18].mxu1 }
 0x258   :  { %16110 = vst [vmem:[#allocation175_spill] sm:$0xff] %v13315_v16  ;;  %v13321_v2 = vpop.f32.mrb[19].mxu1  ;;  %v10351_v16 = vld [vmem:[%s15554_s0 + $0x230] sm:$0xff] }
 0x259   :  { %16113 = vst [vmem:[#allocation176_spill] sm:$0xff] %v13321_v2  ;;  %v13336_v2 = vsel %vm13317_vm10, %v2173_v26, 0.0  ;;  %v1722_v20 = vmul.f32 %v10351_v16, %v11141_v46 }
 0x25a   :  { %16116 = vst [vmem:[#allocation178_spill] sm:$0xff] %v13336_v2  ;;  %v4190_v58 = vrot.slane %v13336_v2, 7 }
 0x25b   :  { %5944 = vmatmul.mubr.bf16.gmra.mrb[132].mxu0 %v13295_v44  ;;  %v1840_v53 = vadd.f32 %v11181_v12, %v1722_v20 }
 0x25c   :  { %5953 = vmatprep.mubr.bf16.mxu0 %v13306_v8  ;;  %v4280_v60 = vsel %vm16123_vm14, %v4189_v5, %v4190_v58  ;;  %vm16135_vm14 = vmmov %vm16086_vm9 }
 0x25d   :  { %6992 = vmatmul.mubr.bf16.gmra.mrb[124].mxu1 %v12318_v47  ;;  %v13351_v47 = vpack.c.bf16 %v4282_v15, %v4283_v28  ;;  %v13360_v14 = vpop.f32.mrb[20].mxu1  ;;  %v1841_v28 = vadd.f32 %v11181_v12, %v1723_v4  ;;  %v1953_v15 = vld [vmem:[%s15555_s1 + $0x238] sm:$0xff]  ;;  %v13391_v4 = vmax.f32 %v2062_v25, 0.0 }
 0x25e   :  { %9654 = vmatprep.mubr.msk.bf16.mxu1 %vm12334_vm6, %v12327_v43  ;;  %16117 = vst [vmem:[#allocation179_spill] sm:$0xff] %v13360_v14  ;;  %v2063_v43 = vadd.f32 %v1951_v36, %v1839_v55  ;;  %v13364_v56 = vpop.f32.mrb[21].mxu1  ;;  %vm13369_vm6 = vmpackc.low %vm13317_vm10, %vm15946_vm0  ;;  %v2064_v14 = vadd.f32 %v1952_v11, %v1840_v53  ;;  %v10353_v11 = vld [vmem:[%s15554_s0 + $0x248] sm:$0xff] }
 0x25f   :  { %16118 = vst [vmem:[#allocation180_spill] sm:$0xff] %v13364_v56  ;;  %v13374_v16 = vpop.f32.mrb[22].mxu1  ;;  %vm16124_vm10 = vmmov %vm16086_vm9  ;;  %v2065_v20 = vadd.f32 %v1953_v15, %v1841_v28  ;;  %v1725_v15 = vmul.f32 %v10353_v11, %v11141_v46 }
 0x260   :  { %16121 = vst [vmem:[#allocation181_spill] sm:$0xff] %v13374_v16  ;;  %v13380_v55 = vpop.f32.mrb[23].mxu1  ;;  %v4281_v36 = vsel %vm16124_vm10, %v4188_v57, %v4189_v5  ;;  %16125 = vst [vmem:[#allocation183_spill] sm:$0xff] %v13391_v4  ;;  %v13393_v2 = vmax.f32 %v2063_v43, 0.0  ;;  %v2832_v16 = vand.u32 31, %v2290_v10  ;;  %v10352_v5 = vld [vmem:[%s15554_s0 + $0x240] sm:$0xff] }
 0x261   :  { %16122 = vst [vmem:[#allocation182_spill] sm:$0xff] %v13380_v55  ;;  %v16127_v55 = vld [vmem:[#allocation97_spill] sm:$0xff]  ;;  %v13400_v56 = vpack.c.bf16 %v4280_v60, %v4281_v36  ;;  %v1724_v57 = vmul.f32 %v10352_v5, %v11141_v46  ;;  %v13429_v5 = vmax.f32 %v2064_v14, 0.0  ;;  %v1954_v14 = vld [vmem:[%s15555_s1 + $0x240] sm:$0xff]  ;;  %vm16143_vm10 = vmmov %vm16086_vm9 }
 0x262   :  { %16126 = vst [vmem:[#allocation184_spill] sm:$0xff] %v13393_v2  ;;  %v13410_v43 = vpack.c.bf16 %v13393_v2, %v13391_v4  ;;  %v4192_v28 = vrot.slane %v13393_v2, 7  ;;  %vm13422_vm13 = vcmp.lt.s32.totalorder %v2832_v16, 28  ;;  %v1843_v16 = vadd.f32 %v11181_v12, %v1725_v15 }
 0x263   :  { %5954 = vmatmul.mubr.bf16.gmra.mrb[136].mxu0 %v13351_v47  ;;  %16134 = vst [vmem:[#allocation188_spill] sm:$0xff] %v13429_v5  ;;  %v1842_v2 = vadd.f32 %v11181_v12, %v1724_v57  ;;  %v10354_v57 = vld [vmem:[%s15554_s0 + $0x250] sm:$0xff] }
 0x264   :  { %9600 = vmatprep.mubr.msk.bf16.mxu0 %vm13369_vm6, %v13354_v38 }
 0x265   :  { %7000 = vmatmul.mubr.bf16.gmra.mrb[128].mxu1 %v12367_v37  ;;  %v4191_v37 = vrot.slane %v13391_v4, 7 }
 0x266   :  { %7007 = vmatprep.mubr.bf16.mxu1 %v16127_v55  ;;  %v13406_v25 = vpop.f32.mrb[24].mxu1  ;;  %v2177_v55 = vmax.f32 %v2065_v20, 0.0 }
 0x267   :  { %16128 = vst [vmem:[#allocation97_spill] sm:$0xff] %v13406_v25  ;;  %v13418_v10 = vpop.f32.mrb[25].mxu1  ;;  %v4278_v11 = vsel %vm16086_vm9, %v4191_v37, %v4192_v28  ;;  %v4279_v20 = vsel %vm16135_vm14, %v4190_v58, %v4191_v37  ;;  %v1726_v37 = vmul.f32 %v10354_v57, %v11141_v46  ;;  %v2066_v25 = vadd.f32 %v1954_v14, %v1842_v2  ;;  %v1956_v14 = vld [vmem:[%s15555_s1 + $0x250] sm:$0xff]  ;;  %vm16152_vm14 = vmmov %vm16086_vm9 }
 0x268   :  { %16129 = vst [vmem:[#allocation185_spill] sm:$0xff] %v13418_v10  ;;  %v13420_v53 = vpop.f32.mrb[26].mxu1  ;;  %v13441_v4 = vsel %vm13422_vm13, %v2177_v55, 0.0  ;;  %v13452_v58 = vpack.c.bf16 %v4278_v11, %v4279_v20  ;;  %v4193_v10 = vrot.slane %v13429_v5, 7 }
 0x269   :  { %16130 = vst [vmem:[#allocation186_spill] sm:$0xff] %v13420_v53  ;;  %v13426_v36 = vpop.f32.mrb[27].mxu1  ;;  %16136 = vst [vmem:[#allocation189_spill] sm:$0xff] %v13441_v4  ;;  %v4194_v53 = vrot.slane %v13441_v4, 7  ;;  %v1844_v57 = vadd.f32 %v11181_v12, %v1726_v37  ;;  %v16147_v37 = vld [vmem:[#allocation104_spill] sm:$0xff] }
 0x26a   :  { %16133 = vst [vmem:[#allocation187_spill] sm:$0xff] %v13426_v36  ;;  %v1955_v36 = vld [vmem:[%s15555_s1 + $0x248] sm:$0xff] }
 0x26b   :  { %5964 = vmatmul.mubr.bf16.gmra.mrb[140].mxu0 %v13400_v56  ;;  %v2067_v62 = vadd.f32 %v1955_v36, %v1843_v16  ;;  %v4276_v2 = vsel %vm16143_vm10, %v4193_v10, %v4194_v53  ;;  %v13487_v36 = vmax.f32 %v2066_v25, 0.0  ;;  %vm16164_vm10 = vmmov %vm16086_vm9 }
 0x26c   :  { %5973 = vmatprep.mubr.bf16.mxu0 %v13410_v43 }
 0x26d   :  { %7008 = vmatmul.mubr.bf16.gmra.mrb[132].mxu1 %v12423_v9  ;;  %v13455_v9 = vpack.c.bf16 %v2177_v55, %v13429_v5  ;;  %16145 = vst [vmem:[#allocation194_spill] sm:$0xff] %v13487_v36  ;;  %v13489_v16 = vmax.f32 %v2067_v62, 0.0  ;;  %v2068_v5 = vadd.f32 %v1956_v14, %v1844_v57  ;;  %v4195_v25 = vrot.slane %v13487_v36, 7  ;;  %v10355_v62 = vld [vmem:[%s15554_s0 + $0x268] sm:$0xff] }
 0x26e   :  { %9657 = vmatprep.mubr.msk.bf16.mxu1 %vm12439_vm8, %v12432_v39  ;;  %v13461_v15 = vpop.f32.mrb[28].mxu1  ;;  %vm13470_vm8 = vmpackc.low %vm13422_vm13, %vm15946_vm0 }
 0x26f   :  { %16137 = vst [vmem:[#allocation190_spill] sm:$0xff] %v13461_v15  ;;  %v13465_v39 = vpop.f32.mrb[29].mxu1  ;;  %vm16144_vm13 = vmmov %vm16086_vm9  ;;  %v4275_v14 = vsel %vm16152_vm14, %v4194_v53, %v4195_v25  ;;  %v10356_v53 = vld [vmem:[%s15554_s0 + $0x270] sm:$0xff] }
 0x270   :  { %16138 = vst [vmem:[#allocation191_spill] sm:$0xff] %v13465_v39  ;;  %v13474_v11 = vpop.f32.mrb[30].mxu1  ;;  %v4277_v60 = vsel %vm16144_vm13, %v4192_v28, %v4193_v10  ;;  %16146 = vst [vmem:[#allocation195_spill] sm:$0xff] %v13489_v16  ;;  %v13502_v28 = vpack.c.bf16 %v13489_v16, %v13487_v36  ;;  %v4196_v10 = vrot.slane %v13489_v16, 7  ;;  %v13522_v16 = vmax.f32 %v2068_v5, 0.0  ;;  %v16154_v36 = vld [vmem:[#allocation107_spill] sm:$0xff] }
 0x271   :  { %16141 = vst [vmem:[#allocation192_spill] sm:$0xff] %v13474_v11  ;;  %v13476_v20 = vpop.f32.mrb[31].mxu1  ;;  %v13496_v4 = vpack.c.bf16 %v4276_v2, %v4277_v60  ;;  %v1730_v5 = vmul.f32 %v10356_v53, %v11141_v46 }
 0x272   :  { %16142 = vst [vmem:[#allocation193_spill] sm:$0xff] %v13476_v20  ;;  %v4274_v60 = vsel %vm16086_vm9, %v4195_v25, %v4196_v10  ;;  %16153 = vst [vmem:[#allocation199_spill] sm:$0xff] %v13522_v16 }
 0x273   :  { %5974 = vmatmul.mubr.bf16.gmra.mrb[144].mxu0 %v13452_v58 }
 0x274   :  { %9603 = vmatprep.mubr.msk.bf16.mxu0 %vm13470_vm8, %v13455_v9 }
 0x275   :  { %7016 = vmatmul.mubr.bf16.gmra.mrb[136].mxu1 %v12466_v61  ;;  %v1729_v61 = vmul.f32 %v10355_v62, %v11141_v46 }
 0x276   :  { %7023 = vmatprep.mubr.bf16.mxu1 %v16147_v37  ;;  %v13498_v20 = vpop.f32.mrb[32].mxu1 }
 0x277   :  { %16148 = vst [vmem:[#allocation104_spill] sm:$0xff] %v13498_v20  ;;  %v13510_v37 = vpop.f32.mrb[33].mxu1  ;;  %v1847_v62 = vadd.f32 %v11181_v12, %v1729_v61  ;;  %v13532_v20 = vpack.c.bf16 %v4274_v60, %v4275_v14  ;;  %v16158_v61 = vmax.f32 %v12851_v19, 0.0  ;;  %v1848_v19 = vadd.f32 %v11181_v12, %v1730_v5 }
 0x278   :  { %16149 = vst [vmem:[#allocation196_spill] sm:$0xff] %v13510_v37  ;;  %v13512_v2 = vpop.f32.mrb[34].mxu1  ;;  %v4197_v37 = vrot.slane %v13522_v16, 7 }
 0x279   :  { %16150 = vst [vmem:[#allocation197_spill] sm:$0xff] %v13512_v2  ;;  %v13514_v57 = vpop.f32.mrb[35].mxu1  ;;  %v16155_v2 = vld [vmem:[#allocation108_spill] sm:$0xff]  ;;  %v13544_v11 = vpack.c.bf16 %v16158_v61, %v13522_v16 }
 0x27a   :  { %16151 = vst [vmem:[#allocation198_spill] sm:$0xff] %v13514_v57  ;;  %v1959_v57 = vld [vmem:[%s15555_s1 + $0x268] sm:$0xff]  ;;  %v1960_v61 = vld [vmem:[%s15555_s1 + $0x270] sm:$0xff] }
 0x27b   :  { %5984 = vmatmul.mubr.bf16.gmra.mrb[148].mxu0 %v13496_v4  ;;  %v16167_v16 = vld [vmem:[#allocation112_spill] sm:$0xff] }
 0x27c   :  { %5993 = vmatprep.mubr.bf16.mxu0 %v13502_v28 }
 0x27d   :  { %7024 = vmatmul.mubr.bf16.gmra.mrb[140].mxu1 %v16154_v36  ;;  %v4198_v36 = vrot.slane %v12907_v63, 7 }
 0x27e   :  { %9660 = vmatprep.mubr.msk.bf16.mxu1 %vm12526_vm15, %v16155_v2  ;;  %v13538_v25 = vpop.f32.mrb[36].mxu1  ;;  %v2071_v2 = vadd.f32 %v1959_v57, %v1847_v62  ;;  %vm13552_vm15 = vmpackc.low %vm12877_vm2, %vm15946_vm0 }
 0x27f   :  { %16157 = vst [vmem:[#allocation107_spill] sm:$0xff] %v13538_v25  ;;  %v13547_v60 = vpop.f32.mrb[37].mxu1  ;;  %v4272_v57 = vsel %vm16164_vm10, %v4197_v37, %v4198_v36  ;;  %vm16165_vm2 = vmmov %vm16086_vm9 }
 0x280   :  { %16159 = vst [vmem:[#allocation108_spill] sm:$0xff] %v13547_v60  ;;  %v13556_v53 = vpop.f32.mrb[38].mxu1  ;;  %v4273_v30 = vsel %vm16165_vm2, %v4196_v10, %v4197_v37  ;;  %v13569_v62 = vmax.f32 %v2071_v2, 0.0  ;;  %v4199_v10 = vrot.slane %v12916_v51, 7  ;;  %v10357_v2 = vld [vmem:[%s15554_s0 + $0x288] sm:$0xff]  ;;  %vm16173_vm13 = vmmov %vm16165_vm2 }
 0x281   :  { %16162 = vst [vmem:[#allocation109_spill] sm:$0xff] %v13556_v53  ;;  %v13558_v63 = vpop.f32.mrb[39].mxu1  ;;  %v13576_v5 = vpack.c.bf16 %v4272_v57, %v4273_v30  ;;  %v2072_v53 = vadd.f32 %v1960_v61, %v1848_v19  ;;  %vm16174_vm9 = vmmov %vm16165_vm2 }
 0x282   :  { %16163 = vst [vmem:[#allocation200_spill] sm:$0xff] %v13558_v63  ;;  %16166 = vst [vmem:[#allocation201_spill] sm:$0xff] %v13569_v62  ;;  %v16168_v63 = vld [vmem:[#allocation113_spill] sm:$0xff]  ;;  %v13582_v25 = vpack.c.bf16 %v13569_v62, %v12916_v51  ;;  %v4200_v37 = vrot.slane %v13569_v62, 7  ;;  %v4271_v61 = vsel %vm16174_vm9, %v4198_v36, %v4199_v10  ;;  %v4202_v36 = vrot.slane %v12990_v23, 7 }
 0x283   :  { %5994 = vmatmul.mubr.bf16.gmra.mrb[152].mxu0 %v13532_v20  ;;  %v13602_v51 = vmax.f32 %v2072_v53, 0.0  ;;  %v16177_v53 = vmax.f32 %v12952_v1, 0.0  ;;  %vm16183_vm14 = vmmov %vm16165_vm2  ;;  %v4203_v23 = vrot.slane %v13001_v29, 7 }
 0x284   :  { %9606 = vmatprep.mubr.msk.bf16.mxu0 %vm13552_vm15, %v13544_v11  ;;  %v4270_v30 = vsel %vm16173_vm13, %v4199_v10, %v4200_v37  ;;  %vm16184_vm10 = vmmov %vm16165_vm2 }
 0x285   :  { %7032 = vmatmul.mubr.bf16.gmra.mrb[144].mxu1 %v16167_v16  ;;  %v1733_v16 = vmul.f32 %v10357_v2, %v11141_v46  ;;  %16175 = vst [vmem:[#allocation204_spill] sm:$0xff] %v13602_v51  ;;  %v1963_v2 = vld [vmem:[%s15555_s1 + $0x288] sm:$0xff]  ;;  %v13612_v62 = vpack.c.bf16 %v4270_v30, %v4271_v61  ;;  %vm13688_vm13 = vmpackc.low %vm11162_vm1, %vm15946_vm0 }
 0x286   :  { %7039 = vmatprep.mubr.bf16.mxu1 %v16168_v63  ;;  %vm16201_vm9 = vmmov %vm16165_vm2 }
 0x287   :  { %v1851_v46 = vadd.f32 %v11181_v12, %v1733_v16  ;;  %v13620_v12 = vpack.c.bf16 %v16177_v53, %v13602_v51  ;;  %vm16208_vm1 = vmmov %vm16165_vm2 }
 0x288   :  { %v13578_v60 = vpop.f32.mrb[40].mxu1 }
 0x289   :  { %16169 = vst [vmem:[#allocation112_spill] sm:$0xff] %v13578_v60  ;;  %v13590_v63 = vpop.f32.mrb[41].mxu1  ;;  %v2075_v10 = vadd.f32 %v1963_v2, %v1851_v46 }
 0x28a   :  { %16170 = vst [vmem:[#allocation113_spill] sm:$0xff] %v13590_v63  ;;  %v13592_v57 = vpop.f32.mrb[42].mxu1 }
 0x28b   :  { %16171 = vst [vmem:[#allocation202_spill] sm:$0xff] %v13592_v57  ;;  %v13594_v19 = vpop.f32.mrb[43].mxu1  ;;  %6004 = vmatmul.mubr.bf16.gmra.mrb[156].mxu0 %v13576_v5  ;;  %v13644_v61 = vmax.f32 %v2075_v10, 0.0  ;;  %v4267_v10 = vsel %vm16165_vm2, %v4202_v36, %v4203_v23  ;;  %v16217_v57 = vld [vmem:[#allocation27_spill] sm:$0xff] }
 0x28c   :  { %16172 = vst [vmem:[#allocation203_spill] sm:$0xff] %v13594_v19  ;;  %6013 = vmatprep.mubr.bf16.mxu0 %v13582_v25  ;;  %v4210_v63 = vrot.slane %v16217_v57, 7  ;;  %v16224_v57 = vld [vmem:[#allocation131_spill] sm:$0xff] }
 0x28d   :  { %7040 = vmatmul.mubr.bf16.gmra.mrb[148].mxu1 %v12600_v59  ;;  %v4201_v59 = vrot.slane %v13602_v51, 7  ;;  %16185 = vst [vmem:[#allocation209_spill] sm:$0xff] %v13644_v61  ;;  %v13654_v53 = vpack.c.bf16 %v13644_v61, %v13001_v29  ;;  %v4204_v51 = vrot.slane %v13644_v61, 7  ;;  %v16191_v29 = vld [vmem:[#allocation13_spill] sm:$0xff]  ;;  %v16192_v61 = vld [vmem:[#allocation10_spill] sm:$0xff] }
 0x28e   :  { %9663 = vmatprep.mubr.msk.bf16.mxu1 %vm12614_vm12, %v12608_v41  ;;  %vm13628_vm12 = vmpackc.low %vm12970_vm5, %vm15946_vm0  ;;  %v16325_v41 = vld [vmem:[#allocation15_spill] sm:$0xff] }
 0x28f   :  { %v4268_v1 = vsel %vm16183_vm14, %v4201_v59, %v4202_v36  ;;  %v4269_v6 = vsel %vm16184_vm10, %v4200_v37, %v4201_v59  ;;  %vm16190_vm5 = vmmov %vm16165_vm2 }
 0x290   :  { %v13614_v19 = vpop.f32.mrb[44].mxu1  ;;  %v13648_v46 = vpack.c.bf16 %v4268_v1, %v4269_v6  ;;  %vm16209_vm14 = vmmov %vm16208_vm1 }
 0x291   :  { %16176 = vst [vmem:[#allocation205_spill] sm:$0xff] %v13614_v19  ;;  %v13623_v16 = vpop.f32.mrb[45].mxu1 }
 0x292   :  { %16178 = vst [vmem:[#allocation206_spill] sm:$0xff] %v13623_v16  ;;  %v13632_v48 = vpop.f32.mrb[46].mxu1 }
 0x293   :  { %16181 = vst [vmem:[#allocation207_spill] sm:$0xff] %v13632_v48  ;;  %v13634_v30 = vpop.f32.mrb[47].mxu1  ;;  %6014 = vmatmul.mubr.bf16.gmra.mrb[160].mxu0 %v13612_v62 }
 0x294   :  { %16182 = vst [vmem:[#allocation208_spill] sm:$0xff] %v13634_v30  ;;  %9609 = vmatprep.mubr.msk.bf16.mxu0 %vm13628_vm12, %v13620_v12  ;;  %v10263_v30 = vld [vmem:[#allocation6 + $0x200] ss:$12 sps:$4 sm:$0xff]  }
 0x295   :  { %7048 = vmatmul.mubr.bf16.gmra.mrb[152].mxu1 %v12641_v45  ;;  %9796 = vmatprep.subr.bf16.mxu1 %v10263_v30 }
 0x296   :  { %7055 = vmatprep.mubr.bf16.mxu1 %v12646_v22  ;;  %9797 = vmatpush3.bf16.msra.mxu1 %v10263_v30  ;;  %v4266_v22 = vsel %vm16190_vm5, %v4203_v23, %v4204_v51  ;;  %v16193_v30 = vmax.f32 %v16192_v61, 0.0 }
 0x297   :  { %v13674_v1 = vpack.c.bf16 %v4266_v22, %v4267_v10  ;;  %v16203_v22 = vld [vmem:[#allocation123_spill] sm:$0xff] }
 0x298   :  { %v13650_v2 = vpop.f32.mrb[48].mxu1 }
 0x299   :  { %16186 = vst [vmem:[#allocation210_spill] sm:$0xff] %v13650_v2  ;;  %v13658_v37 = vpop.f32.mrb[49].mxu1 }
 0x29a   :  { %16187 = vst [vmem:[#allocation211_spill] sm:$0xff] %v13658_v37  ;;  %v13660_v59 = vpop.f32.mrb[50].mxu1  ;;  %v16194_v37 = vld [vmem:[#allocation17_spill] sm:$0xff] }
 0x29b   :  { %16188 = vst [vmem:[#allocation212_spill] sm:$0xff] %v13660_v59  ;;  %v13662_v45 = vpop.f32.mrb[51].mxu1  ;;  %6024 = vmatmul.mubr.bf16.gmra.mrb[164].mxu0 %v13648_v46  ;;  %v4205_v59 = vrot.slane %v16191_v29, 7  ;;  %v4206_v2 = vrot.slane %v16194_v37, 7  ;;  %v16202_v37 = vld [vmem:[#allocation122_spill] sm:$0xff] }
 0x29c   :  { %16189 = vst [vmem:[#allocation213_spill] sm:$0xff] %v13662_v45  ;;  %6033 = vmatprep.mubr.bf16.mxu0 %v13654_v53  ;;  %v13679_v45 = vpack.c.bf16 %v16193_v30, %v16191_v29  ;;  %v16204_v30 = vld [vmem:[#allocation14_spill] sm:$0xff] }
 0x29d   :  { %7056 = vmatmul.mubr.bf16.gmra.mrb[156].mxu1 %v12689_v32  ;;  %v4265_v61 = vsel %vm16201_vm9, %v4204_v51, %v4205_v59  ;;  %v16205_v32 = vld [vmem:[#allocation21_spill] sm:$0xff]  ;;  %v4207_v29 = vrot.slane %v16204_v30, 7  ;;  %vm16223_vm9 = vmmov %vm16208_vm1 }
 0x29e   :  { %9666 = vmatprep.mubr.msk.bf16.mxu1 %vm12703_vm7, %v12698_v31  ;;  %vm16200_vm7 = vmmov %vm16165_vm2 }
 0x29f   :  { %v4264_v36 = vsel %vm16200_vm7, %v4205_v59, %v4206_v2  ;;  %v4263_v59 = vsel %vm16209_vm14, %v4206_v2, %v4207_v29  ;;  %vm16222_vm7 = vmmov %vm16208_vm1 }
 0x2a0   :  { %v6808_v6 = vpop.f32.mrb[52].mxu1  ;;  %v13704_v10 = vpack.c.bf16 %v4264_v36, %v4265_v61  ;;  %v16210_v36 = vld [vmem:[#allocation126_spill] sm:$0xff]  ;;  %v16211_v61 = vld [vmem:[#allocation127_spill] sm:$0xff]  ;;  %vm16230_vm14 = vmmov %vm16208_vm1 }
 0x2a1   :  { %v13683_v48 = vpop.f32.mrb[53].mxu1 }
 0x2a2   :  { %16195 = vst [vmem:[#allocation10_spill] sm:$0xff] %v13683_v48  ;;  %v6812_v31 = vpop.f32.mrb[54].mxu1 }
 0x2a3   :  { %v13692_v23 = vpop.f32.mrb[55].mxu1  ;;  %6034 = vmatmul.mubr.bf16.gmra.mrb[168].mxu0 %v13674_v1  ;;  %v13708_v31 = vpack.c.bf16 %v16205_v32, %v16204_v30  ;;  %v16215_v30 = vld [vmem:[#allocation23_spill] sm:$0xff] }
 0x2a4   :  { %16199 = vst [vmem:[#allocation17_spill] sm:$0xff] %v13692_v23  ;;  %9612 = vmatprep.mubr.msk.bf16.mxu0 %vm13688_vm13, %v13679_v45  ;;  %v4208_v23 = vrot.slane %v16205_v32, 7  ;;  %v16216_v32 = vmax.f32 %v16215_v30, 0.0  ;;  %v16228_v30 = vld [vmem:[#allocation33_spill] sm:$0xff] }
 0x2a5   :  { %7064 = vmatmul.mubr.bf16.gmra.mrb[160].mxu1 %v16202_v37  ;;  %v16212_v37 = vld [vmem:[#allocation129_spill] sm:$0xff] }
 0x2a6   :  { %7071 = vmatprep.mubr.bf16.mxu1 %v16203_v22  ;;  %v4262_v51 = vsel %vm16208_vm1, %v4207_v29, %v4208_v23  ;;  %vm16213_vm10 = vnez %v16212_v37  ;;  %v16218_v29 = vld [vmem:[#allocation19_spill] sm:$0xff] }
 0x2a7   :  { %v13726_v22 = vpack.c.bf16 %v4262_v51, %v4263_v59  ;;  %vm16219_vm5 = vnez %v16218_v29 }
 0x2a8   :  { %v6818_v6 = vpop.f32.mrb[56].mxu1  ;;  %vm13738_vm2 = vmpackc.low %vm16219_vm5, %vm15946_vm0 }
 0x2a9   :  { %v13712_v48 = vpop.f32.mrb[57].mxu1  ;;  %v16214_v6 = vld [vmem:[#allocation22_spill] sm:$0xff] }
 0x2aa   :  { %16206 = vst [vmem:[#allocation8_spill] sm:$0xff] %v13712_v48  ;;  %v6822_v16 = vpop.f32.mrb[58].mxu1  ;;  %v4209_v48 = vrot.slane %v16214_v6, 7 }
 0x2ab   :  { %v13714_v19 = vpop.f32.mrb[59].mxu1  ;;  %6044 = vmatmul.mubr.bf16.gmra.mrb[172].mxu0 %v13704_v10 }
 0x2ac   :  { %16207 = vst [vmem:[#allocation122_spill] sm:$0xff] %v13714_v19  ;;  %6053 = vmatprep.mubr.bf16.mxu0 %v13708_v31  ;;  %v13731_v19 = vpack.c.bf16 %v16216_v32, %v16214_v6  ;;  %v16227_v6 = vld [vmem:[#allocation26_spill] sm:$0xff] }
 0x2ad   :  { %7072 = vmatmul.mubr.bf16.gmra.mrb[164].mxu1 %v16210_v36  ;;  %v4260_v36 = vsel %vm16222_vm7, %v4209_v48, %v4210_v63  ;;  %v13756_v32 = vpack.c.bf16 %v16228_v30, %v16227_v6  ;;  %v4211_v29 = vrot.slane %v16227_v6, 7 }
 0x2ae   :  { %9669 = vmatprep.mubr.msk.bf16.mxu1 %vm16213_vm10, %v16211_v61  ;;  %v16225_v61 = vld [vmem:[#allocation132_spill] sm:$0xff] }
 0x2af   :  { %16229 = vst [vmem:[#allocation14_spill] sm:$0xff] %v13756_v32 }
 0x2b0   :  { %v6828_v16 = vpop.f32.mrb[60].mxu1 }
 0x2b1   :  { %v6830_v60 = vpop.f32.mrb[61].mxu1 }
 0x2b2   :  { %v6832_v51 = vpop.f32.mrb[62].mxu1  ;;  %v4261_v60 = vsel %vm16223_vm9, %v4208_v23, %v4209_v48  ;;  %v4259_v23 = vsel %vm16230_vm14, %v4210_v63, %v4211_v29  ;;  %v16239_v63 = vld [vmem:[#allocation30_spill] sm:$0xff]  ;;  %vm16243_vm9 = vmmov %vm16208_vm1 }
 0x2b3   :  { %v6834_v59 = vpop.f32.mrb[63].mxu1  ;;  %6054 = vmatmul.mubr.bf16.gmra.mrb[176].mxu0 %v13726_v22  ;;  %v13752_v37 = vpack.c.bf16 %v4260_v36, %v4261_v60  ;;  %v4212_v51 = vrot.slane %v16228_v30, 7  ;;  %v16231_v36 = vld [vmem:[#allocation134_spill] sm:$0xff]  ;;  %v16232_v60 = vld [vmem:[#allocation136_spill] sm:$0xff]  ;;  %vm16240_vm5 = vnez %v16239_v63  ;;  %vm16246_vm14 = vmmov %vm16208_vm1 }
 0x2b4   :  { %9615 = vmatprep.mubr.msk.bf16.mxu0 %vm13738_vm2, %v13731_v19  ;;  %vm13782_vm7 = vmpackc.low %vm16240_vm5, %vm15946_vm0 }
 0x2b5   :  { %7080 = vmatmul.mubr.bf16.gmra.mrb[168].mxu1 %v16224_v57  ;;  %16226 = vst [vmem:[#allocation123_spill] sm:$0xff] %v13752_v37  ;;  %v4258_v48 = vsel %vm16208_vm1, %v4211_v29, %v4212_v51  ;;  %v16233_v57 = vld [vmem:[#allocation139_spill] sm:$0xff] }
 0x2b6   :  { %7087 = vmatprep.mubr.bf16.mxu1 %v16225_v61  ;;  %vm16234_vm10 = vnez %v16233_v57  ;;  %v13770_v61 = vpack.c.bf16 %v4258_v48, %v4259_v23  ;;  %v16244_v57 = vld [vmem:[#allocation39_spill] sm:$0xff] }
 0x2b8   :  { %v6838_v16 = vpop.f32.mrb[64].mxu1 }
 0x2b9   :  { %v6840_v59 = vpop.f32.mrb[65].mxu1  ;;  %v16236_v16 = vld [vmem:[#allocation37_spill] sm:$0xff] }
 0x2ba   :  { %v6842_v39 = vpop.f32.mrb[66].mxu1  ;;  %v16237_v6 = vmax.f32 %v16236_v16, 0.0  ;;  %v4215_v16 = vrot.slane %v16244_v57, 7 }
 0x2bb   :  { %v6844_v15 = vpop.f32.mrb[67].mxu1  ;;  %6064 = vmatmul.mubr.bf16.gmra.mrb[180].mxu0 %v13752_v37 }
 0x2bc   :  { %6073 = vmatprep.mubr.bf16.mxu0 %v13756_v32  ;;  %v16235_v15 = vld [vmem:[#allocation34_spill] sm:$0xff]  ;;  %v4214_v32 = vrot.slane %v16238_v54, 7  ;;  %v16346_v2 = vld [vmem:[#allocation123_spill] sm:$0xff] }
 0x2bd   :  { %7088 = vmatmul.mubr.bf16.gmra.mrb[172].mxu1 %v16231_v36  ;;  %v13775_v30 = vpack.c.bf16 %v16237_v6, %v16235_v15  ;;  %v4213_v59 = vrot.slane %v16235_v15, 7 }
 0x2be   :  { %9672 = vmatprep.mubr.msk.bf16.mxu1 %vm16234_vm10, %v16232_v60  ;;  %vm16247_vm10 = vmmov %vm16208_vm1 }
 0x2bf   :  { %v4256_v36 = vsel %vm16243_vm9, %v4213_v59, %v4214_v32  ;;  %v4257_v54 = vsel %vm16208_vm1, %v4212_v51, %v4213_v59 }
 0x2c0   :  { %v6881_v39 = vpop.f32.mrb[68].mxu1 }
 0x2c1   :  { %v6883_v37 = vpop.f32.mrb[69].mxu1  ;;  %v16245_v39 = vld [vmem:[#allocation45_spill] sm:$0xff] }
 0x2c2   :  { %v6884_v48 = vpop.f32.mrb[70].mxu1  ;;  %v13796_v37 = vpack.c.bf16 %v4256_v36, %v4257_v54  ;;  %v13800_v15 = vpack.c.bf16 %v16245_v39, %v16244_v57  ;;  %v4216_v6 = vrot.slane %v16245_v39, 7  ;;  %v16248_v36 = vld [vmem:[#allocation46_spill] sm:$0xff]  ;;  %v16249_v54 = vld [vmem:[#allocation49_spill] sm:$0xff] }
 0x2c3   :  { %v6886_v23 = vpop.f32.mrb[71].mxu1  ;;  %6074 = vmatmul.mubr.bf16.gmra.mrb[184].mxu0 %v13770_v61  ;;  %v4217_v39 = vrot.slane %v16248_v36, 7 }
 0x2c4   :  { %9618 = vmatprep.mubr.msk.bf16.mxu0 %vm13782_vm7, %v13775_v30 }
 0x2c5   :  { %7096 = vmatmul.mubr.bf16.gmra.mrb[176].mxu1 %v12979_v34  ;;  %v4254_v34 = vsel %vm16246_vm14, %v4215_v16, %v4216_v6  ;;  %vm16259_vm14 = vmmov %vm16208_vm1 }
 0x2c6   :  { %7103 = vmatprep.mubr.bf16.mxu1 %v12983_v50  ;;  %v4255_v50 = vsel %vm16247_vm10, %v4214_v32, %v4215_v16  ;;  %v16252_v32 = vld [vmem:[#allocation44_spill] sm:$0xff]  ;;  %v10264_v16 = vld [vmem:[#allocation6 + $0x218] ss:$12 sps:$4 sm:$0xff]   ;;  %vm16260_vm10 = vmmov %vm16208_vm1 }
 0x2c7   :  { %v13814_v51 = vpack.c.bf16 %v4254_v34, %v4255_v50  ;;  %vm16253_vm5 = vnez %v16252_v32  ;;  %v4253_v50 = vsel %vm16208_vm1, %v4216_v6, %v4217_v39  ;;  %9798 = vmatprep.subr.bf16.mxu1 %v10264_v16 }
 0x2c8   :  { %v6889_v60 = vpop.f32.mrb[72].mxu1  ;;  %vm13826_vm9 = vmpackc.low %vm16253_vm5, %vm15946_vm0  ;;  %9799 = vmatpush3.bf16.msra.mxu1 %v10264_v16 }
 0x2c9   :  { %v6891_v63 = vpop.f32.mrb[73].mxu1  ;;  %v16250_v60 = vmax.f32 %v16249_v54, 0.0  ;;  %v16257_v54 = vld [vmem:[#allocation51_spill] sm:$0xff] }
 0x2ca   :  { %v6892_v48 = vpop.f32.mrb[74].mxu1  ;;  %v16251_v63 = vld [vmem:[#allocation52_spill] sm:$0xff] }
 0x2cb   :  { %v6894_v23 = vpop.f32.mrb[75].mxu1  ;;  %6084 = vmatmul.mubr.bf16.gmra.mrb[188].mxu0 %v13796_v37  ;;  %v13819_v57 = vpack.c.bf16 %v16250_v60, %v16248_v36  ;;  %v4218_v48 = vrot.slane %v16251_v63, 7  ;;  %v16258_v60 = vld [vmem:[#allocation57_spill] sm:$0xff] }
 0x2cc   :  { %6093 = vmatprep.mubr.bf16.mxu0 %v13800_v15  ;;  %v13844_v63 = vpack.c.bf16 %v16258_v60, %v16257_v54  ;;  %v4220_v32 = vrot.slane %v16258_v60, 7 }
 0x2cd   :  { %7104 = vmatmul.mubr.bf16.gmra.mrb[180].mxu1 %v13044_v33 }
 0x2ce   :  { %9675 = vmatprep.mubr.msk.bf16.mxu1 %vm13058_vm3, %v13053_v18  ;;  %vm16256_vm3 = vmmov %vm16208_vm1 }
 0x2cf   :  { %v4252_v34 = vsel %vm16256_vm3, %v4217_v39, %v4218_v48 }
 0x2d0   :  { %v6897_v59 = vpop.f32.mrb[76].mxu1 }
 0x2d1   :  { %v6899_v23 = vpop.f32.mrb[77].mxu1  ;;  %v13840_v59 = vpack.c.bf16 %v4252_v34, %v4253_v50  ;;  %v16262_v34 = vld [vmem:[#allocation58_spill] sm:$0xff]  ;;  %v16263_v50 = vld [vmem:[#allocation61_spill] sm:$0xff] }
 0x2d2   :  { %v6900_v18 = vpop.f32.mrb[78].mxu1  ;;  %v4219_v23 = vrot.slane %v16257_v54, 7  ;;  %v4221_v60 = vrot.slane %v16262_v34, 7 }
 0x2d3   :  { %v6902_v40 = vpop.f32.mrb[79].mxu1  ;;  %6094 = vmatmul.mubr.bf16.gmra.mrb[192].mxu0 %v13814_v51 }
 0x2d4   :  { %9621 = vmatprep.mubr.msk.bf16.mxu0 %vm13826_vm9, %v13819_v57 }
 0x2d5   :  { %7112 = vmatmul.mubr.bf16.gmra.mrb[184].mxu1 %v13087_v49  ;;  %v4250_v49 = vsel %vm16259_vm14, %v4219_v23, %v4220_v32  ;;  %vm16275_vm14 = vmmov %vm16208_vm1 }
 0x2d6   :  { %7119 = vmatprep.mubr.bf16.mxu1 %v13097_v13  ;;  %v4251_v13 = vsel %vm16260_vm10, %v4218_v48, %v4219_v23  ;;  %vm16276_vm10 = vmmov %vm16208_vm1 }
 0x2d7   :  { %v13858_v39 = vpack.c.bf16 %v4250_v49, %v4251_v13  ;;  %v4249_v49 = vsel %vm16208_vm1, %v4220_v32, %v4221_v60 }
 0x2d8   :  { %v6905_v36 = vpop.f32.mrb[80].mxu1 }
 0x2d9   :  { %v6907_v18 = vpop.f32.mrb[81].mxu1  ;;  %v16264_v36 = vmax.f32 %v16263_v50, 0.0  ;;  %v16272_v50 = vld [vmem:[#allocation62_spill] sm:$0xff] }
 0x2da   :  { %v6908_v40 = vpop.f32.mrb[82].mxu1  ;;  %v16265_v18 = vld [vmem:[#allocation63_spill] sm:$0xff] }
 0x2db   :  { %v6910_v6 = vpop.f32.mrb[83].mxu1  ;;  %6104 = vmatmul.mubr.bf16.gmra.mrb[196].mxu0 %v13840_v59  ;;  %v13865_v54 = vpack.c.bf16 %v16264_v36, %v16262_v34  ;;  %v4222_v40 = vrot.slane %v16265_v18, 7  ;;  %v16273_v36 = vld [vmem:[#allocation67_spill] sm:$0xff] }
 0x2dc   :  { %6113 = vmatprep.mubr.bf16.mxu0 %v13844_v63  ;;  %v13894_v18 = vpack.c.bf16 %v16273_v36, %v16272_v50 }
 0x2dd   :  { %7120 = vmatmul.mubr.bf16.gmra.mrb[188].mxu1 %v13141_v7  ;;  %v16266_v7 = vld [vmem:[#allocation55_spill] sm:$0xff] }
 0x2de   :  { %9678 = vmatprep.mubr.msk.bf16.mxu1 %vm13159_vm11, %v13148_v35  ;;  %vm16267_vm5 = vnez %v16266_v7  ;;  %vm16271_vm11 = vmmov %vm16208_vm1  ;;  %v4224_v7 = vrot.slane %v16273_v36, 7 }
 0x2df   :  { %vm13872_vm3 = vmpackc.low %vm16267_vm5, %vm15946_vm0  ;;  %v4248_v6 = vsel %vm16271_vm11, %v4221_v60, %v4222_v40 }
 0x2e0   :  { %v13860_v16 = vpop.f32.mrb[84].mxu1  ;;  %v13888_v13 = vpack.c.bf16 %v4248_v6, %v4249_v49  ;;  %v16278_v49 = vld [vmem:[#allocation68_spill] sm:$0xff] }
 0x2e1   :  { %16261 = vst [vmem:[#allocation21_spill] sm:$0xff] %v13860_v16  ;;  %v6915_v48 = vpop.f32.mrb[85].mxu1 }
 0x2e2   :  { %v13876_v35 = vpop.f32.mrb[86].mxu1  ;;  %v4223_v48 = vrot.slane %v16272_v50, 7  ;;  %v16279_v50 = vld [vmem:[#allocation69_spill] sm:$0xff] }
 0x2e3   :  { %16270 = vst [vmem:[#allocation126_spill] sm:$0xff] %v13876_v35  ;;  %v6918_v23 = vpop.f32.mrb[87].mxu1  ;;  %6114 = vmatmul.mubr.bf16.gmra.mrb[200].mxu0 %v13858_v39  ;;  %v16280_v36 = vmax.f32 %v16279_v50, 0.0  ;;  %v16289_v50 = vld [vmem:[#allocation74_spill] sm:$0xff] }
 0x2e4   :  { %9624 = vmatprep.mubr.msk.bf16.mxu0 %vm13872_vm3, %v13865_v54 }
 0x2e5   :  { %7128 = vmatmul.mubr.bf16.gmra.mrb[192].mxu1 %v13190_v27  ;;  %v4246_v27 = vsel %vm16275_vm14, %v4223_v48, %v4224_v7  ;;  %vm16292_vm14 = vmmov %vm16208_vm1 }
 0x2e6   :  { %7135 = vmatprep.mubr.bf16.mxu1 %v13201_v52  ;;  %v4247_v52 = vsel %vm16276_vm10, %v4222_v40, %v4223_v48  ;;  %vm16293_vm10 = vmmov %vm16208_vm1 }
 0x2e7   :  { %v13910_v60 = vpack.c.bf16 %v4246_v27, %v4247_v52 }
 0x2e8   :  { %v13890_v34 = vpop.f32.mrb[88].mxu1 }
 0x2e9   :  { %v6923_v23 = vpop.f32.mrb[89].mxu1 }
 0x2ea   :  { %v13898_v35 = vpop.f32.mrb[90].mxu1  ;;  %v13917_v23 = vpack.c.bf16 %v16280_v36, %v16278_v49  ;;  %v16290_v36 = vld [vmem:[#allocation79_spill] sm:$0xff] }
 0x2eb   :  { %16274 = vst [vmem:[#allocation127_spill] sm:$0xff] %v13898_v35  ;;  %v6926_v32 = vpop.f32.mrb[91].mxu1  ;;  %6124 = vmatmul.mubr.bf16.gmra.mrb[204].mxu0 %v13888_v13  ;;  %v16281_v35 = vld [vmem:[#allocation75_spill] sm:$0xff] }
 0x2ec   :  { %6133 = vmatprep.mubr.bf16.mxu0 %v13894_v18  ;;  %v4225_v32 = vrot.slane %v16278_v49, 7  ;;  %v4226_v16 = vrot.slane %v16281_v35, 7 }
 0x2ed   :  { %7136 = vmatmul.mubr.bf16.gmra.mrb[196].mxu1 %v13246_v3  ;;  %v16282_v3 = vld [vmem:[#allocation72_spill] sm:$0xff] }
 0x2ee   :  { %9681 = vmatprep.mubr.msk.bf16.mxu1 %vm13264_vm4, %v13256_v24  ;;  %vm16283_vm5 = vnez %v16282_v3  ;;  %vm16287_vm4 = vmmov %vm16208_vm1  ;;  %v4245_v27 = vsel %vm16208_vm1, %v4224_v7, %v4225_v32  ;;  %v4227_v3 = vrot.slane %v16289_v50, 7 }
 0x2ef   :  { %vm13924_vm11 = vmpackc.low %vm16283_vm5, %vm15946_vm0  ;;  %v4244_v35 = vsel %vm16287_vm4, %v4225_v32, %v4226_v16 }
 0x2f0   :  { %v13912_v6 = vpop.f32.mrb[92].mxu1  ;;  %v13940_v52 = vpack.c.bf16 %v4244_v35, %v4245_v27  ;;  %v16295_v35 = vld [vmem:[#allocation80_spill] sm:$0xff]  ;;  %v16296_v27 = vld [vmem:[#allocation81_spill] sm:$0xff] }
 0x2f1   :  { %16277 = vst [vmem:[#allocation129_spill] sm:$0xff] %v13912_v6  ;;  %v6931_v40 = vpop.f32.mrb[93].mxu1 }
 0x2f2   :  { %v13928_v24 = vpop.f32.mrb[94].mxu1  ;;  %v13946_v40 = vpack.c.bf16 %v16290_v36, %v16289_v50  ;;  %v16297_v50 = vmax.f32 %v16296_v27, 0.0  ;;  %v16306_v27 = vld [vmem:[#allocation86_spill] sm:$0xff] }
 0x2f3   :  { %16286 = vst [vmem:[#allocation22_spill] sm:$0xff] %v13928_v24  ;;  %v6934_v48 = vpop.f32.mrb[95].mxu1  ;;  %6134 = vmatmul.mubr.bf16.gmra.mrb[208].mxu0 %v13910_v60 }
 0x2f4   :  { %9627 = vmatprep.mubr.msk.bf16.mxu0 %vm13924_vm11, %v13917_v23  ;;  %v4228_v48 = vrot.slane %v16290_v36, 7  ;;  %v13969_v36 = vpack.c.bf16 %v16297_v50, %v16295_v35  ;;  %v16307_v50 = vld [vmem:[#allocation92_spill] sm:$0xff] }
 0x2f5   :  { %7144 = vmatmul.mubr.bf16.gmra.mrb[200].mxu1 %v13295_v44 }
 0x2f6   :  { %7151 = vmatprep.mubr.bf16.mxu1 %v13306_v8  ;;  %v4242_v44 = vsel %vm16292_vm14, %v4227_v3, %v4228_v48  ;;  %v4243_v8 = vsel %vm16293_vm10, %v4226_v16, %v4227_v3  ;;  %vm16309_vm14 = vmmov %vm16208_vm1 }
 0x2f7   :  { %v13962_v32 = vpack.c.bf16 %v4242_v44, %v4243_v8  ;;  %vm16310_vm10 = vmmov %vm16208_vm1 }
 0x2f8   :  { %v13942_v49 = vpop.f32.mrb[96].mxu1 }
 0x2f9   :  { %16288 = vst [vmem:[#allocation23_spill] sm:$0xff] %v13942_v49  ;;  %v6939_v24 = vpop.f32.mrb[97].mxu1 }
 0x2fa   :  { %v13950_v6 = vpop.f32.mrb[98].mxu1 }
 0x2fb   :  { %16291 = vst [vmem:[#allocation27_spill] sm:$0xff] %v13950_v6  ;;  %v6942_v7 = vpop.f32.mrb[99].mxu1  ;;  %6144 = vmatmul.mubr.bf16.gmra.mrb[212].mxu0 %v13940_v52  ;;  %v16298_v6 = vld [vmem:[#allocation87_spill] sm:$0xff] }
 0x2fc   :  { %6153 = vmatprep.mubr.bf16.mxu0 %v13946_v40  ;;  %v4229_v7 = vrot.slane %v16295_v35, 7  ;;  %v4230_v49 = vrot.slane %v16298_v6, 7 }
 0x2fd   :  { %7152 = vmatmul.mubr.bf16.gmra.mrb[204].mxu1 %v13351_v47  ;;  %v16299_v47 = vld [vmem:[#allocation85_spill] sm:$0xff] }
 0x2fe   :  { %9684 = vmatprep.mubr.msk.bf16.mxu1 %vm13369_vm6, %v13354_v38  ;;  %vm16300_vm5 = vnez %v16299_v47  ;;  %vm16304_vm6 = vmmov %vm16208_vm1  ;;  %v4241_v44 = vsel %vm16208_vm1, %v4228_v48, %v4229_v7  ;;  %v4231_v47 = vrot.slane %v16306_v27, 7 }
 0x2ff   :  { %vm13976_vm4 = vmpackc.low %vm16300_vm5, %vm15946_vm0  ;;  %v4240_v6 = vsel %vm16304_vm6, %v4229_v7, %v4230_v49 }
 0x300   :  { %v13964_v24 = vpop.f32.mrb[100].mxu1  ;;  %v13992_v8 = vpack.c.bf16 %v4240_v6, %v4241_v44  ;;  %v16311_v6 = vld [vmem:[#allocation93_spill] sm:$0xff] }
 0x301   :  { %16294 = vst [vmem:[#allocation19_spill] sm:$0xff] %v13964_v24  ;;  %v6947_v16 = vpop.f32.mrb[101].mxu1  ;;  %v16312_v44 = vld [vmem:[#allocation9_spill] sm:$0xff] }
 0x302   :  { %v13980_v38 = vpop.f32.mrb[102].mxu1  ;;  %v13998_v16 = vpack.c.bf16 %v16307_v50, %v16306_v27  ;;  %v16313_v27 = vmax.f32 %v16312_v44, 0.0 }
 0x303   :  { %16303 = vst [vmem:[#allocation131_spill] sm:$0xff] %v13980_v38  ;;  %v6950_v3 = vpop.f32.mrb[103].mxu1  ;;  %6154 = vmatmul.mubr.bf16.gmra.mrb[216].mxu0 %v13962_v32 }
 0x304   :  { %9630 = vmatprep.mubr.msk.bf16.mxu0 %vm13976_vm4, %v13969_v36  ;;  %v4232_v3 = vrot.slane %v16307_v50, 7  ;;  %v14021_v50 = vpack.c.bf16 %v16313_v27, %v16311_v6 }
 0x305   :  { %7160 = vmatmul.mubr.bf16.gmra.mrb[208].mxu1 %v13400_v56 }
 0x306   :  { %7167 = vmatprep.mubr.bf16.mxu1 %v13410_v43  ;;  %v4238_v56 = vsel %vm16309_vm14, %v4231_v47, %v4232_v3  ;;  %v4239_v43 = vsel %vm16310_vm10, %v4230_v49, %v4231_v47  ;;  %v16314_v49 = vld [vmem:[#allocation7_spill] sm:$0xff]  ;;  %v16318_v47 = vld [vmem:[#allocation16_spill] sm:$0xff] }
 0x307   :  { %v14014_v7 = vpack.c.bf16 %v4238_v56, %v4239_v43  ;;  %vm16315_vm5 = vnez %v16314_v49 }
 0x308   :  { %v13994_v35 = vpop.f32.mrb[104].mxu1  ;;  %vm14027_vm6 = vmpackc.low %vm16315_vm5, %vm15946_vm0 }
 0x309   :  { %16305 = vst [vmem:[#allocation132_spill] sm:$0xff] %v13994_v35  ;;  %v6955_v38 = vpop.f32.mrb[105].mxu1  ;;  %vm16321_vm0 = vmmov %vm16208_vm1 }
 0x30a   :  { %v14002_v24 = vpop.f32.mrb[106].mxu1 }
 0x30b   :  { %16308 = vst [vmem:[#allocation26_spill] sm:$0xff] %v14002_v24  ;;  %v6958_v48 = vpop.f32.mrb[107].mxu1  ;;  %6164 = vmatmul.mubr.bf16.gmra.mrb[220].mxu0 %v13992_v8  ;;  %v10265_v24 = vld [vmem:[#allocation6 + $0x230] ss:$12 sps:$4 sm:$0xff]  }
 0x30c   :  { %6173 = vmatprep.mubr.bf16.mxu0 %v13998_v16  ;;  %v4233_v48 = vrot.slane %v16311_v6, 7  ;;  %9800 = vmatprep.subr.bf16.mxu1 %v10265_v24 }
 0x30d   :  { %7168 = vmatmul.mubr.bf16.gmra.mrb[212].mxu1 %v13452_v58 }
 0x30e   :  { %9687 = vmatprep.mubr.msk.bf16.mxu1 %vm13470_vm8, %v13455_v9  ;;  %9801 = vmatpush3.bf16.msra.mxu1 %v10265_v24  ;;  %vm16320_vm8 = vmmov %vm16208_vm1  ;;  %v4237_v43 = vsel %vm16321_vm0, %v4232_v3, %v4233_v48 }
 0x310   :  { %v14016_v38 = vpop.f32.mrb[108].mxu1 }
 0x311   :  { %v6963_v35 = vpop.f32.mrb[109].mxu1 }
 0x312   :  { %v14031_v9 = vpop.f32.mrb[110].mxu1  ;;  %v16319_v35 = vrot.slane %v16318_v47, 7 }
 0x313   :  { %v6966_v55 = vpop.f32.mrb[111].mxu1  ;;  %6174 = vmatmul.mubr.bf16.gmra.mrb[224].mxu0 %v14014_v7 }
 0x314   :  { %9633 = vmatprep.mubr.msk.bf16.mxu0 %vm14027_vm6, %v14021_v50  ;;  %v4236_v56 = vsel %vm16320_vm8, %v4233_v48, %v16319_v35  ;;  %v16322_v55 = vmov 0  }
 0x315   :  { %7176 = vmatmul.mubr.bf16.gmra.mrb[216].mxu1 %v13496_v4  ;;  %v14045_v6 = vpack.c.bf16 %v4236_v56, %v4237_v43 }
 0x316   :  { %7183 = vmatprep.mubr.bf16.mxu1 %v13502_v28 }
 0x318   :  { %v14047_v44 = vpop.f32.mrb[112].mxu1 }
 0x319   :  { %v6971_v24 = vpop.f32.mrb[113].mxu1 }
 0x31a   :  { %v14049_v27 = vpop.f32.mrb[114].mxu1 }
 0x31b   :  { %v6974_v49 = vpop.f32.mrb[115].mxu1  ;;  %6184 = vmatmul.mubr.bf16.gmra.mrb[228].mxu0 %v14045_v6 }
 0x31c   :  { %6193 = vmatprep.mubr.bf16.mxu0 %v16322_v55 }
 0x31d   :  { %7184 = vmatmul.mubr.bf16.gmra.mrb[220].mxu1 %v13532_v20 }
 0x31e   :  { %9690 = vmatprep.mubr.msk.bf16.mxu1 %vm13552_vm15, %v13544_v11  ;;  %vm16327_vm15 = vcmp.lt.s32.totalorder %v11120_v17, 7 }
 0x320   :  { %v14057_v4 = vpop.f32.mrb[116].mxu1 }
 0x321   :  { %v6979_v28 = vpop.f32.mrb[117].mxu1 }
 0x322   :  { %v14059_v3 = vpop.f32.mrb[118].mxu1 }
 0x323   :  { %v6982_v48 = vpop.f32.mrb[119].mxu1  ;;  %6194 = vmatmul.mubr.bf16.gmra.mrb[232].mxu0 %v16322_v55 }
 0x324   :  { %6203 = vmatprep.mubr.bf16.mxu0 %v16322_v55 }
 0x325   :  { %7192 = vmatmul.mubr.bf16.gmra.mrb[224].mxu1 %v13576_v5 }
 0x326   :  { %7199 = vmatprep.mubr.bf16.mxu1 %v13582_v25 }
 0x328   :  { %v14065_v47 = vpop.f32.mrb[120].mxu1 }
 0x329   :  { %v6987_v20 = vpop.f32.mrb[121].mxu1 }
 0x32a   :  { %v14067_v35 = vpop.f32.mrb[122].mxu1 }
 0x32b   :  { %v6990_v11 = vpop.f32.mrb[123].mxu1  ;;  %6204 = vmatmul.mubr.bf16.gmra.mrb[236].mxu0 %v16322_v55 }
 0x32c   :  { %6246 = vmatprep.mubr.bf16.mxu0 %v16322_v55 }
 0x32d   :  { %7200 = vmatmul.mubr.bf16.gmra.mrb[228].mxu1 %v13612_v62  ;;  %v16324_v62 = vld [vmem:[#allocation12_spill] sm:$0xff] }
 0x32e   :  { %9693 = vmatprep.mubr.msk.bf16.mxu1 %vm13628_vm12, %v13620_v12  ;;  %v4349_v24 = vrot.slane %v16324_v62, 1  ;;  %v4350_v12 = vrot.slane %v16325_v41, 1  ;;  %vm16330_vm12 = vmmov %vm16327_vm15 }
 0x32f   :  { %vm16334_vm1 = vmmov %vm16330_vm12 }
 0x330   :  { %v14075_v14 = vpop.f32.mrb[124].mxu1  ;;  %v4570_v20 = vsel %vm16327_vm15, %v4349_v24, %v4350_v12  ;;  %vm16338_vm14 = vmmov %vm16334_vm1 }
 0x331   :  { %v6995_v5 = vpop.f32.mrb[125].mxu1  ;;  %vm16339_vm10 = vmmov %vm16334_vm1 }
 0x332   :  { %v14077_v25 = vpop.f32.mrb[126].mxu1  ;;  %vm16344_vm5 = vmmov %vm16334_vm1 }
 0x333   :  { %16323 = vst [vmem:[#allocation33_spill] sm:$0xff] %v14077_v25  ;;  %v6998_v56 = vpop.f32.mrb[127].mxu1  ;;  %6247 = vmatmul.mubr.bf16.vlgmr.msra.gmra.mrb[0].mxu0 %v16322_v55  ;;  %vm16352_vm8 = vmmov %vm16334_vm1 }
 0x334   :  { %6256 = vmatprep.mubr.bf16.mxu0 %v16322_v55  ;;  %v16331_v56 = vld [vmem:[#allocation18_spill] sm:$0xff]  ;;  %vm16353_vm0 = vmmov %vm16334_vm1 }
 0x335   :  { %7208 = vmatmul.mubr.bf16.gmra.mrb[232].mxu1 %v13648_v46  ;;  %v16328_v46 = vld [vmem:[#allocation11_spill] sm:$0xff]  ;;  %v4351_v62 = vrot.slane %v16331_v56, 1  ;;  %vm16358_vm15 = vmmov %vm16353_vm0 }
 0x336   :  { %7215 = vmatprep.mubr.bf16.mxu1 %v13654_v53  ;;  %v16329_v11 = vrot.slane %v16328_v46, 1 }
 0x338   :  { %v14083_v43 = vpop.f32.mrb[128].mxu1  ;;  %v4571_v53 = vsel %vm16330_vm12, %v16329_v11, %v4349_v24  ;;  %v16336_v24 = vld [vmem:[#allocation25_spill] sm:$0xff]  ;;  %vm16364_vm12 = vmmov %vm16353_vm0 }
 0x339   :  { %v7003_v49 = vpop.f32.mrb[129].mxu1  ;;  %v14101_v5 = vpack.c.bf16 %v4570_v20, %v4571_v53  ;;  %v4353_v20 = vrot.slane %v16336_v24, 1  ;;  %v16337_v11 = vld [vmem:[#allocation29_spill] sm:$0xff]  ;;  %v16342_v24 = vld [vmem:[#allocation35_spill] sm:$0xff] }
 0x33a   :  { %v14087_v28 = vpop.f32.mrb[130].mxu1  ;;  %v16332_v49 = vld [vmem:[#allocation24_spill] sm:$0xff]  ;;  %v4354_v53 = vrot.slane %v16337_v11, 1  ;;  %v4356_v11 = vrot.slane %v16342_v24, 1 }
 0x33b   :  { %16326 = vst [vmem:[#allocation134_spill] sm:$0xff] %v14087_v28  ;;  %v7006_v48 = vpop.f32.mrb[131].mxu1  ;;  %6257 = vmatmul.mubr.bf16.gmra.mrb[4].mxu0 %v16322_v55 }
 0x33c   :  { %6266 = vmatprep.mubr.bf16.mxu0 %v16322_v55  ;;  %v4352_v48 = vrot.slane %v16332_v49, 1 }
 0x33d   :  { %7216 = vmatmul.mubr.bf16.gmra.mrb[236].mxu1 %v13674_v1 }
 0x33e   :  { %9696 = vmatprep.mubr.msk.bf16.mxu1 %vm13688_vm13, %v13679_v45  ;;  %v4568_v1 = vsel %vm16334_vm1, %v4351_v62, %v4352_v48  ;;  %vm16335_vm13 = vmmov %vm16334_vm1 }
 0x33f   :  { %v4569_v45 = vsel %vm16335_vm13, %v4350_v12, %v4351_v62  ;;  %v16340_v62 = vld [vmem:[#allocation31_spill] sm:$0xff]  ;;  %vm16370_vm13 = vmmov %vm16353_vm0 }
 0x340   :  { %v14104_v41 = vpop.f32.mrb[132].mxu1  ;;  %v14117_v0 = vpack.c.bf16 %v4568_v1, %v4569_v45  ;;  %v4355_v1 = vrot.slane %v16340_v62, 1  ;;  %v16350_v62 = vld [vmem:[#allocation41_spill] sm:$0xff] }
 0x341   :  { %v7011_v25 = vpop.f32.mrb[133].mxu1  ;;  %v4358_v24 = vrot.slane %v16350_v62, 1 }
 0x342   :  { %v14107_v28 = vpop.f32.mrb[134].mxu1 }
 0x343   :  { %16333 = vst [vmem:[#allocation136_spill] sm:$0xff] %v14107_v28  ;;  %v7014_v46 = vpop.f32.mrb[135].mxu1  ;;  %6267 = vmatmul.mubr.bf16.gmra.mrb[8].mxu0 %v14101_v5 }
 0x344   :  { %6276 = vmatprep.mubr.bf16.mxu0 %v16322_v55 }
 0x345   :  { %7224 = vmatmul.mubr.bf16.gmra.mrb[240].mxu1 %v13704_v10  ;;  %v4566_v10 = vsel %vm16338_vm14, %v4353_v20, %v4354_v53  ;;  %vm16376_vm14 = vmmov %vm16353_vm0 }
 0x346   :  { %7231 = vmatprep.mubr.bf16.mxu1 %v13708_v31  ;;  %v4567_v31 = vsel %vm16339_vm10, %v4352_v48, %v4353_v20  ;;  %v16347_v48 = vld [vmem:[#allocation14_spill] sm:$0xff]  ;;  %vm16377_vm10 = vmmov %vm16353_vm0 }
 0x347   :  { %v14135_v12 = vpack.c.bf16 %v4566_v10, %v4567_v31  ;;  %v16349_v31 = vld [vmem:[#allocation36_spill] sm:$0xff] }
 0x348   :  { %v14119_v25 = vpop.f32.mrb[136].mxu1 }
 0x349   :  { %v7019_v56 = vpop.f32.mrb[137].mxu1 }
 0x34a   :  { %v14123_v49 = vpop.f32.mrb[138].mxu1 }
 0x34b   :  { %v7022_v46 = vpop.f32.mrb[139].mxu1  ;;  %6277 = vmatmul.mubr.bf16.gmra.mrb[12].mxu0 %v14117_v0 }
 0x34c   :  { %6286 = vmatprep.mubr.bf16.mxu0 %v16322_v55 }
 0x34d   :  { %7232 = vmatmul.mubr.bf16.gmra.mrb[244].mxu1 %v13726_v22  ;;  %v4564_v22 = vsel %vm16344_vm5, %v4355_v1, %v4356_v11  ;;  %vm16389_vm5 = vmmov %vm16353_vm0 }
 0x34e   :  { %9699 = vmatprep.mubr.msk.bf16.mxu1 %vm13738_vm2, %v13731_v19  ;;  %vm16345_vm2 = vmmov %vm16334_vm1 }
 0x34f   :  { %v4565_v19 = vsel %vm16345_vm2, %v4354_v53, %v4355_v1  ;;  %vm16365_vm1 = vmmov %vm16353_vm0 }
 0x350   :  { %v14138_v45 = vpop.f32.mrb[140].mxu1  ;;  %v14151_v20 = vpack.c.bf16 %v4564_v22, %v4565_v19  ;;  %v16354_v19 = vld [vmem:[#allocation43_spill] sm:$0xff]  ;;  %vm16400_vm2 = vmmov %vm16353_vm0 }
 0x351   :  { %16341 = vst [vmem:[#allocation139_spill] sm:$0xff] %v14138_v45  ;;  %v7027_v56 = vpop.f32.mrb[141].mxu1 }
 0x352   :  { %v14141_v46 = vpop.f32.mrb[142].mxu1 }
 0x353   :  { %16343 = vst [vmem:[#allocation34_spill] sm:$0xff] %v14141_v46  ;;  %v7030_v28 = vpop.f32.mrb[143].mxu1  ;;  %6287 = vmatmul.mubr.bf16.gmra.mrb[16].mxu0 %v14135_v12 }
 0x354   :  { %6296 = vmatprep.mubr.bf16.mxu0 %v16322_v55  ;;  %v4357_v28 = vrot.slane %v16349_v31, 1 }
 0x355   :  { %7240 = vmatmul.mubr.bf16.gmra.mrb[248].mxu1 %v16346_v2 }
 0x356   :  { %7247 = vmatprep.mubr.bf16.mxu1 %v16347_v48  ;;  %v4562_v53 = vsel %vm16352_vm8, %v4357_v28, %v4358_v24  ;;  %v4563_v1 = vsel %vm16353_vm0, %v4356_v11, %v4357_v28  ;;  %v16356_v48 = vld [vmem:[#allocation47_spill] sm:$0xff]  ;;  %v16361_v28 = vld [vmem:[#allocation48_spill] sm:$0xff]  ;;  %vm16401_vm8 = vmmov %vm16353_vm0 }
 0x357   :  { %v14169_v22 = vpack.c.bf16 %v4562_v53, %v4563_v1  ;;  %v4360_v31 = vrot.slane %v16356_v48, 1  ;;  %v16362_v53 = vld [vmem:[#allocation53_spill] sm:$0xff] }
 0x358   :  { %v14153_v10 = vpop.f32.mrb[144].mxu1  ;;  %v4362_v1 = vrot.slane %v16362_v53, 1 }
 0x359   :  { %16348 = vst [vmem:[#allocation37_spill] sm:$0xff] %v14153_v10  ;;  %v7035_v56 = vpop.f32.mrb[145].mxu1 }
 0x35a   :  { %v14157_v46 = vpop.f32.mrb[146].mxu1 }
 0x35b   :  { %16351 = vst [vmem:[#allocation40_spill] sm:$0xff] %v14157_v46  ;;  %v7038_v45 = vpop.f32.mrb[147].mxu1  ;;  %6297 = vmatmul.mubr.bf16.gmra.mrb[20].mxu0 %v14151_v20 }
 0x35c   :  { %6306 = vmatprep.mubr.bf16.mxu0 %v16322_v55  ;;  %v4359_v45 = vrot.slane %v16354_v19, 1 }
 0x35d   :  { %7248 = vmatmul.mubr.bf16.gmra.mrb[252].mxu1 %v13770_v61 }
 0x35e   :  { %9702 = vmatprep.mubr.msk.bf16.mxu1 %vm13782_vm7, %v13775_v30  ;;  %v4560_v61 = vsel %vm16358_vm15, %v4359_v45, %v4360_v31  ;;  %vm16359_vm7 = vmmov %vm16353_vm0 }
 0x35f   :  { %v4561_v30 = vsel %vm16359_vm7, %v4358_v24, %v4359_v45  ;;  %v16366_v45 = vld [vmem:[#allocation54_spill] sm:$0xff]  ;;  %vm16423_vm15 = vmmov %vm16353_vm0 }
 0x360   :  { %v14172_v2 = vpop.f32.mrb[148].mxu1  ;;  %v14185_v29 = vpack.c.bf16 %v4560_v61, %v4561_v30  ;;  %v4363_v61 = vrot.slane %v16366_v45, 1  ;;  %vm16424_vm7 = vmmov %vm16353_vm0 }
 0x361   :  { %16355 = vst [vmem:[#allocation30_spill] sm:$0xff] %v14172_v2  ;;  %v7043_v62 = vpop.f32.mrb[149].mxu1 }
 0x362   :  { %v14175_v56 = vpop.f32.mrb[150].mxu1 }
 0x363   :  { %16357 = vst [vmem:[#allocation39_spill] sm:$0xff] %v14175_v56  ;;  %v7046_v46 = vpop.f32.mrb[151].mxu1  ;;  %6307 = vmatmul.mubr.bf16.gmra.mrb[24].mxu0 %v14169_v22 }
 0x364   :  { %6316 = vmatprep.mubr.bf16.mxu0 %v16322_v55  ;;  %v4361_v46 = vrot.slane %v16361_v28, 1  ;;  %v16368_v28 = vld [vmem:[#allocation59_spill] sm:$0xff] }
 0x365   :  { %7256 = vmatmul.mubr.bf16.gmra.mrb[0].mxu1 %v13796_v37  ;;  %v4364_v53 = vrot.slane %v16368_v28, 1 }
 0x366   :  { %7263 = vmatprep.mubr.bf16.mxu1 %v13800_v15  ;;  %v4558_v37 = vsel %vm16364_vm12, %v4361_v46, %v4362_v1  ;;  %v4559_v15 = vsel %vm16365_vm1, %v4360_v31, %v4361_v46  ;;  %v16373_v46 = vld [vmem:[#allocation60_spill] sm:$0xff]  ;;  %vm16436_vm12 = vmmov %vm16353_vm0 }
 0x367   :  { %v14203_v24 = vpack.c.bf16 %v4558_v37, %v4559_v15  ;;  %v16374_v37 = vld [vmem:[#allocation65_spill] sm:$0xff]  ;;  %vm16447_vm1 = vmmov %vm16353_vm0 }
 0x368   :  { %v14187_v11 = vpop.f32.mrb[152].mxu1  ;;  %v4366_v15 = vrot.slane %v16374_v37, 1  ;;  %v16379_v37 = vld [vmem:[#allocation66_spill] sm:$0xff] }
 0x369   :  { %16360 = vst [vmem:[#allocation45_spill] sm:$0xff] %v14187_v11  ;;  %v7051_v19 = vpop.f32.mrb[153].mxu1 }
 0x36a   :  { %v14191_v48 = vpop.f32.mrb[154].mxu1 }
 0x36b   :  { %16363 = vst [vmem:[#allocation46_spill] sm:$0xff] %v14191_v48  ;;  %v7054_v62 = vpop.f32.mrb[155].mxu1  ;;  %6317 = vmatmul.mubr.bf16.gmra.mrb[28].mxu0 %v14185_v29 }
 0x36c   :  { %6326 = vmatprep.mubr.bf16.mxu0 %v16322_v55 }
 0x36d   :  { %7264 = vmatmul.mubr.bf16.gmra.mrb[4].mxu1 %v13814_v51  ;;  %v4556_v51 = vsel %vm16370_vm13, %v4363_v61, %v4364_v53  ;;  %vm16448_vm13 = vmmov %vm16353_vm0 }
 0x36e   :  { %9705 = vmatprep.mubr.msk.bf16.mxu1 %vm13826_vm9, %v13819_v57  ;;  %vm16371_vm9 = vmmov %vm16353_vm0 }
 0x36f   :  { %v4557_v57 = vsel %vm16371_vm9, %v4362_v1, %v4363_v61  ;;  %v16378_v61 = vld [vmem:[#allocation150_spill] sm:$0xff]  ;;  %vm16460_vm9 = vmmov %vm16353_vm0 }
 0x370   :  { %v14206_v30 = vpop.f32.mrb[156].mxu1  ;;  %v14219_v33 = vpack.c.bf16 %v4556_v51, %v4557_v57 }
 0x371   :  { %16367 = vst [vmem:[#allocation49_spill] sm:$0xff] %v14206_v30  ;;  %v7059_v19 = vpop.f32.mrb[157].mxu1 }
 0x372   :  { %v14209_v62 = vpop.f32.mrb[158].mxu1 }
 0x373   :  { %16369 = vst [vmem:[#allocation52_spill] sm:$0xff] %v14209_v62  ;;  %v7062_v56 = vpop.f32.mrb[159].mxu1  ;;  %6327 = vmatmul.mubr.bf16.gmra.mrb[32].mxu0 %v14203_v24  ;;  %v16381_v62 = vld [vmem:[#allocation151_spill] sm:$0xff] }
 0x374   :  { %6336 = vmatprep.mubr.bf16.mxu0 %v16322_v55  ;;  %v4365_v56 = vrot.slane %v16373_v46, 1 }
 0x375   :  { %7272 = vmatmul.mubr.bf16.gmra.mrb[8].mxu1 %v13840_v59 }
 0x376   :  { %7279 = vmatprep.mubr.bf16.mxu1 %v13844_v63  ;;  %v4554_v59 = vsel %vm16376_vm14, %v4365_v56, %v4366_v15  ;;  %v4555_v63 = vsel %vm16377_vm10, %v4364_v53, %v4365_v56  ;;  %v16383_v56 = vld [vmem:[#allocation71_spill] sm:$0xff]  ;;  %vm16471_vm14 = vmmov %vm16353_vm0 }
 0x377   :  { %v14238_v46 = vpack.c.bf16 %v4554_v59, %v4555_v63  ;;  %vm16472_vm10 = vmmov %vm16353_vm0 }
 0x378   :  { %v14221_v31 = vpop.f32.mrb[160].mxu1 }
 0x379   :  { %16372 = vst [vmem:[#allocation44_spill] sm:$0xff] %v14221_v31  ;;  %v7067_v45 = vpop.f32.mrb[161].mxu1  ;;  %v16384_v31 = vld [vmem:[#allocation152_spill] sm:$0xff] }
 0x37a   :  { %v14225_v28 = vpop.f32.mrb[162].mxu1  ;;  %v4367_v45 = vrot.slane %v16379_v37, 1 }
 0x37b   :  { %16375 = vst [vmem:[#allocation51_spill] sm:$0xff] %v14225_v28  ;;  %v7070_v19 = vpop.f32.mrb[163].mxu1  ;;  %6337 = vmatmul.mubr.bf16.gmra.mrb[36].mxu0 %v14219_v33 }
 0x37c   :  { %6346 = vmatprep.mubr.bf16.mxu0 %v16322_v55  ;;  %v4553_v63 = vsel %vm16389_vm5, %v4366_v15, %v4367_v45  ;;  %vm16484_vm5 = vmmov %vm16353_vm0 }
 0x37d   :  { %7280 = vmatmul.mubr.bf16.gmra.mrb[12].mxu1 %v13858_v39  ;;  %v4368_v39 = vrot.slane %v16383_v56, 1 }
 0x37e   :  { %v6045_v1 = vpop.f32.mrb[172].mxu0  ;;  %9708 = vmatprep.mubr.msk.bf16.mxu1 %vm13872_vm3, %v13865_v54  ;;  %vm16388_vm3 = vmmov %vm16353_vm0 }
 0x37f   :  { %v6679_v51 = vadd.f32 %v16378_v61, %v6045_v1  ;;  %v6047_v57 = vpop.f32.mrb[173].mxu0  ;;  %v16386_v1 = vld [vmem:[#allocation153_spill] sm:$0xff] }
 0x380   :  { %v14241_v19 = vpop.f32.mrb[164].mxu1  ;;  %v14244_v28 = vadd.f32 %v16381_v62, %v6047_v57  ;;  %v6049_v53 = vpop.f32.mrb[174].mxu0  ;;  %v4552_v62 = vsel %vm16388_vm3, %v4367_v45, %v4368_v39  ;;  %vm16483_vm3 = vmmov %vm16353_vm0 }
 0x381   :  { %16380 = vst [vmem:[#allocation57_spill] sm:$0xff] %v14241_v19  ;;  %v7075_v30 = vpop.f32.mrb[165].mxu1  ;;  %v6683_v48 = vadd.f32 %v16384_v31, %v6049_v53  ;;  %v6051_v42 = vpop.f32.mrb[175].mxu0  ;;  %v16390_v31 = vld [vmem:[#allocation156_spill] sm:$0xff]  ;;  %v14262_v53 = vpack.c.bf16 %v4552_v62, %v4553_v63 }
 0x382   :  { %16382 = vst [vmem:[#allocation58_spill] sm:$0xff] %v14244_v28  ;;  %v14248_v54 = vpop.f32.mrb[166].mxu1  ;;  %v14251_v61 = vadd.f32 %v16386_v1, %v6051_v42  ;;  %v16392_v42 = vld [vmem:[#allocation157_spill] sm:$0xff] }
 0x383   :  { %16385 = vst [vmem:[#allocation61_spill] sm:$0xff] %v14248_v54  ;;  %v7078_v59 = vpop.f32.mrb[167].mxu1  ;;  %6347 = vmatmul.mubr.bf16.gmra.mrb[40].mxu0 %v14238_v46  ;;  %v16395_v54 = vld [vmem:[#allocation77_spill] sm:$0xff] }
 0x384   :  { %16387 = vst [vmem:[#allocation63_spill] sm:$0xff] %v14251_v61  ;;  %6356 = vmatprep.mubr.bf16.mxu0 %v16322_v55  ;;  %v16394_v61 = vld [vmem:[#allocation73_spill] sm:$0xff]  ;;  %v4370_v15 = vrot.slane %v16395_v54, 1 }
 0x385   :  { %7288 = vmatmul.mubr.bf16.gmra.mrb[16].mxu1 %v13888_v13  ;;  %v4369_v28 = vrot.slane %v16394_v61, 1  ;;  %v16396_v13 = vld [vmem:[#allocation158_spill] sm:$0xff] }
 0x386   :  { %v6055_v30 = vpop.f32.mrb[176].mxu0  ;;  %7295 = vmatprep.mubr.bf16.mxu1 %v13894_v18 }
 0x387   :  { %v6689_v57 = vadd.f32 %v16390_v31, %v6055_v30  ;;  %v6057_v37 = vpop.f32.mrb[177].mxu0  ;;  %v16398_v30 = vld [vmem:[#allocation159_spill] sm:$0xff]  ;;  %v4550_v63 = vsel %vm16400_vm2, %v4369_v28, %v4370_v15  ;;  %v4551_v54 = vsel %vm16401_vm8, %v4368_v39, %v4369_v28  ;;  %vm16495_vm2 = vmmov %vm16353_vm0 }
 0x388   :  { %v14264_v56 = vpop.f32.mrb[168].mxu1  ;;  %v14267_v1 = vadd.f32 %v16392_v42, %v6057_v37  ;;  %v6059_v59 = vpop.f32.mrb[178].mxu0  ;;  %v16406_v28 = vld [vmem:[#allocation83_spill] sm:$0xff]  ;;  %vm16496_vm8 = vmmov %vm16353_vm0 }
 0x389   :  { %16391 = vst [vmem:[#allocation55_spill] sm:$0xff] %v14264_v56  ;;  %v7083_v45 = vpop.f32.mrb[169].mxu1  ;;  %v6693_v19 = vadd.f32 %v16396_v13, %v6059_v59  ;;  %v6061_v2 = vpop.f32.mrb[179].mxu0  ;;  %v14288_v59 = vpack.c.bf16 %v4550_v63, %v4551_v54  ;;  %v4372_v39 = vrot.slane %v16406_v28, 1 }
 0x38a   :  { %16393 = vst [vmem:[#allocation62_spill] sm:$0xff] %v14267_v1  ;;  %v14272_v18 = vpop.f32.mrb[170].mxu1  ;;  %v14275_v31 = vadd.f32 %v16398_v30, %v6061_v2  ;;  %v16402_v2 = vld [vmem:[#allocation162_spill] sm:$0xff] }
 0x38b   :  { %16397 = vst [vmem:[#allocation67_spill] sm:$0xff] %v14272_v18  ;;  %v7086_v62 = vpop.f32.mrb[171].mxu1  ;;  %6357 = vmatmul.mubr.bf16.gmra.mrb[44].mxu0 %v14262_v53  ;;  %v16403_v45 = vld [vmem:[#allocation78_spill] sm:$0xff]  ;;  %v16407_v18 = vld [vmem:[#allocation164_spill] sm:$0xff] }
 0x38c   :  { %16399 = vst [vmem:[#allocation68_spill] sm:$0xff] %v14275_v31  ;;  %6366 = vmatprep.mubr.bf16.mxu0 %v16322_v55  ;;  %v4371_v13 = vrot.slane %v16403_v45, 1  ;;  %v16405_v62 = vld [vmem:[#allocation163_spill] sm:$0xff] }
 0x38d   :  { %7296 = vmatmul.mubr.bf16.gmra.mrb[20].mxu1 %v13910_v60 }
 0x38e   :  { %v6065_v61 = vpop.f32.mrb[180].mxu0  ;;  %9711 = vmatprep.mubr.msk.bf16.mxu1 %vm13924_vm11, %v13917_v23  ;;  %vm16412_vm11 = vmmov %vm16353_vm0 }
 0x38f   :  { %v6699_v37 = vadd.f32 %v16402_v2, %v6065_v61  ;;  %v6067_v42 = vpop.f32.mrb[181].mxu0  ;;  %v16410_v61 = vld [vmem:[#allocation165_spill] sm:$0xff] }
 0x390   :  { %v14291_v30 = vpop.f32.mrb[172].mxu1  ;;  %v6701_v31 = vadd.f32 %v16405_v62, %v6067_v42  ;;  %v6069_v1 = vpop.f32.mrb[182].mxu0  ;;  %v4548_v42 = vsel %vm16412_vm11, %v4371_v13, %v4372_v39  ;;  %v16415_v62 = vld [vmem:[#allocation169_spill] sm:$0xff]  ;;  %vm16507_vm11 = vmmov %vm16353_vm0 }
 0x391   :  { %16404 = vst [vmem:[#allocation69_spill] sm:$0xff] %v14291_v30  ;;  %v7091_v60 = vpop.f32.mrb[173].mxu1  ;;  %v6703_v56 = vadd.f32 %v16407_v18, %v6069_v1  ;;  %v6071_v11 = vpop.f32.mrb[183].mxu0  ;;  %v4549_v1 = vsel %vm16353_vm0, %v4370_v15, %v4371_v13  ;;  %v16413_v18 = vld [vmem:[#allocation168_spill] sm:$0xff]  ;;  %v16418_v13 = vld [vmem:[#allocation170_spill] sm:$0xff] }
 0x392   :  { %v14296_v21 = vadd.f32 %v6701_v31, %v6679_v51  ;;  %v14298_v23 = vpop.f32.mrb[174].mxu1  ;;  %v6705_v63 = vadd.f32 %v16410_v61, %v6071_v11  ;;  %v14312_v45 = vpack.c.bf16 %v4548_v42, %v4549_v1  ;;  %v16416_v61 = vld [vmem:[#allocation84_spill] sm:$0xff] }
 0x393   :  { %16409 = vst [vmem:[#allocation72_spill] sm:$0xff] %v14298_v23  ;;  %v7094_v54 = vpop.f32.mrb[175].mxu1  ;;  %6367 = vmatmul.mubr.bf16.gmra.mrb[48].mxu0 %v14288_v59 }
 0x394   :  { %16408 = vst [vmem:[#allocation75_spill] sm:$0xff] %v14296_v21  ;;  %v14302_v2 = vadd.f32 %v6705_v63, %v6683_v48  ;;  %6376 = vmatprep.mubr.bf16.mxu0 %v16322_v55  ;;  %v4373_v63 = vrot.slane %v16416_v61, 1  ;;  %v16417_v54 = vld [vmem:[#allocation90_spill] sm:$0xff]  ;;  %v16426_v61 = vld [vmem:[#allocation91_spill] sm:$0xff] }
 0x395   :  { %7304 = vmatmul.mubr.bf16.gmra.mrb[24].mxu1 %v13940_v52 }
 0x396   :  { %16411 = vst [vmem:[#allocation74_spill] sm:$0xff] %v14302_v2  ;;  %v6075_v51 = vpop.f32.mrb[184].mxu0  ;;  %7311 = vmatprep.mubr.bf16.mxu1 %v13946_v40  ;;  %v4374_v2 = vrot.slane %v16417_v54, 1  ;;  %v4375_v54 = vrot.slane %v16426_v61, 1 }
 0x397   :  { %v6709_v11 = vadd.f32 %v16413_v18, %v6075_v51  ;;  %v6077_v31 = vpop.f32.mrb[185].mxu0  ;;  %v16421_v51 = vld [vmem:[#allocation171_spill] sm:$0xff] }
 0x398   :  { %v14314_v48 = vpop.f32.mrb[176].mxu1  ;;  %v6711_v28 = vadd.f32 %v16415_v62, %v6077_v31  ;;  %v6079_v60 = vpop.f32.mrb[186].mxu0  ;;  %v4546_v31 = vsel %vm16423_vm15, %v4373_v63, %v4374_v2  ;;  %v4547_v62 = vsel %vm16424_vm7, %v4372_v39, %v4373_v63  ;;  %v16429_v39 = vld [vmem:[#allocation95_spill] sm:$0xff]  ;;  %v4545_v61 = vsel %vm16436_vm12, %v4374_v2, %v4375_v54  ;;  %vm16518_vm15 = vmmov %vm16353_vm0 }
 0x399   :  { %16414 = vst [vmem:[#allocation79_spill] sm:$0xff] %v14314_v48  ;;  %v7099_v15 = vpop.f32.mrb[177].mxu1  ;;  %v6713_v52 = vadd.f32 %v16418_v13, %v6079_v60  ;;  %v6081_v21 = vpop.f32.mrb[187].mxu0  ;;  %v16428_v13 = vld [vmem:[#allocation174_spill] sm:$0xff]  ;;  %v4376_v63 = vrot.slane %v16429_v39, 1  ;;  %v16439_v39 = vld [vmem:[#allocation180_spill] sm:$0xff]  ;;  %vm16519_vm7 = vmmov %vm16353_vm0 }
 0x39a   :  { %v14320_v23 = vadd.f32 %v6711_v28, %v6689_v57  ;;  %v14322_v40 = vpop.f32.mrb[178].mxu1  ;;  %v6715_v42 = vadd.f32 %v16421_v51, %v6081_v21  ;;  %v16425_v21 = vld [vmem:[#allocation88_spill] sm:$0xff]  ;;  %vm16536_vm12 = vmmov %vm16353_vm0 }
 0x39b   :  { %16420 = vst [vmem:[#allocation81_spill] sm:$0xff] %v14322_v40  ;;  %v7102_v1 = vpop.f32.mrb[179].mxu1  ;;  %6377 = vmatmul.mubr.bf16.gmra.mrb[52].mxu0 %v14312_v45 }
 0x39c   :  { %16419 = vst [vmem:[#allocation80_spill] sm:$0xff] %v14320_v23  ;;  %v14326_v18 = vadd.f32 %v6715_v42, %v6693_v19  ;;  %6386 = vmatprep.mubr.bf16.mxu0 %v16322_v55  ;;  %v14338_v19 = vpack.c.bf16 %v4546_v31, %v4547_v62  ;;  %v16430_v1 = vld [vmem:[#allocation175_spill] sm:$0xff] }
 0x39d   :  { %7312 = vmatmul.mubr.bf16.gmra.mrb[28].mxu1 %v13962_v32 }
 0x39e   :  { %16422 = vst [vmem:[#allocation87_spill] sm:$0xff] %v14326_v18  ;;  %v6085_v57 = vpop.f32.mrb[188].mxu0  ;;  %9714 = vmatprep.mubr.msk.bf16.mxu1 %vm13976_vm4, %v13969_v36  ;;  %vm16435_vm4 = vmmov %vm16353_vm0 }
 0x39f   :  { %v6719_v28 = vadd.f32 %v16425_v21, %v6085_v57  ;;  %v6087_v60 = vpop.f32.mrb[189].mxu0  ;;  %v16433_v57 = vld [vmem:[#allocation176_spill] sm:$0xff] }
 0x3a0   :  { %v14341_v15 = vpop.f32.mrb[180].mxu1  ;;  %v6721_v51 = vadd.f32 %v16428_v13, %v6087_v60  ;;  %v6089_v42 = vpop.f32.mrb[190].mxu0  ;;  %v4544_v60 = vsel %vm16435_vm4, %v4375_v54, %v4376_v63  ;;  %v16437_v13 = vld [vmem:[#allocation179_spill] sm:$0xff]  ;;  %v16442_v54 = vld [vmem:[#allocation181_spill] sm:$0xff]  ;;  %vm16533_vm4 = vmmov %vm16353_vm0 }
 0x3a1   :  { %16427 = vst [vmem:[#allocation85_spill] sm:$0xff] %v14341_v15  ;;  %v7107_v32 = vpop.f32.mrb[181].mxu1  ;;  %v6723_v18 = vadd.f32 %v16430_v1, %v6089_v42  ;;  %v6091_v23 = vpop.f32.mrb[191].mxu0  ;;  %v14362_v42 = vpack.c.bf16 %v4544_v60, %v4545_v61 }
 0x3a2   :  { %v14346_v26 = vadd.f32 %v6721_v51, %v6699_v37  ;;  %v14348_v36 = vpop.f32.mrb[182].mxu1  ;;  %v6725_v31 = vadd.f32 %v16433_v57, %v6091_v23  ;;  %v16440_v57 = vld [vmem:[#allocation96_spill] sm:$0xff] }
 0x3a3   :  { %16432 = vst [vmem:[#allocation92_spill] sm:$0xff] %v14348_v36  ;;  %v7110_v62 = vpop.f32.mrb[183].mxu1  ;;  %6387 = vmatmul.mubr.bf16.gmra.mrb[56].mxu0 %v14338_v19 }
 0x3a4   :  { %16431 = vst [vmem:[#allocation86_spill] sm:$0xff] %v14346_v26  ;;  %v14352_v21 = vadd.f32 %v6725_v31, %v6703_v56  ;;  %6396 = vmatprep.mubr.bf16.mxu0 %v16322_v55  ;;  %v4377_v31 = vrot.slane %v16440_v57, 1  ;;  %v16441_v62 = vld [vmem:[#allocation99_spill] sm:$0xff]  ;;  %v16450_v57 = vld [vmem:[#allocation100_spill] sm:$0xff] }
 0x3a5   :  { %7320 = vmatmul.mubr.bf16.gmra.mrb[32].mxu1 %v13992_v8 }
 0x3a6   :  { %16434 = vst [vmem:[#allocation93_spill] sm:$0xff] %v14352_v21  ;;  %v6095_v37 = vpop.f32.mrb[192].mxu0  ;;  %7327 = vmatprep.mubr.bf16.mxu1 %v13998_v16  ;;  %v4378_v21 = vrot.slane %v16441_v62, 1  ;;  %v4379_v62 = vrot.slane %v16450_v57, 1 }
 0x3a7   :  { %v6729_v23 = vadd.f32 %v16437_v13, %v6095_v37  ;;  %v6097_v51 = vpop.f32.mrb[193].mxu0  ;;  %v16445_v37 = vld [vmem:[#allocation182_spill] sm:$0xff] }
 0x3a8   :  { %v14364_v56 = vpop.f32.mrb[184].mxu1  ;;  %v6731_v32 = vadd.f32 %v16439_v39, %v6097_v51  ;;  %v6099_v1 = vpop.f32.mrb[194].mxu0  ;;  %v4542_v51 = vsel %vm16447_vm1, %v4377_v31, %v4378_v21  ;;  %v4543_v39 = vsel %vm16448_vm13, %v4376_v63, %v4377_v31  ;;  %v16453_v63 = vld [vmem:[#allocation102_spill] sm:$0xff]  ;;  %v4541_v57 = vsel %vm16460_vm9, %v4378_v21, %v4379_v62  ;;  %vm16537_vm1 = vmmov %vm16353_vm0 }
 0x3a9   :  { %16438 = vst [vmem:[#allocation9_spill] sm:$0xff] %v14364_v56  ;;  %v7115_v2 = vpop.f32.mrb[185].mxu1  ;;  %v6733_v8 = vadd.f32 %v16442_v54, %v6099_v1  ;;  %v6101_v26 = vpop.f32.mrb[195].mxu0  ;;  %v16452_v54 = vld [vmem:[#allocation185_spill] sm:$0xff]  ;;  %v4380_v31 = vrot.slane %v16453_v63, 1  ;;  %v16463_v63 = vld [vmem:[#allocation191_spill] sm:$0xff]  ;;  %vm16548_vm13 = vmmov %vm16353_vm0 }
 0x3aa   :  { %v14370_v36 = vadd.f32 %v6731_v32, %v6709_v11  ;;  %v14372_v16 = vpop.f32.mrb[186].mxu1  ;;  %v6735_v60 = vadd.f32 %v16445_v37, %v6101_v26  ;;  %v16449_v26 = vld [vmem:[#allocation97_spill] sm:$0xff]  ;;  %vm16552_vm9 = vmmov %vm16353_vm0 }
 0x3ab   :  { %16444 = vst [vmem:[#allocation16_spill] sm:$0xff] %v14372_v16  ;;  %v7118_v61 = vpop.f32.mrb[187].mxu1  ;;  %6397 = vmatmul.mubr.bf16.gmra.mrb[60].mxu0 %v14362_v42 }
 0x3ac   :  { %16443 = vst [vmem:[#allocation7_spill] sm:$0xff] %v14370_v36  ;;  %v14376_v13 = vadd.f32 %v6735_v60, %v6713_v52  ;;  %6406 = vmatprep.mubr.bf16.mxu0 %v16322_v55  ;;  %v14388_v52 = vpack.c.bf16 %v4542_v51, %v4543_v39  ;;  %v16454_v61 = vld [vmem:[#allocation186_spill] sm:$0xff] }
 0x3ad   :  { %7328 = vmatmul.mubr.bf16.gmra.mrb[36].mxu1 %v14014_v7 }
 0x3ae   :  { %16446 = vst [vmem:[#allocation12_spill] sm:$0xff] %v14376_v13  ;;  %v6105_v11 = vpop.f32.mrb[196].mxu0  ;;  %9717 = vmatprep.mubr.msk.bf16.mxu1 %vm14027_vm6, %v14021_v50  ;;  %vm16459_vm6 = vmmov %vm16353_vm0 }
 0x3af   :  { %v6739_v32 = vadd.f32 %v16449_v26, %v6105_v11  ;;  %v6107_v1 = vpop.f32.mrb[197].mxu0  ;;  %v16457_v11 = vld [vmem:[#allocation187_spill] sm:$0xff] }
 0x3b0   :  { %v14391_v2 = vpop.f32.mrb[188].mxu1  ;;  %v6741_v37 = vadd.f32 %v16452_v54, %v6107_v1  ;;  %v6109_v60 = vpop.f32.mrb[198].mxu0  ;;  %v4540_v1 = vsel %vm16459_vm6, %v4379_v62, %v4380_v31  ;;  %v16461_v54 = vld [vmem:[#allocation190_spill] sm:$0xff]  ;;  %v16466_v62 = vld [vmem:[#allocation192_spill] sm:$0xff]  ;;  %vm16551_vm6 = vmmov %vm16353_vm0 }
 0x3b1   :  { %16451 = vst [vmem:[#allocation15_spill] sm:$0xff] %v14391_v2  ;;  %v7123_v7 = vpop.f32.mrb[189].mxu1  ;;  %v6743_v13 = vadd.f32 %v16454_v61, %v6109_v60  ;;  %v6111_v36 = vpop.f32.mrb[199].mxu0  ;;  %v14412_v60 = vpack.c.bf16 %v4540_v1, %v4541_v57 }
 0x3b2   :  { %v14396_v58 = vadd.f32 %v6741_v37, %v6719_v28  ;;  %v14398_v50 = vpop.f32.mrb[190].mxu1  ;;  %v6745_v51 = vadd.f32 %v16457_v11, %v6111_v36  ;;  %v16464_v11 = vld [vmem:[#allocation103_spill] sm:$0xff] }
 0x3b3   :  { %16456 = vst [vmem:[#allocation18_spill] sm:$0xff] %v14398_v50  ;;  %v7126_v39 = vpop.f32.mrb[191].mxu1  ;;  %6407 = vmatmul.mubr.bf16.gmra.mrb[64].mxu0 %v14388_v52 }
 0x3b4   :  { %16455 = vst [vmem:[#allocation11_spill] sm:$0xff] %v14396_v58  ;;  %v14402_v26 = vadd.f32 %v6745_v51, %v6723_v18  ;;  %6416 = vmatprep.mubr.bf16.mxu0 %v16322_v55  ;;  %v4381_v51 = vrot.slane %v16464_v11, 1  ;;  %v16465_v39 = vld [vmem:[#allocation105_spill] sm:$0xff] }
 0x3b5   :  { %7336 = vmatmul.mubr.bf16.gmra.mrb[40].mxu1 %v14045_v6 }
 0x3b6   :  { %16458 = vst [vmem:[#allocation24_spill] sm:$0xff] %v14402_v26  ;;  %v6115_v28 = vpop.f32.mrb[200].mxu0  ;;  %7343 = vmatprep.mubr.bf16.mxu1 %v16322_v55  ;;  %v4382_v26 = vrot.slane %v16465_v39, 1 }
 0x3b7   :  { %v6749_v36 = vadd.f32 %v16461_v54, %v6115_v28  ;;  %v6117_v37 = vpop.f32.mrb[201].mxu0  ;;  %v16469_v28 = vld [vmem:[#allocation193_spill] sm:$0xff] }
 0x3b8   :  { %v14414_v18 = vpop.f32.mrb[192].mxu1  ;;  %v6751_v7 = vadd.f32 %v16463_v63, %v6117_v37  ;;  %v6119_v61 = vpop.f32.mrb[202].mxu0  ;;  %v4538_v37 = vsel %vm16471_vm14, %v4381_v51, %v4382_v26  ;;  %v4539_v63 = vsel %vm16472_vm10, %v4380_v31, %v4381_v51  ;;  %v16478_v51 = vld [vmem:[#allocation197_spill] sm:$0xff]  ;;  %vm16561_vm14 = vmmov %vm16353_vm0 }
 0x3b9   :  { %16462 = vst [vmem:[#allocation25_spill] sm:$0xff] %v14414_v18  ;;  %v7131_v21 = vpop.f32.mrb[193].mxu1  ;;  %v6753_v6 = vadd.f32 %v16466_v62, %v6119_v61  ;;  %v6121_v58 = vpop.f32.mrb[203].mxu0  ;;  %v14436_v11 = vpack.c.bf16 %v4538_v37, %v4539_v63  ;;  %v16476_v62 = vld [vmem:[#allocation196_spill] sm:$0xff]  ;;  %vm16562_vm10 = vmmov %vm16353_vm0 }
 0x3ba   :  { %v14420_v50 = vadd.f32 %v6751_v7, %v6729_v23  ;;  %v14422_v2 = vpop.f32.mrb[194].mxu1  ;;  %v6755_v1 = vadd.f32 %v16469_v28, %v6121_v58  ;;  %v16473_v7 = vld [vmem:[#allocation104_spill] sm:$0xff] }
 0x3bb   :  { %16468 = vst [vmem:[#allocation31_spill] sm:$0xff] %v14422_v2  ;;  %v7134_v57 = vpop.f32.mrb[195].mxu1  ;;  %6417 = vmatmul.mubr.bf16.gmra.mrb[68].mxu0 %v14412_v60 }
 0x3bc   :  { %16467 = vst [vmem:[#allocation29_spill] sm:$0xff] %v14420_v50  ;;  %v14426_v54 = vadd.f32 %v6755_v1, %v6733_v8  ;;  %6426 = vmatprep.mubr.bf16.mxu0 %v16322_v55  ;;  %v16474_v8 = vld [vmem:[#allocation106_spill] sm:$0xff] }
 0x3bd   :  { %7344 = vmatmul.mubr.bf16.gmra.mrb[44].mxu1 %v16322_v55  ;;  %v4383_v39 = vrot.slane %v16474_v8, 1  ;;  %v16477_v57 = vld [vmem:[#allocation110_spill] sm:$0xff] }
 0x3be   :  { %16470 = vst [vmem:[#allocation35_spill] sm:$0xff] %v14426_v54  ;;  %v6125_v23 = vpop.f32.mrb[204].mxu0  ;;  %7351 = vmatprep.mubr.bf16.mxu1 %v16322_v55  ;;  %v4384_v54 = vrot.slane %v16477_v57, 1  ;;  %v16487_v57 = vld [vmem:[#allocation108_spill] sm:$0xff] }
 0x3bf   :  { %v6759_v58 = vadd.f32 %v16473_v7, %v6125_v23  ;;  %v6127_v61 = vpop.f32.mrb[205].mxu0  ;;  %v16481_v23 = vld [vmem:[#allocation198_spill] sm:$0xff]  ;;  %v4537_v8 = vsel %vm16484_vm5, %v4382_v26, %v4383_v39  ;;  %vm16568_vm5 = vmmov %vm16353_vm0 }
 0x3c0   :  { %v14439_v21 = vpop.f32.mrb[196].mxu1  ;;  %v6761_v28 = vadd.f32 %v16476_v62, %v6127_v61  ;;  %v6129_v1 = vpop.f32.mrb[206].mxu0  ;;  %v4536_v61 = vsel %vm16483_vm3, %v4383_v39, %v4384_v54  ;;  %v16485_v62 = vld [vmem:[#allocation107_spill] sm:$0xff]  ;;  %v16490_v39 = vld [vmem:[#allocation109_spill] sm:$0xff]  ;;  %vm16567_vm3 = vmmov %vm16353_vm0 }
 0x3c1   :  { %16475 = vst [vmem:[#allocation123_spill] sm:$0xff] %v14439_v21  ;;  %v7139_v31 = vpop.f32.mrb[197].mxu1  ;;  %v6763_v50 = vadd.f32 %v16478_v51, %v6129_v1  ;;  %v6131_v2 = vpop.f32.mrb[207].mxu0  ;;  %v14460_v1 = vpack.c.bf16 %v4536_v61, %v4537_v8 }
 0x3c2   :  { %v14444_v18 = vadd.f32 %v6761_v28, %v6739_v32  ;;  %v14446_v16 = vpop.f32.mrb[198].mxu1  ;;  %v6765_v37 = vadd.f32 %v16481_v23, %v6131_v2  ;;  %v16488_v23 = vld [vmem:[#allocation111_spill] sm:$0xff] }
 0x3c3   :  { %16480 = vst [vmem:[#allocation36_spill] sm:$0xff] %v14446_v16  ;;  %v7142_v63 = vpop.f32.mrb[199].mxu1  ;;  %6427 = vmatmul.mubr.bf16.gmra.mrb[72].mxu0 %v14436_v11 }
 0x3c4   :  { %16479 = vst [vmem:[#allocation14_spill] sm:$0xff] %v14444_v18  ;;  %v14450_v7 = vadd.f32 %v6765_v37, %v6743_v13  ;;  %6436 = vmatprep.mubr.bf16.mxu0 %v16322_v55  ;;  %v4385_v37 = vrot.slane %v16488_v23, 1  ;;  %v16489_v63 = vld [vmem:[#allocation114_spill] sm:$0xff] }
 0x3c5   :  { %7352 = vmatmul.mubr.bf16.gmra.mrb[48].mxu1 %v16322_v55 }
 0x3c6   :  { %16482 = vst [vmem:[#allocation41_spill] sm:$0xff] %v14450_v7  ;;  %v6135_v32 = vpop.f32.mrb[208].mxu0  ;;  %9802 = vmatprep.mubr.bf16.mxu1 %v16322_v55  ;;  %v4386_v7 = vrot.slane %v16489_v63, 1 }
 0x3c7   :  { %v6769_v2 = vadd.f32 %v16485_v62, %v6135_v32  ;;  %v6137_v28 = vpop.f32.mrb[209].mxu0  ;;  %v16493_v32 = vld [vmem:[#allocation200_spill] sm:$0xff] }
 0x3c8   :  { %v14462_v13 = vpop.f32.mrb[200].mxu1  ;;  %v6771_v31 = vadd.f32 %v16487_v57, %v6137_v28  ;;  %v6139_v51 = vpop.f32.mrb[210].mxu0  ;;  %v4534_v28 = vsel %vm16495_vm2, %v4385_v37, %v4386_v7  ;;  %v4535_v57 = vsel %vm16496_vm8, %v4384_v54, %v4385_v37  ;;  %v16502_v37 = vld [vmem:[#allocation202_spill] sm:$0xff]  ;;  %vm16573_vm2 = vmmov %vm16353_vm0 }
 0x3c9   :  { %16486 = vst [vmem:[#allocation43_spill] sm:$0xff] %v14462_v13  ;;  %v7147_v26 = vpop.f32.mrb[201].mxu1  ;;  %v6773_v18 = vadd.f32 %v16490_v39, %v6139_v51  ;;  %v6141_v16 = vpop.f32.mrb[211].mxu0  ;;  %v14484_v23 = vpack.c.bf16 %v4534_v28, %v4535_v57  ;;  %v16500_v39 = vld [vmem:[#allocation113_spill] sm:$0xff]  ;;  %vm16574_vm8 = vmmov %vm16353_vm0 }
 0x3ca   :  { %v14468_v21 = vadd.f32 %v6771_v31, %v6749_v36  ;;  %v14470_v15 = vpop.f32.mrb[202].mxu1  ;;  %v6775_v61 = vadd.f32 %v16493_v32, %v6141_v16  ;;  %v16497_v31 = vld [vmem:[#allocation112_spill] sm:$0xff] }
 0x3cb   :  { %16492 = vst [vmem:[#allocation48_spill] sm:$0xff] %v14470_v15  ;;  %v7150_v8 = vpop.f32.mrb[203].mxu1  ;;  %6437 = vmatmul.mubr.bf16.gmra.mrb[76].mxu0 %v14460_v1 }
 0x3cc   :  { %16491 = vst [vmem:[#allocation47_spill] sm:$0xff] %v14468_v21  ;;  %v14474_v62 = vadd.f32 %v6775_v61, %v6753_v6  ;;  %6446 = vmatprep.mubr.bf16.mxu0 %v16322_v55  ;;  %v16498_v6 = vld [vmem:[#allocation115_spill] sm:$0xff]  ;;  %v16501_v8 = vld [vmem:[#allocation116_spill] sm:$0xff] }
 0x3cd   :  { %9803 = vmatmul.mubr.bf16.vlgmr.msra.gmra.mrb[52].mxu1 %v16322_v55  ;;  %v4387_v63 = vrot.slane %v16498_v6, 1 }
 0x3ce   :  { %16494 = vst [vmem:[#allocation53_spill] sm:$0xff] %v14474_v62  ;;  %v6145_v36 = vpop.f32.mrb[212].mxu0  ;;  %9806 = vmatprep.mubr.bf16.mxu1 %v14101_v5  ;;  %v4388_v62 = vrot.slane %v16501_v8, 1  ;;  %v16510_v8 = vld [vmem:[#allocation206_spill] sm:$0xff] }
 0x3cf   :  { %v6779_v16 = vadd.f32 %v16497_v31, %v6145_v36  ;;  %v6147_v51 = vpop.f32.mrb[213].mxu0  ;;  %v16505_v36 = vld [vmem:[#allocation203_spill] sm:$0xff]  ;;  %v4533_v6 = vsel %vm16353_vm0, %v4386_v7, %v4387_v63 }
 0x3d0   :  { %v14487_v26 = vpop.f32.mrb[204].mxu1  ;;  %v6781_v32 = vadd.f32 %v16500_v39, %v6147_v51  ;;  %v6149_v61 = vpop.f32.mrb[214].mxu0  ;;  %v4532_v51 = vsel %vm16507_vm11, %v4387_v63, %v4388_v62  ;;  %v16508_v39 = vld [vmem:[#allocation205_spill] sm:$0xff]  ;;  %v16513_v63 = vld [vmem:[#allocation207_spill] sm:$0xff]  ;;  %vm16579_vm11 = vmmov %vm16353_vm0 }
 0x3d1   :  { %16499 = vst [vmem:[#allocation54_spill] sm:$0xff] %v14487_v26  ;;  %v7155_v54 = vpop.f32.mrb[205].mxu1  ;;  %v6783_v21 = vadd.f32 %v16502_v37, %v6149_v61  ;;  %v6151_v15 = vpop.f32.mrb[215].mxu0  ;;  %v14508_v61 = vpack.c.bf16 %v4532_v51, %v4533_v6 }
 0x3d2   :  { %v14492_v13 = vadd.f32 %v6781_v32, %v6759_v58  ;;  %v14494_v5 = vpop.f32.mrb[206].mxu1  ;;  %v6785_v28 = vadd.f32 %v16505_v36, %v6151_v15  ;;  %v16511_v36 = vld [vmem:[#allocation117_spill] sm:$0xff] }
 0x3d3   :  { %16504 = vst [vmem:[#allocation60_spill] sm:$0xff] %v14494_v5  ;;  %v7158_v57 = vpop.f32.mrb[207].mxu1  ;;  %6447 = vmatmul.mubr.bf16.gmra.mrb[80].mxu0 %v14484_v23 }
 0x3d4   :  { %16503 = vst [vmem:[#allocation59_spill] sm:$0xff] %v14492_v13  ;;  %v14498_v31 = vadd.f32 %v6785_v28, %v6763_v50  ;;  %6456 = vmatprep.mubr.bf16.mxu0 %v16322_v55  ;;  %v4389_v28 = vrot.slane %v16511_v36, 1  ;;  %v16512_v57 = vld [vmem:[#allocation118_spill] sm:$0xff] }
 0x3d5   :  { %9807 = vmatmul.mubr.bf16.gmra.mrb[56].mxu1 %v14117_v0 }
 0x3d6   :  { %16506 = vst [vmem:[#allocation65_spill] sm:$0xff] %v14498_v31  ;;  %v6155_v58 = vpop.f32.mrb[216].mxu0  ;;  %9810 = vmatprep.mubr.bf16.mxu1 %v14135_v12  ;;  %v4390_v31 = vrot.slane %v16512_v57, 1 }
 0x3d7   :  { %v6789_v15 = vadd.f32 %v16508_v39, %v6155_v58  ;;  %v6157_v32 = vpop.f32.mrb[217].mxu0  ;;  %v16516_v58 = vld [vmem:[#allocation208_spill] sm:$0xff] }
 0x3d8   :  { %v14510_v50 = vpop.f32.mrb[208].mxu1  ;;  %v6791_v54 = vadd.f32 %v16510_v8, %v6157_v32  ;;  %v6159_v37 = vpop.f32.mrb[218].mxu0  ;;  %v4530_v32 = vsel %vm16518_vm15, %v4389_v28, %v4390_v31  ;;  %v4531_v8 = vsel %vm16519_vm7, %v4388_v62, %v4389_v28  ;;  %v16525_v62 = vld [vmem:[#allocation120_spill] sm:$0xff]  ;;  %vm16584_vm15 = vmmov %vm16353_vm0 }
 0x3d9   :  { %16509 = vst [vmem:[#allocation150_spill] sm:$0xff] %v14510_v50  ;;  %v7163_v7 = vpop.f32.mrb[209].mxu1  ;;  %v6793_v0 = vadd.f32 %v16513_v63, %v6159_v37  ;;  %v6161_v13 = vpop.f32.mrb[219].mxu0  ;;  %v14532_v36 = vpack.c.bf16 %v4530_v32, %v4531_v8  ;;  %v4392_v28 = vrot.slane %v16525_v62, 1  ;;  %v16529_v32 = vld [vmem:[#allocation213_spill] sm:$0xff]  ;;  %v16534_v62 = vld [vmem:[#allocation142_spill] sm:$0xff]  ;;  %vm16585_vm7 = vmmov %vm16353_vm0 }
 0x3da   :  { %v14516_v5 = vadd.f32 %v6791_v54, %v6769_v2  ;;  %v14518_v12 = vpop.f32.mrb[210].mxu1  ;;  %v6795_v51 = vadd.f32 %v16516_v58, %v6161_v13  ;;  %v16520_v54 = vld [vmem:[#allocation210_spill] sm:$0xff]  ;;  %v16522_v7 = vld [vmem:[#allocation119_spill] sm:$0xff] }
 0x3db   :  { %16515 = vst [vmem:[#allocation151_spill] sm:$0xff] %v14518_v12  ;;  %v7166_v6 = vpop.f32.mrb[211].mxu1  ;;  %6457 = vmatmul.mubr.bf16.gmra.mrb[84].mxu0 %v14508_v61  ;;  %v4391_v63 = vrot.slane %v16522_v7, 1 }
 0x3dc   :  { %16514 = vst [vmem:[#allocation66_spill] sm:$0xff] %v14516_v5  ;;  %v14522_v39 = vadd.f32 %v6795_v51, %v6773_v18  ;;  %6466 = vmatprep.mubr.bf16.mxu0 %v16322_v55  ;;  %v16521_v18 = vld [vmem:[#allocation199_spill] sm:$0xff]  ;;  %v16526_v5 = vld [vmem:[#allocation212_spill] sm:$0xff] }
 0x3dd   :  { %9811 = vmatmul.mubr.bf16.gmra.mrb[60].mxu1 %v14151_v20  ;;  %v16524_v51 = vld [vmem:[#allocation211_spill] sm:$0xff]  ;;  %v16532_v7 = vrot.slane %v16521_v18, 1 }
 0x3de   :  { %16517 = vst [vmem:[#allocation71_spill] sm:$0xff] %v14522_v39  ;;  %v6165_v2 = vpop.f32.mrb[220].mxu0  ;;  %9814 = vmatprep.mubr.bf16.mxu1 %v14169_v22 }
 0x3df   :  { %v6799_v13 = vadd.f32 %v16520_v54, %v6165_v2  ;;  %v6167_v37 = vpop.f32.mrb[221].mxu0  ;;  %v16530_v54 = vld [vmem:[#allocation137_spill] sm:$0xff] }
 0x3e0   :  { %v14536_v58 = vpop.f32.mrb[212].mxu1  ;;  %v6801_v6 = vadd.f32 %v16524_v51, %v6167_v37  ;;  %v6169_v39 = vpop.f32.mrb[222].mxu0  ;;  %v16531_v57 = vrot.slane %v16530_v54, 1 }
 0x3e1   :  { %16523 = vst [vmem:[#allocation152_spill] sm:$0xff] %v14536_v58  ;;  %v7171_v20 = vpop.f32.mrb[213].mxu1  ;;  %v6803_v12 = vadd.f32 %v16526_v5, %v6169_v39  ;;  %v6171_v22 = vpop.f32.mrb[223].mxu0  ;;  %v4529_v39 = vsel %vm16537_vm1, %v4390_v31, %v4391_v63  ;;  %vm16596_vm1 = vmmov %vm16353_vm0 }
 0x3e2   :  { %v14541_v26 = vadd.f32 %v6801_v6, %v6779_v16  ;;  %v14543_v2 = vpop.f32.mrb[214].mxu1  ;;  %v6805_v8 = vadd.f32 %v16529_v32, %v6171_v22  ;;  %v4497_v37 = vsel %vm16533_vm4, %v16532_v7, %v16531_v57  ;;  %v4528_v16 = vsel %vm16536_vm12, %v4391_v63, %v4392_v28  ;;  %v16538_v32 = vld [vmem:[#allocation204_spill] sm:$0xff]  ;;  %vm16590_vm4 = vmmov %vm16353_vm0 }
 0x3e3   :  { %16528 = vst [vmem:[#allocation156_spill] sm:$0xff] %v14543_v2  ;;  %v7174_v51 = vpop.f32.mrb[215].mxu1  ;;  %6467 = vmatmul.mubr.bf16.gmra.mrb[88].mxu0 %v14532_v36  ;;  %v14554_v20 = vpack.c.bf16 %v16534_v62, %v4497_v37  ;;  %v14565_v22 = vpack.c.bf16 %v4528_v16, %v4529_v39  ;;  %v15779_v54 = vrot.slane %v16538_v32, 1  ;;  %v16546_v39 = vld [vmem:[#allocation143_spill] sm:$0xff]  ;;  %vm16591_vm12 = vmmov %vm16353_vm0 }
 0x3e4   :  { %16527 = vst [vmem:[#allocation153_spill] sm:$0xff] %v14541_v26  ;;  %v14556_v5 = vadd.f32 %v6805_v8, %v6783_v21  ;;  %6476 = vmatprep.mubr.bf16.mxu0 %v16322_v55  ;;  %v16540_v8 = vld [vmem:[#allocation10_spill] sm:$0xff]  ;;  %v16541_v51 = vld [vmem:[#allocation121_spill] sm:$0xff]  ;;  %v16547_v2 = vrot.slane %v16546_v39, 1 }
 0x3e5   :  { %9815 = vmatmul.mubr.bf16.gmra.mrb[64].mxu1 %v14185_v29  ;;  %v4393_v62 = vrot.slane %v16541_v51, 1 }
 0x3e6   :  { %16535 = vst [vmem:[#allocation157_spill] sm:$0xff] %v14556_v5  ;;  %v6175_v6 = vpop.f32.mrb[224].mxu0  ;;  %9818 = vmatprep.mubr.bf16.mxu1 %v14203_v24  ;;  %v16542_v5 = vld [vmem:[#allocation124_spill] sm:$0xff]  ;;  %v16545_v24 = vld [vmem:[#allocation17_spill] sm:$0xff] }
 0x3e7   :  { %v6177_v57 = vpop.f32.mrb[225].mxu0  ;;  %v4394_v26 = vrot.slane %v16542_v5, 1 }
 0x3e8   :  { %v14568_v21 = vpop.f32.mrb[216].mxu1  ;;  %v6811_v7 = vadd.f32 %v16540_v8, %v6177_v57  ;;  %v6179_v37 = vpop.f32.mrb[226].mxu0  ;;  %v4493_v57 = vsel %vm16548_vm13, %v15779_v54, %v16547_v2  ;;  %vm16597_vm13 = vmmov %vm16353_vm0 }
 0x3e9   :  { %16539 = vst [vmem:[#allocation73_spill] sm:$0xff] %v14568_v21  ;;  %v7179_v31 = vpop.f32.mrb[217].mxu1  ;;  %v6181_v63 = vpop.f32.mrb[227].mxu0  ;;  %v16549_v37 = vld [vmem:[#allocation146_spill] sm:$0xff] }
 0x3ea   :  { %v14573_v29 = vadd.f32 %v6811_v7, %v6789_v15  ;;  %v14575_v6 = vpop.f32.mrb[218].mxu1  ;;  %v6815_v16 = vadd.f32 %v16545_v24, %v6181_v63  ;;  %v14586_v5 = vpack.c.bf16 %v16549_v37, %v4493_v57  ;;  %v4526_v15 = vsel %vm16551_vm6, %v4393_v62, %v4394_v26  ;;  %v16553_v24 = vld [vmem:[#allocation125_spill] sm:$0xff]  ;;  %v16556_v37 = vld [vmem:[#allocation128_spill] sm:$0xff]  ;;  %vm16602_vm6 = vmmov %vm16353_vm0 }
 0x3eb   :  { %16544 = vst [vmem:[#allocation158_spill] sm:$0xff] %v14575_v6  ;;  %v7182_v8 = vpop.f32.mrb[219].mxu1  ;;  %6477 = vmatmul.mubr.bf16.gmra.mrb[92].mxu0 %v14565_v22  ;;  %v4527_v7 = vsel %vm16552_vm9, %v4392_v28, %v4393_v62  ;;  %v4395_v39 = vrot.slane %v16553_v24, 1  ;;  %v4396_v54 = vrot.slane %v16556_v37, 1  ;;  %v16559_v62 = vld [vmem:[#allocation122_spill] sm:$0xff]  ;;  %vm16603_vm9 = vmmov %vm16353_vm0 }
 0x3ec   :  { %16543 = vst [vmem:[#allocation77_spill] sm:$0xff] %v14573_v29  ;;  %v14588_v51 = vadd.f32 %v6815_v16, %v6793_v0  ;;  %6486 = vmatprep.mubr.bf16.mxu0 %v16322_v55  ;;  %v14597_v63 = vpack.c.bf16 %v4526_v15, %v4527_v7  ;;  %v16555_v16 = vld [vmem:[#allocation8_spill] sm:$0xff] }
 0x3ed   :  { %9819 = vmatmul.mubr.bf16.gmra.mrb[68].mxu1 %v14219_v33  ;;  %v4524_v7 = vsel %vm16561_vm14, %v4395_v39, %v4396_v54  ;;  %vm16608_vm14 = vmmov %vm16353_vm0 }
 0x3ee   :  { %16550 = vst [vmem:[#allocation159_spill] sm:$0xff] %v14588_v51  ;;  %v6185_v31 = vpop.f32.mrb[228].mxu0  ;;  %9822 = vmatprep.mubr.bf16.mxu1 %v14238_v46 }
 0x3ef   :  { %v6187_v2 = vpop.f32.mrb[229].mxu0 }
 0x3f0   :  { %v14600_v0 = vpop.f32.mrb[220].mxu1  ;;  %v6821_v57 = vadd.f32 %v16555_v16, %v6187_v2  ;;  %v6189_v8 = vpop.f32.mrb[230].mxu0  ;;  %v16564_v16 = vld [vmem:[#allocation130_spill] sm:$0xff] }
 0x3f1   :  { %16554 = vst [vmem:[#allocation162_spill] sm:$0xff] %v14600_v0  ;;  %v7187_v51 = vpop.f32.mrb[221].mxu1  ;;  %v6191_v29 = vpop.f32.mrb[231].mxu0  ;;  %v16565_v8 = vld [vmem:[#allocation133_spill] sm:$0xff] }
 0x3f2   :  { %v14604_v28 = vadd.f32 %v6821_v57, %v6799_v13  ;;  %v14606_v33 = vpop.f32.mrb[222].mxu1  ;;  %v6825_v46 = vadd.f32 %v16559_v62, %v6191_v29  ;;  %v4525_v51 = vsel %vm16562_vm10, %v4394_v26, %v4395_v39  ;;  %v4397_v57 = vrot.slane %v16564_v16, 1  ;;  %vm16609_vm10 = vmmov %vm16353_vm0 }
 0x3f3   :  { %16558 = vst [vmem:[#allocation163_spill] sm:$0xff] %v14606_v33  ;;  %v7190_v31 = vpop.f32.mrb[223].mxu1  ;;  %6487 = vmatmul.mubr.bf16.gmra.mrb[96].mxu0 %v14597_v63  ;;  %v14619_v2 = vpack.c.bf16 %v4524_v7, %v4525_v51  ;;  %v4398_v37 = vrot.slane %v16565_v8, 1  ;;  %v16571_v8 = vld [vmem:[#allocation140_spill] sm:$0xff] }
 0x3f4   :  { %16557 = vst [vmem:[#allocation78_spill] sm:$0xff] %v14604_v28  ;;  %v14610_v15 = vadd.f32 %v6825_v46, %v6803_v12  ;;  %6496 = vmatprep.mubr.bf16.mxu0 %v16322_v55 }
 0x3f5   :  { %9823 = vmatmul.mubr.bf16.gmra.mrb[72].mxu1 %v14262_v53  ;;  %v4522_v53 = vsel %vm16567_vm3, %v4397_v57, %v4398_v37  ;;  %vm16614_vm3 = vmmov %vm16353_vm0 }
 0x3f6   :  { %16560 = vst [vmem:[#allocation83_spill] sm:$0xff] %v14610_v15  ;;  %9826 = vmatprep.mubr.bf16.mxu1 %v14288_v59  ;;  %v6195_v13 = vpop.f32.mrb[232].mxu0  ;;  %v4523_v59 = vsel %vm16568_vm5, %v4396_v54, %v4397_v57  ;;  %vm16615_vm5 = vmmov %vm16353_vm0 }
 0x3f7   :  { %v6197_v29 = vpop.f32.mrb[233].mxu0  ;;  %v14635_v51 = vpack.c.bf16 %v4522_v53, %v4523_v59  ;;  %v16569_v13 = vld [vmem:[#allocation135_spill] sm:$0xff] }
 0x3f8   :  { %v14621_v24 = vpop.f32.mrb[224].mxu1  ;;  %v6199_v12 = vpop.f32.mrb[234].mxu0  ;;  %v4399_v29 = vrot.slane %v16569_v13, 1  ;;  %v16576_v13 = vld [vmem:[#allocation141_spill] sm:$0xff] }
 0x3f9   :  { %16563 = vst [vmem:[#allocation164_spill] sm:$0xff] %v14621_v24  ;;  %v7195_v62 = vpop.f32.mrb[225].mxu1  ;;  %v6201_v46 = vpop.f32.mrb[235].mxu0 }
 0x3fa   :  { %v14625_v31 = vpop.f32.mrb[226].mxu1  ;;  %v4400_v62 = vrot.slane %v16571_v8, 1  ;;  %v16577_v8 = vld [vmem:[#allocation145_spill] sm:$0xff] }
 0x3fb   :  { %16566 = vst [vmem:[#allocation165_spill] sm:$0xff] %v14625_v31  ;;  %v7198_v26 = vpop.f32.mrb[227].mxu1  ;;  %6497 = vmatmul.mubr.bf16.gmra.mrb[100].mxu0 %v14619_v2 }
 0x3fc   :  { %6506 = vmatprep.mubr.bf16.mxu0 %v16322_v55 }
 0x3fd   :  { %9827 = vmatmul.mubr.bf16.gmra.mrb[76].mxu1 %v14312_v45  ;;  %v4520_v45 = vsel %vm16573_vm2, %v4399_v29, %v4400_v62  ;;  %vm16620_vm2 = vmmov %vm16353_vm0 }
 0x3fe   :  { %v6205_v39 = vpop.f32.mrb[236].mxu0  ;;  %9830 = vmatprep.mubr.bf16.mxu1 %v14338_v19  ;;  %v4521_v19 = vsel %vm16574_vm8, %v4398_v37, %v4399_v29  ;;  %vm16621_vm8 = vmmov %vm16353_vm0 }
 0x3ff   :  { %v6207_v7 = vpop.f32.mrb[237].mxu0  ;;  %v14651_v59 = vpack.c.bf16 %v4520_v45, %v4521_v19 }
 0x400   :  { %v14638_v12 = vpop.f32.mrb[228].mxu1  ;;  %v6209_v16 = vpop.f32.mrb[238].mxu0 }
 0x401   :  { %16570 = vst [vmem:[#allocation168_spill] sm:$0xff] %v14638_v12  ;;  %v7203_v46 = vpop.f32.mrb[229].mxu1  ;;  %v6211_v26 = vpop.f32.mrb[239].mxu0  ;;  %v4401_v16 = vrot.slane %v16576_v13, 1 }
 0x402   :  { %v14641_v15 = vpop.f32.mrb[230].mxu1  ;;  %v4402_v46 = vrot.slane %v16577_v8, 1 }
 0x403   :  { %16572 = vst [vmem:[#allocation169_spill] sm:$0xff] %v14641_v15  ;;  %v7206_v54 = vpop.f32.mrb[231].mxu1  ;;  %6507 = vmatmul.mubr.bf16.gmra.mrb[104].mxu0 %v14635_v51 }
 0x404   :  { %6516 = vmatprep.mubr.bf16.mxu0 %v16322_v55 }
 0x405   :  { %9831 = vmatmul.mubr.bf16.gmra.mrb[80].mxu1 %v14362_v42  ;;  %v4518_v42 = vsel %vm16579_vm11, %v4401_v16, %v4402_v46  ;;  %vm16626_vm11 = vmmov %vm16353_vm0 }
 0x406   :  { %v6248_v57 = vpop.f32.mrb[0].mxu0  ;;  %9834 = vmatprep.mubr.bf16.mxu1 %v14388_v52  ;;  %v4519_v52 = vsel %vm16353_vm0, %v4400_v62, %v4401_v16 }
 0x407   :  { %v6250_v53 = vpop.f32.mrb[1].mxu0  ;;  %v14667_v19 = vpack.c.bf16 %v4518_v42, %v4519_v52 }
 0x408   :  { %v14653_v39 = vpop.f32.mrb[232].mxu1  ;;  %v6252_v7 = vpop.f32.mrb[2].mxu0  ;;  %v16580_v53 = vld [vmem:[#allocation147_spill] sm:$0xff] }
 0x409   :  { %16575 = vst [vmem:[#allocation84_spill] sm:$0xff] %v14653_v39  ;;  %v7211_v26 = vpop.f32.mrb[233].mxu1  ;;  %v6254_v54 = vpop.f32.mrb[3].mxu0  ;;  %v4403_v13 = vrot.slane %v16580_v53, 1  ;;  %v16587_v53 = vld [vmem:[#allocation149_spill] sm:$0xff] }
 0x40a   :  { %v14657_v28 = vpop.f32.mrb[234].mxu1  ;;  %v16582_v54 = vld [vmem:[#allocation148_spill] sm:$0xff] }
 0x40b   :  { %16578 = vst [vmem:[#allocation90_spill] sm:$0xff] %v14657_v28  ;;  %v7214_v37 = vpop.f32.mrb[235].mxu1  ;;  %6517 = vmatmul.mubr.bf16.gmra.mrb[108].mxu0 %v14651_v59 }
 0x40c   :  { %6526 = vmatprep.mubr.bf16.mxu0 %v16322_v55  ;;  %v4404_v37 = vrot.slane %v16582_v54, 1  ;;  %v4405_v54 = vrot.slane %v16587_v53, 1 }
 0x40d   :  { %9835 = vmatmul.mubr.bf16.gmra.mrb[84].mxu1 %v14412_v60 }
 0x40e   :  { %v6258_v29 = vpop.f32.mrb[4].mxu0  ;;  %9838 = vmatprep.mubr.bf16.mxu1 %v14436_v11  ;;  %v4516_v60 = vsel %vm16584_vm15, %v4403_v13, %v4404_v37  ;;  %v4517_v11 = vsel %vm16585_vm7, %v4402_v46, %v4403_v13  ;;  %vm16632_vm15 = vmmov %vm16353_vm0 }
 0x40f   :  { %v6260_v45 = vpop.f32.mrb[5].mxu0  ;;  %vm16633_vm7 = vmmov %vm16353_vm0 }
 0x410   :  { %v14670_v8 = vpop.f32.mrb[236].mxu1  ;;  %v6262_v26 = vpop.f32.mrb[6].mxu0 }
 0x411   :  { %16581 = vst [vmem:[#allocation170_spill] sm:$0xff] %v14670_v8  ;;  %v7219_v15 = vpop.f32.mrb[237].mxu1  ;;  %v6264_v28 = vpop.f32.mrb[7].mxu0 }
 0x412   :  { %v14673_v12 = vpop.f32.mrb[238].mxu1  ;;  %v14683_v28 = vpack.c.bf16 %v4516_v60, %v4517_v11 }
 0x413   :  { %16583 = vst [vmem:[#allocation171_spill] sm:$0xff] %v14673_v12  ;;  %v7222_v62 = vpop.f32.mrb[239].mxu1  ;;  %6527 = vmatmul.mubr.bf16.gmra.mrb[112].mxu0 %v14667_v19 }
 0x414   :  { %6536 = vmatprep.mubr.bf16.mxu0 %v16322_v55  ;;  %v16588_v62 = vld [vmem:[#allocation154_spill] sm:$0xff] }
 0x415   :  { %9839 = vmatmul.mubr.bf16.gmra.mrb[88].mxu1 %v14460_v1  ;;  %v4406_v12 = vrot.slane %v16588_v62, 1 }
 0x416   :  { %v6268_v16 = vpop.f32.mrb[8].mxu0  ;;  %9842 = vmatprep.mubr.bf16.mxu1 %v14484_v23 }
 0x417   :  { %v6270_v15 = vpop.f32.mrb[9].mxu0  ;;  %v4514_v23 = vsel %vm16590_vm4, %v4405_v54, %v4406_v12  ;;  %vm16635_vm4 = vmmov %vm16353_vm0 }
 0x418   :  { %v14685_v42 = vpop.f32.mrb[240].mxu1  ;;  %v14687_v52 = vadd.f32 %v6270_v15, %v6248_v57  ;;  %v6272_v45 = vpop.f32.mrb[10].mxu0  ;;  %v4515_v57 = vsel %vm16591_vm12, %v4404_v37, %v4405_v54  ;;  %vm16636_vm12 = vmmov %vm16353_vm0 }
 0x419   :  { %16586 = vst [vmem:[#allocation88_spill] sm:$0xff] %v14685_v42  ;;  %v7227_v8 = vpop.f32.mrb[241].mxu1  ;;  %v6274_v39 = vpop.f32.mrb[11].mxu0  ;;  %v14703_v11 = vpack.c.bf16 %v4514_v23, %v4515_v57 }
 0x41a   :  { %v14691_v46 = vpop.f32.mrb[242].mxu1  ;;  %v14693_v1 = vadd.f32 %v6274_v39, %v6252_v7  ;;  %v16592_v39 = vld [vmem:[#allocation155_spill] sm:$0xff] }
 0x41b   :  { %16589 = vst [vmem:[#allocation91_spill] sm:$0xff] %v14691_v46  ;;  %v7230_v13 = vpop.f32.mrb[243].mxu1  ;;  %6537 = vmatmul.mubr.bf16.gmra.mrb[116].mxu0 %v14683_v28  ;;  %v4407_v7 = vrot.slane %v16592_v39, 1  ;;  %v16599_v39 = vld [vmem:[#allocation161_spill] sm:$0xff] }
 0x41c   :  { %6546 = vmatprep.mubr.bf16.mxu0 %v16322_v55  ;;  %v16594_v13 = vld [vmem:[#allocation160_spill] sm:$0xff] }
 0x41d   :  { %9843 = vmatmul.mubr.bf16.gmra.mrb[92].mxu1 %v14508_v61  ;;  %v4408_v46 = vrot.slane %v16594_v13, 1  ;;  %v4409_v13 = vrot.slane %v16599_v39, 1 }
 0x41e   :  { %v6278_v60 = vpop.f32.mrb[12].mxu0  ;;  %9846 = vmatprep.mubr.bf16.mxu1 %v14532_v36 }
 0x41f   :  { %v6280_v8 = vpop.f32.mrb[13].mxu0  ;;  %v4512_v36 = vsel %vm16596_vm1, %v4407_v7, %v4408_v46  ;;  %vm16641_vm1 = vmmov %vm16353_vm0 }
 0x420   :  { %v14706_v15 = vpop.f32.mrb[244].mxu1  ;;  %v14708_v53 = vadd.f32 %v6280_v8, %v6258_v29  ;;  %v6282_v62 = vpop.f32.mrb[14].mxu0  ;;  %v4513_v29 = vsel %vm16597_vm13, %v4406_v12, %v4407_v7  ;;  %vm16644_vm13 = vmmov %vm16353_vm0 }
 0x421   :  { %16593 = vst [vmem:[#allocation174_spill] sm:$0xff] %v14706_v15  ;;  %v7235_v42 = vpop.f32.mrb[245].mxu1  ;;  %v6284_v33 = vpop.f32.mrb[15].mxu0  ;;  %v14723_v57 = vpack.c.bf16 %v4512_v36, %v4513_v29 }
 0x422   :  { %v14711_v37 = vpop.f32.mrb[246].mxu1  ;;  %v14713_v61 = vadd.f32 %v6284_v33, %v6262_v26 }
 0x423   :  { %16595 = vst [vmem:[#allocation95_spill] sm:$0xff] %v14711_v37  ;;  %v7238_v54 = vpop.f32.mrb[247].mxu1  ;;  %6547 = vmatmul.mubr.bf16.gmra.mrb[120].mxu0 %v14703_v11 }
 0x424   :  { %6556 = vmatprep.mubr.bf16.mxu0 %v16322_v55  ;;  %v16600_v54 = vld [vmem:[#allocation166_spill] sm:$0xff] }
 0x425   :  { %9847 = vmatmul.mubr.bf16.gmra.mrb[96].mxu1 %v14565_v22  ;;  %v4410_v37 = vrot.slane %v16600_v54, 1 }
 0x426   :  { %v6288_v23 = vpop.f32.mrb[16].mxu0  ;;  %9850 = vmatprep.mubr.bf16.mxu1 %v14597_v63 }
 0x427   :  { %v6290_v42 = vpop.f32.mrb[17].mxu0  ;;  %v4510_v63 = vsel %vm16602_vm6, %v4409_v13, %v4410_v37  ;;  %vm16650_vm6 = vmmov %vm16353_vm0 }
 0x428   :  { %v14725_v33 = vpop.f32.mrb[248].mxu1  ;;  %v14727_v26 = vadd.f32 %v6290_v42, %v6268_v16  ;;  %v6292_v8 = vpop.f32.mrb[18].mxu0  ;;  %v4511_v16 = vsel %vm16603_vm9, %v4408_v46, %v4409_v13  ;;  %vm16653_vm9 = vmmov %vm16353_vm0 }
 0x429   :  { %16598 = vst [vmem:[#allocation175_spill] sm:$0xff] %v14725_v33  ;;  %v7243_v15 = vpop.f32.mrb[249].mxu1  ;;  %v6294_v31 = vpop.f32.mrb[19].mxu0  ;;  %v4715_v29 = vpack.c.bf16 %v4510_v63, %v4511_v16 }
 0x42a   :  { %v14731_v12 = vpop.f32.mrb[250].mxu1  ;;  %v14733_v22 = vadd.f32 %v6294_v31, %v6272_v45  ;;  %v16604_v31 = vld [vmem:[#allocation167_spill] sm:$0xff] }
 0x42b   :  { %16601 = vst [vmem:[#allocation176_spill] sm:$0xff] %v14731_v12  ;;  %v7246_v7 = vpop.f32.mrb[251].mxu1  ;;  %6557 = vmatmul.mubr.bf16.gmra.mrb[124].mxu0 %v14723_v57  ;;  %v4411_v45 = vrot.slane %v16604_v31, 1 }
 0x42c   :  { %6566 = vmatprep.mubr.bf16.mxu0 %v16322_v55  ;;  %v16606_v7 = vld [vmem:[#allocation172_spill] sm:$0xff] }
 0x42d   :  { %9851 = vmatmul.mubr.bf16.gmra.mrb[100].mxu1 %v14619_v2  ;;  %v4412_v12 = vrot.slane %v16606_v7, 1  ;;  %v16612_v7 = vld [vmem:[#allocation177_spill] sm:$0xff] }
 0x42e   :  { %v6298_v36 = vpop.f32.mrb[20].mxu0  ;;  %9854 = vmatprep.mubr.bf16.mxu1 %v14635_v51 }
 0x42f   :  { %v6300_v15 = vpop.f32.mrb[21].mxu0  ;;  %v4508_v51 = vsel %vm16608_vm14, %v4411_v45, %v4412_v12 }
 0x430   :  { %v14744_v42 = vpop.f32.mrb[252].mxu1  ;;  %v14746_v39 = vadd.f32 %v6300_v15, %v6278_v60  ;;  %v6302_v54 = vpop.f32.mrb[22].mxu0  ;;  %v4509_v60 = vsel %vm16609_vm10, %v4410_v37, %v4411_v45  ;;  %v16611_v15 = vld [vmem:[#allocation173_spill] sm:$0xff] }
 0x431   :  { %16605 = vst [vmem:[#allocation179_spill] sm:$0xff] %v14744_v42  ;;  %v7251_v33 = vpop.f32.mrb[253].mxu1  ;;  %v6304_v0 = vpop.f32.mrb[23].mxu0  ;;  %v4716_v63 = vpack.c.bf16 %v4508_v51, %v4509_v60  ;;  %v4413_v31 = vrot.slane %v16611_v15, 1  ;;  %v16616_v60 = vld [vmem:[#allocation178_spill] sm:$0xff] }
 0x432   :  { %v14749_v24 = vpop.f32.mrb[254].mxu1  ;;  %v14751_v46 = vadd.f32 %v6304_v0, %v6282_v62 }
 0x433   :  { %16607 = vst [vmem:[#allocation180_spill] sm:$0xff] %v14749_v24  ;;  %v7254_v2 = vpop.f32.mrb[255].mxu1  ;;  %6567 = vmatmul.mubr.bf16.gmra.mrb[128].mxu0 %v4715_v29 }
 0x434   :  { %6576 = vmatprep.mubr.bf16.mxu0 %v16322_v55  ;;  %v4414_v2 = vrot.slane %v16612_v7, 1  ;;  %v16618_v7 = vld [vmem:[#allocation183_spill] sm:$0xff] }
 0x435   :  { %9855 = vmatmul.mubr.bf16.gmra.mrb[104].mxu1 %v14651_v59 }
 0x436   :  { %v6308_v13 = vpop.f32.mrb[24].mxu0  ;;  %9858 = vmatprep.mubr.bf16.mxu1 %v14667_v19  ;;  %v4506_v19 = vsel %vm16614_vm3, %v4413_v31, %v4414_v2 }
 0x437   :  { %v6310_v33 = vpop.f32.mrb[25].mxu0 }
 0x438   :  { %v14760_v16 = vpop.f32.mrb[0].mxu1  ;;  %v14762_v0 = vadd.f32 %v6310_v33, %v6288_v23  ;;  %v6312_v62 = vpop.f32.mrb[26].mxu0  ;;  %v4507_v23 = vsel %vm16615_vm5, %v4412_v12, %v4413_v31 }
 0x439   :  { %16610 = vst [vmem:[#allocation96_spill] sm:$0xff] %v14760_v16  ;;  %v7259_v24 = vpop.f32.mrb[1].mxu1  ;;  %v6314_v42 = vpop.f32.mrb[27].mxu0  ;;  %v4717_v51 = vpack.c.bf16 %v4506_v19, %v4507_v23 }
 0x43a   :  { %v14766_v6 = vpop.f32.mrb[2].mxu1  ;;  %v14768_v37 = vadd.f32 %v6314_v42, %v6292_v8  ;;  %v4415_v8 = vrot.slane %v16616_v60, 1 }
 0x43b   :  { %16613 = vst [vmem:[#allocation99_spill] sm:$0xff] %v14766_v6  ;;  %v7262_v59 = vpop.f32.mrb[3].mxu1  ;;  %6577 = vmatmul.mubr.bf16.gmra.mrb[132].mxu0 %v4716_v63 }
 0x43c   :  { %6586 = vmatprep.mubr.bf16.mxu0 %v16322_v55  ;;  %v4416_v59 = vrot.slane %v16618_v7, 1  ;;  %v16624_v7 = vld [vmem:[#allocation188_spill] sm:$0xff] }
 0x43d   :  { %9859 = vmatmul.mubr.bf16.gmra.mrb[108].mxu1 %v14683_v28 }
 0x43e   :  { %v6318_v45 = vpop.f32.mrb[28].mxu0  ;;  %9862 = vmatprep.mubr.bf16.mxu1 %v14703_v11  ;;  %v4504_v11 = vsel %vm16620_vm2, %v4415_v8, %v4416_v59 }
 0x43f   :  { %v6320_v24 = vpop.f32.mrb[29].mxu0 }
 0x440   :  { %v14778_v42 = vpop.f32.mrb[4].mxu1  ;;  %v14780_v33 = vadd.f32 %v6320_v24, %v6298_v36  ;;  %v6322_v15 = vpop.f32.mrb[30].mxu0  ;;  %v4505_v36 = vsel %vm16621_vm8, %v4414_v2, %v4415_v8  ;;  %v16623_v24 = vld [vmem:[#allocation184_spill] sm:$0xff] }
 0x441   :  { %16617 = vst [vmem:[#allocation181_spill] sm:$0xff] %v14778_v42  ;;  %v7267_v6 = vpop.f32.mrb[5].mxu1  ;;  %v6324_v16 = vpop.f32.mrb[31].mxu0  ;;  %v4718_v19 = vpack.c.bf16 %v4504_v11, %v4505_v36  ;;  %v4417_v60 = vrot.slane %v16623_v24, 1  ;;  %v16627_v36 = vld [vmem:[#allocation189_spill] sm:$0xff] }
 0x442   :  { %v14783_v58 = vpop.f32.mrb[6].mxu1  ;;  %v14785_v12 = vadd.f32 %v6324_v16, %v6302_v54 }
 0x443   :  { %16619 = vst [vmem:[#allocation182_spill] sm:$0xff] %v14783_v58  ;;  %v7270_v28 = vpop.f32.mrb[7].mxu1  ;;  %6587 = vmatmul.mubr.bf16.gmra.mrb[136].mxu0 %v4717_v51 }
 0x444   :  { %6596 = vmatprep.mubr.bf16.mxu0 %v16322_v55  ;;  %v4418_v28 = vrot.slane %v16624_v7, 1  ;;  %v16629_v7 = vld [vmem:[#allocation194_spill] sm:$0xff] }
 0x445   :  { %9863 = vmatmul.mubr.bf16.gmra.mrb[112].mxu1 %v14723_v57 }
 0x446   :  { %v6328_v31 = vpop.f32.mrb[32].mxu0  ;;  %9866 = vmatprep.mubr.bf16.mxu1 %v4715_v29  ;;  %v4502_v29 = vsel %vm16626_vm11, %v4417_v60, %v4418_v28 }
 0x447   :  { %v6330_v6 = vpop.f32.mrb[33].mxu0 }
 0x448   :  { %v14793_v23 = vpop.f32.mrb[8].mxu1  ;;  %v14795_v54 = vadd.f32 %v6330_v6, %v6308_v13  ;;  %v6332_v16 = vpop.f32.mrb[34].mxu0  ;;  %v4503_v13 = vsel %vm16353_vm0, %v4416_v59, %v4417_v60  ;;  %v4419_v6 = vrot.slane %v16627_v36, 1 }
 0x449   :  { %16622 = vst [vmem:[#allocation97_spill] sm:$0xff] %v14793_v23  ;;  %v7275_v58 = vpop.f32.mrb[9].mxu1  ;;  %v6334_v42 = vpop.f32.mrb[35].mxu0 }
 0x44a   :  { %v14799_v21 = vpop.f32.mrb[10].mxu1  ;;  %v14801_v2 = vadd.f32 %v6334_v42, %v6312_v62  ;;  %v4719_v58 = vpack.c.bf16 %v4502_v29, %v4503_v13 }
 0x44b   :  { %16625 = vst [vmem:[#allocation100_spill] sm:$0xff] %v14799_v21  ;;  %v7278_v57 = vpop.f32.mrb[11].mxu1  ;;  %6597 = vmatmul.mubr.bf16.gmra.mrb[140].mxu0 %v4718_v19 }
 0x44c   :  { %6606 = vmatprep.mubr.bf16.mxu0 %v16322_v55  ;;  %v4420_v57 = vrot.slane %v16629_v7, 1 }
 0x44d   :  { %9867 = vmatmul.mubr.bf16.gmra.mrb[116].mxu1 %v4716_v63 }
 0x44e   :  { %v6338_v8 = vpop.f32.mrb[36].mxu0  ;;  %9870 = vmatprep.mubr.bf16.mxu1 %v4717_v51  ;;  %v16631_v51 = vld [vmem:[#allocation195_spill] sm:$0xff]  ;;  %v4500_v60 = vsel %vm16632_vm15, %v4419_v6, %v4420_v57 }
 0x44f   :  { %v6340_v11 = vpop.f32.mrb[37].mxu0  ;;  %v4421_v59 = vrot.slane %v16631_v51, 1 }
 0x450   :  { %v14809_v24 = vpop.f32.mrb[12].mxu1  ;;  %v14811_v62 = vadd.f32 %v6340_v11, %v6318_v45  ;;  %v6342_v42 = vpop.f32.mrb[38].mxu0  ;;  %v4501_v45 = vsel %vm16633_vm7, %v4418_v28, %v4419_v6 }
 0x451   :  { %16628 = vst [vmem:[#allocation185_spill] sm:$0xff] %v14809_v24  ;;  %v7283_v21 = vpop.f32.mrb[13].mxu1  ;;  %v6344_v23 = vpop.f32.mrb[39].mxu0  ;;  %v4720_v13 = vpack.c.bf16 %v4500_v60, %v4501_v45  ;;  %v4499_v11 = vsel %vm16636_vm12, %v4420_v57, %v4421_v59 }
 0x452   :  { %v14814_v50 = vpop.f32.mrb[14].mxu1  ;;  %v14816_v56 = vadd.f32 %v6344_v23, %v6322_v15  ;;  %v16634_v15 = vrot.slane %v16521_v18, 1  ;;  %v16639_v18 = vld [vmem:[#allocation201_spill] sm:$0xff] }
 0x453   :  { %16630 = vst [vmem:[#allocation102_spill] sm:$0xff] %v14814_v50  ;;  %v7286_v63 = vpop.f32.mrb[15].mxu1  ;;  %6607 = vmatmul.mubr.bf16.gmra.mrb[144].mxu0 %v4719_v58  ;;  %v4425_v45 = vrot.slane %v16639_v18, 1 }
 0x454   :  { %6616 = vmatprep.mubr.bf16.mxu0 %v16322_v55  ;;  %v4498_v23 = vsel %vm16635_vm4, %v4421_v59, %v16634_v15  ;;  %v16642_v15 = vld [vmem:[#allocation138_spill] sm:$0xff] }
 0x455   :  { %9871 = vmatmul.mubr.bf16.gmra.mrb[120].mxu1 %v4718_v19  ;;  %v4721_v6 = vpack.c.bf16 %v4498_v23, %v4499_v11 }
 0x456   :  { %v6348_v29 = vpop.f32.mrb[40].mxu0  ;;  %9874 = vmatprep.mubr.bf16.mxu1 %v4719_v58 }
 0x457   :  { %v6350_v21 = vpop.f32.mrb[41].mxu0 }
 0x458   :  { %v14830_v36 = vpop.f32.mrb[16].mxu1  ;;  %v14832_v7 = vadd.f32 %v6350_v21, %v6328_v31  ;;  %v6352_v63 = vpop.f32.mrb[42].mxu0  ;;  %v16640_v31 = vrot.slane %v16538_v32, 1 }
 0x459   :  { %16637 = vst [vmem:[#allocation186_spill] sm:$0xff] %v14830_v36  ;;  %v7291_v51 = vpop.f32.mrb[17].mxu1  ;;  %v6354_v28 = vpop.f32.mrb[43].mxu0 }
 0x45a   :  { %v14834_v19 = vpop.f32.mrb[18].mxu1  ;;  %v14836_v58 = vadd.f32 %v6354_v28, %v6332_v16  ;;  %v4494_v21 = vsel %vm16641_vm1, %v4425_v45, %v16640_v31  ;;  %v16643_v51 = vrot.slane %v16642_v15, 1  ;;  %v16647_v31 = vld [vmem:[#allocation209_spill] sm:$0xff] }
 0x45b   :  { %16638 = vst [vmem:[#allocation187_spill] sm:$0xff] %v14834_v19  ;;  %v7294_v60 = vpop.f32.mrb[19].mxu1  ;;  %6617 = vmatmul.mubr.bf16.gmra.mrb[148].mxu0 %v4720_v13  ;;  %v4429_v24 = vrot.slane %v16647_v31, 1 }
 0x45c   :  { %6626 = vmatprep.mubr.bf16.mxu0 %v16322_v55  ;;  %v4495_v16 = vsel %vm16644_vm13, %v16643_v51, %v4425_v45 }
 0x45d   :  { %9875 = vmatmul.mubr.bf16.gmra.mrb[124].mxu1 %v4720_v13  ;;  %v4723_v32 = vpack.c.bf16 %v4494_v21, %v4495_v16 }
 0x45e   :  { %v6358_v57 = vpop.f32.mrb[44].mxu0  ;;  %9878 = vmatprep.mubr.bf16.mxu1 %v4721_v6 }
 0x45f   :  { %v6360_v59 = vpop.f32.mrb[45].mxu0 }
 0x460   :  { %v14848_v23 = vpop.f32.mrb[20].mxu1  ;;  %v14850_v11 = vadd.f32 %v6360_v59, %v6338_v8  ;;  %v6362_v28 = vpop.f32.mrb[46].mxu0  ;;  %v16648_v59 = vld [vmem:[#allocation13_spill] sm:$0xff] }
 0x461   :  { %16645 = vst [vmem:[#allocation190_spill] sm:$0xff] %v14848_v23  ;;  %v7299_v60 = vpop.f32.mrb[21].mxu1  ;;  %v6364_v13 = vpop.f32.mrb[47].mxu0  ;;  %v16649_v15 = vrot.slane %v16648_v59, 1 }
 0x462   :  { %v14852_v18 = vpop.f32.mrb[22].mxu1  ;;  %v14854_v50 = vadd.f32 %v6364_v13, %v6342_v42  ;;  %v16651_v60 = vld [vmem:[#allocation144_spill] sm:$0xff] }
 0x463   :  { %16646 = vst [vmem:[#allocation191_spill] sm:$0xff] %v14852_v18  ;;  %v7302_v19 = vpop.f32.mrb[23].mxu1  ;;  %6627 = vmatmul.mubr.bf16.gmra.mrb[152].mxu0 %v4721_v6  ;;  %v4490_v51 = vsel %vm16650_vm6, %v4429_v24, %v16649_v15  ;;  %v16652_v42 = vrot.slane %v16651_v60, 1 }
 0x464   :  { %6636 = vmatprep.mubr.bf16.mxu0 %v16322_v55 }
 0x465   :  { %9879 = vmatmul.mubr.bf16.gmra.mrb[128].mxu1 %v14554_v20  ;;  %v4491_v19 = vsel %vm16653_vm9, %v16652_v42, %v4429_v24 }
 0x466   :  { %v6368_v45 = vpop.f32.mrb[48].mxu0  ;;  %9882 = vmatprep.mubr.bf16.mxu1 %v4723_v32  ;;  %v4725_v59 = vpack.c.bf16 %v4490_v51, %v4491_v19 }
 0x467   :  { %v6370_v8 = vpop.f32.mrb[49].mxu0 }
 0x468   :  { %v14867_v6 = vpop.f32.mrb[24].mxu1  ;;  %v14869_v21 = vadd.f32 %v6370_v8, %v6348_v29  ;;  %v6372_v16 = vpop.f32.mrb[50].mxu0 }
 0x469   :  { %16654 = vst [vmem:[#allocation103_spill] sm:$0xff] %v14867_v6  ;;  %v7307_v13 = vpop.f32.mrb[25].mxu1  ;;  %v6374_v31 = vpop.f32.mrb[51].mxu0  ;;  %v16668_v6 = vld [vmem:[#allocation50_spill] sm:$0xff] }
 0x46a   :  { %v14871_v18 = vpop.f32.mrb[26].mxu1  ;;  %v14873_v23 = vadd.f32 %v6374_v31, %v6352_v63  ;;  %v16659_v13 = vld [vmem:[#allocation28_spill] sm:$0xff] }
 0x46b   :  { %16655 = vst [vmem:[#allocation105_spill] sm:$0xff] %v14871_v18  ;;  %v7310_v36 = vpop.f32.mrb[27].mxu1  ;;  %6637 = vmatmul.mubr.bf16.gmra.mrb[156].mxu0 %v14554_v20  ;;  %v16658_v20 = vld [vmem:[#allocation20_spill] sm:$0xff] }
 0x46c   :  { %6646 = vmatprep.mubr.bf16.mxu0 %v16322_v55 }
 0x46d   :  { %9883 = vmatmul.mubr.bf16.gmra.mrb[132].mxu1 %v14586_v5 }
 0x46e   :  { %v6378_v17 = vpop.f32.mrb[52].mxu0  ;;  %9886 = vmatprep.mubr.bf16.mxu1 %v4725_v59 }
 0x46f   :  { %v6380_v24 = vpop.f32.mrb[53].mxu0 }
 0x470   :  { %v14878_v29 = vpop.f32.mrb[28].mxu1  ;;  %v14880_v8 = vadd.f32 %v6380_v24, %v6358_v57  ;;  %v6382_v15 = vpop.f32.mrb[54].mxu0 }
 0x471   :  { %16656 = vst [vmem:[#allocation192_spill] sm:$0xff] %v14878_v29  ;;  %v7315_v60 = vpop.f32.mrb[29].mxu1  ;;  %v6384_v42 = vpop.f32.mrb[55].mxu0 }
 0x472   :  { %v14882_v63 = vpop.f32.mrb[30].mxu1  ;;  %v14884_v51 = vadd.f32 %v6384_v42, %v6362_v28  ;;  %v16663_v42 = vld [vmem:[#allocation32_spill] sm:$0xff] }
 0x473   :  { %16657 = vst [vmem:[#allocation193_spill] sm:$0xff] %v14882_v63  ;;  %v7318_v36 = vpop.f32.mrb[31].mxu1  ;;  %6647 = vmatmul.mubr.bf16.gmra.mrb[160].mxu0 %v4723_v32 }
 0x474   :  { %6656 = vmatprep.mubr.bf16.mxu0 %v16322_v55 }
 0x475   :  { %9887 = vmatmul.mubr.bf16.gmra.mrb[136].mxu1 %v16658_v20  ;;  %v16664_v20 = vld [vmem:[#allocation38_spill] sm:$0xff] }
 0x476   :  { %v6388_v19 = vpop.f32.mrb[56].mxu0  ;;  %9890 = vmatprep.mubr.bf16.mxu1 %v16659_v13 }
 0x477   :  { %v6390_v31 = vpop.f32.mrb[57].mxu0 }
 0x478   :  { %v14889_v29 = vpop.f32.mrb[32].mxu1  ;;  %v14891_v57 = vadd.f32 %v6390_v31, %v6368_v45  ;;  %v6392_v24 = vpop.f32.mrb[58].mxu0 }
 0x479   :  { %16660 = vst [vmem:[#allocation104_spill] sm:$0xff] %v14889_v29  ;;  %v7323_v60 = vpop.f32.mrb[33].mxu1  ;;  %v6394_v18 = vpop.f32.mrb[59].mxu0 }
 0x47a   :  { %v14893_v63 = vpop.f32.mrb[34].mxu1  ;;  %v14895_v28 = vadd.f32 %v6394_v18, %v6372_v16 }
 0x47b   :  { %16661 = vst [vmem:[#allocation106_spill] sm:$0xff] %v14893_v63  ;;  %v7326_v32 = vpop.f32.mrb[35].mxu1  ;;  %6657 = vmatmul.mubr.bf16.gmra.mrb[164].mxu0 %v14586_v5 }
 0x47c   :  { %16662 = vst [vmem:[#allocation196_spill] sm:$0xff] %v14895_v28  ;;  %6666 = vmatprep.mubr.bf16.mxu0 %v16322_v55  ;;  %v16667_v32 = vld [vmem:[#allocation42_spill] sm:$0xff] }
 0x47d   :  { %9891 = vmatmul.mubr.bf16.gmra.mrb[140].mxu1 %v16663_v42  ;;  %v16696_v28 = vld [vmem:[#allocation126_spill] sm:$0xff] }
 0x47e   :  { %v6398_v36 = vpop.f32.mrb[60].mxu0  ;;  %9894 = vmatprep.mubr.bf16.mxu1 %v16664_v20 }
 0x47f   :  { %v6400_v13 = vpop.f32.mrb[61].mxu0 }
 0x480   :  { %v14901_v45 = vpop.f32.mrb[36].mxu1  ;;  %v14903_v31 = vadd.f32 %v6400_v13, %v6378_v17  ;;  %v6402_v60 = vpop.f32.mrb[62].mxu0 }
 0x481   :  { %16665 = vst [vmem:[#allocation110_spill] sm:$0xff] %v14901_v45  ;;  %v7331_v29 = vpop.f32.mrb[37].mxu1  ;;  %v6404_v63 = vpop.f32.mrb[63].mxu0 }
 0x482   :  { %v14905_v18 = vpop.f32.mrb[38].mxu1  ;;  %v14907_v16 = vadd.f32 %v6404_v63, %v6382_v15  ;;  %v16673_v63 = vld [vmem:[#allocation56_spill] sm:$0xff] }
 0x483   :  { %16666 = vst [vmem:[#allocation197_spill] sm:$0xff] %v14905_v18  ;;  %v7334_v5 = vpop.f32.mrb[39].mxu1  ;;  %6667 = vmatmul.mubr.bf16.gmra.mrb[168].mxu0 %v4725_v59 }
 0x484   :  { %v16674_v5 = vld [vmem:[#allocation64_spill] sm:$0xff] }
 0x485   :  { %9895 = vmatmul.mubr.bf16.gmra.mrb[144].mxu1 %v16667_v32 }
 0x486   :  { %v6408_v42 = vpop.f32.mrb[64].mxu0  ;;  %9898 = vmatprep.mubr.bf16.mxu1 %v16668_v6 }
 0x487   :  { %v6410_v20 = vpop.f32.mrb[65].mxu0 }
 0x488   :  { %v14911_v40 = vpop.f32.mrb[40].mxu1  ;;  %v14913_v45 = vadd.f32 %v6410_v20, %v6388_v19  ;;  %v6412_v17 = vpop.f32.mrb[66].mxu0 }
 0x489   :  { %16669 = vst [vmem:[#allocation198_spill] sm:$0xff] %v14911_v40  ;;  %v7339_v13 = vpop.f32.mrb[41].mxu1  ;;  %v6414_v29 = vpop.f32.mrb[67].mxu0 }
 0x48a   :  { %16670 = vst [vmem:[#allocation107_spill] sm:$0xff] %v14913_v45  ;;  %v14915_v30 = vpop.f32.mrb[42].mxu1  ;;  %v14917_v18 = vadd.f32 %v6414_v29, %v6392_v24  ;;  %v16679_v29 = vld [vmem:[#allocation70_spill] sm:$0xff] }
 0x48b   :  { %16671 = vst [vmem:[#allocation108_spill] sm:$0xff] %v14915_v30  ;;  %v7342_v15 = vpop.f32.mrb[43].mxu1 }
 0x48c   :  { %16672 = vst [vmem:[#allocation111_spill] sm:$0xff] %v14917_v18 }
 0x48d   :  { %9899 = vmatmul.mubr.bf16.gmra.mrb[148].mxu1 %v16673_v63  ;;  %v16680_v63 = vld [vmem:[#allocation76_spill] sm:$0xff] }
 0x48e   :  { %v6418_v59 = vpop.f32.mrb[68].mxu0  ;;  %9902 = vmatprep.mubr.bf16.mxu1 %v16674_v5 }
 0x48f   :  { %v6420_v32 = vpop.f32.mrb[69].mxu0 }
 0x490   :  { %v14921_v6 = vpop.f32.mrb[44].mxu1  ;;  %v14923_v48 = vadd.f32 %v6420_v32, %v6398_v36  ;;  %v6422_v19 = vpop.f32.mrb[70].mxu0 }
 0x491   :  { %16675 = vst [vmem:[#allocation114_spill] sm:$0xff] %v14921_v6  ;;  %v7347_v20 = vpop.f32.mrb[45].mxu1  ;;  %v6424_v40 = vpop.f32.mrb[71].mxu0 }
 0x492   :  { %16676 = vst [vmem:[#allocation109_spill] sm:$0xff] %v14923_v48  ;;  %v14925_v13 = vpop.f32.mrb[46].mxu1  ;;  %v14927_v45 = vadd.f32 %v6424_v40, %v6402_v60  ;;  %v16685_v60 = vld [vmem:[#allocation82_spill] sm:$0xff] }
 0x493   :  { %16677 = vst [vmem:[#allocation200_spill] sm:$0xff] %v14925_v13  ;;  %v7350_v24 = vpop.f32.mrb[47].mxu1 }
 0x494   :  { %16678 = vst [vmem:[#allocation112_spill] sm:$0xff] %v14927_v45 }
 0x495   :  { %9903 = vmatmul.mubr.bf16.gmra.mrb[152].mxu1 %v16679_v29  ;;  %v16686_v29 = vld [vmem:[#allocation89_spill] sm:$0xff] }
 0x496   :  { %v6428_v15 = vpop.f32.mrb[72].mxu0  ;;  %9906 = vmatprep.mubr.bf16.mxu1 %v16680_v63 }
 0x497   :  { %v6430_v30 = vpop.f32.mrb[73].mxu0 }
 0x498   :  { %v14931_v5 = vpop.f32.mrb[48].mxu1  ;;  %v14933_v18 = vadd.f32 %v6430_v30, %v6408_v42  ;;  %v6432_v36 = vpop.f32.mrb[74].mxu0 }
 0x499   :  { %16681 = vst [vmem:[#allocation115_spill] sm:$0xff] %v14931_v5  ;;  %v7355_v32 = vpop.f32.mrb[49].mxu1  ;;  %v6434_v6 = vpop.f32.mrb[75].mxu0 }
 0x49a   :  { %16682 = vst [vmem:[#allocation113_spill] sm:$0xff] %v14933_v18  ;;  %v14935_v20 = vpop.f32.mrb[50].mxu1  ;;  %v14937_v48 = vadd.f32 %v6434_v6, %v6412_v17  ;;  %v16690_v6 = vld [vmem:[#allocation98_spill] sm:$0xff] }
 0x49b   :  { %16683 = vst [vmem:[#allocation116_spill] sm:$0xff] %v14935_v20  ;;  %v7358_v40 = vpop.f32.mrb[51].mxu1  ;;  %v16689_v20 = vld [vmem:[#allocation94_spill] sm:$0xff] }
 0x49c   :  { %16684 = vst [vmem:[#allocation202_spill] sm:$0xff] %v14937_v48 }
 0x49d   :  { %9907 = vmatmul.mubr.bf16.gmra.mrb[156].mxu1 %v16685_v60 }
 0x49e   :  { %v6438_v24 = vpop.f32.mrb[76].mxu0  ;;  %9910 = vmatprep.mubr.bf16.mxu1 %v16686_v29 }
 0x49f   :  { %v6440_v13 = vpop.f32.mrb[77].mxu0 }
 0x4a0   :  { %v9804_v63 = vpop.f32.mrb[52].mxu1  ;;  %v14941_v45 = vadd.f32 %v6440_v13, %v6418_v59  ;;  %v6442_v5 = vpop.f32.mrb[78].mxu0 }
 0x4a1   :  { %v7394_v30 = vpop.f32.mrb[53].mxu1  ;;  %v6444_v42 = vpop.f32.mrb[79].mxu0 }
 0x4a2   :  { %16687 = vst [vmem:[#allocation203_spill] sm:$0xff] %v14941_v45  ;;  %v9805_v18 = vpop.f32.mrb[54].mxu1  ;;  %v14943_v32 = vadd.f32 %v6444_v42, %v6422_v19 }
 0x4a3   :  { %v7397_v10 = vpop.f32.mrb[55].mxu1  ;;  %v16693_v18 = vld [vmem:[#allocation101_spill] sm:$0xff] }
 0x4a4   :  { %16688 = vst [vmem:[#allocation205_spill] sm:$0xff] %v14943_v32 }
 0x4a5   :  { %9911 = vmatmul.mubr.bf16.gmra.mrb[160].mxu1 %v16689_v20 }
 0x4a6   :  { %v6448_v17 = vpop.f32.mrb[80].mxu0  ;;  %9914 = vmatprep.mubr.bf16.mxu1 %v16690_v6 }
 0x4a7   :  { %v6450_v40 = vpop.f32.mrb[81].mxu0 }
 0x4a8   :  { %v9808_v60 = vpop.f32.mrb[56].mxu1  ;;  %v14947_v48 = vadd.f32 %v6450_v40, %v6428_v15  ;;  %v6452_v29 = vpop.f32.mrb[82].mxu0 }
 0x4a9   :  { %v7410_v63 = vpop.f32.mrb[57].mxu1  ;;  %v6454_v59 = vpop.f32.mrb[83].mxu0 }
 0x4aa   :  { %16691 = vst [vmem:[#allocation206_spill] sm:$0xff] %v14947_v48  ;;  %v9809_v13 = vpop.f32.mrb[58].mxu1  ;;  %v14949_v45 = vadd.f32 %v6454_v59, %v6432_v36  ;;  %v16694_v63 = vld [vmem:[#allocation21_spill] sm:$0xff] }
 0x4ab   :  { %v7413_v30 = vpop.f32.mrb[59].mxu1 }
 0x4ac   :  { %16692 = vst [vmem:[#allocation117_spill] sm:$0xff] %v14949_v45  ;;  %v16695_v30 = vld [vmem:[#allocation127_spill] sm:$0xff] }
 0x4ad   :  { %9915 = vmatmul.mubr.bf16.gmra.mrb[164].mxu1 %v16693_v18 }
 0x4ae   :  { %v6458_v19 = vpop.f32.mrb[84].mxu0  ;;  %9918 = vmatprep.mubr.bf16.mxu1 %v16322_v55 }
 0x4af   :  { %v6460_v10 = vpop.f32.mrb[85].mxu0 }
 0x4b0   :  { %v9812_v20 = vpop.f32.mrb[60].mxu1  ;;  %v14953_v42 = vadd.f32 %v6460_v10, %v6438_v24  ;;  %v6462_v6 = vpop.f32.mrb[86].mxu0 }
 0x4b1   :  { %v7435_v15 = vadd.f32 %v9812_v20, %v13890_v34  ;;  %v7426_v40 = vpop.f32.mrb[61].mxu1  ;;  %v6464_v60 = vpop.f32.mrb[87].mxu0  ;;  %v16698_v20 = vld [vmem:[#allocation129_spill] sm:$0xff] }
 0x4b2   :  { %v7427_v48 = vadd.f32 %v7426_v40, %v16694_v63  ;;  %v9813_v13 = vpop.f32.mrb[62].mxu1  ;;  %v14957_v36 = vadd.f32 %v6464_v60, %v6442_v5  ;;  %v16699_v63 = vld [vmem:[#allocation27_spill] sm:$0xff] }
 0x4b3   :  { %v8683_v59 = vadd.f32 %v14708_v53, %v7435_v15  ;;  %v7438_v18 = vadd.f32 %v9813_v13, %v16695_v30  ;;  %v7429_v45 = vpop.f32.mrb[63].mxu1 }
 0x4b4   :  { %v8681_v32 = vadd.f32 %v14687_v52, %v7427_v48  ;;  %v7430_v24 = vadd.f32 %v7429_v45, %v16696_v28  ;;  %v16697_v28 = vld [vmem:[#allocation23_spill] sm:$0xff] }
 0x4b5   :  { %8795 = vst [vmem:[%s15559_s5 + $0x10] sm:$0xff] %v8683_v59  ;;  %v8684_v34 = vadd.f32 %v14713_v61, %v7438_v18  ;;  %9919 = vmatmul.mubr.bf16.gmra.mrb[168].mxu1 %v16322_v55  ;;  %v16700_v18 = vld [vmem:[#allocation22_spill] sm:$0xff] }
 0x4b6   :  { %8793 = vst [vmem:[%s15559_s5] sm:$0xff] %v8681_v32  ;;  %v8682_v53 = vadd.f32 %v14693_v1, %v7430_v24  ;;  %v6468_v5 = vpop.f32.mrb[88].mxu0 }
 0x4b7   :  { %8796 = vst [vmem:[%s15559_s5 + $0x18] sm:$0xff] %v8684_v34  ;;  %v6470_v48 = vpop.f32.mrb[89].mxu0 }
 0x4b8   :  { %8794 = vst [vmem:[%s15559_s5 + $0x8] sm:$0xff] %v8682_v53  ;;  %v9816_v52 = vpop.f32.mrb[64].mxu1  ;;  %v14978_v61 = vadd.f32 %v6470_v48, %v6448_v17  ;;  %v6472_v55 = vpop.f32.mrb[90].mxu0  ;;  %v16701_v48 = vld [vmem:[#allocation132_spill] sm:$0xff] }
 0x4b9   :  { %v7451_v45 = vadd.f32 %v9816_v52, %v16697_v28  ;;  %v7442_v10 = vpop.f32.mrb[65].mxu1  ;;  %v6474_v32 = vpop.f32.mrb[91].mxu0 }
 0x4ba   :  { %v7443_v1 = vadd.f32 %v7442_v10, %v16698_v20  ;;  %v9817_v15 = vpop.f32.mrb[66].mxu1  ;;  %v14982_v40 = vadd.f32 %v6474_v32, %v6452_v29  ;;  %v16702_v10 = vld [vmem:[#allocation19_spill] sm:$0xff] }
 0x4bb   :  { %v8687_v60 = vadd.f32 %v14746_v39, %v7451_v45  ;;  %v7454_v13 = vadd.f32 %v9817_v15, %v16699_v63  ;;  %v7445_v59 = vpop.f32.mrb[67].mxu1  ;;  %v16703_v15 = vld [vmem:[#allocation26_spill] sm:$0xff] }
 0x4bc   :  { %v8685_v30 = vadd.f32 %v14727_v26, %v7443_v1  ;;  %v7446_v17 = vadd.f32 %v7445_v59, %v16700_v18  ;;  %v16704_v59 = vld [vmem:[#allocation131_spill] sm:$0xff] }
 0x4bd   :  { %8799 = vst [vmem:[%s15559_s5 + $0x30] sm:$0xff] %v8687_v60  ;;  %v8688_v24 = vadd.f32 %v14751_v46, %v7454_v13 }
 0x4be   :  { %8797 = vst [vmem:[%s15559_s5 + $0x20] sm:$0xff] %v8685_v30  ;;  %v8686_v29 = vadd.f32 %v14733_v22, %v7446_v17  ;;  %v6478_v39 = vpop.f32.mrb[92].mxu0 }
 0x4bf   :  { %8800 = vst [vmem:[%s15559_s5 + $0x38] sm:$0xff] %v8688_v24  ;;  %v6480_v26 = vpop.f32.mrb[93].mxu0 }
 0x4c0   :  { %8798 = vst [vmem:[%s15559_s5 + $0x28] sm:$0xff] %v8686_v29  ;;  %v9820_v34 = vpop.f32.mrb[68].mxu1  ;;  %v15002_v53 = vadd.f32 %v6480_v26, %v6458_v19  ;;  %v6482_v46 = vpop.f32.mrb[94].mxu0 }
 0x4c1   :  { %v7467_v52 = vadd.f32 %v9820_v34, %v16701_v48  ;;  %v7458_v28 = vpop.f32.mrb[69].mxu1  ;;  %v6484_v45 = vpop.f32.mrb[95].mxu0 }
 0x4c2   :  { %v7459_v22 = vadd.f32 %v7458_v28, %v16702_v10  ;;  %v9821_v32 = vpop.f32.mrb[70].mxu1  ;;  %v15006_v20 = vadd.f32 %v6484_v45, %v6462_v6 }
 0x4c3   :  { %v8691_v1 = vadd.f32 %v14780_v33, %v7467_v52  ;;  %v7470_v60 = vadd.f32 %v9821_v32, %v16703_v15  ;;  %v7461_v63 = vpop.f32.mrb[71].mxu1 }
 0x4c4   :  { %v8689_v13 = vadd.f32 %v14762_v0, %v7459_v22  ;;  %v7462_v19 = vadd.f32 %v7461_v63, %v16704_v59 }
 0x4c5   :  { %8803 = vst [vmem:[%s15559_s5 + $0x50] sm:$0xff] %v8691_v1  ;;  %v8692_v30 = vadd.f32 %v14785_v12, %v7470_v60 }
 0x4c6   :  { %8801 = vst [vmem:[%s15559_s5 + $0x40] sm:$0xff] %v8689_v13  ;;  %v8690_v6 = vadd.f32 %v14768_v37, %v7462_v19  ;;  %v6488_v33 = vpop.f32.mrb[96].mxu0 }
 0x4c7   :  { %8804 = vst [vmem:[%s15559_s5 + $0x58] sm:$0xff] %v8692_v30  ;;  %v6490_v0 = vpop.f32.mrb[97].mxu0 }
 0x4c8   :  { %8802 = vst [vmem:[%s15559_s5 + $0x48] sm:$0xff] %v8690_v6  ;;  %v9824_v18 = vpop.f32.mrb[72].mxu1  ;;  %v15026_v17 = vadd.f32 %v6490_v0, %v6468_v5  ;;  %v6492_v12 = vpop.f32.mrb[98].mxu0 }
 0x4c9   :  { %v7483_v24 = vadd.f32 %v9824_v18, %v14047_v44  ;;  %v7474_v29 = vpop.f32.mrb[73].mxu1  ;;  %v6494_v26 = vpop.f32.mrb[99].mxu0 }
 0x4ca   :  { %v7475_v37 = vadd.f32 %v7474_v29, %v14016_v38  ;;  %v9825_v34 = vpop.f32.mrb[74].mxu1  ;;  %v15030_v48 = vadd.f32 %v6494_v26, %v6472_v55 }
 0x4cb   :  { %v8695_v52 = vadd.f32 %v14811_v62, %v7483_v24  ;;  %v7486_v28 = vadd.f32 %v9825_v34, %v14049_v27  ;;  %v7477_v45 = vpop.f32.mrb[75].mxu1  ;;  %v16705_v24 = vld [vmem:[#allocation134_spill] sm:$0xff]  ;;  %v16706_v34 = vld [vmem:[#allocation33_spill] sm:$0xff] }
 0x4cc   :  { %v8693_v10 = vadd.f32 %v14795_v54, %v7475_v37  ;;  %v7478_v5 = vadd.f32 %v7477_v45, %v14031_v9 }
 0x4cd   :  { %8807 = vst [vmem:[%s15559_s5 + $0x70] sm:$0xff] %v8695_v52  ;;  %v8696_v44 = vadd.f32 %v14816_v56, %v7486_v28 }
 0x4ce   :  { %8805 = vst [vmem:[%s15559_s5 + $0x60] sm:$0xff] %v8693_v10  ;;  %v8694_v38 = vadd.f32 %v14801_v2, %v7478_v5  ;;  %v6498_v62 = vpop.f32.mrb[100].mxu0 }
 0x4cf   :  { %8808 = vst [vmem:[%s15559_s5 + $0x78] sm:$0xff] %v8696_v44  ;;  %v6500_v27 = vpop.f32.mrb[101].mxu0 }
 0x4d0   :  { %8806 = vst [vmem:[%s15559_s5 + $0x68] sm:$0xff] %v8694_v38  ;;  %v9828_v9 = vpop.f32.mrb[76].mxu1  ;;  %v15050_v54 = vadd.f32 %v6500_v27, %v6478_v39  ;;  %v6502_v56 = vpop.f32.mrb[102].mxu0 }
 0x4d1   :  { %v7499_v55 = vadd.f32 %v9828_v9, %v14065_v47  ;;  %v7490_v22 = vpop.f32.mrb[77].mxu1  ;;  %v6504_v32 = vpop.f32.mrb[103].mxu0 }
 0x4d2   :  { %v7491_v2 = vadd.f32 %v7490_v22, %v14057_v4  ;;  %v9829_v1 = vpop.f32.mrb[78].mxu1  ;;  %v15054_v15 = vadd.f32 %v6504_v32, %v6482_v46  ;;  %v16707_v22 = vld [vmem:[#allocation136_spill] sm:$0xff] }
 0x4d3   :  { %v8699_v60 = vadd.f32 %v14850_v11, %v7499_v55  ;;  %v7502_v63 = vadd.f32 %v9829_v1, %v14067_v35  ;;  %v7493_v13 = vpop.f32.mrb[79].mxu1 }
 0x4d4   :  { %v8697_v59 = vadd.f32 %v14832_v7, %v7491_v2  ;;  %v7494_v39 = vadd.f32 %v7493_v13, %v14059_v3  ;;  %v16709_v2 = vld [vmem:[#allocation37_spill] sm:$0xff]  ;;  %v16710_v13 = vld [vmem:[#allocation139_spill] sm:$0xff] }
 0x4d5   :  { %8811 = vst [vmem:[%s15559_s5 + $0x90] sm:$0xff] %v8699_v60  ;;  %v8700_v47 = vadd.f32 %v14854_v50, %v7502_v63 }
 0x4d6   :  { %8809 = vst [vmem:[%s15559_s5 + $0x80] sm:$0xff] %v8697_v59  ;;  %v8698_v4 = vadd.f32 %v14836_v58, %v7494_v39  ;;  %v6508_v11 = vpop.f32.mrb[104].mxu0 }
 0x4d7   :  { %8812 = vst [vmem:[%s15559_s5 + $0x98] sm:$0xff] %v8700_v47  ;;  %v6510_v35 = vpop.f32.mrb[105].mxu0 }
 0x4d8   :  { %8810 = vst [vmem:[%s15559_s5 + $0x88] sm:$0xff] %v8698_v4  ;;  %v9832_v3 = vpop.f32.mrb[80].mxu1  ;;  %v15074_v7 = vadd.f32 %v6510_v35, %v6488_v33  ;;  %v6512_v50 = vpop.f32.mrb[106].mxu0  ;;  %v16711_v4 = vld [vmem:[#allocation109_spill] sm:$0xff] }
 0x4d9   :  { %v7515_v46 = vadd.f32 %v9832_v3, %v14083_v43  ;;  %v7506_v19 = vpop.f32.mrb[81].mxu1  ;;  %v6514_v30 = vpop.f32.mrb[107].mxu0  ;;  %v16712_v3 = vld [vmem:[#allocation40_spill] sm:$0xff] }
 0x4da   :  { %v7507_v58 = vadd.f32 %v7506_v19, %v14075_v14  ;;  %v9833_v6 = vpop.f32.mrb[82].mxu1  ;;  %v15078_v0 = vadd.f32 %v6514_v30, %v6492_v12  ;;  %v16713_v30 = vld [vmem:[#allocation107_spill] sm:$0xff] }
 0x4db   :  { %v8703_v18 = vadd.f32 %v14880_v8, %v7515_v46  ;;  %v7518_v29 = vadd.f32 %v9833_v6, %v16705_v24  ;;  %v7509_v26 = vpop.f32.mrb[83].mxu1  ;;  %v16714_v6 = vld [vmem:[#allocation34_spill] sm:$0xff] }
 0x4dc   :  { %v8701_v37 = vadd.f32 %v14869_v21, %v7507_v58  ;;  %v7510_v33 = vadd.f32 %v7509_v26, %v16706_v34 }
 0x4dd   :  { %8815 = vst [vmem:[%s15559_s5 + $0xb0] sm:$0xff] %v8703_v18  ;;  %v8704_v43 = vadd.f32 %v14884_v51, %v7518_v29  ;;  %v16715_v18 = vld [vmem:[#allocation112_spill] sm:$0xff] }
 0x4de   :  { %8813 = vst [vmem:[%s15559_s5 + $0xa0] sm:$0xff] %v8701_v37  ;;  %v8702_v14 = vadd.f32 %v14873_v23, %v7510_v33  ;;  %v6518_v8 = vpop.f32.mrb[108].mxu0 }
 0x4df   :  { %8816 = vst [vmem:[%s15559_s5 + $0xb8] sm:$0xff] %v8704_v43  ;;  %v6520_v21 = vpop.f32.mrb[109].mxu0 }
 0x4e0   :  { %8814 = vst [vmem:[%s15559_s5 + $0xa8] sm:$0xff] %v8702_v14  ;;  %v9836_v12 = vpop.f32.mrb[84].mxu1  ;;  %v15098_v52 = vadd.f32 %v6520_v21, %v6498_v62  ;;  %v6522_v51 = vpop.f32.mrb[110].mxu0  ;;  %v16717_v14 = vld [vmem:[#allocation45_spill] sm:$0xff] }
 0x4e1   :  { %v7531_v28 = vadd.f32 %v9836_v12, %v14119_v25  ;;  %v7522_v45 = vpop.f32.mrb[85].mxu1  ;;  %v6524_v10 = vpop.f32.mrb[111].mxu0 }
 0x4e2   :  { %v7523_v23 = vadd.f32 %v7522_v45, %v14104_v41  ;;  %v9837_v5 = vpop.f32.mrb[86].mxu1  ;;  %v15102_v44 = vadd.f32 %v6524_v10, %v6502_v56  ;;  %v16708_v41 = vld [vmem:[#allocation196_spill] sm:$0xff]  ;;  %v16718_v45 = vld [vmem:[#allocation30_spill] sm:$0xff] }
 0x4e3   :  { %v8707_v38 = vadd.f32 %v14903_v31, %v7531_v28  ;;  %v7534_v27 = vadd.f32 %v9837_v5, %v14123_v49  ;;  %v7525_v9 = vpop.f32.mrb[87].mxu1 }
 0x4e4   :  { %v8705_v55 = vadd.f32 %v14891_v57, %v7523_v23  ;;  %v7526_v62 = vadd.f32 %v7525_v9, %v16707_v22  ;;  %v16720_v9 = vld [vmem:[#allocation46_spill] sm:$0xff] }
 0x4e5   :  { %8819 = vst [vmem:[%s15559_s5 + $0xd0] sm:$0xff] %v8707_v38  ;;  %v8708_v25 = vadd.f32 %v14907_v16, %v7534_v27  ;;  %v16719_v38 = vld [vmem:[#allocation203_spill] sm:$0xff] }
 0x4e6   :  { %8817 = vst [vmem:[%s15559_s5 + $0xc0] sm:$0xff] %v8705_v55  ;;  %v8706_v56 = vadd.f32 %v16708_v41, %v7526_v62  ;;  %v6528_v31 = vpop.f32.mrb[112].mxu0  ;;  %v16721_v62 = vld [vmem:[#allocation113_spill] sm:$0xff]  ;;  %v16722_v41 = vld [vmem:[#allocation39_spill] sm:$0xff] }
 0x4e7   :  { %8820 = vst [vmem:[%s15559_s5 + $0xd8] sm:$0xff] %v8708_v25  ;;  %v6530_v49 = vpop.f32.mrb[113].mxu0 }
 0x4e8   :  { %8818 = vst [vmem:[%s15559_s5 + $0xc8] sm:$0xff] %v8706_v56  ;;  %v9840_v57 = vpop.f32.mrb[88].mxu1  ;;  %v15122_v32 = vadd.f32 %v6530_v49, %v6508_v11  ;;  %v6532_v16 = vpop.f32.mrb[114].mxu0  ;;  %v16723_v56 = vld [vmem:[#allocation205_spill] sm:$0xff] }
 0x4e9   :  { %v7547_v1 = vadd.f32 %v9840_v57, %v16709_v2  ;;  %v7538_v60 = vpop.f32.mrb[89].mxu1  ;;  %v6534_v63 = vpop.f32.mrb[115].mxu0 }
 0x4ea   :  { %v7539_v59 = vadd.f32 %v7538_v60, %v16710_v13  ;;  %v9841_v39 = vpop.f32.mrb[90].mxu1  ;;  %v15126_v47 = vadd.f32 %v6534_v63, %v6512_v50  ;;  %v16716_v50 = vld [vmem:[#allocation111_spill] sm:$0xff] }
 0x4eb   :  { %v8711_v35 = vadd.f32 %v16711_v4, %v7547_v1  ;;  %v7550_v46 = vadd.f32 %v9841_v39, %v16712_v3  ;;  %v7541_v19 = vpop.f32.mrb[91].mxu1  ;;  %v16726_v3 = vld [vmem:[#allocation49_spill] sm:$0xff] }
 0x4ec   :  { %v8709_v58 = vadd.f32 %v16713_v30, %v7539_v59  ;;  %v7542_v11 = vadd.f32 %v7541_v19, %v16714_v6  ;;  %v16725_v59 = vld [vmem:[#allocation44_spill] sm:$0xff]  ;;  %v16727_v6 = vld [vmem:[#allocation51_spill] sm:$0xff] }
 0x4ed   :  { %8823 = vst [vmem:[%s15559_s5 + $0xf0] sm:$0xff] %v8711_v35  ;;  %v8712_v24 = vadd.f32 %v16715_v18, %v7550_v46 }
 0x4ee   :  { %8821 = vst [vmem:[%s15559_s5 + $0xe0] sm:$0xff] %v8709_v58  ;;  %v8710_v29 = vadd.f32 %v16716_v50, %v7542_v11  ;;  %v6538_v26 = vpop.f32.mrb[116].mxu0 }
 0x4ef   :  { %8824 = vst [vmem:[%s15559_s5 + $0xf8] sm:$0xff] %v8712_v24  ;;  %v6540_v37 = vpop.f32.mrb[117].mxu0  ;;  %v16728_v24 = vld [vmem:[#allocation206_spill] sm:$0xff] }
 0x4f0   :  { %8822 = vst [vmem:[%s15559_s5 + $0xe8] sm:$0xff] %v8710_v29  ;;  %v9844_v34 = vpop.f32.mrb[92].mxu1  ;;  %v15146_v33 = vadd.f32 %v6540_v37, %v6518_v8  ;;  %v6542_v43 = vpop.f32.mrb[118].mxu0  ;;  %v16729_v29 = vld [vmem:[#allocation52_spill] sm:$0xff] }
 0x4f1   :  { %v7563_v21 = vadd.f32 %v9844_v34, %v16717_v14  ;;  %v7554_v12 = vpop.f32.mrb[93].mxu1  ;;  %v6544_v28 = vpop.f32.mrb[119].mxu0 }
 0x4f2   :  { %v7555_v10 = vadd.f32 %v7554_v12, %v16718_v45  ;;  %v9845_v23 = vpop.f32.mrb[94].mxu1  ;;  %v15150_v5 = vadd.f32 %v6544_v28, %v6522_v51  ;;  %v16724_v51 = vld [vmem:[#allocation202_spill] sm:$0xff]  ;;  %v16731_v28 = vld [vmem:[#allocation55_spill] sm:$0xff] }
 0x4f3   :  { %v8715_v27 = vadd.f32 %v16719_v38, %v7563_v21  ;;  %v7566_v55 = vadd.f32 %v9845_v23, %v16720_v9  ;;  %v7557_v22 = vpop.f32.mrb[95].mxu1  ;;  %v16732_v38 = vld [vmem:[#allocation57_spill] sm:$0xff] }
 0x4f4   :  { %v8713_v25 = vadd.f32 %v16721_v62, %v7555_v10  ;;  %v7558_v8 = vadd.f32 %v7557_v22, %v16722_v41  ;;  %v16733_v62 = vld [vmem:[#allocation67_spill] sm:$0xff] }
 0x4f5   :  { %8827 = vst [vmem:[%s15559_s5 + $0x110] sm:$0xff] %v8715_v27  ;;  %v8716_v49 = vadd.f32 %v16723_v56, %v7566_v55  ;;  %v16734_v56 = vld [vmem:[#allocation61_spill] sm:$0xff] }
 0x4f6   :  { %8825 = vst [vmem:[%s15559_s5 + $0x100] sm:$0xff] %v8713_v25  ;;  %v8714_v57 = vadd.f32 %v16724_v51, %v7558_v8  ;;  %v6548_v2 = vpop.f32.mrb[120].mxu0 }
 0x4f7   :  { %8828 = vst [vmem:[%s15559_s5 + $0x118] sm:$0xff] %v8716_v49  ;;  %v6550_v1 = vpop.f32.mrb[121].mxu0 }
 0x4f8   :  { %8826 = vst [vmem:[%s15559_s5 + $0x108] sm:$0xff] %v8714_v57  ;;  %v9848_v60 = vpop.f32.mrb[96].mxu1  ;;  %v15170_v63 = vadd.f32 %v6550_v1, %v6528_v31  ;;  %v6552_v13 = vpop.f32.mrb[122].mxu0  ;;  %v16735_v1 = vld [vmem:[#allocation79_spill] sm:$0xff] }
 0x4f9   :  { %v7579_v39 = vadd.f32 %v9848_v60, %v16725_v59  ;;  %v7570_v4 = vpop.f32.mrb[97].mxu1  ;;  %v6554_v35 = vpop.f32.mrb[123].mxu0 }
 0x4fa   :  { %v7571_v46 = vadd.f32 %v7570_v4, %v16726_v3  ;;  %v9849_v19 = vpop.f32.mrb[98].mxu1  ;;  %v15174_v30 = vadd.f32 %v6554_v35, %v6532_v16  ;;  %v16730_v16 = vld [vmem:[#allocation117_spill] sm:$0xff] }
 0x4fb   :  { %v8719_v58 = vadd.f32 %v14953_v42, %v7579_v39  ;;  %v7582_v11 = vadd.f32 %v9849_v19, %v16727_v6  ;;  %v7573_v18 = vpop.f32.mrb[99].mxu1  ;;  %v16736_v4 = vld [vmem:[#allocation69_spill] sm:$0xff] }
 0x4fc   :  { %v8717_v50 = vadd.f32 %v16728_v24, %v7571_v46  ;;  %v7574_v31 = vadd.f32 %v7573_v18, %v16729_v29  ;;  %v16737_v19 = vld [vmem:[#allocation81_spill] sm:$0xff]  ;;  %v16738_v18 = vld [vmem:[#allocation72_spill] sm:$0xff] }
 0x4fd   :  { %8831 = vst [vmem:[%s15559_s5 + $0x130] sm:$0xff] %v8719_v58  ;;  %v8720_v37 = vadd.f32 %v14957_v36, %v7582_v11 }
 0x4fe   :  { %8829 = vst [vmem:[%s15559_s5 + $0x120] sm:$0xff] %v8717_v50  ;;  %v8718_v34 = vadd.f32 %v16730_v16, %v7574_v31  ;;  %v6558_v42 = vpop.f32.mrb[124].mxu0  ;;  %v16739_v31 = vld [vmem:[#allocation9_spill] sm:$0xff] }
 0x4ff   :  { %8832 = vst [vmem:[%s15559_s5 + $0x138] sm:$0xff] %v8720_v37  ;;  %v6560_v14 = vpop.f32.mrb[125].mxu0 }
 0x500   :  { %8830 = vst [vmem:[%s15559_s5 + $0x128] sm:$0xff] %v8718_v34  ;;  %v9852_v21 = vpop.f32.mrb[100].mxu1  ;;  %v15194_v12 = vadd.f32 %v6560_v14, %v6538_v26  ;;  %v6562_v36 = vpop.f32.mrb[126].mxu0  ;;  %v16740_v14 = vld [vmem:[#allocation85_spill] sm:$0xff] }
 0x501   :  { %v7595_v45 = vadd.f32 %v9852_v21, %v16731_v28  ;;  %v7586_v10 = vpop.f32.mrb[101].mxu1  ;;  %v6564_v23 = vpop.f32.mrb[127].mxu0 }
 0x502   :  { %v7587_v27 = vadd.f32 %v7586_v10, %v16732_v38  ;;  %v9853_v9 = vpop.f32.mrb[102].mxu1  ;;  %v15198_v55 = vadd.f32 %v6564_v23, %v6542_v43  ;;  %v16741_v10 = vld [vmem:[#allocation16_spill] sm:$0xff] }
 0x503   :  { %v8723_v22 = vadd.f32 %v15002_v53, %v7595_v45  ;;  %v7598_v25 = vadd.f32 %v9853_v9, %v16733_v62  ;;  %v7589_v41 = vpop.f32.mrb[103].mxu1  ;;  %v16742_v9 = vld [vmem:[#allocation92_spill] sm:$0xff] }
 0x504   :  { %v8721_v8 = vadd.f32 %v14978_v61, %v7587_v27  ;;  %v7590_v26 = vadd.f32 %v7589_v41, %v16734_v56  ;;  %v16743_v41 = vld [vmem:[#allocation25_spill] sm:$0xff] }
 0x505   :  { %8835 = vst [vmem:[%s15559_s5 + $0x150] sm:$0xff] %v8723_v22  ;;  %v8724_v49 = vadd.f32 %v15006_v20, %v7598_v25 }
 0x506   :  { %8833 = vst [vmem:[%s15559_s5 + $0x140] sm:$0xff] %v8721_v8  ;;  %v8722_v43 = vadd.f32 %v14982_v40, %v7590_v26  ;;  %v6568_v53 = vpop.f32.mrb[128].mxu0 }
 0x507   :  { %8836 = vst [vmem:[%s15559_s5 + $0x158] sm:$0xff] %v8724_v49  ;;  %v6570_v61 = vpop.f32.mrb[129].mxu0  ;;  %v16744_v49 = vld [vmem:[#allocation15_spill] sm:$0xff] }
 0x508   :  { %8834 = vst [vmem:[%s15559_s5 + $0x148] sm:$0xff] %v8722_v43  ;;  %v9856_v51 = vpop.f32.mrb[104].mxu1  ;;  %v15218_v57 = vadd.f32 %v6570_v61, %v6548_v2  ;;  %v6572_v20 = vpop.f32.mrb[130].mxu0 }
 0x509   :  { %v7611_v60 = vadd.f32 %v9856_v51, %v16735_v1  ;;  %v7602_v59 = vpop.f32.mrb[105].mxu1  ;;  %v6574_v39 = vpop.f32.mrb[131].mxu0  ;;  %v16745_v1 = vld [vmem:[#allocation31_spill] sm:$0xff] }
 0x50a   :  { %v7603_v40 = vadd.f32 %v7602_v59, %v16736_v4  ;;  %v9857_v35 = vpop.f32.mrb[106].mxu1  ;;  %v15222_v3 = vadd.f32 %v6574_v39, %v6552_v13  ;;  %v16746_v4 = vld [vmem:[#allocation18_spill] sm:$0xff] }
 0x50b   :  { %v8727_v46 = vadd.f32 %v15050_v54, %v7611_v60  ;;  %v7614_v58 = vadd.f32 %v9857_v35, %v16737_v19  ;;  %v7605_v6 = vpop.f32.mrb[107].mxu1 }
 0x50c   :  { %v8725_v11 = vadd.f32 %v15026_v17, %v7603_v40  ;;  %v7606_v2 = vadd.f32 %v7605_v6, %v16738_v18  ;;  %v16748_v18 = vld [vmem:[#allocation123_spill] sm:$0xff] }
 0x50d   :  { %8839 = vst [vmem:[%s15559_s5 + $0x170] sm:$0xff] %v8727_v46  ;;  %v8728_v24 = vadd.f32 %v15054_v15, %v7614_v58 }
 0x50e   :  { %8837 = vst [vmem:[%s15559_s5 + $0x160] sm:$0xff] %v8725_v11  ;;  %v8726_v13 = vadd.f32 %v15030_v48, %v7606_v2  ;;  %v6578_v54 = vpop.f32.mrb[132].mxu0 }
 0x50f   :  { %8840 = vst [vmem:[%s15559_s5 + $0x178] sm:$0xff] %v8728_v24  ;;  %v6580_v17 = vpop.f32.mrb[133].mxu0 }
 0x510   :  { %8838 = vst [vmem:[%s15559_s5 + $0x168] sm:$0xff] %v8726_v13  ;;  %v9860_v50 = vpop.f32.mrb[108].mxu1  ;;  %v15242_v29 = vadd.f32 %v6580_v17, %v6558_v42  ;;  %v6582_v15 = vpop.f32.mrb[134].mxu0  ;;  %v16749_v17 = vld [vmem:[#allocation48_spill] sm:$0xff] }
 0x511   :  { %v7627_v37 = vadd.f32 %v9860_v50, %v16739_v31  ;;  %v7618_v16 = vpop.f32.mrb[109].mxu1  ;;  %v6584_v34 = vpop.f32.mrb[135].mxu0 }
 0x512   :  { %v7619_v48 = vadd.f32 %v7618_v16, %v16740_v14  ;;  %v9861_v21 = vpop.f32.mrb[110].mxu1  ;;  %v15246_v28 = vadd.f32 %v6584_v34, %v6562_v36  ;;  %v16750_v16 = vld [vmem:[#allocation36_spill] sm:$0xff] }
 0x513   :  { %v8731_v45 = vadd.f32 %v15098_v52, %v7627_v37  ;;  %v7630_v23 = vadd.f32 %v9861_v21, %v16741_v10  ;;  %v7621_v38 = vpop.f32.mrb[111].mxu1 }
 0x514   :  { %v8729_v27 = vadd.f32 %v15074_v7, %v7619_v48  ;;  %v7622_v42 = vadd.f32 %v7621_v38, %v16742_v9  ;;  %v16752_v38 = vld [vmem:[#allocation54_spill] sm:$0xff] }
 0x515   :  { %8843 = vst [vmem:[%s15559_s5 + $0x190] sm:$0xff] %v8731_v45  ;;  %v8732_v22 = vadd.f32 %v15102_v44, %v7630_v23 }
 0x516   :  { %8841 = vst [vmem:[%s15559_s5 + $0x180] sm:$0xff] %v8729_v27  ;;  %v8730_v36 = vadd.f32 %v15078_v0, %v7622_v42  ;;  %v6588_v52 = vpop.f32.mrb[136].mxu0 }
 0x517   :  { %8844 = vst [vmem:[%s15559_s5 + $0x198] sm:$0xff] %v8732_v22  ;;  %v6590_v7 = vpop.f32.mrb[137].mxu0  ;;  %v16753_v22 = vld [vmem:[#allocation151_spill] sm:$0xff] }
 0x518   :  { %8842 = vst [vmem:[%s15559_s5 + $0x188] sm:$0xff] %v8730_v36  ;;  %v9864_v62 = vpop.f32.mrb[112].mxu1  ;;  %v15266_v25 = vadd.f32 %v6590_v7, %v6568_v53  ;;  %v6592_v44 = vpop.f32.mrb[138].mxu0 }
 0x519   :  { %v7643_v8 = vadd.f32 %v9864_v62, %v16743_v41  ;;  %v7634_v56 = vpop.f32.mrb[113].mxu1  ;;  %v6594_v26 = vpop.f32.mrb[139].mxu0  ;;  %v16754_v41 = vld [vmem:[#allocation60_spill] sm:$0xff] }
 0x51a   :  { %v7635_v0 = vadd.f32 %v7634_v56, %v16744_v49  ;;  %v9865_v43 = vpop.f32.mrb[114].mxu1  ;;  %v15270_v61 = vadd.f32 %v6594_v26, %v6572_v20 }
 0x51b   :  { %v8735_v51 = vadd.f32 %v15146_v33, %v7643_v8  ;;  %v7646_v60 = vadd.f32 %v9865_v43, %v16745_v1  ;;  %v7637_v59 = vpop.f32.mrb[115].mxu1  ;;  %v16756_v1 = vld [vmem:[#allocation152_spill] sm:$0xff] }
 0x51c   :  { %v8733_v39 = vadd.f32 %v15122_v32, %v7635_v0  ;;  %v7638_v53 = vadd.f32 %v7637_v59, %v16746_v4  ;;  %v16757_v4 = vld [vmem:[#allocation158_spill] sm:$0xff] }
 0x51d   :  { %8847 = vst [vmem:[%s15559_s5 + $0x1b0] sm:$0xff] %v8735_v51  ;;  %v8736_v40 = vadd.f32 %v15150_v5, %v7646_v60  ;;  %v16747_v5 = vld [vmem:[#allocation43_spill] sm:$0xff] }
 0x51e   :  { %8845 = vst [vmem:[%s15559_s5 + $0x1a0] sm:$0xff] %v8733_v39  ;;  %v8734_v20 = vadd.f32 %v15126_v47, %v7638_v53  ;;  %v6598_v33 = vpop.f32.mrb[140].mxu0 }
 0x51f   :  { %8848 = vst [vmem:[%s15559_s5 + $0x1b8] sm:$0xff] %v8736_v40  ;;  %v6600_v32 = vpop.f32.mrb[141].mxu0 }
 0x520   :  { %8846 = vst [vmem:[%s15559_s5 + $0x1a8] sm:$0xff] %v8734_v20  ;;  %v9868_v35 = vpop.f32.mrb[116].mxu1  ;;  %v8523_v46 = vadd.f32 %v6600_v32, %v6578_v54  ;;  %v6602_v19 = vpop.f32.mrb[142].mxu0  ;;  %v16758_v32 = vld [vmem:[#allocation156_spill] sm:$0xff] }
 0x521   :  { %v7659_v58 = vadd.f32 %v9868_v35, %v16747_v5  ;;  %v7650_v6 = vpop.f32.mrb[117].mxu1  ;;  %v6604_v11 = vpop.f32.mrb[143].mxu0 }
 0x522   :  { %v7651_v2 = vadd.f32 %v7650_v6, %v16748_v18  ;;  %v9869_v47 = vpop.f32.mrb[118].mxu1  ;;  %v8524_v24 = vadd.f32 %v6604_v11, %v6582_v15  ;;  %v16759_v11 = vld [vmem:[#allocation164_spill] sm:$0xff] }
 0x523   :  { %v8739_v13 = vadd.f32 %v15194_v12, %v7659_v58  ;;  %v7662_v50 = vadd.f32 %v9869_v47, %v16749_v17  ;;  %v7653_v31 = vpop.f32.mrb[119].mxu1 }
 0x524   :  { %v8737_v37 = vadd.f32 %v15170_v63, %v7651_v2  ;;  %v7654_v34 = vadd.f32 %v7653_v31, %v16750_v16  ;;  %v16761_v31 = vld [vmem:[#allocation165_spill] sm:$0xff] }
 0x525   :  { %8851 = vst [vmem:[%s15559_s5 + $0x1d0] sm:$0xff] %v8739_v13  ;;  %v8740_v54 = vadd.f32 %v15198_v55, %v7662_v50  ;;  %v16751_v55 = vld [vmem:[#allocation150_spill] sm:$0xff] }
 0x526   :  { %8849 = vst [vmem:[%s15559_s5 + $0x1c0] sm:$0xff] %v8737_v37  ;;  %v8738_v15 = vadd.f32 %v15174_v30, %v7654_v34  ;;  %v6608_v12 = vpop.f32.mrb[144].mxu0 }
 0x527   :  { %8852 = vst [vmem:[%s15559_s5 + $0x1d8] sm:$0xff] %v8740_v54  ;;  %v6610_v63 = vpop.f32.mrb[145].mxu0  ;;  %v16762_v54 = vld [vmem:[#allocation163_spill] sm:$0xff] }
 0x528   :  { %8850 = vst [vmem:[%s15559_s5 + $0x1c8] sm:$0xff] %v8738_v15  ;;  %v9872_v14 = vpop.f32.mrb[120].mxu1  ;;  %v8525_v48 = vadd.f32 %v6610_v63, %v6588_v52  ;;  %v6612_v21 = vpop.f32.mrb[146].mxu0 }
 0x529   :  { %v7675_v45 = vadd.f32 %v9872_v14, %v16751_v55  ;;  %v7666_v10 = vpop.f32.mrb[121].mxu1  ;;  %v6614_v23 = vpop.f32.mrb[147].mxu0 }
 0x52a   :  { %v7667_v27 = vadd.f32 %v7666_v10, %v16752_v38  ;;  %v9873_v30 = vpop.f32.mrb[122].mxu1  ;;  %v8526_v9 = vadd.f32 %v6614_v23, %v6592_v44  ;;  %v16763_v10 = vld [vmem:[#allocation84_spill] sm:$0xff] }
 0x52b   :  { %v8743_v42 = vadd.f32 %v15242_v29, %v7675_v45  ;;  %v7678_v36 = vadd.f32 %v9873_v30, %v16753_v22  ;;  %v7669_v7 = vpop.f32.mrb[123].mxu1  ;;  %v16764_v30 = vld [vmem:[#allocation168_spill] sm:$0xff] }
 0x52c   :  { %v8741_v62 = vadd.f32 %v15218_v57, %v7667_v27  ;;  %v7670_v8 = vadd.f32 %v7669_v7, %v16754_v41  ;;  %v16765_v7 = vld [vmem:[#allocation90_spill] sm:$0xff] }
 0x52d   :  { %8855 = vst [vmem:[%s15559_s5 + $0x1f0] sm:$0xff] %v8743_v42  ;;  %v8744_v52 = vadd.f32 %v15246_v28, %v7678_v36  ;;  %v16755_v28 = vld [vmem:[#allocation73_spill] sm:$0xff] }
 0x52e   :  { %8853 = vst [vmem:[%s15559_s5 + $0x1e0] sm:$0xff] %v8741_v62  ;;  %v8742_v44 = vadd.f32 %v15222_v3, %v7670_v8  ;;  %v6618_v29 = vpop.f32.mrb[148].mxu0 }
 0x52f   :  { %8856 = vst [vmem:[%s15559_s5 + $0x1f8] sm:$0xff] %v8744_v52  ;;  %v6620_v57 = vpop.f32.mrb[149].mxu0  ;;  %v16766_v52 = vld [vmem:[#allocation169_spill] sm:$0xff] }
 0x530   :  { %8854 = vst [vmem:[%s15559_s5 + $0x1e8] sm:$0xff] %v8742_v44  ;;  %v9876_v56 = vpop.f32.mrb[124].mxu1  ;;  %v8527_v26 = vadd.f32 %v6620_v57, %v6598_v33  ;;  %v6622_v49 = vpop.f32.mrb[150].mxu0 }
 0x531   :  { %v7691_v0 = vadd.f32 %v9876_v56, %v16755_v28  ;;  %v7682_v43 = vpop.f32.mrb[125].mxu1  ;;  %v6624_v51 = vpop.f32.mrb[151].mxu0 }
 0x532   :  { %v7683_v60 = vadd.f32 %v7682_v43, %v16756_v1  ;;  %v9877_v3 = vpop.f32.mrb[126].mxu1  ;;  %v8528_v59 = vadd.f32 %v6624_v51, %v6602_v19  ;;  %v16767_v43 = vld [vmem:[#allocation88_spill] sm:$0xff] }
 0x533   :  { %v8747_v39 = vadd.f32 %v8523_v46, %v7691_v0  ;;  %v7694_v53 = vadd.f32 %v9877_v3, %v16757_v4  ;;  %v7685_v40 = vpop.f32.mrb[127].mxu1  ;;  %v16768_v3 = vld [vmem:[#allocation170_spill] sm:$0xff] }
 0x534   :  { %v8745_v20 = vadd.f32 %v15266_v25, %v7683_v60  ;;  %v7686_v35 = vadd.f32 %v7685_v40, %v16758_v32 }
 0x535   :  { %8859 = vst [vmem:[%s15559_s5 + $0x210] sm:$0xff] %v8747_v39  ;;  %v8748_v33 = vadd.f32 %v8524_v24, %v7694_v53  ;;  %v16760_v24 = vld [vmem:[#allocation162_spill] sm:$0xff]  ;;  %v16769_v53 = vld [vmem:[#allocation91_spill] sm:$0xff] }
 0x536   :  { %8857 = vst [vmem:[%s15559_s5 + $0x200] sm:$0xff] %v8745_v20  ;;  %v8746_v5 = vadd.f32 %v15270_v61, %v7686_v35  ;;  %v6628_v19 = vpop.f32.mrb[152].mxu0  ;;  %v16770_v35 = vld [vmem:[#allocation171_spill] sm:$0xff] }
 0x537   :  { %8860 = vst [vmem:[%s15559_s5 + $0x218] sm:$0xff] %v8748_v33  ;;  %v6630_v46 = vpop.f32.mrb[153].mxu0 }
 0x538   :  { %8858 = vst [vmem:[%s15559_s5 + $0x208] sm:$0xff] %v8746_v5  ;;  %v9880_v25 = vpop.f32.mrb[128].mxu1  ;;  %v8529_v58 = vadd.f32 %v6630_v46, %v6608_v12  ;;  %v6632_v6 = vpop.f32.mrb[154].mxu0  ;;  %v16771_v46 = vld [vmem:[#allocation58_spill] sm:$0xff] }
 0x539   :  { %v7707_v18 = vadd.f32 %v9880_v25, %v16759_v11  ;;  %v7698_v2 = vpop.f32.mrb[129].mxu1  ;;  %v6634_v47 = vpop.f32.mrb[155].mxu0 }
 0x53a   :  { %v7699_v13 = vadd.f32 %v7698_v2, %v16760_v24  ;;  %v9881_v61 = vpop.f32.mrb[130].mxu1  ;;  %v8530_v17 = vadd.f32 %v6634_v47, %v6612_v21  ;;  %v16772_v2 = vld [vmem:[#allocation175_spill] sm:$0xff] }
 0x53b   :  { %v8751_v50 = vadd.f32 %v8527_v26, %v7707_v18  ;;  %v7710_v37 = vadd.f32 %v9881_v61, %v16761_v31  ;;  %v7701_v16 = vpop.f32.mrb[131].mxu1  ;;  %v16774_v31 = vld [vmem:[#allocation174_spill] sm:$0xff] }
 0x53c   :  { %v8749_v34 = vadd.f32 %v8525_v48, %v7699_v13  ;;  %v7702_v15 = vadd.f32 %v7701_v16, %v16762_v54  ;;  %v16773_v13 = vld [vmem:[#allocation63_spill] sm:$0xff] }
 0x53d   :  { %8863 = vst [vmem:[%s15559_s5 + $0x230] sm:$0xff] %v8751_v50  ;;  %v8752_v12 = vadd.f32 %v8528_v59, %v7710_v37 }
 0x53e   :  { %8861 = vst [vmem:[%s15559_s5 + $0x220] sm:$0xff] %v8749_v34  ;;  %v8750_v63 = vadd.f32 %v8526_v9, %v7702_v15  ;;  %v6638_v14 = vpop.f32.mrb[156].mxu0  ;;  %v16775_v15 = vld [vmem:[#allocation176_spill] sm:$0xff] }
 0x53f   :  { %8864 = vst [vmem:[%s15559_s5 + $0x238] sm:$0xff] %v8752_v12  ;;  %v6640_v21 = vpop.f32.mrb[157].mxu0 }
 0x540   :  { %8862 = vst [vmem:[%s15559_s5 + $0x228] sm:$0xff] %v8750_v63  ;;  %v9884_v48 = vpop.f32.mrb[132].mxu1  ;;  %v8531_v55 = vadd.f32 %v6640_v21, %v6618_v29  ;;  %v6642_v45 = vpop.f32.mrb[158].mxu0  ;;  %v16776_v21 = vld [vmem:[#allocation95_spill] sm:$0xff] }
 0x541   :  { %v7723_v23 = vadd.f32 %v9884_v48, %v16763_v10  ;;  %v7714_v38 = vpop.f32.mrb[133].mxu1  ;;  %v6644_v27 = vpop.f32.mrb[159].mxu0  ;;  %v16777_v10 = vld [vmem:[#allocation62_spill] sm:$0xff] }
 0x542   :  { %v7715_v42 = vadd.f32 %v7714_v38, %v16764_v30  ;;  %v9885_v9 = vpop.f32.mrb[134].mxu1  ;;  %v8532_v22 = vadd.f32 %v6644_v27, %v6622_v49 }
 0x543   :  { %v8755_v36 = vadd.f32 %v8531_v55, %v7723_v23  ;;  %v7726_v62 = vadd.f32 %v9885_v9, %v16765_v7  ;;  %v7717_v41 = vpop.f32.mrb[135].mxu1  ;;  %v16778_v9 = vld [vmem:[#allocation96_spill] sm:$0xff] }
 0x544   :  { %v8753_v8 = vadd.f32 %v8529_v58, %v7715_v42  ;;  %v7718_v44 = vadd.f32 %v7717_v41, %v16766_v52  ;;  %v16779_v7 = vld [vmem:[#allocation68_spill] sm:$0xff]  ;;  %v16780_v52 = vld [vmem:[#allocation179_spill] sm:$0xff] }
 0x545   :  { %8867 = vst [vmem:[%s15559_s5 + $0x250] sm:$0xff] %v8755_v36  ;;  %v8756_v29 = vadd.f32 %v8532_v22, %v7726_v62 }
 0x546   :  { %8865 = vst [vmem:[%s15559_s5 + $0x240] sm:$0xff] %v8753_v8  ;;  %v8754_v57 = vadd.f32 %v8530_v17, %v7718_v44  ;;  %v6648_v56 = vpop.f32.mrb[160].mxu0 }
 0x547   :  { %8868 = vst [vmem:[%s15559_s5 + $0x258] sm:$0xff] %v8756_v29  ;;  %v6650_v26 = vpop.f32.mrb[161].mxu0 }
 0x548   :  { %8866 = vst [vmem:[%s15559_s5 + $0x248] sm:$0xff] %v8754_v57  ;;  %v9888_v49 = vpop.f32.mrb[136].mxu1  ;;  %v8533_v28 = vadd.f32 %v6650_v26, %v6628_v19  ;;  %v6652_v0 = vpop.f32.mrb[162].mxu0  ;;  %v16781_v26 = vld [vmem:[#allocation75_spill] sm:$0xff] }
 0x549   :  { %v7739_v51 = vadd.f32 %v9888_v49, %v16767_v43  ;;  %v7730_v1 = vpop.f32.mrb[137].mxu1  ;;  %v6654_v60 = vpop.f32.mrb[163].mxu0 }
 0x54a   :  { %v7731_v59 = vadd.f32 %v7730_v1, %v16768_v3  ;;  %v9889_v39 = vpop.f32.mrb[138].mxu1  ;;  %v8534_v4 = vadd.f32 %v6654_v60, %v6632_v6  ;;  %v16783_v60 = vld [vmem:[#allocation180_spill] sm:$0xff] }
 0x54b   :  { %v7742_v40 = vadd.f32 %v9889_v39, %v16769_v53  ;;  %v7733_v20 = vpop.f32.mrb[139].mxu1  ;;  %v16785_v53 = vld [vmem:[#allocation97_spill] sm:$0xff] }
 0x54c   :  { %v8757_v32 = vadd.f32 %v8533_v28, %v7731_v59  ;;  %v7734_v33 = vadd.f32 %v7733_v20, %v16770_v35  ;;  %v16782_v28 = vld [vmem:[#allocation99_spill] sm:$0xff]  ;;  %v16784_v59 = vld [vmem:[#allocation74_spill] sm:$0xff] }
 0x54e   :  { %8869 = vst [vmem:[%s15559_s5 + $0x260] sm:$0xff] %v8757_v32  ;;  %v8758_v5 = vadd.f32 %v8534_v4, %v7734_v33  ;;  %v6658_v19 = vpop.f32.mrb[164].mxu0  ;;  %v16786_v32 = vld [vmem:[#allocation181_spill] sm:$0xff] }
 0x54f   :  { %v8539_v25 = vadd.f32 %v16771_v46, %v6658_v19  ;;  %v6660_v58 = vpop.f32.mrb[165].mxu0  ;;  %v16788_v46 = vld [vmem:[#allocation100_spill] sm:$0xff] }
 0x550   :  { %8870 = vst [vmem:[%s15559_s5 + $0x268] sm:$0xff] %v8758_v5  ;;  %v9892_v6 = vpop.f32.mrb[140].mxu1  ;;  %v8535_v11 = vadd.f32 %v6660_v58, %v6638_v14  ;;  %v6662_v18 = vpop.f32.mrb[166].mxu0  ;;  %v16787_v5 = vld [vmem:[#allocation86_spill] sm:$0xff] }
 0x551   :  { %v7755_v47 = vadd.f32 %v9892_v6, %v16772_v2  ;;  %v7746_v24 = vpop.f32.mrb[141].mxu1  ;;  %v8540_v61 = vadd.f32 %v16773_v13, %v6662_v18  ;;  %v6664_v17 = vpop.f32.mrb[167].mxu0  ;;  %v16789_v6 = vld [vmem:[#allocation80_spill] sm:$0xff]  ;;  %v16790_v18 = vld [vmem:[#allocation182_spill] sm:$0xff]  ;;  %v16792_v13 = vld [vmem:[#allocation87_spill] sm:$0xff] }
 0x552   :  { %v8759_v50 = vadd.f32 %v8535_v11, %v7739_v51  ;;  %v7747_v37 = vadd.f32 %v7746_v24, %v16774_v31  ;;  %v9893_v16 = vpop.f32.mrb[142].mxu1  ;;  %v8536_v34 = vadd.f32 %v6664_v17, %v6642_v45 }
 0x553   :  { %v8763_v54 = vadd.f32 %v8539_v25, %v7755_v47  ;;  %v7758_v12 = vadd.f32 %v9893_v16, %v16775_v15  ;;  %v7749_v63 = vpop.f32.mrb[143].mxu1  ;;  %v16791_v47 = vld [vmem:[#allocation93_spill] sm:$0xff]  ;;  %v16795_v15 = vld [vmem:[#allocation11_spill] sm:$0xff] }
 0x554   :  { %8871 = vst [vmem:[%s15559_s5 + $0x270] sm:$0xff] %v8759_v50  ;;  %v8760_v14 = vadd.f32 %v8536_v34, %v7742_v40  ;;  %v7750_v48 = vadd.f32 %v7749_v63, %v16776_v21  ;;  %v16793_v50 = vld [vmem:[#allocation186_spill] sm:$0xff]  ;;  %v16794_v16 = vld [vmem:[#allocation185_spill] sm:$0xff]  ;;  %v16796_v63 = vld [vmem:[#allocation187_spill] sm:$0xff] }
 0x555   :  { %8875 = vst [vmem:[%s15559_s5 + $0x290] sm:$0xff] %v8763_v54  ;;  %v8764_v55 = vadd.f32 %v8540_v61, %v7758_v12 }
 0x556   :  { %8872 = vst [vmem:[%s15559_s5 + $0x278] sm:$0xff] %v8760_v14  ;;  %v6668_v45 = vpop.f32.mrb[168].mxu0 }
 0x557   :  { %8876 = vst [vmem:[%s15559_s5 + $0x298] sm:$0xff] %v8764_v55  ;;  %v8541_v23 = vadd.f32 %v16777_v10, %v6668_v45  ;;  %v6670_v38 = vpop.f32.mrb[169].mxu0  ;;  %v16798_v45 = vld [vmem:[#allocation102_spill] sm:$0xff] }
 0x558   :  { %v9896_v27 = vpop.f32.mrb[144].mxu1  ;;  %v8537_v30 = vadd.f32 %v6670_v38, %v6648_v56  ;;  %v6672_v42 = vpop.f32.mrb[170].mxu0 }
 0x559   :  { %v7771_v22 = vadd.f32 %v9896_v27, %v16778_v9  ;;  %v7762_v36 = vpop.f32.mrb[145].mxu1  ;;  %v8542_v62 = vadd.f32 %v16779_v7, %v6672_v42  ;;  %v6674_v41 = vpop.f32.mrb[171].mxu0  ;;  %v16800_v27 = vld [vmem:[#allocation12_spill] sm:$0xff]  ;;  %v16801_v9 = vld [vmem:[#allocation103_spill] sm:$0xff]  ;;  %v16802_v7 = vld [vmem:[#allocation190_spill] sm:$0xff] }
 0x55a   :  { %v8761_v8 = vadd.f32 %v8537_v30, %v7747_v37  ;;  %v7763_v44 = vadd.f32 %v7762_v36, %v16780_v52  ;;  %v9897_v29 = vpop.f32.mrb[146].mxu1  ;;  %v8538_v57 = vadd.f32 %v6674_v41, %v6652_v0 }
 0x55b   :  { %v8767_v49 = vadd.f32 %v16781_v26, %v7771_v22  ;;  %v7774_v43 = vadd.f32 %v9897_v29, %v16782_v28  ;;  %v7765_v51 = vpop.f32.mrb[147].mxu1  ;;  %v16805_v26 = vld [vmem:[#allocation29_spill] sm:$0xff]  ;;  %v16806_v28 = vld [vmem:[#allocation191_spill] sm:$0xff] }
 0x55c   :  { %8873 = vst [vmem:[%s15559_s5 + $0x280] sm:$0xff] %v8761_v8  ;;  %v8765_v56 = vadd.f32 %v8541_v23, %v7763_v44  ;;  %v8762_v1 = vadd.f32 %v8538_v57, %v7750_v48  ;;  %v7766_v3 = vadd.f32 %v7765_v51, %v16783_v60  ;;  %v16797_v48 = vld [vmem:[#allocation7_spill] sm:$0xff]  ;;  %v16799_v23 = vld [vmem:[#allocation24_spill] sm:$0xff]  ;;  %v16803_v8 = vld [vmem:[#allocation14_spill] sm:$0xff] }
 0x55d   :  { %8879 = vst [vmem:[%s15559_s5 + $0x2b0] sm:$0xff] %v8767_v49  ;;  %v8768_v39 = vadd.f32 %v16784_v59, %v7774_v43  ;;  %v16804_v44 = vld [vmem:[#allocation105_spill] sm:$0xff]  ;;  %v16809_v59 = vld [vmem:[#allocation104_spill] sm:$0xff] }
 0x55e   :  { %8877 = vst [vmem:[%s15559_s5 + $0x2a0] sm:$0xff] %v8765_v56  ;;  %8874 = vst [vmem:[%s15559_s5 + $0x288] sm:$0xff] %v8762_v1  ;;  %v8766_v0 = vadd.f32 %v8542_v62, %v7766_v3  ;;  %v16807_v51 = vld [vmem:[#allocation41_spill] sm:$0xff]  ;;  %v16808_v1 = vld [vmem:[#allocation35_spill] sm:$0xff] }
 0x55f   :  { %8880 = vst [vmem:[%s15559_s5 + $0x2b8] sm:$0xff] %v8768_v39 }
 0x560   :  { %8878 = vst [vmem:[%s15559_s5 + $0x2a8] sm:$0xff] %v8766_v0  ;;  %v9900_v4 = vpop.f32.mrb[148].mxu1 }
 0x561   :  { %v7787_v40 = vadd.f32 %v9900_v4, %v16785_v53  ;;  %v7778_v20 = vpop.f32.mrb[149].mxu1  ;;  %v16810_v4 = vld [vmem:[#allocation192_spill] sm:$0xff] }
 0x562   :  { %v7779_v35 = vadd.f32 %v7778_v20, %v16786_v32  ;;  %v9901_v33 = vpop.f32.mrb[150].mxu1  ;;  %v16811_v20 = vld [vmem:[#allocation59_spill] sm:$0xff] }
 0x563   :  { %v8771_v19 = vadd.f32 %v16787_v5, %v7787_v40  ;;  %v7790_v25 = vadd.f32 %v9901_v33, %v16788_v46  ;;  %v7781_v58 = vpop.f32.mrb[151].mxu1 }
 0x564   :  { %v8769_v11 = vadd.f32 %v16789_v6, %v7779_v35  ;;  %v7782_v2 = vadd.f32 %v7781_v58, %v16790_v18  ;;  %v16812_v35 = vld [vmem:[#allocation106_spill] sm:$0xff]  ;;  %v16815_v6 = vld [vmem:[#allocation65_spill] sm:$0xff] }
 0x565   :  { %8883 = vst [vmem:[%s15559_s5 + $0x2d0] sm:$0xff] %v8771_v19  ;;  %v8772_v24 = vadd.f32 %v16791_v47, %v7790_v25  ;;  %v16813_v19 = vld [vmem:[#allocation47_spill] sm:$0xff]  ;;  %v16814_v25 = vld [vmem:[#allocation193_spill] sm:$0xff] }
 0x566   :  { %8881 = vst [vmem:[%s15559_s5 + $0x2c0] sm:$0xff] %v8769_v11  ;;  %v8770_v61 = vadd.f32 %v16792_v13, %v7782_v2  ;;  %v16816_v18 = vld [vmem:[#allocation53_spill] sm:$0xff] }
 0x567   :  { %8884 = vst [vmem:[%s15559_s5 + $0x2d8] sm:$0xff] %v8772_v24  ;;  %v16817_v24 = vld [vmem:[#allocation198_spill] sm:$0xff] }
 0x568   :  { %8882 = vst [vmem:[%s15559_s5 + $0x2c8] sm:$0xff] %v8770_v61  ;;  %v9904_v17 = vpop.f32.mrb[152].mxu1 }
 0x569   :  { %v7803_v31 = vadd.f32 %v9904_v17, %v16793_v50  ;;  %v7794_v37 = vpop.f32.mrb[153].mxu1  ;;  %v16818_v17 = vld [vmem:[#allocation110_spill] sm:$0xff] }
 0x56a   :  { %v7795_v34 = vadd.f32 %v7794_v37, %v16794_v16  ;;  %v9905_v54 = vpop.f32.mrb[154].mxu1  ;;  %v16819_v37 = vld [vmem:[#allocation153_spill] sm:$0xff] }
 0x56b   :  { %v8775_v12 = vadd.f32 %v16795_v15, %v7803_v31  ;;  %v7806_v14 = vadd.f32 %v9905_v54, %v16796_v63  ;;  %v7797_v21 = vpop.f32.mrb[155].mxu1 }
 0x56c   :  { %v8773_v55 = vadd.f32 %v16797_v48, %v7795_v34  ;;  %v7798_v10 = vadd.f32 %v7797_v21, %v16798_v45  ;;  %v16820_v34 = vld [vmem:[#allocation108_spill] sm:$0xff]  ;;  %v16823_v48 = vld [vmem:[#allocation157_spill] sm:$0xff]  ;;  %v16824_v45 = vld [vmem:[#allocation71_spill] sm:$0xff] }
 0x56d   :  { %8887 = vst [vmem:[%s15559_s5 + $0x2f0] sm:$0xff] %v8775_v12  ;;  %v8776_v38 = vadd.f32 %v16799_v23, %v7806_v14  ;;  %v16821_v12 = vld [vmem:[#allocation66_spill] sm:$0xff]  ;;  %v16822_v14 = vld [vmem:[#allocation197_spill] sm:$0xff] }
 0x56e   :  { %8885 = vst [vmem:[%s15559_s5 + $0x2e0] sm:$0xff] %v8773_v55  ;;  %v8774_v30 = vadd.f32 %v16800_v27, %v7798_v10 }
 0x56f   :  { %8888 = vst [vmem:[%s15559_s5 + $0x2f8] sm:$0xff] %v8776_v38  ;;  %v16825_v38 = vld [vmem:[#allocation115_spill] sm:$0xff] }
 0x570   :  { %8886 = vst [vmem:[%s15559_s5 + $0x2e8] sm:$0xff] %v8774_v30  ;;  %v9908_v42 = vpop.f32.mrb[156].mxu1 }
 0x571   :  { %v7819_v22 = vadd.f32 %v9908_v42, %v16801_v9  ;;  %v7810_v36 = vpop.f32.mrb[157].mxu1  ;;  %v16826_v42 = vld [vmem:[#allocation114_spill] sm:$0xff] }
 0x572   :  { %v7811_v62 = vadd.f32 %v7810_v36, %v16802_v7  ;;  %v9909_v41 = vpop.f32.mrb[158].mxu1  ;;  %v16827_v36 = vld [vmem:[#allocation78_spill] sm:$0xff] }
 0x573   :  { %v8779_v52 = vadd.f32 %v16803_v8, %v7819_v22  ;;  %v7822_v29 = vadd.f32 %v9909_v41, %v16804_v44  ;;  %v7813_v57 = vpop.f32.mrb[159].mxu1 }
 0x574   :  { %v8777_v49 = vadd.f32 %v16805_v26, %v7811_v62  ;;  %v7814_v43 = vadd.f32 %v7813_v57, %v16806_v28  ;;  %v16828_v62 = vld [vmem:[#allocation116_spill] sm:$0xff]  ;;  %v16831_v26 = vld [vmem:[#allocation83_spill] sm:$0xff] }
 0x575   :  { %8891 = vst [vmem:[%s15559_s5 + $0x310] sm:$0xff] %v8779_v52  ;;  %v8780_v56 = vadd.f32 %v16807_v51, %v7822_v29  ;;  %v16829_v52 = vld [vmem:[#allocation77_spill] sm:$0xff]  ;;  %v16830_v29 = vld [vmem:[#allocation200_spill] sm:$0xff]  ;;  %v16832_v28 = vld [vmem:[#allocation159_spill] sm:$0xff] }
 0x576   :  { %8889 = vst [vmem:[%s15559_s5 + $0x300] sm:$0xff] %v8777_v49  ;;  %v8778_v60 = vadd.f32 %v16808_v1, %v7814_v43 }
 0x577   :  { %8892 = vst [vmem:[%s15559_s5 + $0x318] sm:$0xff] %v8780_v56 }
 0x578   :  { %8890 = vst [vmem:[%s15559_s5 + $0x308] sm:$0xff] %v8778_v60  ;;  %v9912_v3 = vpop.f32.mrb[160].mxu1 }
 0x579   :  { %v7835_v39 = vadd.f32 %v9912_v3, %v16809_v59  ;;  %v7826_v0 = vpop.f32.mrb[161].mxu1 }
 0x57a   :  { %v7827_v53 = vadd.f32 %v7826_v0, %v16810_v4  ;;  %v9913_v40 = vpop.f32.mrb[162].mxu1 }
 0x57b   :  { %v8783_v32 = vadd.f32 %v16811_v20, %v7835_v39  ;;  %v7838_v33 = vadd.f32 %v9913_v40, %v16812_v35  ;;  %v7829_v5 = vpop.f32.mrb[163].mxu1 }
 0x57c   :  { %v8781_v46 = vadd.f32 %v16813_v19, %v7827_v53  ;;  %v7830_v58 = vadd.f32 %v7829_v5, %v16814_v25 }
 0x57d   :  { %8895 = vst [vmem:[%s15559_s5 + $0x330] sm:$0xff] %v8783_v32  ;;  %v8784_v11 = vadd.f32 %v16815_v6, %v7838_v33 }
 0x57e   :  { %8893 = vst [vmem:[%s15559_s5 + $0x320] sm:$0xff] %v8781_v46  ;;  %v8782_v2 = vadd.f32 %v16816_v18, %v7830_v58 }
 0x57f   :  { %8896 = vst [vmem:[%s15559_s5 + $0x338] sm:$0xff] %v8784_v11 }
 0x580   :  { %8894 = vst [vmem:[%s15559_s5 + $0x328] sm:$0xff] %v8782_v2  ;;  %v9916_v47 = vpop.f32.mrb[164].mxu1 }
 0x581   :  { %v7851_v13 = vadd.f32 %v9916_v47, %v16817_v24  ;;  %v7842_v61 = vpop.f32.mrb[165].mxu1 }
 0x582   :  { %v7843_v50 = vadd.f32 %v7842_v61, %v16818_v17  ;;  %v9917_v31 = vpop.f32.mrb[166].mxu1 }
 0x583   :  { %v8787_v16 = vadd.f32 %v16819_v37, %v7851_v13  ;;  %v7854_v54 = vadd.f32 %v9917_v31, %v16820_v34  ;;  %v7845_v15 = vpop.f32.mrb[167].mxu1 }
 0x584   :  { %v8785_v63 = vadd.f32 %v16821_v12, %v7843_v50  ;;  %v7846_v21 = vadd.f32 %v7845_v15, %v16822_v14 }
 0x585   :  { %8899 = vst [vmem:[%s15559_s5 + $0x350] sm:$0xff] %v8787_v16  ;;  %v8788_v55 = vadd.f32 %v16823_v48, %v7854_v54 }
 0x586   :  { %8897 = vst [vmem:[%s15559_s5 + $0x340] sm:$0xff] %v8785_v63  ;;  %v8786_v10 = vadd.f32 %v16824_v45, %v7846_v21 }
 0x587   :  { %8900 = vst [vmem:[%s15559_s5 + $0x358] sm:$0xff] %v8788_v55 }
 0x588   :  { %8898 = vst [vmem:[%s15559_s5 + $0x348] sm:$0xff] %v8786_v10  ;;  %v9920_v23 = vpop.f32.mrb[168].mxu1 }
 0x589   :  { %v7867_v27 = vadd.f32 %v9920_v23, %v16825_v38  ;;  %v7858_v30 = vpop.f32.mrb[169].mxu1 }
 0x58a   :  { %v7859_v9 = vadd.f32 %v7858_v30, %v16826_v42  ;;  %v9921_v22 = vpop.f32.mrb[170].mxu1 }
 0x58b   :  { %v8791_v7 = vadd.f32 %v16827_v36, %v7867_v27  ;;  %v7870_v41 = vadd.f32 %v9921_v22, %v16828_v62  ;;  %v7861_v8 = vpop.f32.mrb[171].mxu1 }
 0x58c   :  { %v8789_v44 = vadd.f32 %v16829_v52, %v7859_v9  ;;  %v7862_v57 = vadd.f32 %v7861_v8, %v16830_v29 }
 0x58d   :  { %8903 = vst [vmem:[%s15559_s5 + $0x370] sm:$0xff] %v8791_v7  ;;  %v8792_v49 = vadd.f32 %v16831_v26, %v7870_v41 }
 0x58e   :  { %8901 = vst [vmem:[%s15559_s5 + $0x360] sm:$0xff] %v8789_v44  ;;  %v8790_v43 = vadd.f32 %v16832_v28, %v7862_v57 }
 0x58f   :  { %8904 = vst [vmem:[%s15559_s5 + $0x378] sm:$0xff] %v8792_v49 }
 0x590   :  { %8902 = vst [vmem:[%s15559_s5 + $0x368] sm:$0xff] %v8790_v43 }

</bundles_post_ra>
